<compile_context>
chip_gen: v5e
topology: v5e:2x2
jax: 0.10.0
libtpu: 0.0.40
codegen_flags: <defaults>
</compile_context>

<pallas_src>
import functools

import numpy as np
import jax
import jax.numpy as jnp
from jax import lax
from jax.experimental import pallas as pl
from jax.experimental.pallas import tpu as pltpu


# ---------------------------------------------------------------------------
# Fused kernel: combine MLP + K stacked LSTMs (state threaded across layers)
# ---------------------------------------------------------------------------
def saba_fused_kernel(xcat_ref, win_ref, bcomb_ref, wc_ref, hc_ref,
                      wihb_ref, whh4_ref, out_ref,
                      *, hidden, num_layers, seq_len):
    H, K, T = hidden, num_layers, seq_len
    f32 = jnp.float32

    # ---- combine MLP: 2 matmuls (block-diag fused input projection + combine layer) ----
    b_in = bcomb_ref[0:1, :]                         # (1, 3H) = [bd | bs | bi]
    bc = bcomb_ref[1:2, :H]                          # (1, H)

    h1 = jnp.dot(xcat_ref[...], win_ref[...], preferred_element_type=f32) + b_in   # (T, 3H)
    cols = lax.broadcasted_iota(jnp.int32, h1.shape, 1)
    no_relu = (cols >= H) & (cols < 2 * H)           # sparse_layer columns: identity
    h1 = jnp.where(no_relu, h1, jnp.maximum(h1, 0.0))
    x_seq = jnp.maximum(
        jnp.dot(h1, wc_ref[...], preferred_element_type=f32) + bc, 0.0)            # (T, H)

    # ---- stacked LSTMs; h/c thread through the whole stack (matches reference) ----
    h = hc_ref[0:1, :].astype(f32)                   # (1, H) in registers
    c = hc_ref[1:2, :].astype(f32)                   # (1, H) in registers

    for k in range(K):                               # static unroll over layers
        wih = wihb_ref[k, :H, :]                     # (H, 4H)  gate order [i|f|g|o]
        bias = wihb_ref[k, H:H + 1, :]               # (1, 4H)  (b_ih + b_hh pre-summed)

        # Hoisted input projection: one (T,H)@(H,4H) matmul per layer; per-gate column slices
        # are hoisted too (they don't depend on h, so they're off the recurrence chain).
        gates_x = jnp.dot(x_seq, wih, preferred_element_type=f32) + bias           # (T, 4H)
        gx_i = gates_x[:, 0 * H:1 * H]
        gx_f = gates_x[:, 1 * H:2 * H]
        gx_g = gates_x[:, 2 * H:3 * H]
        gx_o = gates_x[:, 3 * H:4 * H]
        whh_i = whh4_ref[k, 0]                       # (H, H) per-gate recurrent weights
        whh_f = whh4_ref[k, 1]
        whh_g = whh4_ref[k, 2]
        whh_o = whh4_ref[k, 3]

        rows = []
        for t in range(T):                           # static unroll over time
            # 4 per-gate (1,H)@(H,H) dots -> all gates land in lanes 0..H-1 (no XLU rotates
            # on the serial h/c chain).
            i_g = jax.nn.sigmoid(gx_i[t:t + 1] + jnp.dot(h, whh_i, preferred_element_type=f32))
            f_g = jax.nn.sigmoid(gx_f[t:t + 1] + jnp.dot(h, whh_f, preferred_element_type=f32))
            g_g = jnp.tanh(gx_g[t:t + 1] + jnp.dot(h, whh_g, preferred_element_type=f32))
            o_g = jax.nn.sigmoid(gx_o[t:t + 1] + jnp.dot(h, whh_o, preferred_element_type=f32))
            c = f_g * c + i_g * g_g
            h = o_g * jnp.tanh(c)
            rows.append(h)                           # kept in registers

        x_seq = jnp.concatenate(rows, axis=0)        # (T, H) — next layer's input sequence
        out_ref[k] = x_seq                           # single store per layer


def saba_fused(x_cat, hc, p):
    B = x_cat.shape[0]
    K, HP1, H4 = p["w_ihb"].shape
    H = H4 // 4
    assert HP1 == H + 1
    assert p["w_hh4"].shape == (K, 4, H, H)
    assert p["w_in"].shape == (x_cat.shape[1], 3 * H)
    assert p["b_comb"].shape == (2, 3 * H)
    assert p["wc"].shape == (3 * H, H)
    assert hc.shape == (2, H)

    kernel = functools.partial(saba_fused_kernel, hidden=H, num_layers=K, seq_len=B)
    vmem = pl.BlockSpec(memory_space=pltpu.MemorySpace.VMEM)
    return pl.pallas_call(
        kernel,
        out_shape=jax.ShapeDtypeStruct((K, B, H), jnp.float32),
        in_specs=[vmem] * 7,
        out_specs=vmem,
    )(x_cat, p["w_in"], p["b_comb"], p["wc"], hc, p["w_ihb"], p["w_hh4"])


# ---------------------------------------------------------------------------
# Host-side weight prep (done once): block-diag fuse, bias merge, W_hh gate split
# ---------------------------------------------------------------------------
def prepare_params(params):
    H = params["wd"].shape[1]
    D = params["wd"].shape[0]
    S = params["ws"].shape[0]
    I = params["wi"].shape[0]
    K = params["w_ih"].shape[0]

    # Block-diagonal fused input projection: [xd|xs|xi] @ w_in == [xd@wd | xs@ws | xi@wi].
    w_in = jnp.zeros((D + S + I, 3 * H), jnp.float32)
    w_in = w_in.at[:D, :H].set(params["wd"])
    w_in = w_in.at[D:D + S, H:2 * H].set(params["ws"])
    w_in = w_in.at[D + S:, 2 * H:].set(params["wi"])

    # Merged biases: row 0 = [bd|bs|bi], row 1[:H] = bc.
    b_comb = jnp.zeros((2, 3 * H), jnp.float32)
    b_comb = b_comb.at[0, :].set(
        jnp.concatenate([params["bd"], params["bs"], params["bi"]], axis=-1)[0])
    b_comb = b_comb.at[1, :H].set(params["bc"][0])

    # LSTM bias folded into the w_ih slab; W_hh pre-split per gate (PyTorch order i|f|g|o).
    w_ihb = jnp.concatenate([params["w_ih"], params["b_lstm"]], axis=1)      # (K, H+1, 4H)
    w_hh4 = params["w_hh"].reshape(K, H, 4, H).transpose(0, 2, 1, 3)         # (K, 4, H, H)

    return {"w_in": w_in, "b_comb": b_comb, "wc": params["wc"],
            "w_ihb": w_ihb, "w_hh4": w_hh4, "hidden": H}


# ---------------------------------------------------------------------------
# Full forward (single fused Pallas kernel)
# ---------------------------------------------------------------------------
def saba_forward(prepped_params, x_dense, x_sparse, x_init_seq, hid_states):
    H = prepped_params["hidden"]
    x_cat = jnp.concatenate([x_dense, x_sparse, x_init_seq], axis=-1)        # (B, D+S+I)
    h0, c0 = hid_states                                                      # (1, 1, H) each
    hc = jnp.concatenate([h0.reshape(1, H), c0.reshape(1, H)], axis=0)       # (2, H)
    outs = saba_fused(x_cat, hc, prepped_params)
    # list of max_seq outputs, each x_seq.view(-1, seq_features) == (B, seq_features)
    return [outs[k] for k in range(outs.shape[0])]


# ---------------------------------------------------------------------------
# Pure-JAX reference (same math, original PyTorch layout) for correctness
# ---------------------------------------------------------------------------
def saba_reference(params, x_dense, x_sparse, x_init_seq, hid_states):
    hd = jax.nn.relu(x_dense @ params["wd"] + params["bd"])
    hs = x_sparse @ params["ws"] + params["bs"]
    hi = jax.nn.relu(x_init_seq @ params["wi"] + params["bi"])
    x_all = jax.nn.relu(jnp.concatenate([hd, hs, hi], -1) @ params["wc"] + params["bc"])
    h = hid_states[0].reshape(1, -1)
    c = hid_states[1].reshape(1, -1)
    H = h.shape[-1]
    x_seq = x_all
    outs = []
    for k in range(params["w_ih"].shape[0]):
        ys = []
        for t in range(x_seq.shape[0]):
            g = x_seq[t:t + 1] @ params["w_ih"][k] + h @ params["w_hh"][k] + params["b_lstm"][k]
            i_g = jax.nn.sigmoid(g[:, 0 * H:1 * H])
            f_g = jax.nn.sigmoid(g[:, 1 * H:2 * H])
            g_g = jnp.tanh(g[:, 2 * H:3 * H])
            o_g = jax.nn.sigmoid(g[:, 3 * H:4 * H])
            c = f_g * c + i_g * g_g
            h = o_g * jnp.tanh(c)
            ys.append(h)
        x_seq = jnp.concatenate(ys, 0)
        outs.append(x_seq)
    return outs


if __name__ == "__main__":
    # Sizes chosen so the reference forward is shape-consistent (see note at top).
    B = 8                 # batch of the model == seq_len fed to the LSTMs
    DENSE = 8
    SPARSE = 8
    INIT_SEQ = 8
    HIDD = 8              # hidd_size
    SEQ_FEAT = HIDD       # seq_features (must equal hidd_size, see note)
    MAX_SEQ = 5
    assert DENSE + SPARSE + INIT_SEQ == 3 * HIDD

    key = jax.random.PRNGKey(0)
    ks = jax.random.split(key, 20)

    def init(k, shape, scale=0.2):
        return (scale * jax.random.normal(k, shape)).astype(jnp.float32)

    params = {
        "wd": init(ks[0], (DENSE, HIDD)),        "bd": init(ks[1], (1, HIDD)),
        "ws": init(ks[2], (SPARSE, HIDD)),       "bs": init(ks[3], (1, HIDD)),
        "wi": init(ks[4], (INIT_SEQ, HIDD)),     "bi": init(ks[5], (1, HIDD)),
        "wc": init(ks[6], (3 * HIDD, HIDD)),     "bc": init(ks[7], (1, HIDD)),
        # One LSTM per entry of lstm_layers_list; num_layers=1, hidden_size=SEQ_FEAT.
        "w_ih": init(ks[8], (MAX_SEQ, HIDD, 4 * SEQ_FEAT)),
        "w_hh": init(ks[9], (MAX_SEQ, SEQ_FEAT, 4 * SEQ_FEAT)),
        "b_lstm": init(ks[10], (MAX_SEQ, 1, 4 * SEQ_FEAT)),   # b_ih + b_hh pre-summed
    }

    x_dense = init(ks[11], (B, DENSE), scale=1.0)
    x_sparse = init(ks[12], (B, SPARSE), scale=1.0)
    x_init_seq = init(ks[13], (B, INIT_SEQ), scale=1.0)
    h0 = init(ks[14], (1, 1, SEQ_FEAT), scale=0.5)
    c0 = init(ks[15], (1, 1, SEQ_FEAT), scale=0.5)

    prepped = prepare_params(params)
    outs = saba_forward(prepped, x_dense, x_sparse, x_init_seq, (h0, c0))
    outs = [jax.block_until_ready(o) for o in outs]

    refs = saba_reference(params, x_dense, x_sparse, x_init_seq, (h0, c0))
    for o, r in zip(outs, refs):
        assert o.shape == (B, SEQ_FEAT)
        np.testing.assert_allclose(np.asarray(o), np.asarray(r), rtol=1e-4, atol=1e-4)

    print("KERNEL_OK")
</pallas_src>

<mosaic_0001>
module attributes {stable_mosaic.version = 11 : i64} {
  func.func @saba_fused_kernel(%arg0: memref<8x24xf32, #tpu.memory_space<vmem>>, %arg1: memref<24x24xf32, #tpu.memory_space<vmem>>, %arg2: memref<2x24xf32, #tpu.memory_space<vmem>>, %arg3: memref<24x8xf32, #tpu.memory_space<vmem>>, %arg4: memref<2x8xf32, #tpu.memory_space<vmem>>, %arg5: memref<5x9x32xf32, #tpu.memory_space<vmem>>, %arg6: memref<5x4x8x8xf32, #tpu.memory_space<vmem>>, %arg7: memref<5x8x8xf32, #tpu.memory_space<vmem>>) attributes {dimension_semantics = [], scalar_prefetch = 0 : i64, scratch_operands = 0 : i64, tpu.core_type = #tpu.core_type<tc>} {
    %c0 = arith.constant 0 : index
    %c0_0 = arith.constant 0 : index
    %0 = vector.load %arg2[%c0, %c0_0] : memref<2x24xf32, #tpu.memory_space<vmem>>, vector<1x24xf32>
    %c1 = arith.constant 1 : index
    %c0_1 = arith.constant 0 : index
    %1 = vector.load %arg2[%c1, %c0_1] : memref<2x24xf32, #tpu.memory_space<vmem>>, vector<1x8xf32>
    %c0_2 = arith.constant 0 : index
    %c0_3 = arith.constant 0 : index
    %2 = vector.load %arg0[%c0_2, %c0_3] : memref<8x24xf32, #tpu.memory_space<vmem>>, vector<8x24xf32>
    %c0_4 = arith.constant 0 : index
    %c0_5 = arith.constant 0 : index
    %3 = vector.load %arg1[%c0_4, %c0_5] : memref<24x24xf32, #tpu.memory_space<vmem>>, vector<24x24xf32>
    %cst = arith.constant dense<0.000000e+00> : vector<8x24xf32>
    %4 = tpu.matmul %2, %3, %cst {dimension_numbers = #tpu.dot_dimension_numbers<[1], [0], [0], [1], [0, 0, 1, 1], [], []>} : vector<8x24xf32>, vector<24x24xf32>, vector<8x24xf32> -> vector<8x24xf32>
    %5 = vector.broadcast %0 : vector<1x24xf32> to vector<8x24xf32>
    %6 = arith.addf %4, %5 : vector<8x24xf32>
    %7 = tpu.iota {dimensions = array<i32: 1>} : vector<8x24xi32>
    %c8_i32 = arith.constant 8 : i32
    %8 = vector.broadcast %c8_i32 : i32 to vector<8x24xi32>
    %9 = arith.cmpi sge, %7, %8 : vector<8x24xi32>
    %c16_i32 = arith.constant 16 : i32
    %10 = vector.broadcast %c16_i32 : i32 to vector<8x24xi32>
    %11 = arith.cmpi slt, %7, %10 : vector<8x24xi32>
    %12 = arith.andi %9, %11 : vector<8x24xi1>
    %cst_6 = arith.constant 0.000000e+00 : f32
    %13 = vector.broadcast %cst_6 : f32 to vector<8x24xf32>
    %14 = arith.maximumf %6, %13 : vector<8x24xf32>
    %15 = arith.select %12, %6, %14 : vector<8x24xi1>, vector<8x24xf32>
    %c0_7 = arith.constant 0 : index
    %c0_8 = arith.constant 0 : index
    %16 = vector.load %arg3[%c0_7, %c0_8] : memref<24x8xf32, #tpu.memory_space<vmem>>, vector<24x8xf32>
    %cst_9 = arith.constant dense<0.000000e+00> : vector<8x8xf32>
    %17 = tpu.matmul %15, %16, %cst_9 {dimension_numbers = #tpu.dot_dimension_numbers<[1], [0], [0], [1], [0, 0, 1, 1], [], []>} : vector<8x24xf32>, vector<24x8xf32>, vector<8x8xf32> -> vector<8x8xf32>
    %18 = vector.broadcast %1 : vector<1x8xf32> to vector<8x8xf32>
    %19 = arith.addf %17, %18 : vector<8x8xf32>
    %cst_10 = arith.constant 0.000000e+00 : f32
    %20 = vector.broadcast %cst_10 : f32 to vector<8x8xf32>
    %21 = arith.maximumf %19, %20 : vector<8x8xf32>
    %c0_11 = arith.constant 0 : index
    %c0_12 = arith.constant 0 : index
    %22 = vector.load %arg4[%c0_11, %c0_12] : memref<2x8xf32, #tpu.memory_space<vmem>>, vector<1x8xf32>
    %c1_13 = arith.constant 1 : index
    %c0_14 = arith.constant 0 : index
    %23 = vector.load %arg4[%c1_13, %c0_14] : memref<2x8xf32, #tpu.memory_space<vmem>>, vector<1x8xf32>
    %c0_15 = arith.constant 0 : index
    %c0_16 = arith.constant 0 : index
    %c0_17 = arith.constant 0 : index
    %24 = vector.load %arg5[%c0_15, %c0_16, %c0_17] : memref<5x9x32xf32, #tpu.memory_space<vmem>>, vector<1x8x32xf32>
    %25 = vector.shape_cast %24 : vector<1x8x32xf32> to vector<8x32xf32>
    %c0_18 = arith.constant 0 : index
    %c8 = arith.constant 8 : index
    %c0_19 = arith.constant 0 : index
    %26 = vector.load %arg5[%c0_18, %c8, %c0_19] : memref<5x9x32xf32, #tpu.memory_space<vmem>>, vector<1x1x32xf32>
    %27 = vector.shape_cast %26 : vector<1x1x32xf32> to vector<1x32xf32>
    %cst_20 = arith.constant dense<0.000000e+00> : vector<8x32xf32>
    %28 = tpu.matmul %21, %25, %cst_20 {dimension_numbers = #tpu.dot_dimension_numbers<[1], [0], [0], [1], [0, 0, 1, 1], [], []>} : vector<8x8xf32>, vector<8x32xf32>, vector<8x32xf32> -> vector<8x32xf32>
    %29 = vector.broadcast %27 : vector<1x32xf32> to vector<8x32xf32>
    %30 = arith.addf %28, %29 : vector<8x32xf32>
    %31 = vector.extract_strided_slice %30 {offsets = [0, 0], sizes = [8, 8], strides = [1, 1]} : vector<8x32xf32> to vector<8x8xf32>
    %32 = vector.extract_strided_slice %30 {offsets = [0, 8], sizes = [8, 8], strides = [1, 1]} : vector<8x32xf32> to vector<8x8xf32>
    %33 = vector.extract_strided_slice %30 {offsets = [0, 16], sizes = [8, 8], strides = [1, 1]} : vector<8x32xf32> to vector<8x8xf32>
    %34 = vector.extract_strided_slice %30 {offsets = [0, 24], sizes = [8, 8], strides = [1, 1]} : vector<8x32xf32> to vector<8x8xf32>
    %c0_21 = arith.constant 0 : index
    %c0_22 = arith.constant 0 : index
    %c0_23 = arith.constant 0 : index
    %c0_24 = arith.constant 0 : index
    %35 = vector.load %arg6[%c0_21, %c0_22, %c0_23, %c0_24] : memref<5x4x8x8xf32, #tpu.memory_space<vmem>>, vector<1x1x8x8xf32>
    %36 = vector.shape_cast %35 : vector<1x1x8x8xf32> to vector<8x8xf32>
    %c0_25 = arith.constant 0 : index
    %c1_26 = arith.constant 1 : index
    %c0_27 = arith.constant 0 : index
    %c0_28 = arith.constant 0 : index
    %37 = vector.load %arg6[%c0_25, %c1_26, %c0_27, %c0_28] : memref<5x4x8x8xf32, #tpu.memory_space<vmem>>, vector<1x1x8x8xf32>
    %38 = vector.shape_cast %37 : vector<1x1x8x8xf32> to vector<8x8xf32>
    %c0_29 = arith.constant 0 : index
    %c2 = arith.constant 2 : index
    %c0_30 = arith.constant 0 : index
    %c0_31 = arith.constant 0 : index
    %39 = vector.load %arg6[%c0_29, %c2, %c0_30, %c0_31] : memref<5x4x8x8xf32, #tpu.memory_space<vmem>>, vector<1x1x8x8xf32>
    %40 = vector.shape_cast %39 : vector<1x1x8x8xf32> to vector<8x8xf32>
    %c0_32 = arith.constant 0 : index
    %c3 = arith.constant 3 : index
    %c0_33 = arith.constant 0 : index
    %c0_34 = arith.constant 0 : index
    %41 = vector.load %arg6[%c0_32, %c3, %c0_33, %c0_34] : memref<5x4x8x8xf32, #tpu.memory_space<vmem>>, vector<1x1x8x8xf32>
    %42 = vector.shape_cast %41 : vector<1x1x8x8xf32> to vector<8x8xf32>
    %43 = vector.extract_strided_slice %31 {offsets = [0, 0], sizes = [1, 8], strides = [1, 1]} : vector<8x8xf32> to vector<1x8xf32>
    %cst_35 = arith.constant dense<0.000000e+00> : vector<1x8xf32>
    %44 = tpu.matmul %22, %36, %cst_35 {dimension_numbers = #tpu.dot_dimension_numbers<[1], [0], [0], [1], [0, 0, 1, 1], [], []>} : vector<1x8xf32>, vector<8x8xf32>, vector<1x8xf32> -> vector<1x8xf32>
    %45 = arith.addf %43, %44 : vector<1x8xf32>
    %46 = arith.negf %45 : vector<1x8xf32>
    %47 = math.exp %46 : vector<1x8xf32>
    %cst_36 = arith.constant 1.000000e+00 : f32
    %48 = vector.broadcast %cst_36 : f32 to vector<1x8xf32>
    %49 = arith.addf %48, %47 : vector<1x8xf32>
    %50 = arith.divf %48, %49 : vector<1x8xf32>
    %51 = vector.extract_strided_slice %32 {offsets = [0, 0], sizes = [1, 8], strides = [1, 1]} : vector<8x8xf32> to vector<1x8xf32>
    %cst_37 = arith.constant dense<0.000000e+00> : vector<1x8xf32>
    %52 = tpu.matmul %22, %38, %cst_37 {dimension_numbers = #tpu.dot_dimension_numbers<[1], [0], [0], [1], [0, 0, 1, 1], [], []>} : vector<1x8xf32>, vector<8x8xf32>, vector<1x8xf32> -> vector<1x8xf32>
    %53 = arith.addf %51, %52 : vector<1x8xf32>
    %54 = arith.negf %53 : vector<1x8xf32>
    %55 = math.exp %54 : vector<1x8xf32>
    %cst_38 = arith.constant 1.000000e+00 : f32
    %56 = vector.broadcast %cst_38 : f32 to vector<1x8xf32>
    %57 = arith.addf %56, %55 : vector<1x8xf32>
    %58 = arith.divf %56, %57 : vector<1x8xf32>
    %59 = vector.extract_strided_slice %33 {offsets = [0, 0], sizes = [1, 8], strides = [1, 1]} : vector<8x8xf32> to vector<1x8xf32>
    %cst_39 = arith.constant dense<0.000000e+00> : vector<1x8xf32>
    %60 = tpu.matmul %22, %40, %cst_39 {dimension_numbers = #tpu.dot_dimension_numbers<[1], [0], [0], [1], [0, 0, 1, 1], [], []>} : vector<1x8xf32>, vector<8x8xf32>, vector<1x8xf32> -> vector<1x8xf32>
    %61 = arith.addf %59, %60 : vector<1x8xf32>
    %62 = math.tanh %61 : vector<1x8xf32>
    %63 = vector.extract_strided_slice %34 {offsets = [0, 0], sizes = [1, 8], strides = [1, 1]} : vector<8x8xf32> to vector<1x8xf32>
    %cst_40 = arith.constant dense<0.000000e+00> : vector<1x8xf32>
    %64 = tpu.matmul %22, %42, %cst_40 {dimension_numbers = #tpu.dot_dimension_numbers<[1], [0], [0], [1], [0, 0, 1, 1], [], []>} : vector<1x8xf32>, vector<8x8xf32>, vector<1x8xf32> -> vector<1x8xf32>
    %65 = arith.addf %63, %64 : vector<1x8xf32>
    %66 = arith.negf %65 : vector<1x8xf32>
    %67 = math.exp %66 : vector<1x8xf32>
    %cst_41 = arith.constant 1.000000e+00 : f32
    %68 = vector.broadcast %cst_41 : f32 to vector<1x8xf32>
    %69 = arith.addf %68, %67 : vector<1x8xf32>
    %70 = arith.divf %68, %69 : vector<1x8xf32>
    %71 = arith.mulf %58, %23 : vector<1x8xf32>
    %72 = arith.mulf %50, %62 : vector<1x8xf32>
    %73 = arith.addf %71, %72 : vector<1x8xf32>
    %74 = math.tanh %73 : vector<1x8xf32>
    %75 = arith.mulf %70, %74 : vector<1x8xf32>
    %76 = vector.extract_strided_slice %31 {offsets = [1, 0], sizes = [1, 8], strides = [1, 1]} : vector<8x8xf32> to vector<1x8xf32>
    %cst_42 = arith.constant dense<0.000000e+00> : vector<1x8xf32>
    %77 = tpu.matmul %75, %36, %cst_42 {dimension_numbers = #tpu.dot_dimension_numbers<[1], [0], [0], [1], [0, 0, 1, 1], [], []>} : vector<1x8xf32>, vector<8x8xf32>, vector<1x8xf32> -> vector<1x8xf32>
    %78 = arith.addf %76, %77 : vector<1x8xf32>
    %79 = arith.negf %78 : vector<1x8xf32>
    %80 = math.exp %79 : vector<1x8xf32>
    %cst_43 = arith.constant 1.000000e+00 : f32
    %81 = vector.broadcast %cst_43 : f32 to vector<1x8xf32>
    %82 = arith.addf %81, %80 : vector<1x8xf32>
    %83 = arith.divf %81, %82 : vector<1x8xf32>
    %84 = vector.extract_strided_slice %32 {offsets = [1, 0], sizes = [1, 8], strides = [1, 1]} : vector<8x8xf32> to vector<1x8xf32>
    %cst_44 = arith.constant dense<0.000000e+00> : vector<1x8xf32>
    %85 = tpu.matmul %75, %38, %cst_44 {dimension_numbers = #tpu.dot_dimension_numbers<[1], [0], [0], [1], [0, 0, 1, 1], [], []>} : vector<1x8xf32>, vector<8x8xf32>, vector<1x8xf32> -> vector<1x8xf32>
    %86 = arith.addf %84, %85 : vector<1x8xf32>
    %87 = arith.negf %86 : vector<1x8xf32>
    %88 = math.exp %87 : vector<1x8xf32>
    %cst_45 = arith.constant 1.000000e+00 : f32
    %89 = vector.broadcast %cst_45 : f32 to vector<1x8xf32>
    %90 = arith.addf %89, %88 : vector<1x8xf32>
    %91 = arith.divf %89, %90 : vector<1x8xf32>
    %92 = vector.extract_strided_slice %33 {offsets = [1, 0], sizes = [1, 8], strides = [1, 1]} : vector<8x8xf32> to vector<1x8xf32>
    %cst_46 = arith.constant dense<0.000000e+00> : vector<1x8xf32>
    %93 = tpu.matmul %75, %40, %cst_46 {dimension_numbers = #tpu.dot_dimension_numbers<[1], [0], [0], [1], [0, 0, 1, 1], [], []>} : vector<1x8xf32>, vector<8x8xf32>, vector<1x8xf32> -> vector<1x8xf32>
    %94 = arith.addf %92, %93 : vector<1x8xf32>
    %95 = math.tanh %94 : vector<1x8xf32>
    %96 = vector.extract_strided_slice %34 {offsets = [1, 0], sizes = [1, 8], strides = [1, 1]} : vector<8x8xf32> to vector<1x8xf32>
    %cst_47 = arith.constant dense<0.000000e+00> : vector<1x8xf32>
    %97 = tpu.matmul %75, %42, %cst_47 {dimension_numbers = #tpu.dot_dimension_numbers<[1], [0], [0], [1], [0, 0, 1, 1], [], []>} : vector<1x8xf32>, vector<8x8xf32>, vector<1x8xf32> -> vector<1x8xf32>
    %98 = arith.addf %96, %97 : vector<1x8xf32>
    %99 = arith.negf %98 : vector<1x8xf32>
    %100 = math.exp %99 : vector<1x8xf32>
    %cst_48 = arith.constant 1.000000e+00 : f32
    %101 = vector.broadcast %cst_48 : f32 to vector<1x8xf32>
    %102 = arith.addf %101, %100 : vector<1x8xf32>
    %103 = arith.divf %101, %102 : vector<1x8xf32>
    %104 = arith.mulf %91, %73 : vector<1x8xf32>
    %105 = arith.mulf %83, %95 : vector<1x8xf32>
    %106 = arith.addf %104, %105 : vector<1x8xf32>
    %107 = math.tanh %106 : vector<1x8xf32>
    %108 = arith.mulf %103, %107 : vector<1x8xf32>
    %109 = vector.extract_strided_slice %31 {offsets = [2, 0], sizes = [1, 8], strides = [1, 1]} : vector<8x8xf32> to vector<1x8xf32>
    %cst_49 = arith.constant dense<0.000000e+00> : vector<1x8xf32>
    %110 = tpu.matmul %108, %36, %cst_49 {dimension_numbers = #tpu.dot_dimension_numbers<[1], [0], [0], [1], [0, 0, 1, 1], [], []>} : vector<1x8xf32>, vector<8x8xf32>, vector<1x8xf32> -> vector<1x8xf32>
    %111 = arith.addf %109, %110 : vector<1x8xf32>
    %112 = arith.negf %111 : vector<1x8xf32>
    %113 = math.exp %112 : vector<1x8xf32>
    %cst_50 = arith.constant 1.000000e+00 : f32
    %114 = vector.broadcast %cst_50 : f32 to vector<1x8xf32>
    %115 = arith.addf %114, %113 : vector<1x8xf32>
    %116 = arith.divf %114, %115 : vector<1x8xf32>
    %117 = vector.extract_strided_slice %32 {offsets = [2, 0], sizes = [1, 8], strides = [1, 1]} : vector<8x8xf32> to vector<1x8xf32>
    %cst_51 = arith.constant dense<0.000000e+00> : vector<1x8xf32>
    %118 = tpu.matmul %108, %38, %cst_51 {dimension_numbers = #tpu.dot_dimension_numbers<[1], [0], [0], [1], [0, 0, 1, 1], [], []>} : vector<1x8xf32>, vector<8x8xf32>, vector<1x8xf32> -> vector<1x8xf32>
    %119 = arith.addf %117, %118 : vector<1x8xf32>
    %120 = arith.negf %119 : vector<1x8xf32>
    %121 = math.exp %120 : vector<1x8xf32>
    %cst_52 = arith.constant 1.000000e+00 : f32
    %122 = vector.broadcast %cst_52 : f32 to vector<1x8xf32>
    %123 = arith.addf %122, %121 : vector<1x8xf32>
    %124 = arith.divf %122, %123 : vector<1x8xf32>
    %125 = vector.extract_strided_slice %33 {offsets = [2, 0], sizes = [1, 8], strides = [1, 1]} : vector<8x8xf32> to vector<1x8xf32>
    %cst_53 = arith.constant dense<0.000000e+00> : vector<1x8xf32>
    %126 = tpu.matmul %108, %40, %cst_53 {dimension_numbers = #tpu.dot_dimension_numbers<[1], [0], [0], [1], [0, 0, 1, 1], [], []>} : vector<1x8xf32>, vector<8x8xf32>, vector<1x8xf32> -> vector<1x8xf32>
    %127 = arith.addf %125, %126 : vector<1x8xf32>
    %128 = math.tanh %127 : vector<1x8xf32>
    %129 = vector.extract_strided_slice %34 {offsets = [2, 0], sizes = [1, 8], strides = [1, 1]} : vector<8x8xf32> to vector<1x8xf32>
    %cst_54 = arith.constant dense<0.000000e+00> : vector<1x8xf32>
    %130 = tpu.matmul %108, %42, %cst_54 {dimension_numbers = #tpu.dot_dimension_numbers<[1], [0], [0], [1], [0, 0, 1, 1], [], []>} : vector<1x8xf32>, vector<8x8xf32>, vector<1x8xf32> -> vector<1x8xf32>
    %131 = arith.addf %129, %130 : vector<1x8xf32>
    %132 = arith.negf %131 : vector<1x8xf32>
    %133 = math.exp %132 : vector<1x8xf32>
    %cst_55 = arith.constant 1.000000e+00 : f32
    %134 = vector.broadcast %cst_55 : f32 to vector<1x8xf32>
    %135 = arith.addf %134, %133 : vector<1x8xf32>
    %136 = arith.divf %134, %135 : vector<1x8xf32>
    %137 = arith.mulf %124, %106 : vector<1x8xf32>
    %138 = arith.mulf %116, %128 : vector<1x8xf32>
    %139 = arith.addf %137, %138 : vector<1x8xf32>
    %140 = math.tanh %139 : vector<1x8xf32>
    %141 = arith.mulf %136, %140 : vector<1x8xf32>
    %142 = vector.extract_strided_slice %31 {offsets = [3, 0], sizes = [1, 8], strides = [1, 1]} : vector<8x8xf32> to vector<1x8xf32>
    %cst_56 = arith.constant dense<0.000000e+00> : vector<1x8xf32>
    %143 = tpu.matmul %141, %36, %cst_56 {dimension_numbers = #tpu.dot_dimension_numbers<[1], [0], [0], [1], [0, 0, 1, 1], [], []>} : vector<1x8xf32>, vector<8x8xf32>, vector<1x8xf32> -> vector<1x8xf32>
    %144 = arith.addf %142, %143 : vector<1x8xf32>
    %145 = arith.negf %144 : vector<1x8xf32>
    %146 = math.exp %145 : vector<1x8xf32>
    %cst_57 = arith.constant 1.000000e+00 : f32
    %147 = vector.broadcast %cst_57 : f32 to vector<1x8xf32>
    %148 = arith.addf %147, %146 : vector<1x8xf32>
    %149 = arith.divf %147, %148 : vector<1x8xf32>
    %150 = vector.extract_strided_slice %32 {offsets = [3, 0], sizes = [1, 8], strides = [1, 1]} : vector<8x8xf32> to vector<1x8xf32>
    %cst_58 = arith.constant dense<0.000000e+00> : vector<1x8xf32>
    %151 = tpu.matmul %141, %38, %cst_58 {dimension_numbers = #tpu.dot_dimension_numbers<[1], [0], [0], [1], [0, 0, 1, 1], [], []>} : vector<1x8xf32>, vector<8x8xf32>, vector<1x8xf32> -> vector<1x8xf32>
    %152 = arith.addf %150, %151 : vector<1x8xf32>
    %153 = arith.negf %152 : vector<1x8xf32>
    %154 = math.exp %153 : vector<1x8xf32>
    %cst_59 = arith.constant 1.000000e+00 : f32
    %155 = vector.broadcast %cst_59 : f32 to vector<1x8xf32>
    %156 = arith.addf %155, %154 : vector<1x8xf32>
    %157 = arith.divf %155, %156 : vector<1x8xf32>
    %158 = vector.extract_strided_slice %33 {offsets = [3, 0], sizes = [1, 8], strides = [1, 1]} : vector<8x8xf32> to vector<1x8xf32>
    %cst_60 = arith.constant dense<0.000000e+00> : vector<1x8xf32>
    %159 = tpu.matmul %141, %40, %cst_60 {dimension_numbers = #tpu.dot_dimension_numbers<[1], [0], [0], [1], [0, 0, 1, 1], [], []>} : vector<1x8xf32>, vector<8x8xf32>, vector<1x8xf32> -> vector<1x8xf32>
    %160 = arith.addf %158, %159 : vector<1x8xf32>
    %161 = math.tanh %160 : vector<1x8xf32>
    %162 = vector.extract_strided_slice %34 {offsets = [3, 0], sizes = [1, 8], strides = [1, 1]} : vector<8x8xf32> to vector<1x8xf32>
    %cst_61 = arith.constant dense<0.000000e+00> : vector<1x8xf32>
    %163 = tpu.matmul %141, %42, %cst_61 {dimension_numbers = #tpu.dot_dimension_numbers<[1], [0], [0], [1], [0, 0, 1, 1], [], []>} : vector<1x8xf32>, vector<8x8xf32>, vector<1x8xf32> -> vector<1x8xf32>
    %164 = arith.addf %162, %163 : vector<1x8xf32>
    %165 = arith.negf %164 : vector<1x8xf32>
    %166 = math.exp %165 : vector<1x8xf32>
    %cst_62 = arith.constant 1.000000e+00 : f32
    %167 = vector.broadcast %cst_62 : f32 to vector<1x8xf32>
    %168 = arith.addf %167, %166 : vector<1x8xf32>
    %169 = arith.divf %167, %168 : vector<1x8xf32>
    %170 = arith.mulf %157, %139 : vector<1x8xf32>
    %171 = arith.mulf %149, %161 : vector<1x8xf32>
    %172 = arith.addf %170, %171 : vector<1x8xf32>
    %173 = math.tanh %172 : vector<1x8xf32>
    %174 = arith.mulf %169, %173 : vector<1x8xf32>
    %175 = vector.extract_strided_slice %31 {offsets = [4, 0], sizes = [1, 8], strides = [1, 1]} : vector<8x8xf32> to vector<1x8xf32>
    %cst_63 = arith.constant dense<0.000000e+00> : vector<1x8xf32>
    %176 = tpu.matmul %174, %36, %cst_63 {dimension_numbers = #tpu.dot_dimension_numbers<[1], [0], [0], [1], [0, 0, 1, 1], [], []>} : vector<1x8xf32>, vector<8x8xf32>, vector<1x8xf32> -> vector<1x8xf32>
    %177 = arith.addf %175, %176 : vector<1x8xf32>
    %178 = arith.negf %177 : vector<1x8xf32>
    %179 = math.exp %178 : vector<1x8xf32>
    %cst_64 = arith.constant 1.000000e+00 : f32
    %180 = vector.broadcast %cst_64 : f32 to vector<1x8xf32>
    %181 = arith.addf %180, %179 : vector<1x8xf32>
    %182 = arith.divf %180, %181 : vector<1x8xf32>
    %183 = vector.extract_strided_slice %32 {offsets = [4, 0], sizes = [1, 8], strides = [1, 1]} : vector<8x8xf32> to vector<1x8xf32>
    %cst_65 = arith.constant dense<0.000000e+00> : vector<1x8xf32>
    %184 = tpu.matmul %174, %38, %cst_65 {dimension_numbers = #tpu.dot_dimension_numbers<[1], [0], [0], [1], [0, 0, 1, 1], [], []>} : vector<1x8xf32>, vector<8x8xf32>, vector<1x8xf32> -> vector<1x8xf32>
    %185 = arith.addf %183, %184 : vector<1x8xf32>
    %186 = arith.negf %185 : vector<1x8xf32>
    %187 = math.exp %186 : vector<1x8xf32>
    %cst_66 = arith.constant 1.000000e+00 : f32
    %188 = vector.broadcast %cst_66 : f32 to vector<1x8xf32>
    %189 = arith.addf %188, %187 : vector<1x8xf32>
    %190 = arith.divf %188, %189 : vector<1x8xf32>
    %191 = vector.extract_strided_slice %33 {offsets = [4, 0], sizes = [1, 8], strides = [1, 1]} : vector<8x8xf32> to vector<1x8xf32>
    %cst_67 = arith.constant dense<0.000000e+00> : vector<1x8xf32>
    %192 = tpu.matmul %174, %40, %cst_67 {dimension_numbers = #tpu.dot_dimension_numbers<[1], [0], [0], [1], [0, 0, 1, 1], [], []>} : vector<1x8xf32>, vector<8x8xf32>, vector<1x8xf32> -> vector<1x8xf32>
    %193 = arith.addf %191, %192 : vector<1x8xf32>
    %194 = math.tanh %193 : vector<1x8xf32>
    %195 = vector.extract_strided_slice %34 {offsets = [4, 0], sizes = [1, 8], strides = [1, 1]} : vector<8x8xf32> to vector<1x8xf32>
    %cst_68 = arith.constant dense<0.000000e+00> : vector<1x8xf32>
    %196 = tpu.matmul %174, %42, %cst_68 {dimension_numbers = #tpu.dot_dimension_numbers<[1], [0], [0], [1], [0, 0, 1, 1], [], []>} : vector<1x8xf32>, vector<8x8xf32>, vector<1x8xf32> -> vector<1x8xf32>
    %197 = arith.addf %195, %196 : vector<1x8xf32>
    %198 = arith.negf %197 : vector<1x8xf32>
    %199 = math.exp %198 : vector<1x8xf32>
    %cst_69 = arith.constant 1.000000e+00 : f32
    %200 = vector.broadcast %cst_69 : f32 to vector<1x8xf32>
    %201 = arith.addf %200, %199 : vector<1x8xf32>
    %202 = arith.divf %200, %201 : vector<1x8xf32>
    %203 = arith.mulf %190, %172 : vector<1x8xf32>
    %204 = arith.mulf %182, %194 : vector<1x8xf32>
    %205 = arith.addf %203, %204 : vector<1x8xf32>
    %206 = math.tanh %205 : vector<1x8xf32>
    %207 = arith.mulf %202, %206 : vector<1x8xf32>
    %208 = vector.extract_strided_slice %31 {offsets = [5, 0], sizes = [1, 8], strides = [1, 1]} : vector<8x8xf32> to vector<1x8xf32>
    %cst_70 = arith.constant dense<0.000000e+00> : vector<1x8xf32>
    %209 = tpu.matmul %207, %36, %cst_70 {dimension_numbers = #tpu.dot_dimension_numbers<[1], [0], [0], [1], [0, 0, 1, 1], [], []>} : vector<1x8xf32>, vector<8x8xf32>, vector<1x8xf32> -> vector<1x8xf32>
    %210 = arith.addf %208, %209 : vector<1x8xf32>
    %211 = arith.negf %210 : vector<1x8xf32>
    %212 = math.exp %211 : vector<1x8xf32>
    %cst_71 = arith.constant 1.000000e+00 : f32
    %213 = vector.broadcast %cst_71 : f32 to vector<1x8xf32>
    %214 = arith.addf %213, %212 : vector<1x8xf32>
    %215 = arith.divf %213, %214 : vector<1x8xf32>
    %216 = vector.extract_strided_slice %32 {offsets = [5, 0], sizes = [1, 8], strides = [1, 1]} : vector<8x8xf32> to vector<1x8xf32>
    %cst_72 = arith.constant dense<0.000000e+00> : vector<1x8xf32>
    %217 = tpu.matmul %207, %38, %cst_72 {dimension_numbers = #tpu.dot_dimension_numbers<[1], [0], [0], [1], [0, 0, 1, 1], [], []>} : vector<1x8xf32>, vector<8x8xf32>, vector<1x8xf32> -> vector<1x8xf32>
    %218 = arith.addf %216, %217 : vector<1x8xf32>
    %219 = arith.negf %218 : vector<1x8xf32>
    %220 = math.exp %219 : vector<1x8xf32>
    %cst_73 = arith.constant 1.000000e+00 : f32
    %221 = vector.broadcast %cst_73 : f32 to vector<1x8xf32>
    %222 = arith.addf %221, %220 : vector<1x8xf32>
    %223 = arith.divf %221, %222 : vector<1x8xf32>
    %224 = vector.extract_strided_slice %33 {offsets = [5, 0], sizes = [1, 8], strides = [1, 1]} : vector<8x8xf32> to vector<1x8xf32>
    %cst_74 = arith.constant dense<0.000000e+00> : vector<1x8xf32>
    %225 = tpu.matmul %207, %40, %cst_74 {dimension_numbers = #tpu.dot_dimension_numbers<[1], [0], [0], [1], [0, 0, 1, 1], [], []>} : vector<1x8xf32>, vector<8x8xf32>, vector<1x8xf32> -> vector<1x8xf32>
    %226 = arith.addf %224, %225 : vector<1x8xf32>
    %227 = math.tanh %226 : vector<1x8xf32>
    %228 = vector.extract_strided_slice %34 {offsets = [5, 0], sizes = [1, 8], strides = [1, 1]} : vector<8x8xf32> to vector<1x8xf32>
    %cst_75 = arith.constant dense<0.000000e+00> : vector<1x8xf32>
    %229 = tpu.matmul %207, %42, %cst_75 {dimension_numbers = #tpu.dot_dimension_numbers<[1], [0], [0], [1], [0, 0, 1, 1], [], []>} : vector<1x8xf32>, vector<8x8xf32>, vector<1x8xf32> -> vector<1x8xf32>
    %230 = arith.addf %228, %229 : vector<1x8xf32>
    %231 = arith.negf %230 : vector<1x8xf32>
    %232 = math.exp %231 : vector<1x8xf32>
    %cst_76 = arith.constant 1.000000e+00 : f32
    %233 = vector.broadcast %cst_76 : f32 to vector<1x8xf32>
    %234 = arith.addf %233, %232 : vector<1x8xf32>
    %235 = arith.divf %233, %234 : vector<1x8xf32>
    %236 = arith.mulf %223, %205 : vector<1x8xf32>
    %237 = arith.mulf %215, %227 : vector<1x8xf32>
    %238 = arith.addf %236, %237 : vector<1x8xf32>
    %239 = math.tanh %238 : vector<1x8xf32>
    %240 = arith.mulf %235, %239 : vector<1x8xf32>
    %241 = vector.extract_strided_slice %31 {offsets = [6, 0], sizes = [1, 8], strides = [1, 1]} : vector<8x8xf32> to vector<1x8xf32>
    %cst_77 = arith.constant dense<0.000000e+00> : vector<1x8xf32>
    %242 = tpu.matmul %240, %36, %cst_77 {dimension_numbers = #tpu.dot_dimension_numbers<[1], [0], [0], [1], [0, 0, 1, 1], [], []>} : vector<1x8xf32>, vector<8x8xf32>, vector<1x8xf32> -> vector<1x8xf32>
    %243 = arith.addf %241, %242 : vector<1x8xf32>
    %244 = arith.negf %243 : vector<1x8xf32>
    %245 = math.exp %244 : vector<1x8xf32>
    %cst_78 = arith.constant 1.000000e+00 : f32
    %246 = vector.broadcast %cst_78 : f32 to vector<1x8xf32>
    %247 = arith.addf %246, %245 : vector<1x8xf32>
    %248 = arith.divf %246, %247 : vector<1x8xf32>
    %249 = vector.extract_strided_slice %32 {offsets = [6, 0], sizes = [1, 8], strides = [1, 1]} : vector<8x8xf32> to vector<1x8xf32>
    %cst_79 = arith.constant dense<0.000000e+00> : vector<1x8xf32>
    %250 = tpu.matmul %240, %38, %cst_79 {dimension_numbers = #tpu.dot_dimension_numbers<[1], [0], [0], [1], [0, 0, 1, 1], [], []>} : vector<1x8xf32>, vector<8x8xf32>, vector<1x8xf32> -> vector<1x8xf32>
    %251 = arith.addf %249, %250 : vector<1x8xf32>
    %252 = arith.negf %251 : vector<1x8xf32>
    %253 = math.exp %252 : vector<1x8xf32>
    %cst_80 = arith.constant 1.000000e+00 : f32
    %254 = vector.broadcast %cst_80 : f32 to vector<1x8xf32>
    %255 = arith.addf %254, %253 : vector<1x8xf32>
    %256 = arith.divf %254, %255 : vector<1x8xf32>
    %257 = vector.extract_strided_slice %33 {offsets = [6, 0], sizes = [1, 8], strides = [1, 1]} : vector<8x8xf32> to vector<1x8xf32>
    %cst_81 = arith.constant dense<0.000000e+00> : vector<1x8xf32>
    %258 = tpu.matmul %240, %40, %cst_81 {dimension_numbers = #tpu.dot_dimension_numbers<[1], [0], [0], [1], [0, 0, 1, 1], [], []>} : vector<1x8xf32>, vector<8x8xf32>, vector<1x8xf32> -> vector<1x8xf32>
    %259 = arith.addf %257, %258 : vector<1x8xf32>
    %260 = math.tanh %259 : vector<1x8xf32>
    %261 = vector.extract_strided_slice %34 {offsets = [6, 0], sizes = [1, 8], strides = [1, 1]} : vector<8x8xf32> to vector<1x8xf32>
    %cst_82 = arith.constant dense<0.000000e+00> : vector<1x8xf32>
    %262 = tpu.matmul %240, %42, %cst_82 {dimension_numbers = #tpu.dot_dimension_numbers<[1], [0], [0], [1], [0, 0, 1, 1], [], []>} : vector<1x8xf32>, vector<8x8xf32>, vector<1x8xf32> -> vector<1x8xf32>
    %263 = arith.addf %261, %262 : vector<1x8xf32>
    %264 = arith.negf %263 : vector<1x8xf32>
    %265 = math.exp %264 : vector<1x8xf32>
    %cst_83 = arith.constant 1.000000e+00 : f32
    %266 = vector.broadcast %cst_83 : f32 to vector<1x8xf32>
    %267 = arith.addf %266, %265 : vector<1x8xf32>
    %268 = arith.divf %266, %267 : vector<1x8xf32>
    %269 = arith.mulf %256, %238 : vector<1x8xf32>
    %270 = arith.mulf %248, %260 : vector<1x8xf32>
    %271 = arith.addf %269, %270 : vector<1x8xf32>
    %272 = math.tanh %271 : vector<1x8xf32>
    %273 = arith.mulf %268, %272 : vector<1x8xf32>
    %274 = vector.extract_strided_slice %31 {offsets = [7, 0], sizes = [1, 8], strides = [1, 1]} : vector<8x8xf32> to vector<1x8xf32>
    %cst_84 = arith.constant dense<0.000000e+00> : vector<1x8xf32>
    %275 = tpu.matmul %273, %36, %cst_84 {dimension_numbers = #tpu.dot_dimension_numbers<[1], [0], [0], [1], [0, 0, 1, 1], [], []>} : vector<1x8xf32>, vector<8x8xf32>, vector<1x8xf32> -> vector<1x8xf32>
    %276 = arith.addf %274, %275 : vector<1x8xf32>
    %277 = arith.negf %276 : vector<1x8xf32>
    %278 = math.exp %277 : vector<1x8xf32>
    %cst_85 = arith.constant 1.000000e+00 : f32
    %279 = vector.broadcast %cst_85 : f32 to vector<1x8xf32>
    %280 = arith.addf %279, %278 : vector<1x8xf32>
    %281 = arith.divf %279, %280 : vector<1x8xf32>
    %282 = vector.extract_strided_slice %32 {offsets = [7, 0], sizes = [1, 8], strides = [1, 1]} : vector<8x8xf32> to vector<1x8xf32>
    %cst_86 = arith.constant dense<0.000000e+00> : vector<1x8xf32>
    %283 = tpu.matmul %273, %38, %cst_86 {dimension_numbers = #tpu.dot_dimension_numbers<[1], [0], [0], [1], [0, 0, 1, 1], [], []>} : vector<1x8xf32>, vector<8x8xf32>, vector<1x8xf32> -> vector<1x8xf32>
    %284 = arith.addf %282, %283 : vector<1x8xf32>
    %285 = arith.negf %284 : vector<1x8xf32>
    %286 = math.exp %285 : vector<1x8xf32>
    %cst_87 = arith.constant 1.000000e+00 : f32
    %287 = vector.broadcast %cst_87 : f32 to vector<1x8xf32>
    %288 = arith.addf %287, %286 : vector<1x8xf32>
    %289 = arith.divf %287, %288 : vector<1x8xf32>
    %290 = vector.extract_strided_slice %33 {offsets = [7, 0], sizes = [1, 8], strides = [1, 1]} : vector<8x8xf32> to vector<1x8xf32>
    %cst_88 = arith.constant dense<0.000000e+00> : vector<1x8xf32>
    %291 = tpu.matmul %273, %40, %cst_88 {dimension_numbers = #tpu.dot_dimension_numbers<[1], [0], [0], [1], [0, 0, 1, 1], [], []>} : vector<1x8xf32>, vector<8x8xf32>, vector<1x8xf32> -> vector<1x8xf32>
    %292 = arith.addf %290, %291 : vector<1x8xf32>
    %293 = math.tanh %292 : vector<1x8xf32>
    %294 = vector.extract_strided_slice %34 {offsets = [7, 0], sizes = [1, 8], strides = [1, 1]} : vector<8x8xf32> to vector<1x8xf32>
    %cst_89 = arith.constant dense<0.000000e+00> : vector<1x8xf32>
    %295 = tpu.matmul %273, %42, %cst_89 {dimension_numbers = #tpu.dot_dimension_numbers<[1], [0], [0], [1], [0, 0, 1, 1], [], []>} : vector<1x8xf32>, vector<8x8xf32>, vector<1x8xf32> -> vector<1x8xf32>
    %296 = arith.addf %294, %295 : vector<1x8xf32>
    %297 = arith.negf %296 : vector<1x8xf32>
    %298 = math.exp %297 : vector<1x8xf32>
    %cst_90 = arith.constant 1.000000e+00 : f32
    %299 = vector.broadcast %cst_90 : f32 to vector<1x8xf32>
    %300 = arith.addf %299, %298 : vector<1x8xf32>
    %301 = arith.divf %299, %300 : vector<1x8xf32>
    %302 = arith.mulf %289, %271 : vector<1x8xf32>
    %303 = arith.mulf %281, %293 : vector<1x8xf32>
    %304 = arith.addf %302, %303 : vector<1x8xf32>
    %305 = math.tanh %304 : vector<1x8xf32>
    %306 = arith.mulf %301, %305 : vector<1x8xf32>
    %307 = tpu.concatenate %75, %108, %141, %174, %207, %240, %273, %306 in 0 : vector<1x8xf32>, vector<1x8xf32>, vector<1x8xf32>, vector<1x8xf32>, vector<1x8xf32>, vector<1x8xf32>, vector<1x8xf32>, vector<1x8xf32> -> vector<8x8xf32>
    %c0_91 = arith.constant 0 : index
    %c0_92 = arith.constant 0 : index
    %c0_93 = arith.constant 0 : index
    %308 = vector.load %arg7[%c0_91, %c0_92, %c0_93] : memref<5x8x8xf32, #tpu.memory_space<vmem>>, vector<1x8x8xf32>
    %309 = vector.shape_cast %308 : vector<1x8x8xf32> to vector<8x8xf32>
    %310 = vector.shape_cast %307 : vector<8x8xf32> to vector<1x8x8xf32>
    tpu.vector_store %arg7[%c0_91, %c0_92, %c0_93], %310 {strides = array<i32>} : memref<5x8x8xf32, #tpu.memory_space<vmem>>, vector<1x8x8xf32>,
    %c1_94 = arith.constant 1 : index
    %c0_95 = arith.constant 0 : index
    %c0_96 = arith.constant 0 : index
    %311 = vector.load %arg5[%c1_94, %c0_95, %c0_96] : memref<5x9x32xf32, #tpu.memory_space<vmem>>, vector<1x8x32xf32>
    %312 = vector.shape_cast %311 : vector<1x8x32xf32> to vector<8x32xf32>
    %c1_97 = arith.constant 1 : index
    %c8_98 = arith.constant 8 : index
    %c0_99 = arith.constant 0 : index
    %313 = vector.load %arg5[%c1_97, %c8_98, %c0_99] : memref<5x9x32xf32, #tpu.memory_space<vmem>>, vector<1x1x32xf32>
    %314 = vector.shape_cast %313 : vector<1x1x32xf32> to vector<1x32xf32>
    %cst_100 = arith.constant dense<0.000000e+00> : vector<8x32xf32>
    %315 = tpu.matmul %307, %312, %cst_100 {dimension_numbers = #tpu.dot_dimension_numbers<[1], [0], [0], [1], [0, 0, 1, 1], [], []>} : vector<8x8xf32>, vector<8x32xf32>, vector<8x32xf32> -> vector<8x32xf32>
    %316 = vector.broadcast %314 : vector<1x32xf32> to vector<8x32xf32>
    %317 = arith.addf %315, %316 : vector<8x32xf32>
    %318 = vector.extract_strided_slice %317 {offsets = [0, 0], sizes = [8, 8], strides = [1, 1]} : vector<8x32xf32> to vector<8x8xf32>
    %319 = vector.extract_strided_slice %317 {offsets = [0, 8], sizes = [8, 8], strides = [1, 1]} : vector<8x32xf32> to vector<8x8xf32>
    %320 = vector.extract_strided_slice %317 {offsets = [0, 16], sizes = [8, 8], strides = [1, 1]} : vector<8x32xf32> to vector<8x8xf32>
    %321 = vector.extract_strided_slice %317 {offsets = [0, 24], sizes = [8, 8], strides = [1, 1]} : vector<8x32xf32> to vector<8x8xf32>
    %c1_101 = arith.constant 1 : index
    %c0_102 = arith.constant 0 : index
    %c0_103 = arith.constant 0 : index
    %c0_104 = arith.constant 0 : index
    %322 = vector.load %arg6[%c1_101, %c0_102, %c0_103, %c0_104] : memref<5x4x8x8xf32, #tpu.memory_space<vmem>>, vector<1x1x8x8xf32>
    %323 = vector.shape_cast %322 : vector<1x1x8x8xf32> to vector<8x8xf32>
    %c1_105 = arith.constant 1 : index
    %c1_106 = arith.constant 1 : index
    %c0_107 = arith.constant 0 : index
    %c0_108 = arith.constant 0 : index
    %324 = vector.load %arg6[%c1_105, %c1_106, %c0_107, %c0_108] : memref<5x4x8x8xf32, #tpu.memory_space<vmem>>, vector<1x1x8x8xf32>
    %325 = vector.shape_cast %324 : vector<1x1x8x8xf32> to vector<8x8xf32>
    %c1_109 = arith.constant 1 : index
    %c2_110 = arith.constant 2 : index
    %c0_111 = arith.constant 0 : index
    %c0_112 = arith.constant 0 : index
    %326 = vector.load %arg6[%c1_109, %c2_110, %c0_111, %c0_112] : memref<5x4x8x8xf32, #tpu.memory_space<vmem>>, vector<1x1x8x8xf32>
    %327 = vector.shape_cast %326 : vector<1x1x8x8xf32> to vector<8x8xf32>
    %c1_113 = arith.constant 1 : index
    %c3_114 = arith.constant 3 : index
    %c0_115 = arith.constant 0 : index
    %c0_116 = arith.constant 0 : index
    %328 = vector.load %arg6[%c1_113, %c3_114, %c0_115, %c0_116] : memref<5x4x8x8xf32, #tpu.memory_space<vmem>>, vector<1x1x8x8xf32>
    %329 = vector.shape_cast %328 : vector<1x1x8x8xf32> to vector<8x8xf32>
    %330 = vector.extract_strided_slice %318 {offsets = [0, 0], sizes = [1, 8], strides = [1, 1]} : vector<8x8xf32> to vector<1x8xf32>
    %cst_117 = arith.constant dense<0.000000e+00> : vector<1x8xf32>
    %331 = tpu.matmul %306, %323, %cst_117 {dimension_numbers = #tpu.dot_dimension_numbers<[1], [0], [0], [1], [0, 0, 1, 1], [], []>} : vector<1x8xf32>, vector<8x8xf32>, vector<1x8xf32> -> vector<1x8xf32>
    %332 = arith.addf %330, %331 : vector<1x8xf32>
    %333 = arith.negf %332 : vector<1x8xf32>
    %334 = math.exp %333 : vector<1x8xf32>
    %cst_118 = arith.constant 1.000000e+00 : f32
    %335 = vector.broadcast %cst_118 : f32 to vector<1x8xf32>
    %336 = arith.addf %335, %334 : vector<1x8xf32>
    %337 = arith.divf %335, %336 : vector<1x8xf32>
    %338 = vector.extract_strided_slice %319 {offsets = [0, 0], sizes = [1, 8], strides = [1, 1]} : vector<8x8xf32> to vector<1x8xf32>
    %cst_119 = arith.constant dense<0.000000e+00> : vector<1x8xf32>
    %339 = tpu.matmul %306, %325, %cst_119 {dimension_numbers = #tpu.dot_dimension_numbers<[1], [0], [0], [1], [0, 0, 1, 1], [], []>} : vector<1x8xf32>, vector<8x8xf32>, vector<1x8xf32> -> vector<1x8xf32>
    %340 = arith.addf %338, %339 : vector<1x8xf32>
    %341 = arith.negf %340 : vector<1x8xf32>
    %342 = math.exp %341 : vector<1x8xf32>
    %cst_120 = arith.constant 1.000000e+00 : f32
    %343 = vector.broadcast %cst_120 : f32 to vector<1x8xf32>
    %344 = arith.addf %343, %342 : vector<1x8xf32>
    %345 = arith.divf %343, %344 : vector<1x8xf32>
    %346 = vector.extract_strided_slice %320 {offsets = [0, 0], sizes = [1, 8], strides = [1, 1]} : vector<8x8xf32> to vector<1x8xf32>
    %cst_121 = arith.constant dense<0.000000e+00> : vector<1x8xf32>
    %347 = tpu.matmul %306, %327, %cst_121 {dimension_numbers = #tpu.dot_dimension_numbers<[1], [0], [0], [1], [0, 0, 1, 1], [], []>} : vector<1x8xf32>, vector<8x8xf32>, vector<1x8xf32> -> vector<1x8xf32>
    %348 = arith.addf %346, %347 : vector<1x8xf32>
    %349 = math.tanh %348 : vector<1x8xf32>
    %350 = vector.extract_strided_slice %321 {offsets = [0, 0], sizes = [1, 8], strides = [1, 1]} : vector<8x8xf32> to vector<1x8xf32>
    %cst_122 = arith.constant dense<0.000000e+00> : vector<1x8xf32>
    %351 = tpu.matmul %306, %329, %cst_122 {dimension_numbers = #tpu.dot_dimension_numbers<[1], [0], [0], [1], [0, 0, 1, 1], [], []>} : vector<1x8xf32>, vector<8x8xf32>, vector<1x8xf32> -> vector<1x8xf32>
    %352 = arith.addf %350, %351 : vector<1x8xf32>
    %353 = arith.negf %352 : vector<1x8xf32>
    %354 = math.exp %353 : vector<1x8xf32>
    %cst_123 = arith.constant 1.000000e+00 : f32
    %355 = vector.broadcast %cst_123 : f32 to vector<1x8xf32>
    %356 = arith.addf %355, %354 : vector<1x8xf32>
    %357 = arith.divf %355, %356 : vector<1x8xf32>
    %358 = arith.mulf %345, %304 : vector<1x8xf32>
    %359 = arith.mulf %337, %349 : vector<1x8xf32>
    %360 = arith.addf %358, %359 : vector<1x8xf32>
    %361 = math.tanh %360 : vector<1x8xf32>
    %362 = arith.mulf %357, %361 : vector<1x8xf32>
    %363 = vector.extract_strided_slice %318 {offsets = [1, 0], sizes = [1, 8], strides = [1, 1]} : vector<8x8xf32> to vector<1x8xf32>
    %cst_124 = arith.constant dense<0.000000e+00> : vector<1x8xf32>
    %364 = tpu.matmul %362, %323, %cst_124 {dimension_numbers = #tpu.dot_dimension_numbers<[1], [0], [0], [1], [0, 0, 1, 1], [], []>} : vector<1x8xf32>, vector<8x8xf32>, vector<1x8xf32> -> vector<1x8xf32>
    %365 = arith.addf %363, %364 : vector<1x8xf32>
    %366 = arith.negf %365 : vector<1x8xf32>
    %367 = math.exp %366 : vector<1x8xf32>
    %cst_125 = arith.constant 1.000000e+00 : f32
    %368 = vector.broadcast %cst_125 : f32 to vector<1x8xf32>
    %369 = arith.addf %368, %367 : vector<1x8xf32>
    %370 = arith.divf %368, %369 : vector<1x8xf32>
    %371 = vector.extract_strided_slice %319 {offsets = [1, 0], sizes = [1, 8], strides = [1, 1]} : vector<8x8xf32> to vector<1x8xf32>
    %cst_126 = arith.constant dense<0.000000e+00> : vector<1x8xf32>
    %372 = tpu.matmul %362, %325, %cst_126 {dimension_numbers = #tpu.dot_dimension_numbers<[1], [0], [0], [1], [0, 0, 1, 1], [], []>} : vector<1x8xf32>, vector<8x8xf32>, vector<1x8xf32> -> vector<1x8xf32>
    %373 = arith.addf %371, %372 : vector<1x8xf32>
    %374 = arith.negf %373 : vector<1x8xf32>
    %375 = math.exp %374 : vector<1x8xf32>
    %cst_127 = arith.constant 1.000000e+00 : f32
    %376 = vector.broadcast %cst_127 : f32 to vector<1x8xf32>
    %377 = arith.addf %376, %375 : vector<1x8xf32>
    %378 = arith.divf %376, %377 : vector<1x8xf32>
    %379 = vector.extract_strided_slice %320 {offsets = [1, 0], sizes = [1, 8], strides = [1, 1]} : vector<8x8xf32> to vector<1x8xf32>
    %cst_128 = arith.constant dense<0.000000e+00> : vector<1x8xf32>
    %380 = tpu.matmul %362, %327, %cst_128 {dimension_numbers = #tpu.dot_dimension_numbers<[1], [0], [0], [1], [0, 0, 1, 1], [], []>} : vector<1x8xf32>, vector<8x8xf32>, vector<1x8xf32> -> vector<1x8xf32>
    %381 = arith.addf %379, %380 : vector<1x8xf32>
    %382 = math.tanh %381 : vector<1x8xf32>
    %383 = vector.extract_strided_slice %321 {offsets = [1, 0], sizes = [1, 8], strides = [1, 1]} : vector<8x8xf32> to vector<1x8xf32>
    %cst_129 = arith.constant dense<0.000000e+00> : vector<1x8xf32>
    %384 = tpu.matmul %362, %329, %cst_129 {dimension_numbers = #tpu.dot_dimension_numbers<[1], [0], [0], [1], [0, 0, 1, 1], [], []>} : vector<1x8xf32>, vector<8x8xf32>, vector<1x8xf32> -> vector<1x8xf32>
    %385 = arith.addf %383, %384 : vector<1x8xf32>
    %386 = arith.negf %385 : vector<1x8xf32>
    %387 = math.exp %386 : vector<1x8xf32>
    %cst_130 = arith.constant 1.000000e+00 : f32
    %388 = vector.broadcast %cst_130 : f32 to vector<1x8xf32>
    %389 = arith.addf %388, %387 : vector<1x8xf32>
    %390 = arith.divf %388, %389 : vector<1x8xf32>
    %391 = arith.mulf %378, %360 : vector<1x8xf32>
    %392 = arith.mulf %370, %382 : vector<1x8xf32>
    %393 = arith.addf %391, %392 : vector<1x8xf32>
    %394 = math.tanh %393 : vector<1x8xf32>
    %395 = arith.mulf %390, %394 : vector<1x8xf32>
    %396 = vector.extract_strided_slice %318 {offsets = [2, 0], sizes = [1, 8], strides = [1, 1]} : vector<8x8xf32> to vector<1x8xf32>
    %cst_131 = arith.constant dense<0.000000e+00> : vector<1x8xf32>
    %397 = tpu.matmul %395, %323, %cst_131 {dimension_numbers = #tpu.dot_dimension_numbers<[1], [0], [0], [1], [0, 0, 1, 1], [], []>} : vector<1x8xf32>, vector<8x8xf32>, vector<1x8xf32> -> vector<1x8xf32>
    %398 = arith.addf %396, %397 : vector<1x8xf32>
    %399 = arith.negf %398 : vector<1x8xf32>
    %400 = math.exp %399 : vector<1x8xf32>
    %cst_132 = arith.constant 1.000000e+00 : f32
    %401 = vector.broadcast %cst_132 : f32 to vector<1x8xf32>
    %402 = arith.addf %401, %400 : vector<1x8xf32>
    %403 = arith.divf %401, %402 : vector<1x8xf32>
    %404 = vector.extract_strided_slice %319 {offsets = [2, 0], sizes = [1, 8], strides = [1, 1]} : vector<8x8xf32> to vector<1x8xf32>
    %cst_133 = arith.constant dense<0.000000e+00> : vector<1x8xf32>
    %405 = tpu.matmul %395, %325, %cst_133 {dimension_numbers = #tpu.dot_dimension_numbers<[1], [0], [0], [1], [0, 0, 1, 1], [], []>} : vector<1x8xf32>, vector<8x8xf32>, vector<1x8xf32> -> vector<1x8xf32>
    %406 = arith.addf %404, %405 : vector<1x8xf32>
    %407 = arith.negf %406 : vector<1x8xf32>
    %408 = math.exp %407 : vector<1x8xf32>
    %cst_134 = arith.constant 1.000000e+00 : f32
    %409 = vector.broadcast %cst_134 : f32 to vector<1x8xf32>
    %410 = arith.addf %409, %408 : vector<1x8xf32>
    %411 = arith.divf %409, %410 : vector<1x8xf32>
    %412 = vector.extract_strided_slice %320 {offsets = [2, 0], sizes = [1, 8], strides = [1, 1]} : vector<8x8xf32> to vector<1x8xf32>
    %cst_135 = arith.constant dense<0.000000e+00> : vector<1x8xf32>
    %413 = tpu.matmul %395, %327, %cst_135 {dimension_numbers = #tpu.dot_dimension_numbers<[1], [0], [0], [1], [0, 0, 1, 1], [], []>} : vector<1x8xf32>, vector<8x8xf32>, vector<1x8xf32> -> vector<1x8xf32>
    %414 = arith.addf %412, %413 : vector<1x8xf32>
    %415 = math.tanh %414 : vector<1x8xf32>
    %416 = vector.extract_strided_slice %321 {offsets = [2, 0], sizes = [1, 8], strides = [1, 1]} : vector<8x8xf32> to vector<1x8xf32>
    %cst_136 = arith.constant dense<0.000000e+00> : vector<1x8xf32>
    %417 = tpu.matmul %395, %329, %cst_136 {dimension_numbers = #tpu.dot_dimension_numbers<[1], [0], [0], [1], [0, 0, 1, 1], [], []>} : vector<1x8xf32>, vector<8x8xf32>, vector<1x8xf32> -> vector<1x8xf32>
    %418 = arith.addf %416, %417 : vector<1x8xf32>
    %419 = arith.negf %418 : vector<1x8xf32>
    %420 = math.exp %419 : vector<1x8xf32>
    %cst_137 = arith.constant 1.000000e+00 : f32
    %421 = vector.broadcast %cst_137 : f32 to vector<1x8xf32>
    %422 = arith.addf %421, %420 : vector<1x8xf32>
    %423 = arith.divf %421, %422 : vector<1x8xf32>
    %424 = arith.mulf %411, %393 : vector<1x8xf32>
    %425 = arith.mulf %403, %415 : vector<1x8xf32>
    %426 = arith.addf %424, %425 : vector<1x8xf32>
    %427 = math.tanh %426 : vector<1x8xf32>
    %428 = arith.mulf %423, %427 : vector<1x8xf32>
    %429 = vector.extract_strided_slice %318 {offsets = [3, 0], sizes = [1, 8], strides = [1, 1]} : vector<8x8xf32> to vector<1x8xf32>
    %cst_138 = arith.constant dense<0.000000e+00> : vector<1x8xf32>
    %430 = tpu.matmul %428, %323, %cst_138 {dimension_numbers = #tpu.dot_dimension_numbers<[1], [0], [0], [1], [0, 0, 1, 1], [], []>} : vector<1x8xf32>, vector<8x8xf32>, vector<1x8xf32> -> vector<1x8xf32>
    %431 = arith.addf %429, %430 : vector<1x8xf32>
    %432 = arith.negf %431 : vector<1x8xf32>
    %433 = math.exp %432 : vector<1x8xf32>
    %cst_139 = arith.constant 1.000000e+00 : f32
    %434 = vector.broadcast %cst_139 : f32 to vector<1x8xf32>
    %435 = arith.addf %434, %433 : vector<1x8xf32>
    %436 = arith.divf %434, %435 : vector<1x8xf32>
    %437 = vector.extract_strided_slice %319 {offsets = [3, 0], sizes = [1, 8], strides = [1, 1]} : vector<8x8xf32> to vector<1x8xf32>
    %cst_140 = arith.constant dense<0.000000e+00> : vector<1x8xf32>
    %438 = tpu.matmul %428, %325, %cst_140 {dimension_numbers = #tpu.dot_dimension_numbers<[1], [0], [0], [1], [0, 0, 1, 1], [], []>} : vector<1x8xf32>, vector<8x8xf32>, vector<1x8xf32> -> vector<1x8xf32>
    %439 = arith.addf %437, %438 : vector<1x8xf32>
    %440 = arith.negf %439 : vector<1x8xf32>
    %441 = math.exp %440 : vector<1x8xf32>
    %cst_141 = arith.constant 1.000000e+00 : f32
    %442 = vector.broadcast %cst_141 : f32 to vector<1x8xf32>
    %443 = arith.addf %442, %441 : vector<1x8xf32>
    %444 = arith.divf %442, %443 : vector<1x8xf32>
    %445 = vector.extract_strided_slice %320 {offsets = [3, 0], sizes = [1, 8], strides = [1, 1]} : vector<8x8xf32> to vector<1x8xf32>
    %cst_142 = arith.constant dense<0.000000e+00> : vector<1x8xf32>
    %446 = tpu.matmul %428, %327, %cst_142 {dimension_numbers = #tpu.dot_dimension_numbers<[1], [0], [0], [1], [0, 0, 1, 1], [], []>} : vector<1x8xf32>, vector<8x8xf32>, vector<1x8xf32> -> vector<1x8xf32>
    %447 = arith.addf %445, %446 : vector<1x8xf32>
    %448 = math.tanh %447 : vector<1x8xf32>
    %449 = vector.extract_strided_slice %321 {offsets = [3, 0], sizes = [1, 8], strides = [1, 1]} : vector<8x8xf32> to vector<1x8xf32>
    %cst_143 = arith.constant dense<0.000000e+00> : vector<1x8xf32>
    %450 = tpu.matmul %428, %329, %cst_143 {dimension_numbers = #tpu.dot_dimension_numbers<[1], [0], [0], [1], [0, 0, 1, 1], [], []>} : vector<1x8xf32>, vector<8x8xf32>, vector<1x8xf32> -> vector<1x8xf32>
    %451 = arith.addf %449, %450 : vector<1x8xf32>
    %452 = arith.negf %451 : vector<1x8xf32>
    %453 = math.exp %452 : vector<1x8xf32>
    %cst_144 = arith.constant 1.000000e+00 : f32
    %454 = vector.broadcast %cst_144 : f32 to vector<1x8xf32>
    %455 = arith.addf %454, %453 : vector<1x8xf32>
    %456 = arith.divf %454, %455 : vector<1x8xf32>
    %457 = arith.mulf %444, %426 : vector<1x8xf32>
    %458 = arith.mulf %436, %448 : vector<1x8xf32>
    %459 = arith.addf %457, %458 : vector<1x8xf32>
    %460 = math.tanh %459 : vector<1x8xf32>
    %461 = arith.mulf %456, %460 : vector<1x8xf32>
    %462 = vector.extract_strided_slice %318 {offsets = [4, 0], sizes = [1, 8], strides = [1, 1]} : vector<8x8xf32> to vector<1x8xf32>
    %cst_145 = arith.constant dense<0.000000e+00> : vector<1x8xf32>
    %463 = tpu.matmul %461, %323, %cst_145 {dimension_numbers = #tpu.dot_dimension_numbers<[1], [0], [0], [1], [0, 0, 1, 1], [], []>} : vector<1x8xf32>, vector<8x8xf32>, vector<1x8xf32> -> vector<1x8xf32>
    %464 = arith.addf %462, %463 : vector<1x8xf32>
    %465 = arith.negf %464 : vector<1x8xf32>
    %466 = math.exp %465 : vector<1x8xf32>
    %cst_146 = arith.constant 1.000000e+00 : f32
    %467 = vector.broadcast %cst_146 : f32 to vector<1x8xf32>
    %468 = arith.addf %467, %466 : vector<1x8xf32>
    %469 = arith.divf %467, %468 : vector<1x8xf32>
    %470 = vector.extract_strided_slice %319 {offsets = [4, 0], sizes = [1, 8], strides = [1, 1]} : vector<8x8xf32> to vector<1x8xf32>
    %cst_147 = arith.constant dense<0.000000e+00> : vector<1x8xf32>
    %471 = tpu.matmul %461, %325, %cst_147 {dimension_numbers = #tpu.dot_dimension_numbers<[1], [0], [0], [1], [0, 0, 1, 1], [], []>} : vector<1x8xf32>, vector<8x8xf32>, vector<1x8xf32> -> vector<1x8xf32>
    %472 = arith.addf %470, %471 : vector<1x8xf32>
    %473 = arith.negf %472 : vector<1x8xf32>
    %474 = math.exp %473 : vector<1x8xf32>
    %cst_148 = arith.constant 1.000000e+00 : f32
    %475 = vector.broadcast %cst_148 : f32 to vector<1x8xf32>
    %476 = arith.addf %475, %474 : vector<1x8xf32>
    %477 = arith.divf %475, %476 : vector<1x8xf32>
    %478 = vector.extract_strided_slice %320 {offsets = [4, 0], sizes = [1, 8], strides = [1, 1]} : vector<8x8xf32> to vector<1x8xf32>
    %cst_149 = arith.constant dense<0.000000e+00> : vector<1x8xf32>
    %479 = tpu.matmul %461, %327, %cst_149 {dimension_numbers = #tpu.dot_dimension_numbers<[1], [0], [0], [1], [0, 0, 1, 1], [], []>} : vector<1x8xf32>, vector<8x8xf32>, vector<1x8xf32> -> vector<1x8xf32>
    %480 = arith.addf %478, %479 : vector<1x8xf32>
    %481 = math.tanh %480 : vector<1x8xf32>
    %482 = vector.extract_strided_slice %321 {offsets = [4, 0], sizes = [1, 8], strides = [1, 1]} : vector<8x8xf32> to vector<1x8xf32>
    %cst_150 = arith.constant dense<0.000000e+00> : vector<1x8xf32>
    %483 = tpu.matmul %461, %329, %cst_150 {dimension_numbers = #tpu.dot_dimension_numbers<[1], [0], [0], [1], [0, 0, 1, 1], [], []>} : vector<1x8xf32>, vector<8x8xf32>, vector<1x8xf32> -> vector<1x8xf32>
    %484 = arith.addf %482, %483 : vector<1x8xf32>
    %485 = arith.negf %484 : vector<1x8xf32>
    %486 = math.exp %485 : vector<1x8xf32>
    %cst_151 = arith.constant 1.000000e+00 : f32
    %487 = vector.broadcast %cst_151 : f32 to vector<1x8xf32>
    %488 = arith.addf %487, %486 : vector<1x8xf32>
    %489 = arith.divf %487, %488 : vector<1x8xf32>
    %490 = arith.mulf %477, %459 : vector<1x8xf32>
    %491 = arith.mulf %469, %481 : vector<1x8xf32>
    %492 = arith.addf %490, %491 : vector<1x8xf32>
    %493 = math.tanh %492 : vector<1x8xf32>
    %494 = arith.mulf %489, %493 : vector<1x8xf32>
    %495 = vector.extract_strided_slice %318 {offsets = [5, 0], sizes = [1, 8], strides = [1, 1]} : vector<8x8xf32> to vector<1x8xf32>
    %cst_152 = arith.constant dense<0.000000e+00> : vector<1x8xf32>
    %496 = tpu.matmul %494, %323, %cst_152 {dimension_numbers = #tpu.dot_dimension_numbers<[1], [0], [0], [1], [0, 0, 1, 1], [], []>} : vector<1x8xf32>, vector<8x8xf32>, vector<1x8xf32> -> vector<1x8xf32>
    %497 = arith.addf %495, %496 : vector<1x8xf32>
    %498 = arith.negf %497 : vector<1x8xf32>
    %499 = math.exp %498 : vector<1x8xf32>
    %cst_153 = arith.constant 1.000000e+00 : f32
    %500 = vector.broadcast %cst_153 : f32 to vector<1x8xf32>
    %501 = arith.addf %500, %499 : vector<1x8xf32>
    %502 = arith.divf %500, %501 : vector<1x8xf32>
    %503 = vector.extract_strided_slice %319 {offsets = [5, 0], sizes = [1, 8], strides = [1, 1]} : vector<8x8xf32> to vector<1x8xf32>
    %cst_154 = arith.constant dense<0.000000e+00> : vector<1x8xf32>
    %504 = tpu.matmul %494, %325, %cst_154 {dimension_numbers = #tpu.dot_dimension_numbers<[1], [0], [0], [1], [0, 0, 1, 1], [], []>} : vector<1x8xf32>, vector<8x8xf32>, vector<1x8xf32> -> vector<1x8xf32>
    %505 = arith.addf %503, %504 : vector<1x8xf32>
    %506 = arith.negf %505 : vector<1x8xf32>
    %507 = math.exp %506 : vector<1x8xf32>
    %cst_155 = arith.constant 1.000000e+00 : f32
    %508 = vector.broadcast %cst_155 : f32 to vector<1x8xf32>
    %509 = arith.addf %508, %507 : vector<1x8xf32>
    %510 = arith.divf %508, %509 : vector<1x8xf32>
    %511 = vector.extract_strided_slice %320 {offsets = [5, 0], sizes = [1, 8], strides = [1, 1]} : vector<8x8xf32> to vector<1x8xf32>
    %cst_156 = arith.constant dense<0.000000e+00> : vector<1x8xf32>
    %512 = tpu.matmul %494, %327, %cst_156 {dimension_numbers = #tpu.dot_dimension_numbers<[1], [0], [0], [1], [0, 0, 1, 1], [], []>} : vector<1x8xf32>, vector<8x8xf32>, vector<1x8xf32> -> vector<1x8xf32>
    %513 = arith.addf %511, %512 : vector<1x8xf32>
    %514 = math.tanh %513 : vector<1x8xf32>
    %515 = vector.extract_strided_slice %321 {offsets = [5, 0], sizes = [1, 8], strides = [1, 1]} : vector<8x8xf32> to vector<1x8xf32>
    %cst_157 = arith.constant dense<0.000000e+00> : vector<1x8xf32>
    %516 = tpu.matmul %494, %329, %cst_157 {dimension_numbers = #tpu.dot_dimension_numbers<[1], [0], [0], [1], [0, 0, 1, 1], [], []>} : vector<1x8xf32>, vector<8x8xf32>, vector<1x8xf32> -> vector<1x8xf32>
    %517 = arith.addf %515, %516 : vector<1x8xf32>
    %518 = arith.negf %517 : vector<1x8xf32>
    %519 = math.exp %518 : vector<1x8xf32>
    %cst_158 = arith.constant 1.000000e+00 : f32
    %520 = vector.broadcast %cst_158 : f32 to vector<1x8xf32>
    %521 = arith.addf %520, %519 : vector<1x8xf32>
    %522 = arith.divf %520, %521 : vector<1x8xf32>
    %523 = arith.mulf %510, %492 : vector<1x8xf32>
    %524 = arith.mulf %502, %514 : vector<1x8xf32>
    %525 = arith.addf %523, %524 : vector<1x8xf32>
    %526 = math.tanh %525 : vector<1x8xf32>
    %527 = arith.mulf %522, %526 : vector<1x8xf32>
    %528 = vector.extract_strided_slice %318 {offsets = [6, 0], sizes = [1, 8], strides = [1, 1]} : vector<8x8xf32> to vector<1x8xf32>
    %cst_159 = arith.constant dense<0.000000e+00> : vector<1x8xf32>
    %529 = tpu.matmul %527, %323, %cst_159 {dimension_numbers = #tpu.dot_dimension_numbers<[1], [0], [0], [1], [0, 0, 1, 1], [], []>} : vector<1x8xf32>, vector<8x8xf32>, vector<1x8xf32> -> vector<1x8xf32>
    %530 = arith.addf %528, %529 : vector<1x8xf32>
    %531 = arith.negf %530 : vector<1x8xf32>
    %532 = math.exp %531 : vector<1x8xf32>
    %cst_160 = arith.constant 1.000000e+00 : f32
    %533 = vector.broadcast %cst_160 : f32 to vector<1x8xf32>
    %534 = arith.addf %533, %532 : vector<1x8xf32>
    %535 = arith.divf %533, %534 : vector<1x8xf32>
    %536 = vector.extract_strided_slice %319 {offsets = [6, 0], sizes = [1, 8], strides = [1, 1]} : vector<8x8xf32> to vector<1x8xf32>
    %cst_161 = arith.constant dense<0.000000e+00> : vector<1x8xf32>
    %537 = tpu.matmul %527, %325, %cst_161 {dimension_numbers = #tpu.dot_dimension_numbers<[1], [0], [0], [1], [0, 0, 1, 1], [], []>} : vector<1x8xf32>, vector<8x8xf32>, vector<1x8xf32> -> vector<1x8xf32>
    %538 = arith.addf %536, %537 : vector<1x8xf32>
    %539 = arith.negf %538 : vector<1x8xf32>
    %540 = math.exp %539 : vector<1x8xf32>
    %cst_162 = arith.constant 1.000000e+00 : f32
    %541 = vector.broadcast %cst_162 : f32 to vector<1x8xf32>
    %542 = arith.addf %541, %540 : vector<1x8xf32>
    %543 = arith.divf %541, %542 : vector<1x8xf32>
    %544 = vector.extract_strided_slice %320 {offsets = [6, 0], sizes = [1, 8], strides = [1, 1]} : vector<8x8xf32> to vector<1x8xf32>
    %cst_163 = arith.constant dense<0.000000e+00> : vector<1x8xf32>
    %545 = tpu.matmul %527, %327, %cst_163 {dimension_numbers = #tpu.dot_dimension_numbers<[1], [0], [0], [1], [0, 0, 1, 1], [], []>} : vector<1x8xf32>, vector<8x8xf32>, vector<1x8xf32> -> vector<1x8xf32>
    %546 = arith.addf %544, %545 : vector<1x8xf32>
    %547 = math.tanh %546 : vector<1x8xf32>
    %548 = vector.extract_strided_slice %321 {offsets = [6, 0], sizes = [1, 8], strides = [1, 1]} : vector<8x8xf32> to vector<1x8xf32>
    %cst_164 = arith.constant dense<0.000000e+00> : vector<1x8xf32>
    %549 = tpu.matmul %527, %329, %cst_164 {dimension_numbers = #tpu.dot_dimension_numbers<[1], [0], [0], [1], [0, 0, 1, 1], [], []>} : vector<1x8xf32>, vector<8x8xf32>, vector<1x8xf32> -> vector<1x8xf32>
    %550 = arith.addf %548, %549 : vector<1x8xf32>
    %551 = arith.negf %550 : vector<1x8xf32>
    %552 = math.exp %551 : vector<1x8xf32>
    %cst_165 = arith.constant 1.000000e+00 : f32
    %553 = vector.broadcast %cst_165 : f32 to vector<1x8xf32>
    %554 = arith.addf %553, %552 : vector<1x8xf32>
    %555 = arith.divf %553, %554 : vector<1x8xf32>
    %556 = arith.mulf %543, %525 : vector<1x8xf32>
    %557 = arith.mulf %535, %547 : vector<1x8xf32>
    %558 = arith.addf %556, %557 : vector<1x8xf32>
    %559 = math.tanh %558 : vector<1x8xf32>
    %560 = arith.mulf %555, %559 : vector<1x8xf32>
    %561 = vector.extract_strided_slice %318 {offsets = [7, 0], sizes = [1, 8], strides = [1, 1]} : vector<8x8xf32> to vector<1x8xf32>
    %cst_166 = arith.constant dense<0.000000e+00> : vector<1x8xf32>
    %562 = tpu.matmul %560, %323, %cst_166 {dimension_numbers = #tpu.dot_dimension_numbers<[1], [0], [0], [1], [0, 0, 1, 1], [], []>} : vector<1x8xf32>, vector<8x8xf32>, vector<1x8xf32> -> vector<1x8xf32>
    %563 = arith.addf %561, %562 : vector<1x8xf32>
    %564 = arith.negf %563 : vector<1x8xf32>
    %565 = math.exp %564 : vector<1x8xf32>
    %cst_167 = arith.constant 1.000000e+00 : f32
    %566 = vector.broadcast %cst_167 : f32 to vector<1x8xf32>
    %567 = arith.addf %566, %565 : vector<1x8xf32>
    %568 = arith.divf %566, %567 : vector<1x8xf32>
    %569 = vector.extract_strided_slice %319 {offsets = [7, 0], sizes = [1, 8], strides = [1, 1]} : vector<8x8xf32> to vector<1x8xf32>
    %cst_168 = arith.constant dense<0.000000e+00> : vector<1x8xf32>
    %570 = tpu.matmul %560, %325, %cst_168 {dimension_numbers = #tpu.dot_dimension_numbers<[1], [0], [0], [1], [0, 0, 1, 1], [], []>} : vector<1x8xf32>, vector<8x8xf32>, vector<1x8xf32> -> vector<1x8xf32>
    %571 = arith.addf %569, %570 : vector<1x8xf32>
    %572 = arith.negf %571 : vector<1x8xf32>
    %573 = math.exp %572 : vector<1x8xf32>
    %cst_169 = arith.constant 1.000000e+00 : f32
    %574 = vector.broadcast %cst_169 : f32 to vector<1x8xf32>
    %575 = arith.addf %574, %573 : vector<1x8xf32>
    %576 = arith.divf %574, %575 : vector<1x8xf32>
    %577 = vector.extract_strided_slice %320 {offsets = [7, 0], sizes = [1, 8], strides = [1, 1]} : vector<8x8xf32> to vector<1x8xf32>
    %cst_170 = arith.constant dense<0.000000e+00> : vector<1x8xf32>
    %578 = tpu.matmul %560, %327, %cst_170 {dimension_numbers = #tpu.dot_dimension_numbers<[1], [0], [0], [1], [0, 0, 1, 1], [], []>} : vector<1x8xf32>, vector<8x8xf32>, vector<1x8xf32> -> vector<1x8xf32>
    %579 = arith.addf %577, %578 : vector<1x8xf32>
    %580 = math.tanh %579 : vector<1x8xf32>
    %581 = vector.extract_strided_slice %321 {offsets = [7, 0], sizes = [1, 8], strides = [1, 1]} : vector<8x8xf32> to vector<1x8xf32>
    %cst_171 = arith.constant dense<0.000000e+00> : vector<1x8xf32>
    %582 = tpu.matmul %560, %329, %cst_171 {dimension_numbers = #tpu.dot_dimension_numbers<[1], [0], [0], [1], [0, 0, 1, 1], [], []>} : vector<1x8xf32>, vector<8x8xf32>, vector<1x8xf32> -> vector<1x8xf32>
    %583 = arith.addf %581, %582 : vector<1x8xf32>
    %584 = arith.negf %583 : vector<1x8xf32>
    %585 = math.exp %584 : vector<1x8xf32>
    %cst_172 = arith.constant 1.000000e+00 : f32
    %586 = vector.broadcast %cst_172 : f32 to vector<1x8xf32>
    %587 = arith.addf %586, %585 : vector<1x8xf32>
    %588 = arith.divf %586, %587 : vector<1x8xf32>
    %589 = arith.mulf %576, %558 : vector<1x8xf32>
    %590 = arith.mulf %568, %580 : vector<1x8xf32>
    %591 = arith.addf %589, %590 : vector<1x8xf32>
    %592 = math.tanh %591 : vector<1x8xf32>
    %593 = arith.mulf %588, %592 : vector<1x8xf32>
    %594 = tpu.concatenate %362, %395, %428, %461, %494, %527, %560, %593 in 0 : vector<1x8xf32>, vector<1x8xf32>, vector<1x8xf32>, vector<1x8xf32>, vector<1x8xf32>, vector<1x8xf32>, vector<1x8xf32>, vector<1x8xf32> -> vector<8x8xf32>
    %c1_173 = arith.constant 1 : index
    %c0_174 = arith.constant 0 : index
    %c0_175 = arith.constant 0 : index
    %595 = vector.load %arg7[%c1_173, %c0_174, %c0_175] : memref<5x8x8xf32, #tpu.memory_space<vmem>>, vector<1x8x8xf32>
    %596 = vector.shape_cast %595 : vector<1x8x8xf32> to vector<8x8xf32>
    %597 = vector.shape_cast %594 : vector<8x8xf32> to vector<1x8x8xf32>
    tpu.vector_store %arg7[%c1_173, %c0_174, %c0_175], %597 {strides = array<i32>} : memref<5x8x8xf32, #tpu.memory_space<vmem>>, vector<1x8x8xf32>,
    %c2_176 = arith.constant 2 : index
    %c0_177 = arith.constant 0 : index
    %c0_178 = arith.constant 0 : index
    %598 = vector.load %arg5[%c2_176, %c0_177, %c0_178] : memref<5x9x32xf32, #tpu.memory_space<vmem>>, vector<1x8x32xf32>
    %599 = vector.shape_cast %598 : vector<1x8x32xf32> to vector<8x32xf32>
    %c2_179 = arith.constant 2 : index
    %c8_180 = arith.constant 8 : index
    %c0_181 = arith.constant 0 : index
    %600 = vector.load %arg5[%c2_179, %c8_180, %c0_181] : memref<5x9x32xf32, #tpu.memory_space<vmem>>, vector<1x1x32xf32>
    %601 = vector.shape_cast %600 : vector<1x1x32xf32> to vector<1x32xf32>
    %cst_182 = arith.constant dense<0.000000e+00> : vector<8x32xf32>
    %602 = tpu.matmul %594, %599, %cst_182 {dimension_numbers = #tpu.dot_dimension_numbers<[1], [0], [0], [1], [0, 0, 1, 1], [], []>} : vector<8x8xf32>, vector<8x32xf32>, vector<8x32xf32> -> vector<8x32xf32>
    %603 = vector.broadcast %601 : vector<1x32xf32> to vector<8x32xf32>
    %604 = arith.addf %602, %603 : vector<8x32xf32>
    %605 = vector.extract_strided_slice %604 {offsets = [0, 0], sizes = [8, 8], strides = [1, 1]} : vector<8x32xf32> to vector<8x8xf32>
    %606 = vector.extract_strided_slice %604 {offsets = [0, 8], sizes = [8, 8], strides = [1, 1]} : vector<8x32xf32> to vector<8x8xf32>
    %607 = vector.extract_strided_slice %604 {offsets = [0, 16], sizes = [8, 8], strides = [1, 1]} : vector<8x32xf32> to vector<8x8xf32>
    %608 = vector.extract_strided_slice %604 {offsets = [0, 24], sizes = [8, 8], strides = [1, 1]} : vector<8x32xf32> to vector<8x8xf32>
    %c2_183 = arith.constant 2 : index
    %c0_184 = arith.constant 0 : index
    %c0_185 = arith.constant 0 : index
    %c0_186 = arith.constant 0 : index
    %609 = vector.load %arg6[%c2_183, %c0_184, %c0_185, %c0_186] : memref<5x4x8x8xf32, #tpu.memory_space<vmem>>, vector<1x1x8x8xf32>
    %610 = vector.shape_cast %609 : vector<1x1x8x8xf32> to vector<8x8xf32>
    %c2_187 = arith.constant 2 : index
    %c1_188 = arith.constant 1 : index
    %c0_189 = arith.constant 0 : index
    %c0_190 = arith.constant 0 : index
    %611 = vector.load %arg6[%c2_187, %c1_188, %c0_189, %c0_190] : memref<5x4x8x8xf32, #tpu.memory_space<vmem>>, vector<1x1x8x8xf32>
    %612 = vector.shape_cast %611 : vector<1x1x8x8xf32> to vector<8x8xf32>
    %c2_191 = arith.constant 2 : index
    %c2_192 = arith.constant 2 : index
    %c0_193 = arith.constant 0 : index
    %c0_194 = arith.constant 0 : index
    %613 = vector.load %arg6[%c2_191, %c2_192, %c0_193, %c0_194] : memref<5x4x8x8xf32, #tpu.memory_space<vmem>>, vector<1x1x8x8xf32>
    %614 = vector.shape_cast %613 : vector<1x1x8x8xf32> to vector<8x8xf32>
    %c2_195 = arith.constant 2 : index
    %c3_196 = arith.constant 3 : index
    %c0_197 = arith.constant 0 : index
    %c0_198 = arith.constant 0 : index
    %615 = vector.load %arg6[%c2_195, %c3_196, %c0_197, %c0_198] : memref<5x4x8x8xf32, #tpu.memory_space<vmem>>, vector<1x1x8x8xf32>
    %616 = vector.shape_cast %615 : vector<1x1x8x8xf32> to vector<8x8xf32>
    %617 = vector.extract_strided_slice %605 {offsets = [0, 0], sizes = [1, 8], strides = [1, 1]} : vector<8x8xf32> to vector<1x8xf32>
    %cst_199 = arith.constant dense<0.000000e+00> : vector<1x8xf32>
    %618 = tpu.matmul %593, %610, %cst_199 {dimension_numbers = #tpu.dot_dimension_numbers<[1], [0], [0], [1], [0, 0, 1, 1], [], []>} : vector<1x8xf32>, vector<8x8xf32>, vector<1x8xf32> -> vector<1x8xf32>
    %619 = arith.addf %617, %618 : vector<1x8xf32>
    %620 = arith.negf %619 : vector<1x8xf32>
    %621 = math.exp %620 : vector<1x8xf32>
    %cst_200 = arith.constant 1.000000e+00 : f32
    %622 = vector.broadcast %cst_200 : f32 to vector<1x8xf32>
    %623 = arith.addf %622, %621 : vector<1x8xf32>
    %624 = arith.divf %622, %623 : vector<1x8xf32>
    %625 = vector.extract_strided_slice %606 {offsets = [0, 0], sizes = [1, 8], strides = [1, 1]} : vector<8x8xf32> to vector<1x8xf32>
    %cst_201 = arith.constant dense<0.000000e+00> : vector<1x8xf32>
    %626 = tpu.matmul %593, %612, %cst_201 {dimension_numbers = #tpu.dot_dimension_numbers<[1], [0], [0], [1], [0, 0, 1, 1], [], []>} : vector<1x8xf32>, vector<8x8xf32>, vector<1x8xf32> -> vector<1x8xf32>
    %627 = arith.addf %625, %626 : vector<1x8xf32>
    %628 = arith.negf %627 : vector<1x8xf32>
    %629 = math.exp %628 : vector<1x8xf32>
    %cst_202 = arith.constant 1.000000e+00 : f32
    %630 = vector.broadcast %cst_202 : f32 to vector<1x8xf32>
    %631 = arith.addf %630, %629 : vector<1x8xf32>
    %632 = arith.divf %630, %631 : vector<1x8xf32>
    %633 = vector.extract_strided_slice %607 {offsets = [0, 0], sizes = [1, 8], strides = [1, 1]} : vector<8x8xf32> to vector<1x8xf32>
    %cst_203 = arith.constant dense<0.000000e+00> : vector<1x8xf32>
    %634 = tpu.matmul %593, %614, %cst_203 {dimension_numbers = #tpu.dot_dimension_numbers<[1], [0], [0], [1], [0, 0, 1, 1], [], []>} : vector<1x8xf32>, vector<8x8xf32>, vector<1x8xf32> -> vector<1x8xf32>
    %635 = arith.addf %633, %634 : vector<1x8xf32>
    %636 = math.tanh %635 : vector<1x8xf32>
    %637 = vector.extract_strided_slice %608 {offsets = [0, 0], sizes = [1, 8], strides = [1, 1]} : vector<8x8xf32> to vector<1x8xf32>
    %cst_204 = arith.constant dense<0.000000e+00> : vector<1x8xf32>
    %638 = tpu.matmul %593, %616, %cst_204 {dimension_numbers = #tpu.dot_dimension_numbers<[1], [0], [0], [1], [0, 0, 1, 1], [], []>} : vector<1x8xf32>, vector<8x8xf32>, vector<1x8xf32> -> vector<1x8xf32>
    %639 = arith.addf %637, %638 : vector<1x8xf32>
    %640 = arith.negf %639 : vector<1x8xf32>
    %641 = math.exp %640 : vector<1x8xf32>
    %cst_205 = arith.constant 1.000000e+00 : f32
    %642 = vector.broadcast %cst_205 : f32 to vector<1x8xf32>
    %643 = arith.addf %642, %641 : vector<1x8xf32>
    %644 = arith.divf %642, %643 : vector<1x8xf32>
    %645 = arith.mulf %632, %591 : vector<1x8xf32>
    %646 = arith.mulf %624, %636 : vector<1x8xf32>
    %647 = arith.addf %645, %646 : vector<1x8xf32>
    %648 = math.tanh %647 : vector<1x8xf32>
    %649 = arith.mulf %644, %648 : vector<1x8xf32>
    %650 = vector.extract_strided_slice %605 {offsets = [1, 0], sizes = [1, 8], strides = [1, 1]} : vector<8x8xf32> to vector<1x8xf32>
    %cst_206 = arith.constant dense<0.000000e+00> : vector<1x8xf32>
    %651 = tpu.matmul %649, %610, %cst_206 {dimension_numbers = #tpu.dot_dimension_numbers<[1], [0], [0], [1], [0, 0, 1, 1], [], []>} : vector<1x8xf32>, vector<8x8xf32>, vector<1x8xf32> -> vector<1x8xf32>
    %652 = arith.addf %650, %651 : vector<1x8xf32>
    %653 = arith.negf %652 : vector<1x8xf32>
    %654 = math.exp %653 : vector<1x8xf32>
    %cst_207 = arith.constant 1.000000e+00 : f32
    %655 = vector.broadcast %cst_207 : f32 to vector<1x8xf32>
    %656 = arith.addf %655, %654 : vector<1x8xf32>
    %657 = arith.divf %655, %656 : vector<1x8xf32>
    %658 = vector.extract_strided_slice %606 {offsets = [1, 0], sizes = [1, 8], strides = [1, 1]} : vector<8x8xf32> to vector<1x8xf32>
    %cst_208 = arith.constant dense<0.000000e+00> : vector<1x8xf32>
    %659 = tpu.matmul %649, %612, %cst_208 {dimension_numbers = #tpu.dot_dimension_numbers<[1], [0], [0], [1], [0, 0, 1, 1], [], []>} : vector<1x8xf32>, vector<8x8xf32>, vector<1x8xf32> -> vector<1x8xf32>
    %660 = arith.addf %658, %659 : vector<1x8xf32>
    %661 = arith.negf %660 : vector<1x8xf32>
    %662 = math.exp %661 : vector<1x8xf32>
    %cst_209 = arith.constant 1.000000e+00 : f32
    %663 = vector.broadcast %cst_209 : f32 to vector<1x8xf32>
    %664 = arith.addf %663, %662 : vector<1x8xf32>
    %665 = arith.divf %663, %664 : vector<1x8xf32>
    %666 = vector.extract_strided_slice %607 {offsets = [1, 0], sizes = [1, 8], strides = [1, 1]} : vector<8x8xf32> to vector<1x8xf32>
    %cst_210 = arith.constant dense<0.000000e+00> : vector<1x8xf32>
    %667 = tpu.matmul %649, %614, %cst_210 {dimension_numbers = #tpu.dot_dimension_numbers<[1], [0], [0], [1], [0, 0, 1, 1], [], []>} : vector<1x8xf32>, vector<8x8xf32>, vector<1x8xf32> -> vector<1x8xf32>
    %668 = arith.addf %666, %667 : vector<1x8xf32>
    %669 = math.tanh %668 : vector<1x8xf32>
    %670 = vector.extract_strided_slice %608 {offsets = [1, 0], sizes = [1, 8], strides = [1, 1]} : vector<8x8xf32> to vector<1x8xf32>
    %cst_211 = arith.constant dense<0.000000e+00> : vector<1x8xf32>
    %671 = tpu.matmul %649, %616, %cst_211 {dimension_numbers = #tpu.dot_dimension_numbers<[1], [0], [0], [1], [0, 0, 1, 1], [], []>} : vector<1x8xf32>, vector<8x8xf32>, vector<1x8xf32> -> vector<1x8xf32>
    %672 = arith.addf %670, %671 : vector<1x8xf32>
    %673 = arith.negf %672 : vector<1x8xf32>
    %674 = math.exp %673 : vector<1x8xf32>
    %cst_212 = arith.constant 1.000000e+00 : f32
    %675 = vector.broadcast %cst_212 : f32 to vector<1x8xf32>
    %676 = arith.addf %675, %674 : vector<1x8xf32>
    %677 = arith.divf %675, %676 : vector<1x8xf32>
    %678 = arith.mulf %665, %647 : vector<1x8xf32>
    %679 = arith.mulf %657, %669 : vector<1x8xf32>
    %680 = arith.addf %678, %679 : vector<1x8xf32>
    %681 = math.tanh %680 : vector<1x8xf32>
    %682 = arith.mulf %677, %681 : vector<1x8xf32>
    %683 = vector.extract_strided_slice %605 {offsets = [2, 0], sizes = [1, 8], strides = [1, 1]} : vector<8x8xf32> to vector<1x8xf32>
    %cst_213 = arith.constant dense<0.000000e+00> : vector<1x8xf32>
    %684 = tpu.matmul %682, %610, %cst_213 {dimension_numbers = #tpu.dot_dimension_numbers<[1], [0], [0], [1], [0, 0, 1, 1], [], []>} : vector<1x8xf32>, vector<8x8xf32>, vector<1x8xf32> -> vector<1x8xf32>
    %685 = arith.addf %683, %684 : vector<1x8xf32>
    %686 = arith.negf %685 : vector<1x8xf32>
    %687 = math.exp %686 : vector<1x8xf32>
    %cst_214 = arith.constant 1.000000e+00 : f32
    %688 = vector.broadcast %cst_214 : f32 to vector<1x8xf32>
    %689 = arith.addf %688, %687 : vector<1x8xf32>
    %690 = arith.divf %688, %689 : vector<1x8xf32>
    %691 = vector.extract_strided_slice %606 {offsets = [2, 0], sizes = [1, 8], strides = [1, 1]} : vector<8x8xf32> to vector<1x8xf32>
    %cst_215 = arith.constant dense<0.000000e+00> : vector<1x8xf32>
    %692 = tpu.matmul %682, %612, %cst_215 {dimension_numbers = #tpu.dot_dimension_numbers<[1], [0], [0], [1], [0, 0, 1, 1], [], []>} : vector<1x8xf32>, vector<8x8xf32>, vector<1x8xf32> -> vector<1x8xf32>
    %693 = arith.addf %691, %692 : vector<1x8xf32>
    %694 = arith.negf %693 : vector<1x8xf32>
    %695 = math.exp %694 : vector<1x8xf32>
    %cst_216 = arith.constant 1.000000e+00 : f32
    %696 = vector.broadcast %cst_216 : f32 to vector<1x8xf32>
    %697 = arith.addf %696, %695 : vector<1x8xf32>
    %698 = arith.divf %696, %697 : vector<1x8xf32>
    %699 = vector.extract_strided_slice %607 {offsets = [2, 0], sizes = [1, 8], strides = [1, 1]} : vector<8x8xf32> to vector<1x8xf32>
    %cst_217 = arith.constant dense<0.000000e+00> : vector<1x8xf32>
    %700 = tpu.matmul %682, %614, %cst_217 {dimension_numbers = #tpu.dot_dimension_numbers<[1], [0], [0], [1], [0, 0, 1, 1], [], []>} : vector<1x8xf32>, vector<8x8xf32>, vector<1x8xf32> -> vector<1x8xf32>
    %701 = arith.addf %699, %700 : vector<1x8xf32>
    %702 = math.tanh %701 : vector<1x8xf32>
    %703 = vector.extract_strided_slice %608 {offsets = [2, 0], sizes = [1, 8], strides = [1, 1]} : vector<8x8xf32> to vector<1x8xf32>
    %cst_218 = arith.constant dense<0.000000e+00> : vector<1x8xf32>
    %704 = tpu.matmul %682, %616, %cst_218 {dimension_numbers = #tpu.dot_dimension_numbers<[1], [0], [0], [1], [0, 0, 1, 1], [], []>} : vector<1x8xf32>, vector<8x8xf32>, vector<1x8xf32> -> vector<1x8xf32>
    %705 = arith.addf %703, %704 : vector<1x8xf32>
    %706 = arith.negf %705 : vector<1x8xf32>
    %707 = math.exp %706 : vector<1x8xf32>
    %cst_219 = arith.constant 1.000000e+00 : f32
    %708 = vector.broadcast %cst_219 : f32 to vector<1x8xf32>
    %709 = arith.addf %708, %707 : vector<1x8xf32>
    %710 = arith.divf %708, %709 : vector<1x8xf32>
    %711 = arith.mulf %698, %680 : vector<1x8xf32>
    %712 = arith.mulf %690, %702 : vector<1x8xf32>
    %713 = arith.addf %711, %712 : vector<1x8xf32>
    %714 = math.tanh %713 : vector<1x8xf32>
    %715 = arith.mulf %710, %714 : vector<1x8xf32>
    %716 = vector.extract_strided_slice %605 {offsets = [3, 0], sizes = [1, 8], strides = [1, 1]} : vector<8x8xf32> to vector<1x8xf32>
    %cst_220 = arith.constant dense<0.000000e+00> : vector<1x8xf32>
    %717 = tpu.matmul %715, %610, %cst_220 {dimension_numbers = #tpu.dot_dimension_numbers<[1], [0], [0], [1], [0, 0, 1, 1], [], []>} : vector<1x8xf32>, vector<8x8xf32>, vector<1x8xf32> -> vector<1x8xf32>
    %718 = arith.addf %716, %717 : vector<1x8xf32>
    %719 = arith.negf %718 : vector<1x8xf32>
    %720 = math.exp %719 : vector<1x8xf32>
    %cst_221 = arith.constant 1.000000e+00 : f32
    %721 = vector.broadcast %cst_221 : f32 to vector<1x8xf32>
    %722 = arith.addf %721, %720 : vector<1x8xf32>
    %723 = arith.divf %721, %722 : vector<1x8xf32>
    %724 = vector.extract_strided_slice %606 {offsets = [3, 0], sizes = [1, 8], strides = [1, 1]} : vector<8x8xf32> to vector<1x8xf32>
    %cst_222 = arith.constant dense<0.000000e+00> : vector<1x8xf32>
    %725 = tpu.matmul %715, %612, %cst_222 {dimension_numbers = #tpu.dot_dimension_numbers<[1], [0], [0], [1], [0, 0, 1, 1], [], []>} : vector<1x8xf32>, vector<8x8xf32>, vector<1x8xf32> -> vector<1x8xf32>
    %726 = arith.addf %724, %725 : vector<1x8xf32>
    %727 = arith.negf %726 : vector<1x8xf32>
    %728 = math.exp %727 : vector<1x8xf32>
    %cst_223 = arith.constant 1.000000e+00 : f32
    %729 = vector.broadcast %cst_223 : f32 to vector<1x8xf32>
    %730 = arith.addf %729, %728 : vector<1x8xf32>
    %731 = arith.divf %729, %730 : vector<1x8xf32>
    %732 = vector.extract_strided_slice %607 {offsets = [3, 0], sizes = [1, 8], strides = [1, 1]} : vector<8x8xf32> to vector<1x8xf32>
    %cst_224 = arith.constant dense<0.000000e+00> : vector<1x8xf32>
    %733 = tpu.matmul %715, %614, %cst_224 {dimension_numbers = #tpu.dot_dimension_numbers<[1], [0], [0], [1], [0, 0, 1, 1], [], []>} : vector<1x8xf32>, vector<8x8xf32>, vector<1x8xf32> -> vector<1x8xf32>
    %734 = arith.addf %732, %733 : vector<1x8xf32>
    %735 = math.tanh %734 : vector<1x8xf32>
    %736 = vector.extract_strided_slice %608 {offsets = [3, 0], sizes = [1, 8], strides = [1, 1]} : vector<8x8xf32> to vector<1x8xf32>
    %cst_225 = arith.constant dense<0.000000e+00> : vector<1x8xf32>
    %737 = tpu.matmul %715, %616, %cst_225 {dimension_numbers = #tpu.dot_dimension_numbers<[1], [0], [0], [1], [0, 0, 1, 1], [], []>} : vector<1x8xf32>, vector<8x8xf32>, vector<1x8xf32> -> vector<1x8xf32>
    %738 = arith.addf %736, %737 : vector<1x8xf32>
    %739 = arith.negf %738 : vector<1x8xf32>
    %740 = math.exp %739 : vector<1x8xf32>
    %cst_226 = arith.constant 1.000000e+00 : f32
    %741 = vector.broadcast %cst_226 : f32 to vector<1x8xf32>
    %742 = arith.addf %741, %740 : vector<1x8xf32>
    %743 = arith.divf %741, %742 : vector<1x8xf32>
    %744 = arith.mulf %731, %713 : vector<1x8xf32>
    %745 = arith.mulf %723, %735 : vector<1x8xf32>
    %746 = arith.addf %744, %745 : vector<1x8xf32>
    %747 = math.tanh %746 : vector<1x8xf32>
    %748 = arith.mulf %743, %747 : vector<1x8xf32>
    %749 = vector.extract_strided_slice %605 {offsets = [4, 0], sizes = [1, 8], strides = [1, 1]} : vector<8x8xf32> to vector<1x8xf32>
    %cst_227 = arith.constant dense<0.000000e+00> : vector<1x8xf32>
    %750 = tpu.matmul %748, %610, %cst_227 {dimension_numbers = #tpu.dot_dimension_numbers<[1], [0], [0], [1], [0, 0, 1, 1], [], []>} : vector<1x8xf32>, vector<8x8xf32>, vector<1x8xf32> -> vector<1x8xf32>
    %751 = arith.addf %749, %750 : vector<1x8xf32>
    %752 = arith.negf %751 : vector<1x8xf32>
    %753 = math.exp %752 : vector<1x8xf32>
    %cst_228 = arith.constant 1.000000e+00 : f32
    %754 = vector.broadcast %cst_228 : f32 to vector<1x8xf32>
    %755 = arith.addf %754, %753 : vector<1x8xf32>
    %756 = arith.divf %754, %755 : vector<1x8xf32>
    %757 = vector.extract_strided_slice %606 {offsets = [4, 0], sizes = [1, 8], strides = [1, 1]} : vector<8x8xf32> to vector<1x8xf32>
    %cst_229 = arith.constant dense<0.000000e+00> : vector<1x8xf32>
    %758 = tpu.matmul %748, %612, %cst_229 {dimension_numbers = #tpu.dot_dimension_numbers<[1], [0], [0], [1], [0, 0, 1, 1], [], []>} : vector<1x8xf32>, vector<8x8xf32>, vector<1x8xf32> -> vector<1x8xf32>
    %759 = arith.addf %757, %758 : vector<1x8xf32>
    %760 = arith.negf %759 : vector<1x8xf32>
    %761 = math.exp %760 : vector<1x8xf32>
    %cst_230 = arith.constant 1.000000e+00 : f32
    %762 = vector.broadcast %cst_230 : f32 to vector<1x8xf32>
    %763 = arith.addf %762, %761 : vector<1x8xf32>
    %764 = arith.divf %762, %763 : vector<1x8xf32>
    %765 = vector.extract_strided_slice %607 {offsets = [4, 0], sizes = [1, 8], strides = [1, 1]} : vector<8x8xf32> to vector<1x8xf32>
    %cst_231 = arith.constant dense<0.000000e+00> : vector<1x8xf32>
    %766 = tpu.matmul %748, %614, %cst_231 {dimension_numbers = #tpu.dot_dimension_numbers<[1], [0], [0], [1], [0, 0, 1, 1], [], []>} : vector<1x8xf32>, vector<8x8xf32>, vector<1x8xf32> -> vector<1x8xf32>
    %767 = arith.addf %765, %766 : vector<1x8xf32>
    %768 = math.tanh %767 : vector<1x8xf32>
    %769 = vector.extract_strided_slice %608 {offsets = [4, 0], sizes = [1, 8], strides = [1, 1]} : vector<8x8xf32> to vector<1x8xf32>
    %cst_232 = arith.constant dense<0.000000e+00> : vector<1x8xf32>
    %770 = tpu.matmul %748, %616, %cst_232 {dimension_numbers = #tpu.dot_dimension_numbers<[1], [0], [0], [1], [0, 0, 1, 1], [], []>} : vector<1x8xf32>, vector<8x8xf32>, vector<1x8xf32> -> vector<1x8xf32>
    %771 = arith.addf %769, %770 : vector<1x8xf32>
    %772 = arith.negf %771 : vector<1x8xf32>
    %773 = math.exp %772 : vector<1x8xf32>
    %cst_233 = arith.constant 1.000000e+00 : f32
    %774 = vector.broadcast %cst_233 : f32 to vector<1x8xf32>
    %775 = arith.addf %774, %773 : vector<1x8xf32>
    %776 = arith.divf %774, %775 : vector<1x8xf32>
    %777 = arith.mulf %764, %746 : vector<1x8xf32>
    %778 = arith.mulf %756, %768 : vector<1x8xf32>
    %779 = arith.addf %777, %778 : vector<1x8xf32>
    %780 = math.tanh %779 : vector<1x8xf32>
    %781 = arith.mulf %776, %780 : vector<1x8xf32>
    %782 = vector.extract_strided_slice %605 {offsets = [5, 0], sizes = [1, 8], strides = [1, 1]} : vector<8x8xf32> to vector<1x8xf32>
    %cst_234 = arith.constant dense<0.000000e+00> : vector<1x8xf32>
    %783 = tpu.matmul %781, %610, %cst_234 {dimension_numbers = #tpu.dot_dimension_numbers<[1], [0], [0], [1], [0, 0, 1, 1], [], []>} : vector<1x8xf32>, vector<8x8xf32>, vector<1x8xf32> -> vector<1x8xf32>
    %784 = arith.addf %782, %783 : vector<1x8xf32>
    %785 = arith.negf %784 : vector<1x8xf32>
    %786 = math.exp %785 : vector<1x8xf32>
    %cst_235 = arith.constant 1.000000e+00 : f32
    %787 = vector.broadcast %cst_235 : f32 to vector<1x8xf32>
    %788 = arith.addf %787, %786 : vector<1x8xf32>
    %789 = arith.divf %787, %788 : vector<1x8xf32>
    %790 = vector.extract_strided_slice %606 {offsets = [5, 0], sizes = [1, 8], strides = [1, 1]} : vector<8x8xf32> to vector<1x8xf32>
    %cst_236 = arith.constant dense<0.000000e+00> : vector<1x8xf32>
    %791 = tpu.matmul %781, %612, %cst_236 {dimension_numbers = #tpu.dot_dimension_numbers<[1], [0], [0], [1], [0, 0, 1, 1], [], []>} : vector<1x8xf32>, vector<8x8xf32>, vector<1x8xf32> -> vector<1x8xf32>
    %792 = arith.addf %790, %791 : vector<1x8xf32>
    %793 = arith.negf %792 : vector<1x8xf32>
    %794 = math.exp %793 : vector<1x8xf32>
    %cst_237 = arith.constant 1.000000e+00 : f32
    %795 = vector.broadcast %cst_237 : f32 to vector<1x8xf32>
    %796 = arith.addf %795, %794 : vector<1x8xf32>
    %797 = arith.divf %795, %796 : vector<1x8xf32>
    %798 = vector.extract_strided_slice %607 {offsets = [5, 0], sizes = [1, 8], strides = [1, 1]} : vector<8x8xf32> to vector<1x8xf32>
    %cst_238 = arith.constant dense<0.000000e+00> : vector<1x8xf32>
    %799 = tpu.matmul %781, %614, %cst_238 {dimension_numbers = #tpu.dot_dimension_numbers<[1], [0], [0], [1], [0, 0, 1, 1], [], []>} : vector<1x8xf32>, vector<8x8xf32>, vector<1x8xf32> -> vector<1x8xf32>
    %800 = arith.addf %798, %799 : vector<1x8xf32>
    %801 = math.tanh %800 : vector<1x8xf32>
    %802 = vector.extract_strided_slice %608 {offsets = [5, 0], sizes = [1, 8], strides = [1, 1]} : vector<8x8xf32> to vector<1x8xf32>
    %cst_239 = arith.constant dense<0.000000e+00> : vector<1x8xf32>
    %803 = tpu.matmul %781, %616, %cst_239 {dimension_numbers = #tpu.dot_dimension_numbers<[1], [0], [0], [1], [0, 0, 1, 1], [], []>} : vector<1x8xf32>, vector<8x8xf32>, vector<1x8xf32> -> vector<1x8xf32>
    %804 = arith.addf %802, %803 : vector<1x8xf32>
    %805 = arith.negf %804 : vector<1x8xf32>
    %806 = math.exp %805 : vector<1x8xf32>
    %cst_240 = arith.constant 1.000000e+00 : f32
    %807 = vector.broadcast %cst_240 : f32 to vector<1x8xf32>
    %808 = arith.addf %807, %806 : vector<1x8xf32>
    %809 = arith.divf %807, %808 : vector<1x8xf32>
    %810 = arith.mulf %797, %779 : vector<1x8xf32>
    %811 = arith.mulf %789, %801 : vector<1x8xf32>
    %812 = arith.addf %810, %811 : vector<1x8xf32>
    %813 = math.tanh %812 : vector<1x8xf32>
    %814 = arith.mulf %809, %813 : vector<1x8xf32>
    %815 = vector.extract_strided_slice %605 {offsets = [6, 0], sizes = [1, 8], strides = [1, 1]} : vector<8x8xf32> to vector<1x8xf32>
    %cst_241 = arith.constant dense<0.000000e+00> : vector<1x8xf32>
    %816 = tpu.matmul %814, %610, %cst_241 {dimension_numbers = #tpu.dot_dimension_numbers<[1], [0], [0], [1], [0, 0, 1, 1], [], []>} : vector<1x8xf32>, vector<8x8xf32>, vector<1x8xf32> -> vector<1x8xf32>
    %817 = arith.addf %815, %816 : vector<1x8xf32>
    %818 = arith.negf %817 : vector<1x8xf32>
    %819 = math.exp %818 : vector<1x8xf32>
    %cst_242 = arith.constant 1.000000e+00 : f32
    %820 = vector.broadcast %cst_242 : f32 to vector<1x8xf32>
    %821 = arith.addf %820, %819 : vector<1x8xf32>
    %822 = arith.divf %820, %821 : vector<1x8xf32>
    %823 = vector.extract_strided_slice %606 {offsets = [6, 0], sizes = [1, 8], strides = [1, 1]} : vector<8x8xf32> to vector<1x8xf32>
    %cst_243 = arith.constant dense<0.000000e+00> : vector<1x8xf32>
    %824 = tpu.matmul %814, %612, %cst_243 {dimension_numbers = #tpu.dot_dimension_numbers<[1], [0], [0], [1], [0, 0, 1, 1], [], []>} : vector<1x8xf32>, vector<8x8xf32>, vector<1x8xf32> -> vector<1x8xf32>
    %825 = arith.addf %823, %824 : vector<1x8xf32>
    %826 = arith.negf %825 : vector<1x8xf32>
    %827 = math.exp %826 : vector<1x8xf32>
    %cst_244 = arith.constant 1.000000e+00 : f32
    %828 = vector.broadcast %cst_244 : f32 to vector<1x8xf32>
    %829 = arith.addf %828, %827 : vector<1x8xf32>
    %830 = arith.divf %828, %829 : vector<1x8xf32>
    %831 = vector.extract_strided_slice %607 {offsets = [6, 0], sizes = [1, 8], strides = [1, 1]} : vector<8x8xf32> to vector<1x8xf32>
    %cst_245 = arith.constant dense<0.000000e+00> : vector<1x8xf32>
    %832 = tpu.matmul %814, %614, %cst_245 {dimension_numbers = #tpu.dot_dimension_numbers<[1], [0], [0], [1], [0, 0, 1, 1], [], []>} : vector<1x8xf32>, vector<8x8xf32>, vector<1x8xf32> -> vector<1x8xf32>
    %833 = arith.addf %831, %832 : vector<1x8xf32>
    %834 = math.tanh %833 : vector<1x8xf32>
    %835 = vector.extract_strided_slice %608 {offsets = [6, 0], sizes = [1, 8], strides = [1, 1]} : vector<8x8xf32> to vector<1x8xf32>
    %cst_246 = arith.constant dense<0.000000e+00> : vector<1x8xf32>
    %836 = tpu.matmul %814, %616, %cst_246 {dimension_numbers = #tpu.dot_dimension_numbers<[1], [0], [0], [1], [0, 0, 1, 1], [], []>} : vector<1x8xf32>, vector<8x8xf32>, vector<1x8xf32> -> vector<1x8xf32>
    %837 = arith.addf %835, %836 : vector<1x8xf32>
    %838 = arith.negf %837 : vector<1x8xf32>
    %839 = math.exp %838 : vector<1x8xf32>
    %cst_247 = arith.constant 1.000000e+00 : f32
    %840 = vector.broadcast %cst_247 : f32 to vector<1x8xf32>
    %841 = arith.addf %840, %839 : vector<1x8xf32>
    %842 = arith.divf %840, %841 : vector<1x8xf32>
    %843 = arith.mulf %830, %812 : vector<1x8xf32>
    %844 = arith.mulf %822, %834 : vector<1x8xf32>
    %845 = arith.addf %843, %844 : vector<1x8xf32>
    %846 = math.tanh %845 : vector<1x8xf32>
    %847 = arith.mulf %842, %846 : vector<1x8xf32>
    %848 = vector.extract_strided_slice %605 {offsets = [7, 0], sizes = [1, 8], strides = [1, 1]} : vector<8x8xf32> to vector<1x8xf32>
    %cst_248 = arith.constant dense<0.000000e+00> : vector<1x8xf32>
    %849 = tpu.matmul %847, %610, %cst_248 {dimension_numbers = #tpu.dot_dimension_numbers<[1], [0], [0], [1], [0, 0, 1, 1], [], []>} : vector<1x8xf32>, vector<8x8xf32>, vector<1x8xf32> -> vector<1x8xf32>
    %850 = arith.addf %848, %849 : vector<1x8xf32>
    %851 = arith.negf %850 : vector<1x8xf32>
    %852 = math.exp %851 : vector<1x8xf32>
    %cst_249 = arith.constant 1.000000e+00 : f32
    %853 = vector.broadcast %cst_249 : f32 to vector<1x8xf32>
    %854 = arith.addf %853, %852 : vector<1x8xf32>
    %855 = arith.divf %853, %854 : vector<1x8xf32>
    %856 = vector.extract_strided_slice %606 {offsets = [7, 0], sizes = [1, 8], strides = [1, 1]} : vector<8x8xf32> to vector<1x8xf32>
    %cst_250 = arith.constant dense<0.000000e+00> : vector<1x8xf32>
    %857 = tpu.matmul %847, %612, %cst_250 {dimension_numbers = #tpu.dot_dimension_numbers<[1], [0], [0], [1], [0, 0, 1, 1], [], []>} : vector<1x8xf32>, vector<8x8xf32>, vector<1x8xf32> -> vector<1x8xf32>
    %858 = arith.addf %856, %857 : vector<1x8xf32>
    %859 = arith.negf %858 : vector<1x8xf32>
    %860 = math.exp %859 : vector<1x8xf32>
    %cst_251 = arith.constant 1.000000e+00 : f32
    %861 = vector.broadcast %cst_251 : f32 to vector<1x8xf32>
    %862 = arith.addf %861, %860 : vector<1x8xf32>
    %863 = arith.divf %861, %862 : vector<1x8xf32>
    %864 = vector.extract_strided_slice %607 {offsets = [7, 0], sizes = [1, 8], strides = [1, 1]} : vector<8x8xf32> to vector<1x8xf32>
    %cst_252 = arith.constant dense<0.000000e+00> : vector<1x8xf32>
    %865 = tpu.matmul %847, %614, %cst_252 {dimension_numbers = #tpu.dot_dimension_numbers<[1], [0], [0], [1], [0, 0, 1, 1], [], []>} : vector<1x8xf32>, vector<8x8xf32>, vector<1x8xf32> -> vector<1x8xf32>
    %866 = arith.addf %864, %865 : vector<1x8xf32>
    %867 = math.tanh %866 : vector<1x8xf32>
    %868 = vector.extract_strided_slice %608 {offsets = [7, 0], sizes = [1, 8], strides = [1, 1]} : vector<8x8xf32> to vector<1x8xf32>
    %cst_253 = arith.constant dense<0.000000e+00> : vector<1x8xf32>
    %869 = tpu.matmul %847, %616, %cst_253 {dimension_numbers = #tpu.dot_dimension_numbers<[1], [0], [0], [1], [0, 0, 1, 1], [], []>} : vector<1x8xf32>, vector<8x8xf32>, vector<1x8xf32> -> vector<1x8xf32>
    %870 = arith.addf %868, %869 : vector<1x8xf32>
    %871 = arith.negf %870 : vector<1x8xf32>
    %872 = math.exp %871 : vector<1x8xf32>
    %cst_254 = arith.constant 1.000000e+00 : f32
    %873 = vector.broadcast %cst_254 : f32 to vector<1x8xf32>
    %874 = arith.addf %873, %872 : vector<1x8xf32>
    %875 = arith.divf %873, %874 : vector<1x8xf32>
    %876 = arith.mulf %863, %845 : vector<1x8xf32>
    %877 = arith.mulf %855, %867 : vector<1x8xf32>
    %878 = arith.addf %876, %877 : vector<1x8xf32>
    %879 = math.tanh %878 : vector<1x8xf32>
    %880 = arith.mulf %875, %879 : vector<1x8xf32>
    %881 = tpu.concatenate %649, %682, %715, %748, %781, %814, %847, %880 in 0 : vector<1x8xf32>, vector<1x8xf32>, vector<1x8xf32>, vector<1x8xf32>, vector<1x8xf32>, vector<1x8xf32>, vector<1x8xf32>, vector<1x8xf32> -> vector<8x8xf32>
    %c2_255 = arith.constant 2 : index
    %c0_256 = arith.constant 0 : index
    %c0_257 = arith.constant 0 : index
    %882 = vector.load %arg7[%c2_255, %c0_256, %c0_257] : memref<5x8x8xf32, #tpu.memory_space<vmem>>, vector<1x8x8xf32>
    %883 = vector.shape_cast %882 : vector<1x8x8xf32> to vector<8x8xf32>
    %884 = vector.shape_cast %881 : vector<8x8xf32> to vector<1x8x8xf32>
    tpu.vector_store %arg7[%c2_255, %c0_256, %c0_257], %884 {strides = array<i32>} : memref<5x8x8xf32, #tpu.memory_space<vmem>>, vector<1x8x8xf32>,
    %c3_258 = arith.constant 3 : index
    %c0_259 = arith.constant 0 : index
    %c0_260 = arith.constant 0 : index
    %885 = vector.load %arg5[%c3_258, %c0_259, %c0_260] : memref<5x9x32xf32, #tpu.memory_space<vmem>>, vector<1x8x32xf32>
    %886 = vector.shape_cast %885 : vector<1x8x32xf32> to vector<8x32xf32>
    %c3_261 = arith.constant 3 : index
    %c8_262 = arith.constant 8 : index
    %c0_263 = arith.constant 0 : index
    %887 = vector.load %arg5[%c3_261, %c8_262, %c0_263] : memref<5x9x32xf32, #tpu.memory_space<vmem>>, vector<1x1x32xf32>
    %888 = vector.shape_cast %887 : vector<1x1x32xf32> to vector<1x32xf32>
    %cst_264 = arith.constant dense<0.000000e+00> : vector<8x32xf32>
    %889 = tpu.matmul %881, %886, %cst_264 {dimension_numbers = #tpu.dot_dimension_numbers<[1], [0], [0], [1], [0, 0, 1, 1], [], []>} : vector<8x8xf32>, vector<8x32xf32>, vector<8x32xf32> -> vector<8x32xf32>
    %890 = vector.broadcast %888 : vector<1x32xf32> to vector<8x32xf32>
    %891 = arith.addf %889, %890 : vector<8x32xf32>
    %892 = vector.extract_strided_slice %891 {offsets = [0, 0], sizes = [8, 8], strides = [1, 1]} : vector<8x32xf32> to vector<8x8xf32>
    %893 = vector.extract_strided_slice %891 {offsets = [0, 8], sizes = [8, 8], strides = [1, 1]} : vector<8x32xf32> to vector<8x8xf32>
    %894 = vector.extract_strided_slice %891 {offsets = [0, 16], sizes = [8, 8], strides = [1, 1]} : vector<8x32xf32> to vector<8x8xf32>
    %895 = vector.extract_strided_slice %891 {offsets = [0, 24], sizes = [8, 8], strides = [1, 1]} : vector<8x32xf32> to vector<8x8xf32>
    %c3_265 = arith.constant 3 : index
    %c0_266 = arith.constant 0 : index
    %c0_267 = arith.constant 0 : index
    %c0_268 = arith.constant 0 : index
    %896 = vector.load %arg6[%c3_265, %c0_266, %c0_267, %c0_268] : memref<5x4x8x8xf32, #tpu.memory_space<vmem>>, vector<1x1x8x8xf32>
    %897 = vector.shape_cast %896 : vector<1x1x8x8xf32> to vector<8x8xf32>
    %c3_269 = arith.constant 3 : index
    %c1_270 = arith.constant 1 : index
    %c0_271 = arith.constant 0 : index
    %c0_272 = arith.constant 0 : index
    %898 = vector.load %arg6[%c3_269, %c1_270, %c0_271, %c0_272] : memref<5x4x8x8xf32, #tpu.memory_space<vmem>>, vector<1x1x8x8xf32>
    %899 = vector.shape_cast %898 : vector<1x1x8x8xf32> to vector<8x8xf32>
    %c3_273 = arith.constant 3 : index
    %c2_274 = arith.constant 2 : index
    %c0_275 = arith.constant 0 : index
    %c0_276 = arith.constant 0 : index
    %900 = vector.load %arg6[%c3_273, %c2_274, %c0_275, %c0_276] : memref<5x4x8x8xf32, #tpu.memory_space<vmem>>, vector<1x1x8x8xf32>
    %901 = vector.shape_cast %900 : vector<1x1x8x8xf32> to vector<8x8xf32>
    %c3_277 = arith.constant 3 : index
    %c3_278 = arith.constant 3 : index
    %c0_279 = arith.constant 0 : index
    %c0_280 = arith.constant 0 : index
    %902 = vector.load %arg6[%c3_277, %c3_278, %c0_279, %c0_280] : memref<5x4x8x8xf32, #tpu.memory_space<vmem>>, vector<1x1x8x8xf32>
    %903 = vector.shape_cast %902 : vector<1x1x8x8xf32> to vector<8x8xf32>
    %904 = vector.extract_strided_slice %892 {offsets = [0, 0], sizes = [1, 8], strides = [1, 1]} : vector<8x8xf32> to vector<1x8xf32>
    %cst_281 = arith.constant dense<0.000000e+00> : vector<1x8xf32>
    %905 = tpu.matmul %880, %897, %cst_281 {dimension_numbers = #tpu.dot_dimension_numbers<[1], [0], [0], [1], [0, 0, 1, 1], [], []>} : vector<1x8xf32>, vector<8x8xf32>, vector<1x8xf32> -> vector<1x8xf32>
    %906 = arith.addf %904, %905 : vector<1x8xf32>
    %907 = arith.negf %906 : vector<1x8xf32>
    %908 = math.exp %907 : vector<1x8xf32>
    %cst_282 = arith.constant 1.000000e+00 : f32
    %909 = vector.broadcast %cst_282 : f32 to vector<1x8xf32>
    %910 = arith.addf %909, %908 : vector<1x8xf32>
    %911 = arith.divf %909, %910 : vector<1x8xf32>
    %912 = vector.extract_strided_slice %893 {offsets = [0, 0], sizes = [1, 8], strides = [1, 1]} : vector<8x8xf32> to vector<1x8xf32>
    %cst_283 = arith.constant dense<0.000000e+00> : vector<1x8xf32>
    %913 = tpu.matmul %880, %899, %cst_283 {dimension_numbers = #tpu.dot_dimension_numbers<[1], [0], [0], [1], [0, 0, 1, 1], [], []>} : vector<1x8xf32>, vector<8x8xf32>, vector<1x8xf32> -> vector<1x8xf32>
    %914 = arith.addf %912, %913 : vector<1x8xf32>
    %915 = arith.negf %914 : vector<1x8xf32>
    %916 = math.exp %915 : vector<1x8xf32>
    %cst_284 = arith.constant 1.000000e+00 : f32
    %917 = vector.broadcast %cst_284 : f32 to vector<1x8xf32>
    %918 = arith.addf %917, %916 : vector<1x8xf32>
    %919 = arith.divf %917, %918 : vector<1x8xf32>
    %920 = vector.extract_strided_slice %894 {offsets = [0, 0], sizes = [1, 8], strides = [1, 1]} : vector<8x8xf32> to vector<1x8xf32>
    %cst_285 = arith.constant dense<0.000000e+00> : vector<1x8xf32>
    %921 = tpu.matmul %880, %901, %cst_285 {dimension_numbers = #tpu.dot_dimension_numbers<[1], [0], [0], [1], [0, 0, 1, 1], [], []>} : vector<1x8xf32>, vector<8x8xf32>, vector<1x8xf32> -> vector<1x8xf32>
    %922 = arith.addf %920, %921 : vector<1x8xf32>
    %923 = math.tanh %922 : vector<1x8xf32>
    %924 = vector.extract_strided_slice %895 {offsets = [0, 0], sizes = [1, 8], strides = [1, 1]} : vector<8x8xf32> to vector<1x8xf32>
    %cst_286 = arith.constant dense<0.000000e+00> : vector<1x8xf32>
    %925 = tpu.matmul %880, %903, %cst_286 {dimension_numbers = #tpu.dot_dimension_numbers<[1], [0], [0], [1], [0, 0, 1, 1], [], []>} : vector<1x8xf32>, vector<8x8xf32>, vector<1x8xf32> -> vector<1x8xf32>
    %926 = arith.addf %924, %925 : vector<1x8xf32>
    %927 = arith.negf %926 : vector<1x8xf32>
    %928 = math.exp %927 : vector<1x8xf32>
    %cst_287 = arith.constant 1.000000e+00 : f32
    %929 = vector.broadcast %cst_287 : f32 to vector<1x8xf32>
    %930 = arith.addf %929, %928 : vector<1x8xf32>
    %931 = arith.divf %929, %930 : vector<1x8xf32>
    %932 = arith.mulf %919, %878 : vector<1x8xf32>
    %933 = arith.mulf %911, %923 : vector<1x8xf32>
    %934 = arith.addf %932, %933 : vector<1x8xf32>
    %935 = math.tanh %934 : vector<1x8xf32>
    %936 = arith.mulf %931, %935 : vector<1x8xf32>
    %937 = vector.extract_strided_slice %892 {offsets = [1, 0], sizes = [1, 8], strides = [1, 1]} : vector<8x8xf32> to vector<1x8xf32>
    %cst_288 = arith.constant dense<0.000000e+00> : vector<1x8xf32>
    %938 = tpu.matmul %936, %897, %cst_288 {dimension_numbers = #tpu.dot_dimension_numbers<[1], [0], [0], [1], [0, 0, 1, 1], [], []>} : vector<1x8xf32>, vector<8x8xf32>, vector<1x8xf32> -> vector<1x8xf32>
    %939 = arith.addf %937, %938 : vector<1x8xf32>
    %940 = arith.negf %939 : vector<1x8xf32>
    %941 = math.exp %940 : vector<1x8xf32>
    %cst_289 = arith.constant 1.000000e+00 : f32
    %942 = vector.broadcast %cst_289 : f32 to vector<1x8xf32>
    %943 = arith.addf %942, %941 : vector<1x8xf32>
    %944 = arith.divf %942, %943 : vector<1x8xf32>
    %945 = vector.extract_strided_slice %893 {offsets = [1, 0], sizes = [1, 8], strides = [1, 1]} : vector<8x8xf32> to vector<1x8xf32>
    %cst_290 = arith.constant dense<0.000000e+00> : vector<1x8xf32>
    %946 = tpu.matmul %936, %899, %cst_290 {dimension_numbers = #tpu.dot_dimension_numbers<[1], [0], [0], [1], [0, 0, 1, 1], [], []>} : vector<1x8xf32>, vector<8x8xf32>, vector<1x8xf32> -> vector<1x8xf32>
    %947 = arith.addf %945, %946 : vector<1x8xf32>
    %948 = arith.negf %947 : vector<1x8xf32>
    %949 = math.exp %948 : vector<1x8xf32>
    %cst_291 = arith.constant 1.000000e+00 : f32
    %950 = vector.broadcast %cst_291 : f32 to vector<1x8xf32>
    %951 = arith.addf %950, %949 : vector<1x8xf32>
    %952 = arith.divf %950, %951 : vector<1x8xf32>
    %953 = vector.extract_strided_slice %894 {offsets = [1, 0], sizes = [1, 8], strides = [1, 1]} : vector<8x8xf32> to vector<1x8xf32>
    %cst_292 = arith.constant dense<0.000000e+00> : vector<1x8xf32>
    %954 = tpu.matmul %936, %901, %cst_292 {dimension_numbers = #tpu.dot_dimension_numbers<[1], [0], [0], [1], [0, 0, 1, 1], [], []>} : vector<1x8xf32>, vector<8x8xf32>, vector<1x8xf32> -> vector<1x8xf32>
    %955 = arith.addf %953, %954 : vector<1x8xf32>
    %956 = math.tanh %955 : vector<1x8xf32>
    %957 = vector.extract_strided_slice %895 {offsets = [1, 0], sizes = [1, 8], strides = [1, 1]} : vector<8x8xf32> to vector<1x8xf32>
    %cst_293 = arith.constant dense<0.000000e+00> : vector<1x8xf32>
    %958 = tpu.matmul %936, %903, %cst_293 {dimension_numbers = #tpu.dot_dimension_numbers<[1], [0], [0], [1], [0, 0, 1, 1], [], []>} : vector<1x8xf32>, vector<8x8xf32>, vector<1x8xf32> -> vector<1x8xf32>
    %959 = arith.addf %957, %958 : vector<1x8xf32>
    %960 = arith.negf %959 : vector<1x8xf32>
    %961 = math.exp %960 : vector<1x8xf32>
    %cst_294 = arith.constant 1.000000e+00 : f32
    %962 = vector.broadcast %cst_294 : f32 to vector<1x8xf32>
    %963 = arith.addf %962, %961 : vector<1x8xf32>
    %964 = arith.divf %962, %963 : vector<1x8xf32>
    %965 = arith.mulf %952, %934 : vector<1x8xf32>
    %966 = arith.mulf %944, %956 : vector<1x8xf32>
    %967 = arith.addf %965, %966 : vector<1x8xf32>
    %968 = math.tanh %967 : vector<1x8xf32>
    %969 = arith.mulf %964, %968 : vector<1x8xf32>
    %970 = vector.extract_strided_slice %892 {offsets = [2, 0], sizes = [1, 8], strides = [1, 1]} : vector<8x8xf32> to vector<1x8xf32>
    %cst_295 = arith.constant dense<0.000000e+00> : vector<1x8xf32>
    %971 = tpu.matmul %969, %897, %cst_295 {dimension_numbers = #tpu.dot_dimension_numbers<[1], [0], [0], [1], [0, 0, 1, 1], [], []>} : vector<1x8xf32>, vector<8x8xf32>, vector<1x8xf32> -> vector<1x8xf32>
    %972 = arith.addf %970, %971 : vector<1x8xf32>
    %973 = arith.negf %972 : vector<1x8xf32>
    %974 = math.exp %973 : vector<1x8xf32>
    %cst_296 = arith.constant 1.000000e+00 : f32
    %975 = vector.broadcast %cst_296 : f32 to vector<1x8xf32>
    %976 = arith.addf %975, %974 : vector<1x8xf32>
    %977 = arith.divf %975, %976 : vector<1x8xf32>
    %978 = vector.extract_strided_slice %893 {offsets = [2, 0], sizes = [1, 8], strides = [1, 1]} : vector<8x8xf32> to vector<1x8xf32>
    %cst_297 = arith.constant dense<0.000000e+00> : vector<1x8xf32>
    %979 = tpu.matmul %969, %899, %cst_297 {dimension_numbers = #tpu.dot_dimension_numbers<[1], [0], [0], [1], [0, 0, 1, 1], [], []>} : vector<1x8xf32>, vector<8x8xf32>, vector<1x8xf32> -> vector<1x8xf32>
    %980 = arith.addf %978, %979 : vector<1x8xf32>
    %981 = arith.negf %980 : vector<1x8xf32>
    %982 = math.exp %981 : vector<1x8xf32>
    %cst_298 = arith.constant 1.000000e+00 : f32
    %983 = vector.broadcast %cst_298 : f32 to vector<1x8xf32>
    %984 = arith.addf %983, %982 : vector<1x8xf32>
    %985 = arith.divf %983, %984 : vector<1x8xf32>
    %986 = vector.extract_strided_slice %894 {offsets = [2, 0], sizes = [1, 8], strides = [1, 1]} : vector<8x8xf32> to vector<1x8xf32>
    %cst_299 = arith.constant dense<0.000000e+00> : vector<1x8xf32>
    %987 = tpu.matmul %969, %901, %cst_299 {dimension_numbers = #tpu.dot_dimension_numbers<[1], [0], [0], [1], [0, 0, 1, 1], [], []>} : vector<1x8xf32>, vector<8x8xf32>, vector<1x8xf32> -> vector<1x8xf32>
    %988 = arith.addf %986, %987 : vector<1x8xf32>
    %989 = math.tanh %988 : vector<1x8xf32>
    %990 = vector.extract_strided_slice %895 {offsets = [2, 0], sizes = [1, 8], strides = [1, 1]} : vector<8x8xf32> to vector<1x8xf32>
    %cst_300 = arith.constant dense<0.000000e+00> : vector<1x8xf32>
    %991 = tpu.matmul %969, %903, %cst_300 {dimension_numbers = #tpu.dot_dimension_numbers<[1], [0], [0], [1], [0, 0, 1, 1], [], []>} : vector<1x8xf32>, vector<8x8xf32>, vector<1x8xf32> -> vector<1x8xf32>
    %992 = arith.addf %990, %991 : vector<1x8xf32>
    %993 = arith.negf %992 : vector<1x8xf32>
    %994 = math.exp %993 : vector<1x8xf32>
    %cst_301 = arith.constant 1.000000e+00 : f32
    %995 = vector.broadcast %cst_301 : f32 to vector<1x8xf32>
    %996 = arith.addf %995, %994 : vector<1x8xf32>
    %997 = arith.divf %995, %996 : vector<1x8xf32>
    %998 = arith.mulf %985, %967 : vector<1x8xf32>
    %999 = arith.mulf %977, %989 : vector<1x8xf32>
    %1000 = arith.addf %998, %999 : vector<1x8xf32>
    %1001 = math.tanh %1000 : vector<1x8xf32>
    %1002 = arith.mulf %997, %1001 : vector<1x8xf32>
    %1003 = vector.extract_strided_slice %892 {offsets = [3, 0], sizes = [1, 8], strides = [1, 1]} : vector<8x8xf32> to vector<1x8xf32>
    %cst_302 = arith.constant dense<0.000000e+00> : vector<1x8xf32>
    %1004 = tpu.matmul %1002, %897, %cst_302 {dimension_numbers = #tpu.dot_dimension_numbers<[1], [0], [0], [1], [0, 0, 1, 1], [], []>} : vector<1x8xf32>, vector<8x8xf32>, vector<1x8xf32> -> vector<1x8xf32>
    %1005 = arith.addf %1003, %1004 : vector<1x8xf32>
    %1006 = arith.negf %1005 : vector<1x8xf32>
    %1007 = math.exp %1006 : vector<1x8xf32>
    %cst_303 = arith.constant 1.000000e+00 : f32
    %1008 = vector.broadcast %cst_303 : f32 to vector<1x8xf32>
    %1009 = arith.addf %1008, %1007 : vector<1x8xf32>
    %1010 = arith.divf %1008, %1009 : vector<1x8xf32>
    %1011 = vector.extract_strided_slice %893 {offsets = [3, 0], sizes = [1, 8], strides = [1, 1]} : vector<8x8xf32> to vector<1x8xf32>
    %cst_304 = arith.constant dense<0.000000e+00> : vector<1x8xf32>
    %1012 = tpu.matmul %1002, %899, %cst_304 {dimension_numbers = #tpu.dot_dimension_numbers<[1], [0], [0], [1], [0, 0, 1, 1], [], []>} : vector<1x8xf32>, vector<8x8xf32>, vector<1x8xf32> -> vector<1x8xf32>
    %1013 = arith.addf %1011, %1012 : vector<1x8xf32>
    %1014 = arith.negf %1013 : vector<1x8xf32>
    %1015 = math.exp %1014 : vector<1x8xf32>
    %cst_305 = arith.constant 1.000000e+00 : f32
    %1016 = vector.broadcast %cst_305 : f32 to vector<1x8xf32>
    %1017 = arith.addf %1016, %1015 : vector<1x8xf32>
    %1018 = arith.divf %1016, %1017 : vector<1x8xf32>
    %1019 = vector.extract_strided_slice %894 {offsets = [3, 0], sizes = [1, 8], strides = [1, 1]} : vector<8x8xf32> to vector<1x8xf32>
    %cst_306 = arith.constant dense<0.000000e+00> : vector<1x8xf32>
    %1020 = tpu.matmul %1002, %901, %cst_306 {dimension_numbers = #tpu.dot_dimension_numbers<[1], [0], [0], [1], [0, 0, 1, 1], [], []>} : vector<1x8xf32>, vector<8x8xf32>, vector<1x8xf32> -> vector<1x8xf32>
    %1021 = arith.addf %1019, %1020 : vector<1x8xf32>
    %1022 = math.tanh %1021 : vector<1x8xf32>
    %1023 = vector.extract_strided_slice %895 {offsets = [3, 0], sizes = [1, 8], strides = [1, 1]} : vector<8x8xf32> to vector<1x8xf32>
    %cst_307 = arith.constant dense<0.000000e+00> : vector<1x8xf32>
    %1024 = tpu.matmul %1002, %903, %cst_307 {dimension_numbers = #tpu.dot_dimension_numbers<[1], [0], [0], [1], [0, 0, 1, 1], [], []>} : vector<1x8xf32>, vector<8x8xf32>, vector<1x8xf32> -> vector<1x8xf32>
    %1025 = arith.addf %1023, %1024 : vector<1x8xf32>
    %1026 = arith.negf %1025 : vector<1x8xf32>
    %1027 = math.exp %1026 : vector<1x8xf32>
    %cst_308 = arith.constant 1.000000e+00 : f32
    %1028 = vector.broadcast %cst_308 : f32 to vector<1x8xf32>
    %1029 = arith.addf %1028, %1027 : vector<1x8xf32>
    %1030 = arith.divf %1028, %1029 : vector<1x8xf32>
    %1031 = arith.mulf %1018, %1000 : vector<1x8xf32>
    %1032 = arith.mulf %1010, %1022 : vector<1x8xf32>
    %1033 = arith.addf %1031, %1032 : vector<1x8xf32>
    %1034 = math.tanh %1033 : vector<1x8xf32>
    %1035 = arith.mulf %1030, %1034 : vector<1x8xf32>
    %1036 = vector.extract_strided_slice %892 {offsets = [4, 0], sizes = [1, 8], strides = [1, 1]} : vector<8x8xf32> to vector<1x8xf32>
    %cst_309 = arith.constant dense<0.000000e+00> : vector<1x8xf32>
    %1037 = tpu.matmul %1035, %897, %cst_309 {dimension_numbers = #tpu.dot_dimension_numbers<[1], [0], [0], [1], [0, 0, 1, 1], [], []>} : vector<1x8xf32>, vector<8x8xf32>, vector<1x8xf32> -> vector<1x8xf32>
    %1038 = arith.addf %1036, %1037 : vector<1x8xf32>
    %1039 = arith.negf %1038 : vector<1x8xf32>
    %1040 = math.exp %1039 : vector<1x8xf32>
    %cst_310 = arith.constant 1.000000e+00 : f32
    %1041 = vector.broadcast %cst_310 : f32 to vector<1x8xf32>
    %1042 = arith.addf %1041, %1040 : vector<1x8xf32>
    %1043 = arith.divf %1041, %1042 : vector<1x8xf32>
    %1044 = vector.extract_strided_slice %893 {offsets = [4, 0], sizes = [1, 8], strides = [1, 1]} : vector<8x8xf32> to vector<1x8xf32>
    %cst_311 = arith.constant dense<0.000000e+00> : vector<1x8xf32>
    %1045 = tpu.matmul %1035, %899, %cst_311 {dimension_numbers = #tpu.dot_dimension_numbers<[1], [0], [0], [1], [0, 0, 1, 1], [], []>} : vector<1x8xf32>, vector<8x8xf32>, vector<1x8xf32> -> vector<1x8xf32>
    %1046 = arith.addf %1044, %1045 : vector<1x8xf32>
    %1047 = arith.negf %1046 : vector<1x8xf32>
    %1048 = math.exp %1047 : vector<1x8xf32>
    %cst_312 = arith.constant 1.000000e+00 : f32
    %1049 = vector.broadcast %cst_312 : f32 to vector<1x8xf32>
    %1050 = arith.addf %1049, %1048 : vector<1x8xf32>
    %1051 = arith.divf %1049, %1050 : vector<1x8xf32>
    %1052 = vector.extract_strided_slice %894 {offsets = [4, 0], sizes = [1, 8], strides = [1, 1]} : vector<8x8xf32> to vector<1x8xf32>
    %cst_313 = arith.constant dense<0.000000e+00> : vector<1x8xf32>
    %1053 = tpu.matmul %1035, %901, %cst_313 {dimension_numbers = #tpu.dot_dimension_numbers<[1], [0], [0], [1], [0, 0, 1, 1], [], []>} : vector<1x8xf32>, vector<8x8xf32>, vector<1x8xf32> -> vector<1x8xf32>
    %1054 = arith.addf %1052, %1053 : vector<1x8xf32>
    %1055 = math.tanh %1054 : vector<1x8xf32>
    %1056 = vector.extract_strided_slice %895 {offsets = [4, 0], sizes = [1, 8], strides = [1, 1]} : vector<8x8xf32> to vector<1x8xf32>
    %cst_314 = arith.constant dense<0.000000e+00> : vector<1x8xf32>
    %1057 = tpu.matmul %1035, %903, %cst_314 {dimension_numbers = #tpu.dot_dimension_numbers<[1], [0], [0], [1], [0, 0, 1, 1], [], []>} : vector<1x8xf32>, vector<8x8xf32>, vector<1x8xf32> -> vector<1x8xf32>
    %1058 = arith.addf %1056, %1057 : vector<1x8xf32>
    %1059 = arith.negf %1058 : vector<1x8xf32>
    %1060 = math.exp %1059 : vector<1x8xf32>
    %cst_315 = arith.constant 1.000000e+00 : f32
    %1061 = vector.broadcast %cst_315 : f32 to vector<1x8xf32>
    %1062 = arith.addf %1061, %1060 : vector<1x8xf32>
    %1063 = arith.divf %1061, %1062 : vector<1x8xf32>
    %1064 = arith.mulf %1051, %1033 : vector<1x8xf32>
    %1065 = arith.mulf %1043, %1055 : vector<1x8xf32>
    %1066 = arith.addf %1064, %1065 : vector<1x8xf32>
    %1067 = math.tanh %1066 : vector<1x8xf32>
    %1068 = arith.mulf %1063, %1067 : vector<1x8xf32>
    %1069 = vector.extract_strided_slice %892 {offsets = [5, 0], sizes = [1, 8], strides = [1, 1]} : vector<8x8xf32> to vector<1x8xf32>
    %cst_316 = arith.constant dense<0.000000e+00> : vector<1x8xf32>
    %1070 = tpu.matmul %1068, %897, %cst_316 {dimension_numbers = #tpu.dot_dimension_numbers<[1], [0], [0], [1], [0, 0, 1, 1], [], []>} : vector<1x8xf32>, vector<8x8xf32>, vector<1x8xf32> -> vector<1x8xf32>
    %1071 = arith.addf %1069, %1070 : vector<1x8xf32>
    %1072 = arith.negf %1071 : vector<1x8xf32>
    %1073 = math.exp %1072 : vector<1x8xf32>
    %cst_317 = arith.constant 1.000000e+00 : f32
    %1074 = vector.broadcast %cst_317 : f32 to vector<1x8xf32>
    %1075 = arith.addf %1074, %1073 : vector<1x8xf32>
    %1076 = arith.divf %1074, %1075 : vector<1x8xf32>
    %1077 = vector.extract_strided_slice %893 {offsets = [5, 0], sizes = [1, 8], strides = [1, 1]} : vector<8x8xf32> to vector<1x8xf32>
    %cst_318 = arith.constant dense<0.000000e+00> : vector<1x8xf32>
    %1078 = tpu.matmul %1068, %899, %cst_318 {dimension_numbers = #tpu.dot_dimension_numbers<[1], [0], [0], [1], [0, 0, 1, 1], [], []>} : vector<1x8xf32>, vector<8x8xf32>, vector<1x8xf32> -> vector<1x8xf32>
    %1079 = arith.addf %1077, %1078 : vector<1x8xf32>
    %1080 = arith.negf %1079 : vector<1x8xf32>
    %1081 = math.exp %1080 : vector<1x8xf32>
    %cst_319 = arith.constant 1.000000e+00 : f32
    %1082 = vector.broadcast %cst_319 : f32 to vector<1x8xf32>
    %1083 = arith.addf %1082, %1081 : vector<1x8xf32>
    %1084 = arith.divf %1082, %1083 : vector<1x8xf32>
    %1085 = vector.extract_strided_slice %894 {offsets = [5, 0], sizes = [1, 8], strides = [1, 1]} : vector<8x8xf32> to vector<1x8xf32>
    %cst_320 = arith.constant dense<0.000000e+00> : vector<1x8xf32>
    %1086 = tpu.matmul %1068, %901, %cst_320 {dimension_numbers = #tpu.dot_dimension_numbers<[1], [0], [0], [1], [0, 0, 1, 1], [], []>} : vector<1x8xf32>, vector<8x8xf32>, vector<1x8xf32> -> vector<1x8xf32>
    %1087 = arith.addf %1085, %1086 : vector<1x8xf32>
    %1088 = math.tanh %1087 : vector<1x8xf32>
    %1089 = vector.extract_strided_slice %895 {offsets = [5, 0], sizes = [1, 8], strides = [1, 1]} : vector<8x8xf32> to vector<1x8xf32>
    %cst_321 = arith.constant dense<0.000000e+00> : vector<1x8xf32>
    %1090 = tpu.matmul %1068, %903, %cst_321 {dimension_numbers = #tpu.dot_dimension_numbers<[1], [0], [0], [1], [0, 0, 1, 1], [], []>} : vector<1x8xf32>, vector<8x8xf32>, vector<1x8xf32> -> vector<1x8xf32>
    %1091 = arith.addf %1089, %1090 : vector<1x8xf32>
    %1092 = arith.negf %1091 : vector<1x8xf32>
    %1093 = math.exp %1092 : vector<1x8xf32>
    %cst_322 = arith.constant 1.000000e+00 : f32
    %1094 = vector.broadcast %cst_322 : f32 to vector<1x8xf32>
    %1095 = arith.addf %1094, %1093 : vector<1x8xf32>
    %1096 = arith.divf %1094, %1095 : vector<1x8xf32>
    %1097 = arith.mulf %1084, %1066 : vector<1x8xf32>
    %1098 = arith.mulf %1076, %1088 : vector<1x8xf32>
    %1099 = arith.addf %1097, %1098 : vector<1x8xf32>
    %1100 = math.tanh %1099 : vector<1x8xf32>
    %1101 = arith.mulf %1096, %1100 : vector<1x8xf32>
    %1102 = vector.extract_strided_slice %892 {offsets = [6, 0], sizes = [1, 8], strides = [1, 1]} : vector<8x8xf32> to vector<1x8xf32>
    %cst_323 = arith.constant dense<0.000000e+00> : vector<1x8xf32>
    %1103 = tpu.matmul %1101, %897, %cst_323 {dimension_numbers = #tpu.dot_dimension_numbers<[1], [0], [0], [1], [0, 0, 1, 1], [], []>} : vector<1x8xf32>, vector<8x8xf32>, vector<1x8xf32> -> vector<1x8xf32>
    %1104 = arith.addf %1102, %1103 : vector<1x8xf32>
    %1105 = arith.negf %1104 : vector<1x8xf32>
    %1106 = math.exp %1105 : vector<1x8xf32>
    %cst_324 = arith.constant 1.000000e+00 : f32
    %1107 = vector.broadcast %cst_324 : f32 to vector<1x8xf32>
    %1108 = arith.addf %1107, %1106 : vector<1x8xf32>
    %1109 = arith.divf %1107, %1108 : vector<1x8xf32>
    %1110 = vector.extract_strided_slice %893 {offsets = [6, 0], sizes = [1, 8], strides = [1, 1]} : vector<8x8xf32> to vector<1x8xf32>
    %cst_325 = arith.constant dense<0.000000e+00> : vector<1x8xf32>
    %1111 = tpu.matmul %1101, %899, %cst_325 {dimension_numbers = #tpu.dot_dimension_numbers<[1], [0], [0], [1], [0, 0, 1, 1], [], []>} : vector<1x8xf32>, vector<8x8xf32>, vector<1x8xf32> -> vector<1x8xf32>
    %1112 = arith.addf %1110, %1111 : vector<1x8xf32>
    %1113 = arith.negf %1112 : vector<1x8xf32>
    %1114 = math.exp %1113 : vector<1x8xf32>
    %cst_326 = arith.constant 1.000000e+00 : f32
    %1115 = vector.broadcast %cst_326 : f32 to vector<1x8xf32>
    %1116 = arith.addf %1115, %1114 : vector<1x8xf32>
    %1117 = arith.divf %1115, %1116 : vector<1x8xf32>
    %1118 = vector.extract_strided_slice %894 {offsets = [6, 0], sizes = [1, 8], strides = [1, 1]} : vector<8x8xf32> to vector<1x8xf32>
    %cst_327 = arith.constant dense<0.000000e+00> : vector<1x8xf32>
    %1119 = tpu.matmul %1101, %901, %cst_327 {dimension_numbers = #tpu.dot_dimension_numbers<[1], [0], [0], [1], [0, 0, 1, 1], [], []>} : vector<1x8xf32>, vector<8x8xf32>, vector<1x8xf32> -> vector<1x8xf32>
    %1120 = arith.addf %1118, %1119 : vector<1x8xf32>
    %1121 = math.tanh %1120 : vector<1x8xf32>
    %1122 = vector.extract_strided_slice %895 {offsets = [6, 0], sizes = [1, 8], strides = [1, 1]} : vector<8x8xf32> to vector<1x8xf32>
    %cst_328 = arith.constant dense<0.000000e+00> : vector<1x8xf32>
    %1123 = tpu.matmul %1101, %903, %cst_328 {dimension_numbers = #tpu.dot_dimension_numbers<[1], [0], [0], [1], [0, 0, 1, 1], [], []>} : vector<1x8xf32>, vector<8x8xf32>, vector<1x8xf32> -> vector<1x8xf32>
    %1124 = arith.addf %1122, %1123 : vector<1x8xf32>
    %1125 = arith.negf %1124 : vector<1x8xf32>
    %1126 = math.exp %1125 : vector<1x8xf32>
    %cst_329 = arith.constant 1.000000e+00 : f32
    %1127 = vector.broadcast %cst_329 : f32 to vector<1x8xf32>
    %1128 = arith.addf %1127, %1126 : vector<1x8xf32>
    %1129 = arith.divf %1127, %1128 : vector<1x8xf32>
    %1130 = arith.mulf %1117, %1099 : vector<1x8xf32>
    %1131 = arith.mulf %1109, %1121 : vector<1x8xf32>
    %1132 = arith.addf %1130, %1131 : vector<1x8xf32>
    %1133 = math.tanh %1132 : vector<1x8xf32>
    %1134 = arith.mulf %1129, %1133 : vector<1x8xf32>
    %1135 = vector.extract_strided_slice %892 {offsets = [7, 0], sizes = [1, 8], strides = [1, 1]} : vector<8x8xf32> to vector<1x8xf32>
    %cst_330 = arith.constant dense<0.000000e+00> : vector<1x8xf32>
    %1136 = tpu.matmul %1134, %897, %cst_330 {dimension_numbers = #tpu.dot_dimension_numbers<[1], [0], [0], [1], [0, 0, 1, 1], [], []>} : vector<1x8xf32>, vector<8x8xf32>, vector<1x8xf32> -> vector<1x8xf32>
    %1137 = arith.addf %1135, %1136 : vector<1x8xf32>
    %1138 = arith.negf %1137 : vector<1x8xf32>
    %1139 = math.exp %1138 : vector<1x8xf32>
    %cst_331 = arith.constant 1.000000e+00 : f32
    %1140 = vector.broadcast %cst_331 : f32 to vector<1x8xf32>
    %1141 = arith.addf %1140, %1139 : vector<1x8xf32>
    %1142 = arith.divf %1140, %1141 : vector<1x8xf32>
    %1143 = vector.extract_strided_slice %893 {offsets = [7, 0], sizes = [1, 8], strides = [1, 1]} : vector<8x8xf32> to vector<1x8xf32>
    %cst_332 = arith.constant dense<0.000000e+00> : vector<1x8xf32>
    %1144 = tpu.matmul %1134, %899, %cst_332 {dimension_numbers = #tpu.dot_dimension_numbers<[1], [0], [0], [1], [0, 0, 1, 1], [], []>} : vector<1x8xf32>, vector<8x8xf32>, vector<1x8xf32> -> vector<1x8xf32>
    %1145 = arith.addf %1143, %1144 : vector<1x8xf32>
    %1146 = arith.negf %1145 : vector<1x8xf32>
    %1147 = math.exp %1146 : vector<1x8xf32>
    %cst_333 = arith.constant 1.000000e+00 : f32
    %1148 = vector.broadcast %cst_333 : f32 to vector<1x8xf32>
    %1149 = arith.addf %1148, %1147 : vector<1x8xf32>
    %1150 = arith.divf %1148, %1149 : vector<1x8xf32>
    %1151 = vector.extract_strided_slice %894 {offsets = [7, 0], sizes = [1, 8], strides = [1, 1]} : vector<8x8xf32> to vector<1x8xf32>
    %cst_334 = arith.constant dense<0.000000e+00> : vector<1x8xf32>
    %1152 = tpu.matmul %1134, %901, %cst_334 {dimension_numbers = #tpu.dot_dimension_numbers<[1], [0], [0], [1], [0, 0, 1, 1], [], []>} : vector<1x8xf32>, vector<8x8xf32>, vector<1x8xf32> -> vector<1x8xf32>
    %1153 = arith.addf %1151, %1152 : vector<1x8xf32>
    %1154 = math.tanh %1153 : vector<1x8xf32>
    %1155 = vector.extract_strided_slice %895 {offsets = [7, 0], sizes = [1, 8], strides = [1, 1]} : vector<8x8xf32> to vector<1x8xf32>
    %cst_335 = arith.constant dense<0.000000e+00> : vector<1x8xf32>
    %1156 = tpu.matmul %1134, %903, %cst_335 {dimension_numbers = #tpu.dot_dimension_numbers<[1], [0], [0], [1], [0, 0, 1, 1], [], []>} : vector<1x8xf32>, vector<8x8xf32>, vector<1x8xf32> -> vector<1x8xf32>
    %1157 = arith.addf %1155, %1156 : vector<1x8xf32>
    %1158 = arith.negf %1157 : vector<1x8xf32>
    %1159 = math.exp %1158 : vector<1x8xf32>
    %cst_336 = arith.constant 1.000000e+00 : f32
    %1160 = vector.broadcast %cst_336 : f32 to vector<1x8xf32>
    %1161 = arith.addf %1160, %1159 : vector<1x8xf32>
    %1162 = arith.divf %1160, %1161 : vector<1x8xf32>
    %1163 = arith.mulf %1150, %1132 : vector<1x8xf32>
    %1164 = arith.mulf %1142, %1154 : vector<1x8xf32>
    %1165 = arith.addf %1163, %1164 : vector<1x8xf32>
    %1166 = math.tanh %1165 : vector<1x8xf32>
    %1167 = arith.mulf %1162, %1166 : vector<1x8xf32>
    %1168 = tpu.concatenate %936, %969, %1002, %1035, %1068, %1101, %1134, %1167 in 0 : vector<1x8xf32>, vector<1x8xf32>, vector<1x8xf32>, vector<1x8xf32>, vector<1x8xf32>, vector<1x8xf32>, vector<1x8xf32>, vector<1x8xf32> -> vector<8x8xf32>
    %c3_337 = arith.constant 3 : index
    %c0_338 = arith.constant 0 : index
    %c0_339 = arith.constant 0 : index
    %1169 = vector.load %arg7[%c3_337, %c0_338, %c0_339] : memref<5x8x8xf32, #tpu.memory_space<vmem>>, vector<1x8x8xf32>
    %1170 = vector.shape_cast %1169 : vector<1x8x8xf32> to vector<8x8xf32>
    %1171 = vector.shape_cast %1168 : vector<8x8xf32> to vector<1x8x8xf32>
    tpu.vector_store %arg7[%c3_337, %c0_338, %c0_339], %1171 {strides = array<i32>} : memref<5x8x8xf32, #tpu.memory_space<vmem>>, vector<1x8x8xf32>,
    %c4 = arith.constant 4 : index
    %c0_340 = arith.constant 0 : index
    %c0_341 = arith.constant 0 : index
    %1172 = vector.load %arg5[%c4, %c0_340, %c0_341] : memref<5x9x32xf32, #tpu.memory_space<vmem>>, vector<1x8x32xf32>
    %1173 = vector.shape_cast %1172 : vector<1x8x32xf32> to vector<8x32xf32>
    %c4_342 = arith.constant 4 : index
    %c8_343 = arith.constant 8 : index
    %c0_344 = arith.constant 0 : index
    %1174 = vector.load %arg5[%c4_342, %c8_343, %c0_344] : memref<5x9x32xf32, #tpu.memory_space<vmem>>, vector<1x1x32xf32>
    %1175 = vector.shape_cast %1174 : vector<1x1x32xf32> to vector<1x32xf32>
    %cst_345 = arith.constant dense<0.000000e+00> : vector<8x32xf32>
    %1176 = tpu.matmul %1168, %1173, %cst_345 {dimension_numbers = #tpu.dot_dimension_numbers<[1], [0], [0], [1], [0, 0, 1, 1], [], []>} : vector<8x8xf32>, vector<8x32xf32>, vector<8x32xf32> -> vector<8x32xf32>
    %1177 = vector.broadcast %1175 : vector<1x32xf32> to vector<8x32xf32>
    %1178 = arith.addf %1176, %1177 : vector<8x32xf32>
    %1179 = vector.extract_strided_slice %1178 {offsets = [0, 0], sizes = [8, 8], strides = [1, 1]} : vector<8x32xf32> to vector<8x8xf32>
    %1180 = vector.extract_strided_slice %1178 {offsets = [0, 8], sizes = [8, 8], strides = [1, 1]} : vector<8x32xf32> to vector<8x8xf32>
    %1181 = vector.extract_strided_slice %1178 {offsets = [0, 16], sizes = [8, 8], strides = [1, 1]} : vector<8x32xf32> to vector<8x8xf32>
    %1182 = vector.extract_strided_slice %1178 {offsets = [0, 24], sizes = [8, 8], strides = [1, 1]} : vector<8x32xf32> to vector<8x8xf32>
    %c4_346 = arith.constant 4 : index
    %c0_347 = arith.constant 0 : index
    %c0_348 = arith.constant 0 : index
    %c0_349 = arith.constant 0 : index
    %1183 = vector.load %arg6[%c4_346, %c0_347, %c0_348, %c0_349] : memref<5x4x8x8xf32, #tpu.memory_space<vmem>>, vector<1x1x8x8xf32>
    %1184 = vector.shape_cast %1183 : vector<1x1x8x8xf32> to vector<8x8xf32>
    %c4_350 = arith.constant 4 : index
    %c1_351 = arith.constant 1 : index
    %c0_352 = arith.constant 0 : index
    %c0_353 = arith.constant 0 : index
    %1185 = vector.load %arg6[%c4_350, %c1_351, %c0_352, %c0_353] : memref<5x4x8x8xf32, #tpu.memory_space<vmem>>, vector<1x1x8x8xf32>
    %1186 = vector.shape_cast %1185 : vector<1x1x8x8xf32> to vector<8x8xf32>
    %c4_354 = arith.constant 4 : index
    %c2_355 = arith.constant 2 : index
    %c0_356 = arith.constant 0 : index
    %c0_357 = arith.constant 0 : index
    %1187 = vector.load %arg6[%c4_354, %c2_355, %c0_356, %c0_357] : memref<5x4x8x8xf32, #tpu.memory_space<vmem>>, vector<1x1x8x8xf32>
    %1188 = vector.shape_cast %1187 : vector<1x1x8x8xf32> to vector<8x8xf32>
    %c4_358 = arith.constant 4 : index
    %c3_359 = arith.constant 3 : index
    %c0_360 = arith.constant 0 : index
    %c0_361 = arith.constant 0 : index
    %1189 = vector.load %arg6[%c4_358, %c3_359, %c0_360, %c0_361] : memref<5x4x8x8xf32, #tpu.memory_space<vmem>>, vector<1x1x8x8xf32>
    %1190 = vector.shape_cast %1189 : vector<1x1x8x8xf32> to vector<8x8xf32>
    %1191 = vector.extract_strided_slice %1179 {offsets = [0, 0], sizes = [1, 8], strides = [1, 1]} : vector<8x8xf32> to vector<1x8xf32>
    %cst_362 = arith.constant dense<0.000000e+00> : vector<1x8xf32>
    %1192 = tpu.matmul %1167, %1184, %cst_362 {dimension_numbers = #tpu.dot_dimension_numbers<[1], [0], [0], [1], [0, 0, 1, 1], [], []>} : vector<1x8xf32>, vector<8x8xf32>, vector<1x8xf32> -> vector<1x8xf32>
    %1193 = arith.addf %1191, %1192 : vector<1x8xf32>
    %1194 = arith.negf %1193 : vector<1x8xf32>
    %1195 = math.exp %1194 : vector<1x8xf32>
    %cst_363 = arith.constant 1.000000e+00 : f32
    %1196 = vector.broadcast %cst_363 : f32 to vector<1x8xf32>
    %1197 = arith.addf %1196, %1195 : vector<1x8xf32>
    %1198 = arith.divf %1196, %1197 : vector<1x8xf32>
    %1199 = vector.extract_strided_slice %1180 {offsets = [0, 0], sizes = [1, 8], strides = [1, 1]} : vector<8x8xf32> to vector<1x8xf32>
    %cst_364 = arith.constant dense<0.000000e+00> : vector<1x8xf32>
    %1200 = tpu.matmul %1167, %1186, %cst_364 {dimension_numbers = #tpu.dot_dimension_numbers<[1], [0], [0], [1], [0, 0, 1, 1], [], []>} : vector<1x8xf32>, vector<8x8xf32>, vector<1x8xf32> -> vector<1x8xf32>
    %1201 = arith.addf %1199, %1200 : vector<1x8xf32>
    %1202 = arith.negf %1201 : vector<1x8xf32>
    %1203 = math.exp %1202 : vector<1x8xf32>
    %cst_365 = arith.constant 1.000000e+00 : f32
    %1204 = vector.broadcast %cst_365 : f32 to vector<1x8xf32>
    %1205 = arith.addf %1204, %1203 : vector<1x8xf32>
    %1206 = arith.divf %1204, %1205 : vector<1x8xf32>
    %1207 = vector.extract_strided_slice %1181 {offsets = [0, 0], sizes = [1, 8], strides = [1, 1]} : vector<8x8xf32> to vector<1x8xf32>
    %cst_366 = arith.constant dense<0.000000e+00> : vector<1x8xf32>
    %1208 = tpu.matmul %1167, %1188, %cst_366 {dimension_numbers = #tpu.dot_dimension_numbers<[1], [0], [0], [1], [0, 0, 1, 1], [], []>} : vector<1x8xf32>, vector<8x8xf32>, vector<1x8xf32> -> vector<1x8xf32>
    %1209 = arith.addf %1207, %1208 : vector<1x8xf32>
    %1210 = math.tanh %1209 : vector<1x8xf32>
    %1211 = vector.extract_strided_slice %1182 {offsets = [0, 0], sizes = [1, 8], strides = [1, 1]} : vector<8x8xf32> to vector<1x8xf32>
    %cst_367 = arith.constant dense<0.000000e+00> : vector<1x8xf32>
    %1212 = tpu.matmul %1167, %1190, %cst_367 {dimension_numbers = #tpu.dot_dimension_numbers<[1], [0], [0], [1], [0, 0, 1, 1], [], []>} : vector<1x8xf32>, vector<8x8xf32>, vector<1x8xf32> -> vector<1x8xf32>
    %1213 = arith.addf %1211, %1212 : vector<1x8xf32>
    %1214 = arith.negf %1213 : vector<1x8xf32>
    %1215 = math.exp %1214 : vector<1x8xf32>
    %cst_368 = arith.constant 1.000000e+00 : f32
    %1216 = vector.broadcast %cst_368 : f32 to vector<1x8xf32>
    %1217 = arith.addf %1216, %1215 : vector<1x8xf32>
    %1218 = arith.divf %1216, %1217 : vector<1x8xf32>
    %1219 = arith.mulf %1206, %1165 : vector<1x8xf32>
    %1220 = arith.mulf %1198, %1210 : vector<1x8xf32>
    %1221 = arith.addf %1219, %1220 : vector<1x8xf32>
    %1222 = math.tanh %1221 : vector<1x8xf32>
    %1223 = arith.mulf %1218, %1222 : vector<1x8xf32>
    %1224 = vector.extract_strided_slice %1179 {offsets = [1, 0], sizes = [1, 8], strides = [1, 1]} : vector<8x8xf32> to vector<1x8xf32>
    %cst_369 = arith.constant dense<0.000000e+00> : vector<1x8xf32>
    %1225 = tpu.matmul %1223, %1184, %cst_369 {dimension_numbers = #tpu.dot_dimension_numbers<[1], [0], [0], [1], [0, 0, 1, 1], [], []>} : vector<1x8xf32>, vector<8x8xf32>, vector<1x8xf32> -> vector<1x8xf32>
    %1226 = arith.addf %1224, %1225 : vector<1x8xf32>
    %1227 = arith.negf %1226 : vector<1x8xf32>
    %1228 = math.exp %1227 : vector<1x8xf32>
    %cst_370 = arith.constant 1.000000e+00 : f32
    %1229 = vector.broadcast %cst_370 : f32 to vector<1x8xf32>
    %1230 = arith.addf %1229, %1228 : vector<1x8xf32>
    %1231 = arith.divf %1229, %1230 : vector<1x8xf32>
    %1232 = vector.extract_strided_slice %1180 {offsets = [1, 0], sizes = [1, 8], strides = [1, 1]} : vector<8x8xf32> to vector<1x8xf32>
    %cst_371 = arith.constant dense<0.000000e+00> : vector<1x8xf32>
    %1233 = tpu.matmul %1223, %1186, %cst_371 {dimension_numbers = #tpu.dot_dimension_numbers<[1], [0], [0], [1], [0, 0, 1, 1], [], []>} : vector<1x8xf32>, vector<8x8xf32>, vector<1x8xf32> -> vector<1x8xf32>
    %1234 = arith.addf %1232, %1233 : vector<1x8xf32>
    %1235 = arith.negf %1234 : vector<1x8xf32>
    %1236 = math.exp %1235 : vector<1x8xf32>
    %cst_372 = arith.constant 1.000000e+00 : f32
    %1237 = vector.broadcast %cst_372 : f32 to vector<1x8xf32>
    %1238 = arith.addf %1237, %1236 : vector<1x8xf32>
    %1239 = arith.divf %1237, %1238 : vector<1x8xf32>
    %1240 = vector.extract_strided_slice %1181 {offsets = [1, 0], sizes = [1, 8], strides = [1, 1]} : vector<8x8xf32> to vector<1x8xf32>
    %cst_373 = arith.constant dense<0.000000e+00> : vector<1x8xf32>
    %1241 = tpu.matmul %1223, %1188, %cst_373 {dimension_numbers = #tpu.dot_dimension_numbers<[1], [0], [0], [1], [0, 0, 1, 1], [], []>} : vector<1x8xf32>, vector<8x8xf32>, vector<1x8xf32> -> vector<1x8xf32>
    %1242 = arith.addf %1240, %1241 : vector<1x8xf32>
    %1243 = math.tanh %1242 : vector<1x8xf32>
    %1244 = vector.extract_strided_slice %1182 {offsets = [1, 0], sizes = [1, 8], strides = [1, 1]} : vector<8x8xf32> to vector<1x8xf32>
    %cst_374 = arith.constant dense<0.000000e+00> : vector<1x8xf32>
    %1245 = tpu.matmul %1223, %1190, %cst_374 {dimension_numbers = #tpu.dot_dimension_numbers<[1], [0], [0], [1], [0, 0, 1, 1], [], []>} : vector<1x8xf32>, vector<8x8xf32>, vector<1x8xf32> -> vector<1x8xf32>
    %1246 = arith.addf %1244, %1245 : vector<1x8xf32>
    %1247 = arith.negf %1246 : vector<1x8xf32>
    %1248 = math.exp %1247 : vector<1x8xf32>
    %cst_375 = arith.constant 1.000000e+00 : f32
    %1249 = vector.broadcast %cst_375 : f32 to vector<1x8xf32>
    %1250 = arith.addf %1249, %1248 : vector<1x8xf32>
    %1251 = arith.divf %1249, %1250 : vector<1x8xf32>
    %1252 = arith.mulf %1239, %1221 : vector<1x8xf32>
    %1253 = arith.mulf %1231, %1243 : vector<1x8xf32>
    %1254 = arith.addf %1252, %1253 : vector<1x8xf32>
    %1255 = math.tanh %1254 : vector<1x8xf32>
    %1256 = arith.mulf %1251, %1255 : vector<1x8xf32>
    %1257 = vector.extract_strided_slice %1179 {offsets = [2, 0], sizes = [1, 8], strides = [1, 1]} : vector<8x8xf32> to vector<1x8xf32>
    %cst_376 = arith.constant dense<0.000000e+00> : vector<1x8xf32>
    %1258 = tpu.matmul %1256, %1184, %cst_376 {dimension_numbers = #tpu.dot_dimension_numbers<[1], [0], [0], [1], [0, 0, 1, 1], [], []>} : vector<1x8xf32>, vector<8x8xf32>, vector<1x8xf32> -> vector<1x8xf32>
    %1259 = arith.addf %1257, %1258 : vector<1x8xf32>
    %1260 = arith.negf %1259 : vector<1x8xf32>
    %1261 = math.exp %1260 : vector<1x8xf32>
    %cst_377 = arith.constant 1.000000e+00 : f32
    %1262 = vector.broadcast %cst_377 : f32 to vector<1x8xf32>
    %1263 = arith.addf %1262, %1261 : vector<1x8xf32>
    %1264 = arith.divf %1262, %1263 : vector<1x8xf32>
    %1265 = vector.extract_strided_slice %1180 {offsets = [2, 0], sizes = [1, 8], strides = [1, 1]} : vector<8x8xf32> to vector<1x8xf32>
    %cst_378 = arith.constant dense<0.000000e+00> : vector<1x8xf32>
    %1266 = tpu.matmul %1256, %1186, %cst_378 {dimension_numbers = #tpu.dot_dimension_numbers<[1], [0], [0], [1], [0, 0, 1, 1], [], []>} : vector<1x8xf32>, vector<8x8xf32>, vector<1x8xf32> -> vector<1x8xf32>
    %1267 = arith.addf %1265, %1266 : vector<1x8xf32>
    %1268 = arith.negf %1267 : vector<1x8xf32>
    %1269 = math.exp %1268 : vector<1x8xf32>
    %cst_379 = arith.constant 1.000000e+00 : f32
    %1270 = vector.broadcast %cst_379 : f32 to vector<1x8xf32>
    %1271 = arith.addf %1270, %1269 : vector<1x8xf32>
    %1272 = arith.divf %1270, %1271 : vector<1x8xf32>
    %1273 = vector.extract_strided_slice %1181 {offsets = [2, 0], sizes = [1, 8], strides = [1, 1]} : vector<8x8xf32> to vector<1x8xf32>
    %cst_380 = arith.constant dense<0.000000e+00> : vector<1x8xf32>
    %1274 = tpu.matmul %1256, %1188, %cst_380 {dimension_numbers = #tpu.dot_dimension_numbers<[1], [0], [0], [1], [0, 0, 1, 1], [], []>} : vector<1x8xf32>, vector<8x8xf32>, vector<1x8xf32> -> vector<1x8xf32>
    %1275 = arith.addf %1273, %1274 : vector<1x8xf32>
    %1276 = math.tanh %1275 : vector<1x8xf32>
    %1277 = vector.extract_strided_slice %1182 {offsets = [2, 0], sizes = [1, 8], strides = [1, 1]} : vector<8x8xf32> to vector<1x8xf32>
    %cst_381 = arith.constant dense<0.000000e+00> : vector<1x8xf32>
    %1278 = tpu.matmul %1256, %1190, %cst_381 {dimension_numbers = #tpu.dot_dimension_numbers<[1], [0], [0], [1], [0, 0, 1, 1], [], []>} : vector<1x8xf32>, vector<8x8xf32>, vector<1x8xf32> -> vector<1x8xf32>
    %1279 = arith.addf %1277, %1278 : vector<1x8xf32>
    %1280 = arith.negf %1279 : vector<1x8xf32>
    %1281 = math.exp %1280 : vector<1x8xf32>
    %cst_382 = arith.constant 1.000000e+00 : f32
    %1282 = vector.broadcast %cst_382 : f32 to vector<1x8xf32>
    %1283 = arith.addf %1282, %1281 : vector<1x8xf32>
    %1284 = arith.divf %1282, %1283 : vector<1x8xf32>
    %1285 = arith.mulf %1272, %1254 : vector<1x8xf32>
    %1286 = arith.mulf %1264, %1276 : vector<1x8xf32>
    %1287 = arith.addf %1285, %1286 : vector<1x8xf32>
    %1288 = math.tanh %1287 : vector<1x8xf32>
    %1289 = arith.mulf %1284, %1288 : vector<1x8xf32>
    %1290 = vector.extract_strided_slice %1179 {offsets = [3, 0], sizes = [1, 8], strides = [1, 1]} : vector<8x8xf32> to vector<1x8xf32>
    %cst_383 = arith.constant dense<0.000000e+00> : vector<1x8xf32>
    %1291 = tpu.matmul %1289, %1184, %cst_383 {dimension_numbers = #tpu.dot_dimension_numbers<[1], [0], [0], [1], [0, 0, 1, 1], [], []>} : vector<1x8xf32>, vector<8x8xf32>, vector<1x8xf32> -> vector<1x8xf32>
    %1292 = arith.addf %1290, %1291 : vector<1x8xf32>
    %1293 = arith.negf %1292 : vector<1x8xf32>
    %1294 = math.exp %1293 : vector<1x8xf32>
    %cst_384 = arith.constant 1.000000e+00 : f32
    %1295 = vector.broadcast %cst_384 : f32 to vector<1x8xf32>
    %1296 = arith.addf %1295, %1294 : vector<1x8xf32>
    %1297 = arith.divf %1295, %1296 : vector<1x8xf32>
    %1298 = vector.extract_strided_slice %1180 {offsets = [3, 0], sizes = [1, 8], strides = [1, 1]} : vector<8x8xf32> to vector<1x8xf32>
    %cst_385 = arith.constant dense<0.000000e+00> : vector<1x8xf32>
    %1299 = tpu.matmul %1289, %1186, %cst_385 {dimension_numbers = #tpu.dot_dimension_numbers<[1], [0], [0], [1], [0, 0, 1, 1], [], []>} : vector<1x8xf32>, vector<8x8xf32>, vector<1x8xf32> -> vector<1x8xf32>
    %1300 = arith.addf %1298, %1299 : vector<1x8xf32>
    %1301 = arith.negf %1300 : vector<1x8xf32>
    %1302 = math.exp %1301 : vector<1x8xf32>
    %cst_386 = arith.constant 1.000000e+00 : f32
    %1303 = vector.broadcast %cst_386 : f32 to vector<1x8xf32>
    %1304 = arith.addf %1303, %1302 : vector<1x8xf32>
    %1305 = arith.divf %1303, %1304 : vector<1x8xf32>
    %1306 = vector.extract_strided_slice %1181 {offsets = [3, 0], sizes = [1, 8], strides = [1, 1]} : vector<8x8xf32> to vector<1x8xf32>
    %cst_387 = arith.constant dense<0.000000e+00> : vector<1x8xf32>
    %1307 = tpu.matmul %1289, %1188, %cst_387 {dimension_numbers = #tpu.dot_dimension_numbers<[1], [0], [0], [1], [0, 0, 1, 1], [], []>} : vector<1x8xf32>, vector<8x8xf32>, vector<1x8xf32> -> vector<1x8xf32>
    %1308 = arith.addf %1306, %1307 : vector<1x8xf32>
    %1309 = math.tanh %1308 : vector<1x8xf32>
    %1310 = vector.extract_strided_slice %1182 {offsets = [3, 0], sizes = [1, 8], strides = [1, 1]} : vector<8x8xf32> to vector<1x8xf32>
    %cst_388 = arith.constant dense<0.000000e+00> : vector<1x8xf32>
    %1311 = tpu.matmul %1289, %1190, %cst_388 {dimension_numbers = #tpu.dot_dimension_numbers<[1], [0], [0], [1], [0, 0, 1, 1], [], []>} : vector<1x8xf32>, vector<8x8xf32>, vector<1x8xf32> -> vector<1x8xf32>
    %1312 = arith.addf %1310, %1311 : vector<1x8xf32>
    %1313 = arith.negf %1312 : vector<1x8xf32>
    %1314 = math.exp %1313 : vector<1x8xf32>
    %cst_389 = arith.constant 1.000000e+00 : f32
    %1315 = vector.broadcast %cst_389 : f32 to vector<1x8xf32>
    %1316 = arith.addf %1315, %1314 : vector<1x8xf32>
    %1317 = arith.divf %1315, %1316 : vector<1x8xf32>
    %1318 = arith.mulf %1305, %1287 : vector<1x8xf32>
    %1319 = arith.mulf %1297, %1309 : vector<1x8xf32>
    %1320 = arith.addf %1318, %1319 : vector<1x8xf32>
    %1321 = math.tanh %1320 : vector<1x8xf32>
    %1322 = arith.mulf %1317, %1321 : vector<1x8xf32>
    %1323 = vector.extract_strided_slice %1179 {offsets = [4, 0], sizes = [1, 8], strides = [1, 1]} : vector<8x8xf32> to vector<1x8xf32>
    %cst_390 = arith.constant dense<0.000000e+00> : vector<1x8xf32>
    %1324 = tpu.matmul %1322, %1184, %cst_390 {dimension_numbers = #tpu.dot_dimension_numbers<[1], [0], [0], [1], [0, 0, 1, 1], [], []>} : vector<1x8xf32>, vector<8x8xf32>, vector<1x8xf32> -> vector<1x8xf32>
    %1325 = arith.addf %1323, %1324 : vector<1x8xf32>
    %1326 = arith.negf %1325 : vector<1x8xf32>
    %1327 = math.exp %1326 : vector<1x8xf32>
    %cst_391 = arith.constant 1.000000e+00 : f32
    %1328 = vector.broadcast %cst_391 : f32 to vector<1x8xf32>
    %1329 = arith.addf %1328, %1327 : vector<1x8xf32>
    %1330 = arith.divf %1328, %1329 : vector<1x8xf32>
    %1331 = vector.extract_strided_slice %1180 {offsets = [4, 0], sizes = [1, 8], strides = [1, 1]} : vector<8x8xf32> to vector<1x8xf32>
    %cst_392 = arith.constant dense<0.000000e+00> : vector<1x8xf32>
    %1332 = tpu.matmul %1322, %1186, %cst_392 {dimension_numbers = #tpu.dot_dimension_numbers<[1], [0], [0], [1], [0, 0, 1, 1], [], []>} : vector<1x8xf32>, vector<8x8xf32>, vector<1x8xf32> -> vector<1x8xf32>
    %1333 = arith.addf %1331, %1332 : vector<1x8xf32>
    %1334 = arith.negf %1333 : vector<1x8xf32>
    %1335 = math.exp %1334 : vector<1x8xf32>
    %cst_393 = arith.constant 1.000000e+00 : f32
    %1336 = vector.broadcast %cst_393 : f32 to vector<1x8xf32>
    %1337 = arith.addf %1336, %1335 : vector<1x8xf32>
    %1338 = arith.divf %1336, %1337 : vector<1x8xf32>
    %1339 = vector.extract_strided_slice %1181 {offsets = [4, 0], sizes = [1, 8], strides = [1, 1]} : vector<8x8xf32> to vector<1x8xf32>
    %cst_394 = arith.constant dense<0.000000e+00> : vector<1x8xf32>
    %1340 = tpu.matmul %1322, %1188, %cst_394 {dimension_numbers = #tpu.dot_dimension_numbers<[1], [0], [0], [1], [0, 0, 1, 1], [], []>} : vector<1x8xf32>, vector<8x8xf32>, vector<1x8xf32> -> vector<1x8xf32>
    %1341 = arith.addf %1339, %1340 : vector<1x8xf32>
    %1342 = math.tanh %1341 : vector<1x8xf32>
    %1343 = vector.extract_strided_slice %1182 {offsets = [4, 0], sizes = [1, 8], strides = [1, 1]} : vector<8x8xf32> to vector<1x8xf32>
    %cst_395 = arith.constant dense<0.000000e+00> : vector<1x8xf32>
    %1344 = tpu.matmul %1322, %1190, %cst_395 {dimension_numbers = #tpu.dot_dimension_numbers<[1], [0], [0], [1], [0, 0, 1, 1], [], []>} : vector<1x8xf32>, vector<8x8xf32>, vector<1x8xf32> -> vector<1x8xf32>
    %1345 = arith.addf %1343, %1344 : vector<1x8xf32>
    %1346 = arith.negf %1345 : vector<1x8xf32>
    %1347 = math.exp %1346 : vector<1x8xf32>
    %cst_396 = arith.constant 1.000000e+00 : f32
    %1348 = vector.broadcast %cst_396 : f32 to vector<1x8xf32>
    %1349 = arith.addf %1348, %1347 : vector<1x8xf32>
    %1350 = arith.divf %1348, %1349 : vector<1x8xf32>
    %1351 = arith.mulf %1338, %1320 : vector<1x8xf32>
    %1352 = arith.mulf %1330, %1342 : vector<1x8xf32>
    %1353 = arith.addf %1351, %1352 : vector<1x8xf32>
    %1354 = math.tanh %1353 : vector<1x8xf32>
    %1355 = arith.mulf %1350, %1354 : vector<1x8xf32>
    %1356 = vector.extract_strided_slice %1179 {offsets = [5, 0], sizes = [1, 8], strides = [1, 1]} : vector<8x8xf32> to vector<1x8xf32>
    %cst_397 = arith.constant dense<0.000000e+00> : vector<1x8xf32>
    %1357 = tpu.matmul %1355, %1184, %cst_397 {dimension_numbers = #tpu.dot_dimension_numbers<[1], [0], [0], [1], [0, 0, 1, 1], [], []>} : vector<1x8xf32>, vector<8x8xf32>, vector<1x8xf32> -> vector<1x8xf32>
    %1358 = arith.addf %1356, %1357 : vector<1x8xf32>
    %1359 = arith.negf %1358 : vector<1x8xf32>
    %1360 = math.exp %1359 : vector<1x8xf32>
    %cst_398 = arith.constant 1.000000e+00 : f32
    %1361 = vector.broadcast %cst_398 : f32 to vector<1x8xf32>
    %1362 = arith.addf %1361, %1360 : vector<1x8xf32>
    %1363 = arith.divf %1361, %1362 : vector<1x8xf32>
    %1364 = vector.extract_strided_slice %1180 {offsets = [5, 0], sizes = [1, 8], strides = [1, 1]} : vector<8x8xf32> to vector<1x8xf32>
    %cst_399 = arith.constant dense<0.000000e+00> : vector<1x8xf32>
    %1365 = tpu.matmul %1355, %1186, %cst_399 {dimension_numbers = #tpu.dot_dimension_numbers<[1], [0], [0], [1], [0, 0, 1, 1], [], []>} : vector<1x8xf32>, vector<8x8xf32>, vector<1x8xf32> -> vector<1x8xf32>
    %1366 = arith.addf %1364, %1365 : vector<1x8xf32>
    %1367 = arith.negf %1366 : vector<1x8xf32>
    %1368 = math.exp %1367 : vector<1x8xf32>
    %cst_400 = arith.constant 1.000000e+00 : f32
    %1369 = vector.broadcast %cst_400 : f32 to vector<1x8xf32>
    %1370 = arith.addf %1369, %1368 : vector<1x8xf32>
    %1371 = arith.divf %1369, %1370 : vector<1x8xf32>
    %1372 = vector.extract_strided_slice %1181 {offsets = [5, 0], sizes = [1, 8], strides = [1, 1]} : vector<8x8xf32> to vector<1x8xf32>
    %cst_401 = arith.constant dense<0.000000e+00> : vector<1x8xf32>
    %1373 = tpu.matmul %1355, %1188, %cst_401 {dimension_numbers = #tpu.dot_dimension_numbers<[1], [0], [0], [1], [0, 0, 1, 1], [], []>} : vector<1x8xf32>, vector<8x8xf32>, vector<1x8xf32> -> vector<1x8xf32>
    %1374 = arith.addf %1372, %1373 : vector<1x8xf32>
    %1375 = math.tanh %1374 : vector<1x8xf32>
    %1376 = vector.extract_strided_slice %1182 {offsets = [5, 0], sizes = [1, 8], strides = [1, 1]} : vector<8x8xf32> to vector<1x8xf32>
    %cst_402 = arith.constant dense<0.000000e+00> : vector<1x8xf32>
    %1377 = tpu.matmul %1355, %1190, %cst_402 {dimension_numbers = #tpu.dot_dimension_numbers<[1], [0], [0], [1], [0, 0, 1, 1], [], []>} : vector<1x8xf32>, vector<8x8xf32>, vector<1x8xf32> -> vector<1x8xf32>
    %1378 = arith.addf %1376, %1377 : vector<1x8xf32>
    %1379 = arith.negf %1378 : vector<1x8xf32>
    %1380 = math.exp %1379 : vector<1x8xf32>
    %cst_403 = arith.constant 1.000000e+00 : f32
    %1381 = vector.broadcast %cst_403 : f32 to vector<1x8xf32>
    %1382 = arith.addf %1381, %1380 : vector<1x8xf32>
    %1383 = arith.divf %1381, %1382 : vector<1x8xf32>
    %1384 = arith.mulf %1371, %1353 : vector<1x8xf32>
    %1385 = arith.mulf %1363, %1375 : vector<1x8xf32>
    %1386 = arith.addf %1384, %1385 : vector<1x8xf32>
    %1387 = math.tanh %1386 : vector<1x8xf32>
    %1388 = arith.mulf %1383, %1387 : vector<1x8xf32>
    %1389 = vector.extract_strided_slice %1179 {offsets = [6, 0], sizes = [1, 8], strides = [1, 1]} : vector<8x8xf32> to vector<1x8xf32>
    %cst_404 = arith.constant dense<0.000000e+00> : vector<1x8xf32>
    %1390 = tpu.matmul %1388, %1184, %cst_404 {dimension_numbers = #tpu.dot_dimension_numbers<[1], [0], [0], [1], [0, 0, 1, 1], [], []>} : vector<1x8xf32>, vector<8x8xf32>, vector<1x8xf32> -> vector<1x8xf32>
    %1391 = arith.addf %1389, %1390 : vector<1x8xf32>
    %1392 = arith.negf %1391 : vector<1x8xf32>
    %1393 = math.exp %1392 : vector<1x8xf32>
    %cst_405 = arith.constant 1.000000e+00 : f32
    %1394 = vector.broadcast %cst_405 : f32 to vector<1x8xf32>
    %1395 = arith.addf %1394, %1393 : vector<1x8xf32>
    %1396 = arith.divf %1394, %1395 : vector<1x8xf32>
    %1397 = vector.extract_strided_slice %1180 {offsets = [6, 0], sizes = [1, 8], strides = [1, 1]} : vector<8x8xf32> to vector<1x8xf32>
    %cst_406 = arith.constant dense<0.000000e+00> : vector<1x8xf32>
    %1398 = tpu.matmul %1388, %1186, %cst_406 {dimension_numbers = #tpu.dot_dimension_numbers<[1], [0], [0], [1], [0, 0, 1, 1], [], []>} : vector<1x8xf32>, vector<8x8xf32>, vector<1x8xf32> -> vector<1x8xf32>
    %1399 = arith.addf %1397, %1398 : vector<1x8xf32>
    %1400 = arith.negf %1399 : vector<1x8xf32>
    %1401 = math.exp %1400 : vector<1x8xf32>
    %cst_407 = arith.constant 1.000000e+00 : f32
    %1402 = vector.broadcast %cst_407 : f32 to vector<1x8xf32>
    %1403 = arith.addf %1402, %1401 : vector<1x8xf32>
    %1404 = arith.divf %1402, %1403 : vector<1x8xf32>
    %1405 = vector.extract_strided_slice %1181 {offsets = [6, 0], sizes = [1, 8], strides = [1, 1]} : vector<8x8xf32> to vector<1x8xf32>
    %cst_408 = arith.constant dense<0.000000e+00> : vector<1x8xf32>
    %1406 = tpu.matmul %1388, %1188, %cst_408 {dimension_numbers = #tpu.dot_dimension_numbers<[1], [0], [0], [1], [0, 0, 1, 1], [], []>} : vector<1x8xf32>, vector<8x8xf32>, vector<1x8xf32> -> vector<1x8xf32>
    %1407 = arith.addf %1405, %1406 : vector<1x8xf32>
    %1408 = math.tanh %1407 : vector<1x8xf32>
    %1409 = vector.extract_strided_slice %1182 {offsets = [6, 0], sizes = [1, 8], strides = [1, 1]} : vector<8x8xf32> to vector<1x8xf32>
    %cst_409 = arith.constant dense<0.000000e+00> : vector<1x8xf32>
    %1410 = tpu.matmul %1388, %1190, %cst_409 {dimension_numbers = #tpu.dot_dimension_numbers<[1], [0], [0], [1], [0, 0, 1, 1], [], []>} : vector<1x8xf32>, vector<8x8xf32>, vector<1x8xf32> -> vector<1x8xf32>
    %1411 = arith.addf %1409, %1410 : vector<1x8xf32>
    %1412 = arith.negf %1411 : vector<1x8xf32>
    %1413 = math.exp %1412 : vector<1x8xf32>
    %cst_410 = arith.constant 1.000000e+00 : f32
    %1414 = vector.broadcast %cst_410 : f32 to vector<1x8xf32>
    %1415 = arith.addf %1414, %1413 : vector<1x8xf32>
    %1416 = arith.divf %1414, %1415 : vector<1x8xf32>
    %1417 = arith.mulf %1404, %1386 : vector<1x8xf32>
    %1418 = arith.mulf %1396, %1408 : vector<1x8xf32>
    %1419 = arith.addf %1417, %1418 : vector<1x8xf32>
    %1420 = math.tanh %1419 : vector<1x8xf32>
    %1421 = arith.mulf %1416, %1420 : vector<1x8xf32>
    %1422 = vector.extract_strided_slice %1179 {offsets = [7, 0], sizes = [1, 8], strides = [1, 1]} : vector<8x8xf32> to vector<1x8xf32>
    %cst_411 = arith.constant dense<0.000000e+00> : vector<1x8xf32>
    %1423 = tpu.matmul %1421, %1184, %cst_411 {dimension_numbers = #tpu.dot_dimension_numbers<[1], [0], [0], [1], [0, 0, 1, 1], [], []>} : vector<1x8xf32>, vector<8x8xf32>, vector<1x8xf32> -> vector<1x8xf32>
    %1424 = arith.addf %1422, %1423 : vector<1x8xf32>
    %1425 = arith.negf %1424 : vector<1x8xf32>
    %1426 = math.exp %1425 : vector<1x8xf32>
    %cst_412 = arith.constant 1.000000e+00 : f32
    %1427 = vector.broadcast %cst_412 : f32 to vector<1x8xf32>
    %1428 = arith.addf %1427, %1426 : vector<1x8xf32>
    %1429 = arith.divf %1427, %1428 : vector<1x8xf32>
    %1430 = vector.extract_strided_slice %1180 {offsets = [7, 0], sizes = [1, 8], strides = [1, 1]} : vector<8x8xf32> to vector<1x8xf32>
    %cst_413 = arith.constant dense<0.000000e+00> : vector<1x8xf32>
    %1431 = tpu.matmul %1421, %1186, %cst_413 {dimension_numbers = #tpu.dot_dimension_numbers<[1], [0], [0], [1], [0, 0, 1, 1], [], []>} : vector<1x8xf32>, vector<8x8xf32>, vector<1x8xf32> -> vector<1x8xf32>
    %1432 = arith.addf %1430, %1431 : vector<1x8xf32>
    %1433 = arith.negf %1432 : vector<1x8xf32>
    %1434 = math.exp %1433 : vector<1x8xf32>
    %cst_414 = arith.constant 1.000000e+00 : f32
    %1435 = vector.broadcast %cst_414 : f32 to vector<1x8xf32>
    %1436 = arith.addf %1435, %1434 : vector<1x8xf32>
    %1437 = arith.divf %1435, %1436 : vector<1x8xf32>
    %1438 = vector.extract_strided_slice %1181 {offsets = [7, 0], sizes = [1, 8], strides = [1, 1]} : vector<8x8xf32> to vector<1x8xf32>
    %cst_415 = arith.constant dense<0.000000e+00> : vector<1x8xf32>
    %1439 = tpu.matmul %1421, %1188, %cst_415 {dimension_numbers = #tpu.dot_dimension_numbers<[1], [0], [0], [1], [0, 0, 1, 1], [], []>} : vector<1x8xf32>, vector<8x8xf32>, vector<1x8xf32> -> vector<1x8xf32>
    %1440 = arith.addf %1438, %1439 : vector<1x8xf32>
    %1441 = math.tanh %1440 : vector<1x8xf32>
    %1442 = vector.extract_strided_slice %1182 {offsets = [7, 0], sizes = [1, 8], strides = [1, 1]} : vector<8x8xf32> to vector<1x8xf32>
    %cst_416 = arith.constant dense<0.000000e+00> : vector<1x8xf32>
    %1443 = tpu.matmul %1421, %1190, %cst_416 {dimension_numbers = #tpu.dot_dimension_numbers<[1], [0], [0], [1], [0, 0, 1, 1], [], []>} : vector<1x8xf32>, vector<8x8xf32>, vector<1x8xf32> -> vector<1x8xf32>
    %1444 = arith.addf %1442, %1443 : vector<1x8xf32>
    %1445 = arith.negf %1444 : vector<1x8xf32>
    %1446 = math.exp %1445 : vector<1x8xf32>
    %cst_417 = arith.constant 1.000000e+00 : f32
    %1447 = vector.broadcast %cst_417 : f32 to vector<1x8xf32>
    %1448 = arith.addf %1447, %1446 : vector<1x8xf32>
    %1449 = arith.divf %1447, %1448 : vector<1x8xf32>
    %1450 = arith.mulf %1437, %1419 : vector<1x8xf32>
    %1451 = arith.mulf %1429, %1441 : vector<1x8xf32>
    %1452 = arith.addf %1450, %1451 : vector<1x8xf32>
    %1453 = math.tanh %1452 : vector<1x8xf32>
    %1454 = arith.mulf %1449, %1453 : vector<1x8xf32>
    %1455 = tpu.concatenate %1223, %1256, %1289, %1322, %1355, %1388, %1421, %1454 in 0 : vector<1x8xf32>, vector<1x8xf32>, vector<1x8xf32>, vector<1x8xf32>, vector<1x8xf32>, vector<1x8xf32>, vector<1x8xf32>, vector<1x8xf32> -> vector<8x8xf32>
    %c4_418 = arith.constant 4 : index
    %c0_419 = arith.constant 0 : index
    %c0_420 = arith.constant 0 : index
    %1456 = vector.load %arg7[%c4_418, %c0_419, %c0_420] : memref<5x8x8xf32, #tpu.memory_space<vmem>>, vector<1x8x8xf32>
    %1457 = vector.shape_cast %1456 : vector<1x8x8xf32> to vector<8x8xf32>
    %1458 = vector.shape_cast %1455 : vector<8x8xf32> to vector<1x8x8xf32>
    tpu.vector_store %arg7[%c4_418, %c0_419, %c0_420], %1458 {strides = array<i32>} : memref<5x8x8xf32, #tpu.memory_space<vmem>>, vector<1x8x8xf32>,
    return
  }
}

</mosaic_0001>

<bundles_post_ra>
// kernel: tpu_custom_call.1
= control target key start
LH: loop header
LB: loop body
LE: loop exit
PB: predicated region body
PF: predicated region fallthrough
CT: control target
= control target key end

     0   :  { %12 = vsyncpa [#allocation3], 0  ;;  %s10161_s0 = inlined_call_operand.hbm [shape: f32[8,24], index: 0, kind: input, shape index: {}]   ;;  %s10162_s1 = inlined_call_operand.vmem [shape: f32[24,24], index: 1, kind: input, shape index: {}]   ;;  %s10163_s2 = inlined_call_operand.vmem [shape: f32[2,24], index: 2, kind: input, shape index: {}]   ;;  %s10164_s3 = inlined_call_operand.vmem [shape: f32[24,8], index: 3, kind: input, shape index: {}]   ;;  %s10165_s4 = inlined_call_operand.vmem [shape: f32[2,8], index: 4, kind: input, shape index: {}]   ;;  %s10166_s5 = inlined_call_operand.vmem [shape: f32[5,9,32], index: 5, kind: input, shape index: {}]   ;;  %s10167_s6 = inlined_call_operand.vmem [shape: f32[5,4,8,8], index: 6, kind: input, shape index: {}]   ;;  %s10168_s7 = inlined_call_operand.hbm [shape: f32[5,8,8], index: 7, kind: output, shape index: {}]  }
   0x1   :  { %13 = vsyncpa [#allocation4], 0  ;;  %s19_s26 = sshll.u32 %s10161_s0, 4  ;;  %s8813_s27 = smov [#allocation2]   ;;  %s20_s26 = int_to_ptr.hbm [resolvable:$true] %s19_s26 }
   0x2   :  { %s21_s28 = sshll.u32 %s8813_s27, 4  ;;  %s22_s28 = int_to_ptr.vmem [resolvable:$true] %s21_s28 }
   0x3   :  { %24 = dma.hbm_to_vmem [thread:$0]  %s20_s26, 128, %s22_s28, [#allocation3]  }
   0x4   :  { %8809 = dma.done.wait [#allocation3], 128  }
   0x5   :  { %8810 = vsyncadd [#allocation3], 4294967168  ;;  %v46_v0 = vld [vmem:[%s10162_s1 + $0x10] sm:$0xff]  ;;  %v45_v1 = vld [vmem:[%s10162_s1 + $0x8] sm:$0xff]  ;;  %vm48_vm0 = vcmask 195584   ;;  %vm112_vm1 = vcmask 64512   ;;  %v72_v10 = vlaneseq }
   0x6   :  { %65 = vmatpush.msra.mxu0 %v46_v0  ;;  %v44_v2 = vld [vmem:[%s10162_s1] sm:$0xff]  ;;  %v81_v4 = vld [vmem:[%s10164_s3 + $0x10] sm:$0xff]  ;;  %v80_v5 = vld [vmem:[%s10164_s3 + $0x8] sm:$0xff]  ;;  %s8814_s27 = smov 16   ;;  %s8815_s10 = smov 8  }
   0x7   :  { %v43_v3 = vld [vmem:[#allocation2] sm:$0xff]  ;;  %99 = vmatpush.msra.mxu1 %v81_v4  ;;  %v8894_v9 = vld [vmem:[%s10167_s6 + $0x10] sm:$0xff]  ;;  %v73_v11 = vand.u32 127, %v72_v10  ;;  %v8914_v18 = vld [vmem:[%s10167_s6 + $0x8] sm:$0xff]  ;;  %s8816_s11 = smov 112   ;;  %s8818_s13 = smov 104  }
   0x8   :  { %66 = vmatpush.msra.mxu0 %v45_v1  ;;  %v79_v6 = vld [vmem:[%s10164_s3] sm:$0xff]  ;;  %v8928_v25 = vld [vmem:[%s10167_s6 + $0x18] sm:$0xff]  ;;  %v8096_v26 = vld [vmem:[%s10166_s5 + $0x8] ss:$0 sm:$0xff]  ;;  %s7759_s8 = sshll.u32 %s10168_s7, 4  ;;  %s7760_s8 = int_to_ptr.hbm [resolvable:$true] %s7759_s8 }
   0x9   :  { %100 = vmatpush.msra.mxu1 %v80_v5  ;;  %v8886_v7 = vld [vmem:[%s10167_s6] sm:$0xff]  ;;  %vm74_vm2 = vcmp.ge.s32.totalorder %v73_v11, 8  ;;  %vm75_vm3 = vcmp.lt.s32.totalorder %v73_v11, 16 }
   0xa   :  { %67 = vmatpush.msra.mxu0 %v44_v2  ;;  %v107_v8 = vld [vmem:[%s10165_s4] sm:$0x1]  ;;  %161 = vmatpush.msra.mxu3 %v8886_v7  ;;  %vm76_vm4 = vmand %vm74_vm2, %vm75_vm3  ;;  %v8095_v21 = vld [vmem:[%s10163_s2 + $0x1] ss:$0 sm:$0xff] }
   0xb   :  { %7772 = vmatmul.msk.f32.vlgmr.msra.gmra.mxu0 %vm48_vm0, %v43_v3  ;;  %101 = vmatpush.msra.mxu1 %v79_v6  ;;  %v8094_v12 = vld [vmem:[%s10163_s2] ss:$0 sm:$0xff]  ;;  %v108_v33 = vld [vmem:[%s10165_s4 + $0x1] sm:$0x1]  ;;  %s8817_s4 = smov 24   ;;  %s8820_s2 = smov 128  }
   0xc   :  { %7778 = vmatmul.msk.f32.vlgmr.msra.gmra.mxu3 %vm112_vm1, %v107_v8  ;;  %v109_v17 = vld [vmem:[%s10166_s5] sm:$0xff]  ;;  %271 = vmatpush.msrb.mxu0 %v8928_v25 }
   0xd   :  { %341 = vmatpush.msrb.mxu1 %v8886_v7  ;;  %245 = vmatpush.msrb.mxu3 %v8894_v9 }
   0xe   :  { %131 = vmatpush.msra.mxu2 %v109_v17  ;;  %456 = vmatpush.msra.mxu0 %v8928_v25 }
   0xf   :  { %429 = vmatpush.msra.mxu3 %v8894_v9 }
  0x10   :  { %201 = vmatpush.msrb.mxu2 %v8914_v18 }
  0x13   :  { %7783 = vmatmul.msk.f32.vlgmr.msrb.gmra.mxu0 %vm112_vm1, %v107_v8 }
  0x14   :  { %7782 = vmatmul.msk.f32.vlgmr.msrb.gmra.mxu3 %vm112_vm1, %v107_v8  ;;  %642 = vmatpush.msrb.mxu0 %v8928_v25 }
  0x15   :  { %615 = vmatpush.msrb.mxu3 %v8894_v9 }
  0x88   :  { %v69_v13 = vpop.f32.mrf.mxu0 }
  0x89   :  { %v70_v14 = vadd.f32 %v8094_v12, %v69_v13 }
  0x8b   :  { %v77_v15 = vmax.f32 %v70_v14, 0.0 }
  0x8d   :  { %v78_v16 = vsel %vm76_vm4, %v70_v14, %v77_v15 }
  0x8e   :  { %7773 = vmatmul.msk.f32.vlgmr.msra.gmra.mxu1 %vm48_vm0, %v78_v16 }
  0x8f   :  { %527 = vmatpush.msra.mxu1 %v8886_v7  ;;  %v163_v19 = vpop.f32.mrf.mxu3 }
  0x90   :  { %v273_v50 = vpop.f32.mrf.mxu0 }
  0x97   :  { %v247_v20 = vpop.f32.mrf.mxu3 }
  0x98   :  { %251 = vrot.lane.b32.xlu0 %v247_v20, %s8814_s27 }
 0x10a   :  { %v252_v28 = vpop.permute.xlu0 %251 }
 0x10b   :  { %v103_v22 = vpop.f32.mrf.mxu1 }
 0x10c   :  { %v104_v23 = vadd.f32 %v8095_v21, %v103_v22 }
 0x10e   :  { %v106_v24 = vmax.f32 %v104_v23, 0.0 }
 0x110   :  { %7774 = vmatmul.msk.f32.vlgmr.msra.gmra.mxu2 %vm112_vm1, %v106_v24 }
 0x111   :  { %384 = vmatpush.msra.mxu2 %v8914_v18 }
 0x118   :  { %7780 = vmatmul.msk.f32.vlgmr.msrb.gmra.mxu2 %vm112_vm1, %v107_v8 }
 0x119   :  { %570 = vmatpush.msrb.mxu2 %v8914_v18 }
 0x193   :  { %v133_v27 = vpop.f32.mrf.mxu2 }
 0x194   :  { %v8937_v29 = vadd.f32 %v8096_v26, %v133_v27 }
 0x196   :  { %v254_v30 = vadd.f32 %v252_v28, %v8937_v29  ;;  %v166_v34 = vadd.f32 %v163_v19, %v8937_v29 }
 0x198   :  { %8101 = vtanh.f32 %v254_v30  ;;  %v7779_v35 = vmul.f32 -1.442695, %v166_v34 }
 0x19a   :  { %8103 = vpow2.f32 %v7779_v35 }
 0x19b   :  { %v203_v31 = vpop.f32.mrf.mxu2 }
 0x19c   :  { %207 = vrot.lane.b32.xlu1 %v203_v31, %s8815_s10 }
 0x19e   :  { %v8102_v32 = vpop.eup %8101 }
 0x19f   :  { %306 = vrot.lane.b32.xlu0 %v8102_v32, %s8816_s11 }
 0x1a0   :  { %v8104_v36 = vpop.eup %8103 }
 0x1a1   :  { %v170_v37 = vadd.f32 1.0, %v8104_v36 }
 0x1a3   :  { %8105 = vrcp.f32 %v170_v37  ;;  %v182_v43 = vand.u32 2147483648, %v170_v37  ;;  %vm176_vm6 = vweird.f32 %v170_v37  ;;  %v180_v44 = vand.u32 2147483647, %v170_v37 }
 0x1a4   :  { %301 = vrot.lane.b32.xlu1 %v108_v33, %s8815_s10 }
 0x1a5   :  { %v183_v46 = vor.u32 1.1754944e-38, %v182_v43  ;;  %vm181_vm8 = vcmp.eq.f32.partialorder %v180_v44, 8.507059e+37 }
 0x1a9   :  { %v8106_v38 = vpop.eup %8105 }
 0x1aa   :  { %v172_v39 = vmul.f32 %v8106_v38, %v170_v37  ;;  %vm177_vm5 = vweird.f32 %v8106_v38 }
 0x1ab   :  { %vm178_vm7 = vmor %vm176_vm6, %vm177_vm5 }
 0x1ac   :  { %v173_v40 = vsub.f32 1.0, %v172_v39 }
 0x1ae   :  { %v174_v41 = vmul.f32 %v8106_v38, %v173_v40 }
 0x1b0   :  { %v175_v42 = vadd.f32 %v8106_v38, %v174_v41 }
 0x1b2   :  { %v179_v45 = vsel %vm178_vm7, %v8106_v38, %v175_v42 }
 0x1b3   :  { %v184_v48 = vsel %vm181_vm8, %v183_v46, %v179_v45 }
 0x20e   :  { %v208_v51 = vpop.permute.xlu1 %207 }
 0x20f   :  { %v210_v52 = vadd.f32 %v208_v51, %v8937_v29 }
 0x211   :  { %v307_v47 = vpop.permute.xlu0 %306  ;;  %v7781_v53 = vmul.f32 -1.442695, %v210_v52 }
 0x212   :  { %v309_v49 = vmul.f32 %v307_v47, %v184_v48 }
 0x213   :  { %8107 = vpow2.f32 %v7781_v53 }
 0x214   :  { %311 = vrot.lane.b32.xlu2 %v309_v49, %s8815_s10 }
 0x216   :  { %v302_v1 = vpop.permute.xlu1 %301 }
 0x219   :  { %v8108_v54 = vpop.eup %8107 }
 0x21a   :  { %v214_v55 = vadd.f32 1.0, %v8108_v54 }
 0x21c   :  { %277 = vrot.lane.b32.xlu2 %v273_v50, %s8817_s4  ;;  %8109 = vrcp.f32 %v214_v55  ;;  %v226_v61 = vand.u32 2147483648, %v214_v55  ;;  %vm220_vm10 = vweird.f32 %v214_v55  ;;  %v224_v62 = vand.u32 2147483647, %v214_v55 }
 0x21e   :  { %v227_v0 = vor.u32 1.1754944e-38, %v226_v61  ;;  %vm225_vm12 = vcmp.eq.f32.partialorder %v224_v62, 8.507059e+37 }
 0x222   :  { %v8110_v56 = vpop.eup %8109 }
 0x223   :  { %v216_v57 = vmul.f32 %v8110_v56, %v214_v55  ;;  %vm221_vm9 = vweird.f32 %v8110_v56 }
 0x224   :  { %vm222_vm11 = vmor %vm220_vm10, %vm221_vm9 }
 0x225   :  { %v217_v58 = vsub.f32 1.0, %v216_v57 }
 0x227   :  { %v218_v59 = vmul.f32 %v8110_v56, %v217_v58 }
 0x229   :  { %v219_v60 = vadd.f32 %v8110_v56, %v218_v59 }
 0x22b   :  { %v223_v63 = vsel %vm222_vm11, %v8110_v56, %v219_v60 }
 0x22c   :  { %v228_v2 = vsel %vm225_vm12, %v227_v0, %v223_v63 }
 0x22d   :  { %v304_v3 = vmul.f32 %v302_v1, %v228_v2 }
 0x26e   :  { %v312_v4 = vpop.permute.xlu2 %311 }
 0x26f   :  { %v8950_v5 = vadd.f32 %v312_v4, %v304_v3 }
 0x271   :  { %8111 = vtanh.f32 %v8950_v5 }
 0x276   :  { %v278_v8 = vpop.permute.xlu2 %277 }
 0x277   :  { %v8112_v6 = vpop.eup %8111  ;;  %v280_v10 = vadd.f32 %v278_v8, %v8937_v29 }
 0x278   :  { %317 = vrot.lane.b32.xlu0 %v8112_v6, %s8814_s27 }
 0x279   :  { %v7784_v11 = vmul.f32 -1.442695, %v280_v10 }
 0x27b   :  { %8113 = vpow2.f32 %v7784_v11  ;;  %v487_v11 = vrot.slane %v8950_v5, 7 }
 0x281   :  { %v8114_v12 = vpop.eup %8113 }
 0x282   :  { %v284_v13 = vadd.f32 1.0, %v8114_v12 }
 0x284   :  { %8115 = vrcp.f32 %v284_v13  ;;  %v296_v20 = vand.u32 2147483648, %v284_v13  ;;  %vm290_vm14 = vweird.f32 %v284_v13  ;;  %v294_v21 = vand.u32 2147483647, %v284_v13 }
 0x286   :  { %v297_v23 = vor.u32 1.1754944e-38, %v296_v20  ;;  %vm295_vm0 = vcmp.eq.f32.partialorder %v294_v21, 8.507059e+37 }
 0x28a   :  { %v8116_v14 = vpop.eup %8115 }
 0x28b   :  { %v286_v15 = vmul.f32 %v8116_v14, %v284_v13  ;;  %vm291_vm13 = vweird.f32 %v8116_v14 }
 0x28c   :  { %vm292_vm15 = vmor %vm290_vm14, %vm291_vm13 }
 0x28d   :  { %v287_v16 = vsub.f32 1.0, %v286_v15 }
 0x28f   :  { %v288_v17 = vmul.f32 %v8116_v14, %v287_v16 }
 0x291   :  { %v289_v19 = vadd.f32 %v8116_v14, %v288_v17 }
 0x293   :  { %v293_v22 = vsel %vm292_vm15, %v8116_v14, %v289_v19 }
 0x294   :  { %v298_v26 = vsel %vm295_vm0, %v297_v23, %v293_v22 }
 0x2ea   :  { %v318_v24 = vpop.permute.xlu0 %317 }
 0x2eb   :  { %v8955_v27 = vmul.f32 %v318_v24, %v298_v26 }
 0x2ed   :  { %322 = vrot.lane.b32.xlu1 %v8955_v27, %s8818_s13 }
 0x35f   :  { %v323_v28 = vpop.permute.xlu1 %322 }
 0x360   :  { %7785 = vmatmul.msk.f32.vlgmr.msrb.gmra.mxu1 %vm112_vm1, %v323_v28  ;;  %7787 = vmatmul.msk.f32.vlgmr.msra.gmra.mxu2 %vm112_vm1, %v323_v28 }
 0x361   :  { %7789 = vmatmul.msk.f32.vlgmr.msra.gmra.mxu3 %vm112_vm1, %v323_v28  ;;  %7790 = vmatmul.msk.f32.vlgmr.msra.gmra.mxu0 %vm112_vm1, %v323_v28 }
 0x362   :  { %801 = vmatpush.msra.mxu3 %v8894_v9  ;;  %713 = vmatpush.msrb.mxu1 %v8886_v7 }
 0x363   :  { %756 = vmatpush.msra.mxu2 %v8914_v18  ;;  %828 = vmatpush.msra.mxu0 %v8928_v25 }
 0x3dd   :  { %v343_v39 = vpop.f32.mrf.mxu1 }
 0x3de   :  { %v458_v37 = vpop.f32.mrf.mxu0  ;;  %v347_v40 = vrot.slane %v343_v39, 7 }
 0x3df   :  { %v462_v38 = vrot.slane %v458_v37, 7 }
 0x3e0   :  { %v349_v41 = vadd.f32 %v347_v40, %v8937_v29 }
 0x3e2   :  { %v7786_v42 = vmul.f32 -1.442695, %v349_v41 }
 0x3e3   :  { %v386_v30 = vpop.f32.mrf.mxu2 }
 0x3e4   :  { %v390_v31 = vrot.slane %v386_v30, 7  ;;  %v431_v32 = vpop.f32.mrf.mxu3 }
 0x3e5   :  { %v435_v33 = vrot.slane %v431_v32, 7 }
 0x3e6   :  { %391 = vrot.lane.b32.xlu1 %v390_v31, %s8815_s10 }
 0x3e7   :  { %436 = vrot.lane.b32.xlu2 %v435_v33, %s8814_s27 }
 0x441   :  { %v437_v34 = vpop.permute.xlu2 %436 }
 0x442   :  { %v439_v35 = vadd.f32 %v437_v34, %v8937_v29 }
 0x444   :  { %8117 = vtanh.f32 %v439_v35 }
 0x445   :  { %8119 = vpow2.f32 %v7786_v42 }
 0x44a   :  { %v8118_v36 = vpop.eup %8117 }
 0x44b   :  { %491 = vrot.lane.b32.xlu0 %v8118_v36, %s8816_s11  ;;  %v8120_v43 = vpop.eup %8119 }
 0x44c   :  { %v353_v44 = vadd.f32 1.0, %v8120_v43 }
 0x44e   :  { %8121 = vrcp.f32 %v353_v44  ;;  %v365_v50 = vand.u32 2147483648, %v353_v44  ;;  %vm359_vm3 = vweird.f32 %v353_v44  ;;  %v363_v51 = vand.u32 2147483647, %v353_v44 }
 0x450   :  { %v366_v53 = vor.u32 1.1754944e-38, %v365_v50  ;;  %vm364_vm5 = vcmp.eq.f32.partialorder %v363_v51, 8.507059e+37 }
 0x453   :  { %463 = vrot.lane.b32.xlu0 %v462_v38, %s8817_s4 }
 0x454   :  { %v8122_v45 = vpop.eup %8121 }
 0x455   :  { %v355_v46 = vmul.f32 %v8122_v45, %v353_v44  ;;  %vm360_vm2 = vweird.f32 %v8122_v45 }
 0x456   :  { %vm361_vm4 = vmor %vm359_vm3, %vm360_vm2 }
 0x457   :  { %v356_v47 = vsub.f32 1.0, %v355_v46 }
 0x458   :  { %v392_v57 = vpop.permute.xlu1 %391 }
 0x459   :  { %v357_v48 = vmul.f32 %v8122_v45, %v356_v47  ;;  %v394_v58 = vadd.f32 %v392_v57, %v8937_v29 }
 0x45b   :  { %v358_v49 = vadd.f32 %v8122_v45, %v357_v48  ;;  %v7788_v59 = vmul.f32 -1.442695, %v394_v58 }
 0x45d   :  { %v362_v52 = vsel %vm361_vm4, %v8122_v45, %v358_v49  ;;  %8123 = vpow2.f32 %v7788_v59 }
 0x45e   :  { %v367_v55 = vsel %vm364_vm5, %v366_v53, %v362_v52 }
 0x463   :  { %v8124_v60 = vpop.eup %8123 }
 0x464   :  { %v398_v61 = vadd.f32 1.0, %v8124_v60 }
 0x466   :  { %8125 = vrcp.f32 %v398_v61  ;;  %v410_v3 = vand.u32 2147483648, %v398_v61  ;;  %vm404_vm7 = vweird.f32 %v398_v61  ;;  %v408_v4 = vand.u32 2147483647, %v398_v61 }
 0x468   :  { %v411_v8 = vor.u32 1.1754944e-38, %v410_v3  ;;  %vm409_vm9 = vcmp.eq.f32.partialorder %v408_v4, 8.507059e+37 }
 0x46c   :  { %v8126_v62 = vpop.eup %8125 }
 0x46d   :  { %v400_v63 = vmul.f32 %v8126_v62, %v398_v61  ;;  %vm405_vm6 = vweird.f32 %v8126_v62 }
 0x46e   :  { %vm406_vm8 = vmor %vm404_vm7, %vm405_vm6 }
 0x46f   :  { %v401_v0 = vsub.f32 1.0, %v400_v63 }
 0x471   :  { %v402_v1 = vmul.f32 %v8126_v62, %v401_v0 }
 0x473   :  { %v403_v2 = vadd.f32 %v8126_v62, %v402_v1 }
 0x475   :  { %v407_v6 = vsel %vm406_vm8, %v8126_v62, %v403_v2 }
 0x476   :  { %v412_v10 = vsel %vm409_vm9, %v411_v8, %v407_v6 }
 0x477   :  { %v489_v12 = vmul.f32 %v487_v11, %v412_v10 }
 0x4bd   :  { %v492_v54 = vpop.permute.xlu0 %491 }
 0x4be   :  { %v494_v56 = vmul.f32 %v492_v54, %v367_v55 }
 0x4c0   :  { %496 = vrot.lane.b32.xlu2 %v494_v56, %s8815_s10 }
 0x4c5   :  { %v464_v16 = vpop.permute.xlu0 %463 }
 0x4c6   :  { %v466_v17 = vadd.f32 %v464_v16, %v8937_v29 }
 0x4c8   :  { %v7791_v19 = vmul.f32 -1.442695, %v466_v17 }
 0x51a   :  { %v497_v13 = vpop.permute.xlu2 %496 }
 0x51b   :  { %v8976_v14 = vadd.f32 %v497_v13, %v489_v12 }
 0x51d   :  { %8127 = vtanh.f32 %v8976_v14 }
 0x51e   :  { %8129 = vpow2.f32 %v7791_v19 }
 0x523   :  { %v8128_v15 = vpop.eup %8127 }
 0x524   :  { %502 = vrot.lane.b32.xlu1 %v8128_v15, %s8814_s27  ;;  %v8130_v20 = vpop.eup %8129 }
 0x525   :  { %v470_v21 = vadd.f32 1.0, %v8130_v20 }
 0x527   :  { %8131 = vrcp.f32 %v470_v21  ;;  %v482_v28 = vand.u32 2147483648, %v470_v21  ;;  %vm476_vm11 = vweird.f32 %v470_v21  ;;  %v480_v30 = vand.u32 2147483647, %v470_v21 }
 0x529   :  { %v483_v32 = vor.u32 1.1754944e-38, %v482_v28  ;;  %vm481_vm13 = vcmp.eq.f32.partialorder %v480_v30, 8.507059e+37 }
 0x52d   :  { %v8132_v22 = vpop.eup %8131 }
 0x52e   :  { %v472_v23 = vmul.f32 %v8132_v22, %v470_v21  ;;  %vm477_vm10 = vweird.f32 %v8132_v22  ;;  %v673_v21 = vrot.slane %v8976_v14, 7 }
 0x52f   :  { %vm478_vm12 = vmor %vm476_vm11, %vm477_vm10  ;;  %vm1622_vm10 = vcmask 1040384  }
 0x530   :  { %v473_v5 = vsub.f32 1.0, %v472_v23 }
 0x532   :  { %v474_v24 = vmul.f32 %v8132_v22, %v473_v5 }
 0x534   :  { %v475_v26 = vadd.f32 %v8132_v22, %v474_v24 }
 0x536   :  { %v479_v31 = vsel %vm478_vm12, %v8132_v22, %v475_v26  ;;  %vm1624_vm12 = vcmask 1041408  }
 0x537   :  { %v484_v33 = vsel %vm481_vm13, %v483_v32, %v479_v31 }
 0x596   :  { %v503_v34 = vpop.permute.xlu1 %502 }
 0x597   :  { %v8981_v35 = vmul.f32 %v503_v34, %v484_v33 }
 0x599   :  { %v507_v36 = vrot.slane %v8981_v35, 1 }
 0x59b   :  { %508 = vrot.lane.b32.xlu2 %v507_v36, %s8818_s13 }
 0x5f5   :  { %v509_v37 = vpop.permute.xlu2 %508 }
 0x5f6   :  { %7792 = vmatmul.msk.f32.vlgmr.msra.gmra.mxu1 %vm112_vm1, %v509_v37  ;;  %7794 = vmatmul.msk.f32.vlgmr.msrb.gmra.mxu2 %vm112_vm1, %v509_v37 }
 0x5f7   :  { %7796 = vmatmul.msk.f32.vlgmr.msrb.gmra.mxu3 %vm112_vm1, %v509_v37  ;;  %7797 = vmatmul.msk.f32.vlgmr.msrb.gmra.mxu0 %vm112_vm1, %v509_v37 }
 0x5f8   :  { %987 = vmatpush.msrb.mxu3 %v8894_v9  ;;  %899 = vmatpush.msra.mxu1 %v8886_v7 }
 0x5f9   :  { %942 = vmatpush.msrb.mxu2 %v8914_v18  ;;  %1014 = vmatpush.msrb.mxu0 %v8928_v25 }
 0x673   :  { %v529_v47 = vpop.f32.mrf.mxu1 }
 0x674   :  { %v644_v45 = vpop.f32.mrf.mxu0  ;;  %v533_v48 = vrot.slane %v529_v47, 6 }
 0x675   :  { %v648_v46 = vrot.slane %v644_v45, 6  ;;  %v1623_v45 = vsel %vm1622_vm10, %v8955_v27, %v8981_v35 }
 0x676   :  { %v535_v49 = vadd.f32 %v533_v48, %v8937_v29 }
 0x678   :  { %v7793_v50 = vmul.f32 -1.442695, %v535_v49 }
 0x679   :  { %v572_v38 = vpop.f32.mrf.mxu2 }
 0x67a   :  { %v576_v39 = vrot.slane %v572_v38, 6  ;;  %v617_v40 = vpop.f32.mrf.mxu3 }
 0x67b   :  { %v621_v41 = vrot.slane %v617_v40, 6 }
 0x67c   :  { %577 = vrot.lane.b32.xlu2 %v576_v39, %s8815_s10 }
 0x67d   :  { %622 = vrot.lane.b32.xlu0 %v621_v41, %s8814_s27 }
 0x6d6   :  { %v578_v1 = vpop.permute.xlu2 %577 }
 0x6d7   :  { %v580_v2 = vadd.f32 %v578_v1, %v8937_v29 }
 0x6d9   :  { %v7795_v3 = vmul.f32 -1.442695, %v580_v2 }
 0x6ef   :  { %v623_v42 = vpop.permute.xlu0 %622 }
 0x6f0   :  { %v625_v43 = vadd.f32 %v623_v42, %v8937_v29 }
 0x6f2   :  { %8133 = vtanh.f32 %v625_v43 }
 0x6f3   :  { %8135 = vpow2.f32 %v7793_v50 }
 0x6f8   :  { %v8134_v44 = vpop.eup %8133 }
 0x6f9   :  { %677 = vrot.lane.b32.xlu1 %v8134_v44, %s8816_s11  ;;  %v8136_v51 = vpop.eup %8135 }
 0x6fa   :  { %v539_v52 = vadd.f32 1.0, %v8136_v51 }
 0x6fc   :  { %8137 = vrcp.f32 %v539_v52  ;;  %v551_v58 = vand.u32 2147483648, %v539_v52  ;;  %vm545_vm15 = vweird.f32 %v539_v52  ;;  %v549_v59 = vand.u32 2147483647, %v539_v52 }
 0x6fd   :  { %8139 = vpow2.f32 %v7795_v3 }
 0x6fe   :  { %v552_v61 = vor.u32 1.1754944e-38, %v551_v58  ;;  %vm550_vm2 = vcmp.eq.f32.partialorder %v549_v59, 8.507059e+37 }
 0x701   :  { %649 = vrot.lane.b32.xlu1 %v648_v46, %s8817_s4 }
 0x702   :  { %v8138_v53 = vpop.eup %8137 }
 0x703   :  { %v541_v54 = vmul.f32 %v8138_v53, %v539_v52  ;;  %vm546_vm14 = vweird.f32 %v8138_v53  ;;  %v8140_v4 = vpop.eup %8139 }
 0x704   :  { %vm547_vm0 = vmor %vm545_vm15, %vm546_vm14  ;;  %v584_v6 = vadd.f32 1.0, %v8140_v4 }
 0x705   :  { %v542_v55 = vsub.f32 1.0, %v541_v54 }
 0x706   :  { %8141 = vrcp.f32 %v584_v6  ;;  %v596_v15 = vand.u32 2147483648, %v584_v6  ;;  %vm590_vm4 = vweird.f32 %v584_v6  ;;  %v594_v16 = vand.u32 2147483647, %v584_v6 }
 0x707   :  { %v543_v56 = vmul.f32 %v8138_v53, %v542_v55 }
 0x708   :  { %v597_v19 = vor.u32 1.1754944e-38, %v596_v15  ;;  %vm595_vm6 = vcmp.eq.f32.partialorder %v594_v16, 8.507059e+37 }
 0x709   :  { %v544_v57 = vadd.f32 %v8138_v53, %v543_v56 }
 0x70b   :  { %v548_v60 = vsel %vm547_vm0, %v8138_v53, %v544_v57 }
 0x70c   :  { %v553_v63 = vsel %vm550_vm2, %v552_v61, %v548_v60  ;;  %v8142_v8 = vpop.eup %8141 }
 0x70d   :  { %v586_v10 = vmul.f32 %v8142_v8, %v584_v6  ;;  %vm591_vm3 = vweird.f32 %v8142_v8 }
 0x70e   :  { %vm592_vm5 = vmor %vm590_vm4, %vm591_vm3 }
 0x70f   :  { %v587_v11 = vsub.f32 1.0, %v586_v10 }
 0x711   :  { %v588_v12 = vmul.f32 %v8142_v8, %v587_v11 }
 0x713   :  { %v589_v13 = vadd.f32 %v8142_v8, %v588_v12 }
 0x715   :  { %v593_v17 = vsel %vm592_vm5, %v8142_v8, %v589_v13 }
 0x716   :  { %v598_v20 = vsel %vm595_vm6, %v597_v19, %v593_v17 }
 0x717   :  { %v675_v22 = vmul.f32 %v673_v21, %v598_v20 }
 0x76b   :  { %v678_v62 = vpop.permute.xlu1 %677 }
 0x76c   :  { %v680_v0 = vmul.f32 %v678_v62, %v553_v63 }
 0x76e   :  { %682 = vrot.lane.b32.xlu0 %v680_v0, %s8815_s10 }
 0x773   :  { %v650_v26 = vpop.permute.xlu1 %649 }
 0x774   :  { %v652_v28 = vadd.f32 %v650_v26, %v8937_v29 }
 0x776   :  { %v7798_v30 = vmul.f32 -1.442695, %v652_v28 }
 0x7e0   :  { %v683_v23 = vpop.permute.xlu0 %682 }
 0x7e1   :  { %v9002_v5 = vadd.f32 %v683_v23, %v675_v22 }
 0x7e3   :  { %8143 = vtanh.f32 %v9002_v5 }
 0x7e4   :  { %8145 = vpow2.f32 %v7798_v30 }
 0x7e9   :  { %v8144_v24 = vpop.eup %8143 }
 0x7ea   :  { %688 = vrot.lane.b32.xlu2 %v8144_v24, %s8814_s27  ;;  %v8146_v31 = vpop.eup %8145 }
 0x7eb   :  { %v656_v32 = vadd.f32 1.0, %v8146_v31 }
 0x7ed   :  { %8147 = vrcp.f32 %v656_v32  ;;  %v668_v38 = vand.u32 2147483648, %v656_v32  ;;  %vm662_vm8 = vweird.f32 %v656_v32  ;;  %v666_v39 = vand.u32 2147483647, %v656_v32 }
 0x7ef   :  { %v669_v41 = vor.u32 1.1754944e-38, %v668_v38  ;;  %vm667_vm11 = vcmp.eq.f32.partialorder %v666_v39, 8.507059e+37 }
 0x7f3   :  { %v8148_v33 = vpop.eup %8147 }
 0x7f4   :  { %v658_v34 = vmul.f32 %v8148_v33, %v656_v32  ;;  %vm663_vm7 = vweird.f32 %v8148_v33 }
 0x7f5   :  { %vm664_vm9 = vmor %vm662_vm8, %vm663_vm7 }
 0x7f6   :  { %v659_v14 = vsub.f32 1.0, %v658_v34 }
 0x7f8   :  { %v660_v36 = vmul.f32 %v8148_v33, %v659_v14 }
 0x7fa   :  { %v661_v37 = vadd.f32 %v8148_v33, %v660_v36 }
 0x7fc   :  { %v665_v40 = vsel %vm664_vm9, %v8148_v33, %v661_v37  ;;  %v859_v33 = vrot.slane %v9002_v5, 7 }
 0x7fd   :  { %v670_v42 = vsel %vm667_vm11, %v669_v41, %v665_v40  ;;  %vm1626_vm11 = vcmask 1042432  }
 0x844   :  { %v689_v43 = vpop.permute.xlu2 %688 }
 0x845   :  { %v691_v44 = vmul.f32 %v689_v43, %v670_v42 }
 0x847   :  { %v693_v46 = vrot.slane %v691_v44, 2  ;;  %v9011_v47 = vsel %vm1624_vm12, %v1623_v45, %v691_v44 }
 0x849   :  { %694 = vrot.lane.b32.xlu0 %v693_v46, %s8818_s13 }
 0x8bb   :  { %v695_v48 = vpop.permute.xlu0 %694 }
 0x8bc   :  { %7799 = vmatmul.msk.f32.vlgmr.msrb.gmra.mxu1 %vm112_vm1, %v695_v48  ;;  %7801 = vmatmul.msk.f32.vlgmr.msra.gmra.mxu2 %vm112_vm1, %v695_v48 }
 0x8bd   :  { %7803 = vmatmul.msk.f32.vlgmr.msra.gmra.mxu3 %vm112_vm1, %v695_v48  ;;  %7804 = vmatmul.msk.f32.vlgmr.msra.gmra.mxu0 %vm112_vm1, %v695_v48 }
 0x8be   :  { %1173 = vmatpush.msra.mxu3 %v8894_v9  ;;  %1085 = vmatpush.msrb.mxu1 %v8886_v7 }
 0x8bf   :  { %1128 = vmatpush.msra.mxu2 %v8914_v18  ;;  %1200 = vmatpush.msra.mxu0 %v8928_v25 }
 0x939   :  { %v715_v56 = vpop.f32.mrf.mxu1 }
 0x93a   :  { %v830_v54 = vpop.f32.mrf.mxu0  ;;  %v719_v57 = vrot.slane %v715_v56, 5 }
 0x93b   :  { %v834_v55 = vrot.slane %v830_v54, 5 }
 0x93c   :  { %v721_v58 = vadd.f32 %v719_v57, %v8937_v29 }
 0x93e   :  { %v7800_v59 = vmul.f32 -1.442695, %v721_v58 }
 0x93f   :  { %v758_v27 = vpop.f32.mrf.mxu2 }
 0x940   :  { %v762_v35 = vrot.slane %v758_v27, 5  ;;  %v803_v49 = vpop.f32.mrf.mxu3 }
 0x941   :  { %v807_v50 = vrot.slane %v803_v49, 5 }
 0x942   :  { %763 = vrot.lane.b32.xlu0 %v762_v35, %s8815_s10 }
 0x943   :  { %808 = vrot.lane.b32.xlu1 %v807_v50, %s8814_s27 }
 0x9b4   :  { %v764_v13 = vpop.permute.xlu0 %763 }
 0x9b5   :  { %v809_v51 = vpop.permute.xlu1 %808  ;;  %v766_v15 = vadd.f32 %v764_v13, %v8937_v29 }
 0x9b6   :  { %v811_v52 = vadd.f32 %v809_v51, %v8937_v29 }
 0x9b7   :  { %v7802_v16 = vmul.f32 -1.442695, %v766_v15 }
 0x9b8   :  { %8149 = vtanh.f32 %v811_v52 }
 0x9b9   :  { %8151 = vpow2.f32 %v7800_v59 }
 0x9be   :  { %v8150_v53 = vpop.eup %8149 }
 0x9bf   :  { %863 = vrot.lane.b32.xlu2 %v8150_v53, %s8816_s11  ;;  %v8152_v60 = vpop.eup %8151 }
 0x9c0   :  { %v725_v61 = vadd.f32 1.0, %v8152_v60 }
 0x9c2   :  { %8153 = vrcp.f32 %v725_v61  ;;  %v737_v3 = vand.u32 2147483648, %v725_v61  ;;  %vm731_vm14 = vweird.f32 %v725_v61  ;;  %v735_v4 = vand.u32 2147483647, %v725_v61 }
 0x9c3   :  { %8155 = vpow2.f32 %v7802_v16 }
 0x9c4   :  { %v738_v8 = vor.u32 1.1754944e-38, %v737_v3  ;;  %vm736_vm0 = vcmp.eq.f32.partialorder %v735_v4, 8.507059e+37 }
 0x9c7   :  { %835 = vrot.lane.b32.xlu2 %v834_v55, %s8817_s4 }
 0x9c8   :  { %v8154_v62 = vpop.eup %8153 }
 0x9c9   :  { %v727_v63 = vmul.f32 %v8154_v62, %v725_v61  ;;  %vm732_vm13 = vweird.f32 %v8154_v62  ;;  %v8156_v17 = vpop.eup %8155 }
 0x9ca   :  { %vm733_vm15 = vmor %vm731_vm14, %vm732_vm13  ;;  %v770_v19 = vadd.f32 1.0, %v8156_v17 }
 0x9cb   :  { %v728_v0 = vsub.f32 1.0, %v727_v63 }
 0x9cc   :  { %8157 = vrcp.f32 %v770_v19  ;;  %v782_v26 = vand.u32 2147483648, %v770_v19  ;;  %vm776_vm3 = vweird.f32 %v770_v19  ;;  %v780_v28 = vand.u32 2147483647, %v770_v19 }
 0x9cd   :  { %v729_v1 = vmul.f32 %v8154_v62, %v728_v0 }
 0x9ce   :  { %v783_v31 = vor.u32 1.1754944e-38, %v782_v26  ;;  %vm781_vm5 = vcmp.eq.f32.partialorder %v780_v28, 8.507059e+37 }
 0x9cf   :  { %v730_v2 = vadd.f32 %v8154_v62, %v729_v1 }
 0x9d1   :  { %v734_v6 = vsel %vm733_vm15, %v8154_v62, %v730_v2 }
 0x9d2   :  { %v739_v11 = vsel %vm736_vm0, %v738_v8, %v734_v6  ;;  %v8158_v20 = vpop.eup %8157 }
 0x9d3   :  { %v772_v21 = vmul.f32 %v8158_v20, %v770_v19  ;;  %vm777_vm2 = vweird.f32 %v8158_v20 }
 0x9d4   :  { %vm778_vm4 = vmor %vm776_vm3, %vm777_vm2 }
 0x9d5   :  { %v773_v22 = vsub.f32 1.0, %v772_v21 }
 0x9d7   :  { %v774_v23 = vmul.f32 %v8158_v20, %v773_v22 }
 0x9d9   :  { %v775_v24 = vadd.f32 %v8158_v20, %v774_v23 }
 0x9db   :  { %v779_v30 = vsel %vm778_vm4, %v8158_v20, %v775_v24 }
 0x9dc   :  { %v784_v32 = vsel %vm781_vm5, %v783_v31, %v779_v30 }
 0x9dd   :  { %v861_v34 = vmul.f32 %v859_v33, %v784_v32 }
 0xa19   :  { %v864_v10 = vpop.permute.xlu2 %863 }
 0xa1a   :  { %v866_v12 = vmul.f32 %v864_v10, %v739_v11 }
 0xa1c   :  { %868 = vrot.lane.b32.xlu1 %v866_v12, %s8815_s10 }
 0xa21   :  { %v836_v38 = vpop.permute.xlu2 %835 }
 0xa22   :  { %v838_v39 = vadd.f32 %v836_v38, %v8937_v29 }
 0xa24   :  { %v7805_v40 = vmul.f32 -1.442695, %v838_v39 }
 0xa8e   :  { %v869_v14 = vpop.permute.xlu1 %868 }
 0xa8f   :  { %v9031_v36 = vadd.f32 %v869_v14, %v861_v34 }
 0xa91   :  { %8159 = vtanh.f32 %v9031_v36  ;;  %v1045_v38 = vrot.slane %v9031_v36, 7 }
 0xa92   :  { %8161 = vpow2.f32 %v7805_v40 }
 0xa97   :  { %v8160_v37 = vpop.eup %8159 }
 0xa98   :  { %874 = vrot.lane.b32.xlu0 %v8160_v37, %s8814_s27  ;;  %v8162_v41 = vpop.eup %8161 }
 0xa99   :  { %v842_v42 = vadd.f32 1.0, %v8162_v41 }
 0xa9b   :  { %8163 = vrcp.f32 %v842_v42  ;;  %v854_v48 = vand.u32 2147483648, %v842_v42  ;;  %vm848_vm7 = vweird.f32 %v842_v42  ;;  %v852_v27 = vand.u32 2147483647, %v842_v42 }
 0xa9d   :  { %v855_v49 = vor.u32 1.1754944e-38, %v854_v48  ;;  %vm853_vm9 = vcmp.eq.f32.partialorder %v852_v27, 8.507059e+37 }
 0xaa1   :  { %v8164_v43 = vpop.eup %8163 }
 0xaa2   :  { %v844_v44 = vmul.f32 %v8164_v43, %v842_v42  ;;  %vm849_vm6 = vweird.f32 %v8164_v43 }
 0xaa3   :  { %vm850_vm8 = vmor %vm848_vm7, %vm849_vm6 }
 0xaa4   :  { %v845_v5 = vsub.f32 1.0, %v844_v44 }
 0xaa6   :  { %v846_v45 = vmul.f32 %v8164_v43, %v845_v5 }
 0xaa8   :  { %v847_v46 = vadd.f32 %v8164_v43, %v846_v45 }
 0xaaa   :  { %v851_v35 = vsel %vm850_vm8, %v8164_v43, %v847_v46 }
 0xaab   :  { %v856_v50 = vsel %vm853_vm9, %v855_v49, %v851_v35 }
 0xb0a   :  { %v875_v51 = vpop.permute.xlu0 %874 }
 0xb0b   :  { %v877_v52 = vmul.f32 %v875_v51, %v856_v50 }
 0xb0d   :  { %v879_v53 = vrot.slane %v877_v52, 3  ;;  %v9038_v54 = vsel %vm1626_vm11, %v9011_v47, %v877_v52 }
 0xb0f   :  { %880 = vrot.lane.b32.xlu1 %v879_v53, %s8818_s13 }
 0xb81   :  { %v881_v55 = vpop.permute.xlu1 %880 }
 0xb82   :  { %7806 = vmatmul.msk.f32.vlgmr.msra.gmra.mxu1 %vm112_vm1, %v881_v55  ;;  %7808 = vmatmul.msk.f32.vlgmr.msrb.gmra.mxu2 %vm112_vm1, %v881_v55 }
 0xb83   :  { %7810 = vmatmul.msk.f32.vlgmr.msrb.gmra.mxu3 %vm112_vm1, %v881_v55  ;;  %7811 = vmatmul.msk.f32.vlgmr.msrb.gmra.mxu0 %vm112_vm1, %v881_v55 }
 0xb84   :  { %1359 = vmatpush.msrb.mxu3 %v8894_v9  ;;  %1271 = vmatpush.msra.mxu1 %v8886_v7 }
 0xb85   :  { %1314 = vmatpush.msrb.mxu2 %v8914_v18  ;;  %1386 = vmatpush.msrb.mxu0 %v8928_v25 }
 0xbff   :  { %v901_v18 = vpop.f32.mrf.mxu1 }
 0xc00   :  { %v1016_v7 = vpop.f32.mrf.mxu0  ;;  %v905_v25 = vrot.slane %v901_v18, 4 }
 0xc01   :  { %v1020_v9 = vrot.slane %v1016_v7, 4  ;;  %v8744_v7 = vld [vmem:[%s10167_s6 + $0x18] sm:$0xff] }
 0xc02   :  { %v907_v62 = vadd.f32 %v905_v25, %v8937_v29 }
 0xc04   :  { %v7807_v63 = vmul.f32 -1.442695, %v907_v62 }
 0xc05   :  { %v944_v47 = vpop.f32.mrf.mxu2 }
 0xc06   :  { %v948_v56 = vrot.slane %v944_v47, 4  ;;  %v989_v57 = vpop.f32.mrf.mxu3 }
 0xc07   :  { %v993_v58 = vrot.slane %v989_v57, 4 }
 0xc08   :  { %949 = vrot.lane.b32.xlu1 %v948_v56, %s8815_s10 }
 0xc09   :  { %994 = vrot.lane.b32.xlu2 %v993_v58, %s8814_s27 }
 0xc63   :  { %v995_v59 = vpop.permute.xlu2 %994 }
 0xc64   :  { %v997_v60 = vadd.f32 %v995_v59, %v8937_v29 }
 0xc66   :  { %8165 = vtanh.f32 %v997_v60  ;;  %v8741_v60 = vld [vmem:[%s10167_s6 + $0x10] sm:$0xff] }
 0xc67   :  { %8167 = vpow2.f32 %v7807_v63 }
 0xc6c   :  { %v8166_v61 = vpop.eup %8165 }
 0xc6d   :  { %1049 = vrot.lane.b32.xlu0 %v8166_v61, %s8816_s11  ;;  %v8168_v0 = vpop.eup %8167  ;;  %v8743_v61 = vld [vmem:[%s10167_s6 + $0x8] sm:$0xff] }
 0xc6e   :  { %v911_v1 = vadd.f32 1.0, %v8168_v0 }
 0xc70   :  { %8169 = vrcp.f32 %v911_v1  ;;  %v923_v10 = vand.u32 2147483648, %v911_v1  ;;  %vm917_vm14 = vweird.f32 %v911_v1  ;;  %v921_v11 = vand.u32 2147483647, %v911_v1 }
 0xc72   :  { %v924_v13 = vor.u32 1.1754944e-38, %v923_v10  ;;  %vm922_vm0 = vcmp.eq.f32.partialorder %v921_v11, 8.507059e+37 }
 0xc75   :  { %1021 = vrot.lane.b32.xlu0 %v1020_v9, %s8817_s4 }
 0xc76   :  { %v8170_v2 = vpop.eup %8169 }
 0xc77   :  { %v913_v3 = vmul.f32 %v8170_v2, %v911_v1  ;;  %vm918_vm13 = vweird.f32 %v8170_v2 }
 0xc78   :  { %vm919_vm15 = vmor %vm917_vm14, %vm918_vm13  ;;  %vm1628_vm13 = vcmask 1043456  }
 0xc79   :  { %v914_v4 = vsub.f32 1.0, %v913_v3 }
 0xc7a   :  { %v950_v19 = vpop.permute.xlu1 %949 }
 0xc7b   :  { %v915_v6 = vmul.f32 %v8170_v2, %v914_v4  ;;  %v952_v20 = vadd.f32 %v950_v19, %v8937_v29 }
 0xc7d   :  { %v916_v8 = vadd.f32 %v8170_v2, %v915_v6  ;;  %v7809_v21 = vmul.f32 -1.442695, %v952_v20 }
 0xc7f   :  { %v920_v12 = vsel %vm919_vm15, %v8170_v2, %v916_v8  ;;  %8171 = vpow2.f32 %v7809_v21 }
 0xc80   :  { %v925_v16 = vsel %vm922_vm0, %v924_v13, %v920_v12 }
 0xc85   :  { %v8172_v22 = vpop.eup %8171 }
 0xc86   :  { %v956_v23 = vadd.f32 1.0, %v8172_v22 }
 0xc88   :  { %8173 = vrcp.f32 %v956_v23  ;;  %v968_v32 = vand.u32 2147483648, %v956_v23  ;;  %vm962_vm3 = vweird.f32 %v956_v23  ;;  %v966_v33 = vand.u32 2147483647, %v956_v23 }
 0xc8a   :  { %v969_v14 = vor.u32 1.1754944e-38, %v968_v32  ;;  %vm967_vm5 = vcmp.eq.f32.partialorder %v966_v33, 8.507059e+37 }
 0xc8e   :  { %v8174_v24 = vpop.eup %8173 }
 0xc8f   :  { %v958_v26 = vmul.f32 %v8174_v24, %v956_v23  ;;  %vm963_vm2 = vweird.f32 %v8174_v24 }
 0xc90   :  { %vm964_vm4 = vmor %vm962_vm3, %vm963_vm2 }
 0xc91   :  { %v959_v28 = vsub.f32 1.0, %v958_v26 }
 0xc93   :  { %v960_v30 = vmul.f32 %v8174_v24, %v959_v28 }
 0xc95   :  { %v961_v31 = vadd.f32 %v8174_v24, %v960_v30 }
 0xc97   :  { %v965_v34 = vsel %vm964_vm4, %v8174_v24, %v961_v31 }
 0xc98   :  { %v970_v37 = vsel %vm967_vm5, %v969_v14, %v965_v34 }
 0xc99   :  { %v1047_v39 = vmul.f32 %v1045_v38, %v970_v37 }
 0xcdf   :  { %v1050_v15 = vpop.permute.xlu0 %1049 }
 0xce0   :  { %v1052_v17 = vmul.f32 %v1050_v15, %v925_v16 }
 0xce2   :  { %1054 = vrot.lane.b32.xlu2 %v1052_v17, %s8815_s10 }
 0xce7   :  { %v1022_v43 = vpop.permute.xlu0 %1021 }
 0xce8   :  { %v1024_v44 = vadd.f32 %v1022_v43, %v8937_v29 }
 0xcea   :  { %v7812_v5 = vmul.f32 -1.442695, %v1024_v44 }
 0xd3c   :  { %v1055_v40 = vpop.permute.xlu2 %1054 }
 0xd3d   :  { %v9058_v41 = vadd.f32 %v1055_v40, %v1047_v39 }
 0xd3f   :  { %8175 = vtanh.f32 %v9058_v41 }
 0xd40   :  { %8177 = vpow2.f32 %v7812_v5 }
 0xd45   :  { %v8176_v42 = vpop.eup %8175 }
 0xd46   :  { %1060 = vrot.lane.b32.xlu1 %v8176_v42, %s8814_s27  ;;  %v8178_v45 = vpop.eup %8177 }
 0xd47   :  { %v1028_v46 = vadd.f32 1.0, %v8178_v45 }
 0xd49   :  { %8179 = vrcp.f32 %v1028_v46  ;;  %v1040_v50 = vand.u32 2147483648, %v1028_v46  ;;  %vm1034_vm7 = vweird.f32 %v1028_v46  ;;  %v1038_v51 = vand.u32 2147483647, %v1028_v46 }
 0xd4b   :  { %v1041_v53 = vor.u32 1.1754944e-38, %v1040_v50  ;;  %vm1039_vm9 = vcmp.eq.f32.partialorder %v1038_v51, 8.507059e+37 }
 0xd4f   :  { %v8180_v48 = vpop.eup %8179 }
 0xd50   :  { %v1030_v27 = vmul.f32 %v8180_v48, %v1028_v46  ;;  %vm1035_vm6 = vweird.f32 %v8180_v48  ;;  %v1231_v46 = vrot.slane %v9058_v41, 7 }
 0xd51   :  { %vm1036_vm8 = vmor %vm1034_vm7, %vm1035_vm6 }
 0xd52   :  { %v1031_v36 = vsub.f32 1.0, %v1030_v27 }
 0xd54   :  { %v1032_v35 = vmul.f32 %v8180_v48, %v1031_v36 }
 0xd56   :  { %v1033_v49 = vadd.f32 %v8180_v48, %v1032_v35 }
 0xd58   :  { %v1037_v52 = vsel %vm1036_vm8, %v8180_v48, %v1033_v49 }
 0xd59   :  { %v1042_v55 = vsel %vm1039_vm9, %v1041_v53, %v1037_v52 }
 0xdb8   :  { %v1061_v47 = vpop.permute.xlu1 %1060 }
 0xdb9   :  { %v1063_v56 = vmul.f32 %v1061_v47, %v1042_v55 }
 0xdbb   :  { %v1065_v57 = vrot.slane %v1063_v56, 4  ;;  %v9065_v58 = vsel %vm1628_vm13, %v9038_v54, %v1063_v56  ;;  %v8742_v54 = vld [vmem:[%s10167_s6] sm:$0xff] }
 0xdbd   :  { %1066 = vrot.lane.b32.xlu2 %v1065_v57, %s8818_s13 }
 0xe17   :  { %v1067_v59 = vpop.permute.xlu2 %1066 }
 0xe18   :  { %7813 = vmatmul.msk.f32.vlgmr.msrb.gmra.mxu1 %vm112_vm1, %v1067_v59  ;;  %7815 = vmatmul.msk.f32.vlgmr.msra.gmra.mxu2 %vm112_vm1, %v1067_v59 }
 0xe19   :  { %7817 = vmatmul.msk.f32.vlgmr.msra.gmra.mxu3 %vm112_vm1, %v1067_v59  ;;  %7818 = vmatmul.msk.f32.vlgmr.msra.gmra.mxu0 %vm112_vm1, %v1067_v59 }
 0xe1a   :  { %1545 = vmatpush.msra.mxu3 %v8741_v60  ;;  %1457 = vmatpush.msrb.mxu1 %v8742_v54 }
 0xe1b   :  { %1500 = vmatpush.msra.mxu2 %v8743_v61  ;;  %1572 = vmatpush.msra.mxu0 %v8744_v7 }
 0xe95   :  { %v1087_v4 = vpop.f32.mrf.mxu1 }
 0xe96   :  { %v1202_v2 = vpop.f32.mrf.mxu0  ;;  %v1091_v6 = vrot.slane %v1087_v4, 3 }
 0xe97   :  { %v1206_v3 = vrot.slane %v1202_v2, 3 }
 0xe98   :  { %v1093_v8 = vadd.f32 %v1091_v6, %v8937_v29 }
 0xe9a   :  { %v7814_v10 = vmul.f32 -1.442695, %v1093_v8 }
 0xe9b   :  { %v1130_v9 = vpop.f32.mrf.mxu2 }
 0xe9c   :  { %v1134_v18 = vrot.slane %v1130_v9, 3  ;;  %v1175_v25 = vpop.f32.mrf.mxu3 }
 0xe9d   :  { %v1179_v62 = vrot.slane %v1175_v25, 3 }
 0xe9e   :  { %1135 = vrot.lane.b32.xlu2 %v1134_v18, %s8815_s10 }
 0xe9f   :  { %1180 = vrot.lane.b32.xlu0 %v1179_v62, %s8814_s27 }
 0xef8   :  { %v1136_v30 = vpop.permute.xlu2 %1135 }
 0xef9   :  { %v1138_v31 = vadd.f32 %v1136_v30, %v8937_v29 }
 0xefb   :  { %v7816_v32 = vmul.f32 -1.442695, %v1138_v31 }
 0xf11   :  { %v1181_v63 = vpop.permute.xlu0 %1180 }
 0xf12   :  { %v1183_v0 = vadd.f32 %v1181_v63, %v8937_v29 }
 0xf14   :  { %8181 = vtanh.f32 %v1183_v0 }
 0xf15   :  { %8183 = vpow2.f32 %v7814_v10 }
 0xf1a   :  { %v8182_v1 = vpop.eup %8181 }
 0xf1b   :  { %1235 = vrot.lane.b32.xlu1 %v8182_v1, %s8816_s11  ;;  %v8184_v11 = vpop.eup %8183 }
 0xf1c   :  { %v1097_v12 = vadd.f32 1.0, %v8184_v11 }
 0xf1e   :  { %8185 = vrcp.f32 %v1097_v12  ;;  %v1109_v20 = vand.u32 2147483648, %v1097_v12  ;;  %vm1103_vm15 = vweird.f32 %v1097_v12  ;;  %v1107_v21 = vand.u32 2147483647, %v1097_v12 }
 0xf1f   :  { %8187 = vpow2.f32 %v7816_v32 }
 0xf20   :  { %v1110_v23 = vor.u32 1.1754944e-38, %v1109_v20  ;;  %vm1108_vm2 = vcmp.eq.f32.partialorder %v1107_v21, 8.507059e+37 }
 0xf23   :  { %1207 = vrot.lane.b32.xlu1 %v1206_v3, %s8817_s4 }
 0xf24   :  { %v8186_v13 = vpop.eup %8185 }
 0xf25   :  { %v1099_v15 = vmul.f32 %v8186_v13, %v1097_v12  ;;  %vm1104_vm14 = vweird.f32 %v8186_v13  ;;  %v8188_v33 = vpop.eup %8187 }
 0xf26   :  { %vm1105_vm0 = vmor %vm1103_vm15, %vm1104_vm14  ;;  %v1142_v34 = vadd.f32 1.0, %v8188_v33  ;;  %vm1630_vm15 = vcmask 1044480  }
 0xf27   :  { %v1100_v16 = vsub.f32 1.0, %v1099_v15 }
 0xf28   :  { %8189 = vrcp.f32 %v1142_v34  ;;  %v1154_v42 = vand.u32 2147483648, %v1142_v34  ;;  %vm1148_vm4 = vweird.f32 %v1142_v34  ;;  %v1152_v43 = vand.u32 2147483647, %v1142_v34 }
 0xf29   :  { %v1101_v17 = vmul.f32 %v8186_v13, %v1100_v16 }
 0xf2a   :  { %v1155_v5 = vor.u32 1.1754944e-38, %v1154_v42  ;;  %vm1153_vm6 = vcmp.eq.f32.partialorder %v1152_v43, 8.507059e+37 }
 0xf2b   :  { %v1102_v19 = vadd.f32 %v8186_v13, %v1101_v17 }
 0xf2d   :  { %v1106_v22 = vsel %vm1105_vm0, %v8186_v13, %v1102_v19 }
 0xf2e   :  { %v1111_v26 = vsel %vm1108_vm2, %v1110_v23, %v1106_v22  ;;  %v8190_v14 = vpop.eup %8189 }
 0xf2f   :  { %v1144_v37 = vmul.f32 %v8190_v14, %v1142_v34  ;;  %vm1149_vm3 = vweird.f32 %v8190_v14 }
 0xf30   :  { %vm1150_vm5 = vmor %vm1148_vm4, %vm1149_vm3 }
 0xf31   :  { %v1145_v38 = vsub.f32 1.0, %v1144_v37 }
 0xf33   :  { %v1146_v39 = vmul.f32 %v8190_v14, %v1145_v38 }
 0xf35   :  { %v1147_v40 = vadd.f32 %v8190_v14, %v1146_v39 }
 0xf37   :  { %v1151_v44 = vsel %vm1150_vm5, %v8190_v14, %v1147_v40 }
 0xf38   :  { %v1156_v45 = vsel %vm1153_vm6, %v1155_v5, %v1151_v44 }
 0xf39   :  { %v1233_v48 = vmul.f32 %v1231_v46, %v1156_v45 }
 0xf8d   :  { %v1236_v24 = vpop.permute.xlu1 %1235 }
 0xf8e   :  { %v1238_v28 = vmul.f32 %v1236_v24, %v1111_v26 }
 0xf90   :  { %1240 = vrot.lane.b32.xlu0 %v1238_v28, %s8815_s10 }
 0xf95   :  { %v1208_v49 = vpop.permute.xlu1 %1207 }
 0xf96   :  { %v1210_v50 = vadd.f32 %v1208_v49, %v8937_v29 }
 0xf98   :  { %v7819_v51 = vmul.f32 -1.442695, %v1210_v50 }
0x1002   :  { %v1241_v27 = vpop.permute.xlu0 %1240 }
0x1003   :  { %v9093_v36 = vadd.f32 %v1241_v27, %v1233_v48 }
0x1005   :  { %8191 = vtanh.f32 %v9093_v36  ;;  %v1417_v49 = vrot.slane %v9093_v36, 7 }
0x1006   :  { %8193 = vpow2.f32 %v7819_v51 }
0x100b   :  { %v8192_v35 = vpop.eup %8191 }
0x100c   :  { %1246 = vrot.lane.b32.xlu2 %v8192_v35, %s8814_s27  ;;  %v8194_v52 = vpop.eup %8193 }
0x100d   :  { %v1214_v53 = vadd.f32 1.0, %v8194_v52 }
0x100f   :  { %8195 = vrcp.f32 %v1214_v53  ;;  %v1226_v59 = vand.u32 2147483648, %v1214_v53  ;;  %vm1220_vm8 = vweird.f32 %v1214_v53  ;;  %v1224_v60 = vand.u32 2147483647, %v1214_v53 }
0x1011   :  { %v1227_v61 = vor.u32 1.1754944e-38, %v1226_v59  ;;  %vm1225_vm14 = vcmp.eq.f32.partialorder %v1224_v60, 8.507059e+37 }
0x1015   :  { %v8196_v55 = vpop.eup %8195 }
0x1016   :  { %v1216_v47 = vmul.f32 %v8196_v55, %v1214_v53  ;;  %vm1221_vm7 = vweird.f32 %v8196_v55 }
0x1017   :  { %vm1222_vm9 = vmor %vm1220_vm8, %vm1221_vm7 }
0x1018   :  { %v1217_v41 = vsub.f32 1.0, %v1216_v47 }
0x101a   :  { %v1218_v56 = vmul.f32 %v8196_v55, %v1217_v41 }
0x101c   :  { %v1219_v57 = vadd.f32 %v8196_v55, %v1218_v56 }
0x101e   :  { %v1223_v54 = vsel %vm1222_vm9, %v8196_v55, %v1219_v57 }
0x101f   :  { %v1228_v7 = vsel %vm1225_vm14, %v1227_v61, %v1223_v54 }
0x1066   :  { %v1247_v9 = vpop.permute.xlu2 %1246 }
0x1067   :  { %v1249_v18 = vmul.f32 %v1247_v9, %v1228_v7 }
0x1069   :  { %v1251_v25 = vrot.slane %v1249_v18, 5  ;;  %v9100_v62 = vsel %vm1630_vm15, %v9065_v58, %v1249_v18 }
0x106b   :  { %1252 = vrot.lane.b32.xlu0 %v1251_v25, %s8818_s13 }
0x10dd   :  { %v1253_v63 = vpop.permute.xlu0 %1252 }
0x10de   :  { %7820 = vmatmul.msk.f32.vlgmr.msra.gmra.mxu1 %vm112_vm1, %v1253_v63  ;;  %7822 = vmatmul.msk.f32.vlgmr.msrb.gmra.mxu2 %vm112_vm1, %v1253_v63 }
0x10df   :  { %7824 = vmatmul.msk.f32.vlgmr.msrb.gmra.mxu3 %vm112_vm1, %v1253_v63  ;;  %7825 = vmatmul.msk.f32.vlgmr.msrb.gmra.mxu0 %vm112_vm1, %v1253_v63 }
0x115b   :  { %v1273_v11 = vpop.f32.mrf.mxu1 }
0x115c   :  { %v1388_v8 = vpop.f32.mrf.mxu0  ;;  %v1277_v12 = vrot.slane %v1273_v11, 2 }
0x115d   :  { %v1392_v10 = vrot.slane %v1388_v8, 2 }
0x115e   :  { %v1279_v13 = vadd.f32 %v1277_v12, %v8937_v29 }
0x1160   :  { %v7821_v15 = vmul.f32 -1.442695, %v1279_v13 }
0x1161   :  { %v1316_v0 = vpop.f32.mrf.mxu2 }
0x1162   :  { %v1320_v1 = vrot.slane %v1316_v0, 2  ;;  %v1361_v2 = vpop.f32.mrf.mxu3 }
0x1163   :  { %v1365_v3 = vrot.slane %v1361_v2, 2 }
0x1164   :  { %1321 = vrot.lane.b32.xlu0 %v1320_v1, %s8815_s10 }
0x1165   :  { %1366 = vrot.lane.b32.xlu1 %v1365_v3, %s8814_s27 }
0x11d6   :  { %v1322_v34 = vpop.permute.xlu0 %1321 }
0x11d7   :  { %v1367_v58 = vpop.permute.xlu1 %1366  ;;  %v1324_v14 = vadd.f32 %v1322_v34, %v8937_v29 }
0x11d8   :  { %v1369_v4 = vadd.f32 %v1367_v58, %v8937_v29 }
0x11d9   :  { %v7823_v37 = vmul.f32 -1.442695, %v1324_v14 }
0x11da   :  { %8197 = vtanh.f32 %v1369_v4 }
0x11db   :  { %8199 = vpow2.f32 %v7821_v15 }
0x11e0   :  { %v8198_v6 = vpop.eup %8197 }
0x11e1   :  { %1421 = vrot.lane.b32.xlu2 %v8198_v6, %s8816_s11  ;;  %v8200_v16 = vpop.eup %8199 }
0x11e2   :  { %v1283_v17 = vadd.f32 1.0, %v8200_v16 }
0x11e4   :  { %8201 = vrcp.f32 %v1283_v17  ;;  %v1295_v24 = vand.u32 2147483648, %v1283_v17  ;;  %vm1289_vm2 = vweird.f32 %v1283_v17  ;;  %v1293_v26 = vand.u32 2147483647, %v1283_v17 }
0x11e5   :  { %8203 = vpow2.f32 %v7823_v37 }
0x11e6   :  { %v1296_v30 = vor.u32 1.1754944e-38, %v1295_v24  ;;  %vm1294_vm4 = vcmp.eq.f32.partialorder %v1293_v26, 8.507059e+37 }
0x11e9   :  { %1393 = vrot.lane.b32.xlu2 %v1392_v10, %s8817_s4 }
0x11ea   :  { %v8202_v19 = vpop.eup %8201 }
0x11eb   :  { %v1285_v20 = vmul.f32 %v8202_v19, %v1283_v17  ;;  %vm1290_vm0 = vweird.f32 %v8202_v19  ;;  %v8204_v38 = vpop.eup %8203 }
0x11ec   :  { %vm1291_vm3 = vmor %vm1289_vm2, %vm1290_vm0  ;;  %v1328_v39 = vadd.f32 1.0, %v8204_v38 }
0x11ed   :  { %v1286_v21 = vsub.f32 1.0, %v1285_v20 }
0x11ee   :  { %8205 = vrcp.f32 %v1328_v39  ;;  %v1340_v45 = vand.u32 2147483648, %v1328_v39  ;;  %vm1334_vm6 = vweird.f32 %v1328_v39  ;;  %v1338_v46 = vand.u32 2147483647, %v1328_v39 }
0x11ef   :  { %v1287_v22 = vmul.f32 %v8202_v19, %v1286_v21 }
0x11f0   :  { %v1341_v27 = vor.u32 1.1754944e-38, %v1340_v45  ;;  %vm1339_vm8 = vcmp.eq.f32.partialorder %v1338_v46, 8.507059e+37 }
0x11f1   :  { %v1288_v23 = vadd.f32 %v8202_v19, %v1287_v22 }
0x11f3   :  { %v1292_v28 = vsel %vm1291_vm3, %v8202_v19, %v1288_v23  ;;  %vm1632_vm3 = vcmask 1045504  }
0x11f4   :  { %v1297_v32 = vsel %vm1294_vm4, %v1296_v30, %v1292_v28  ;;  %v8206_v40 = vpop.eup %8205 }
0x11f5   :  { %v1330_v42 = vmul.f32 %v8206_v40, %v1328_v39  ;;  %vm1335_vm5 = vweird.f32 %v8206_v40 }
0x11f6   :  { %vm1336_vm7 = vmor %vm1334_vm6, %vm1335_vm5 }
0x11f7   :  { %v1331_v43 = vsub.f32 1.0, %v1330_v42 }
0x11f9   :  { %v1332_v44 = vmul.f32 %v8206_v40, %v1331_v43 }
0x11fb   :  { %v1333_v5 = vadd.f32 %v8206_v40, %v1332_v44 }
0x11fd   :  { %v1337_v48 = vsel %vm1336_vm7, %v8206_v40, %v1333_v5 }
0x11fe   :  { %v1342_v35 = vsel %vm1339_vm8, %v1341_v27, %v1337_v48 }
0x11ff   :  { %v1419_v50 = vmul.f32 %v1417_v49, %v1342_v35 }
0x123b   :  { %v1422_v31 = vpop.permute.xlu2 %1421 }
0x123c   :  { %v1424_v33 = vmul.f32 %v1422_v31, %v1297_v32 }
0x123e   :  { %1426 = vrot.lane.b32.xlu1 %v1424_v33, %s8815_s10 }
0x1243   :  { %v1394_v55 = vpop.permute.xlu2 %1393 }
0x1244   :  { %v1396_v47 = vadd.f32 %v1394_v55, %v8937_v29 }
0x1246   :  { %v7826_v41 = vmul.f32 -1.442695, %v1396_v47 }
0x12b0   :  { %v1427_v51 = vpop.permute.xlu1 %1426 }
0x12b1   :  { %v9116_v52 = vadd.f32 %v1427_v51, %v1419_v50 }
0x12b3   :  { %8207 = vtanh.f32 %v9116_v52  ;;  %v1603_v55 = vrot.slane %v9116_v52, 7  ;;  %v9147_v52 = vld [vmem:[%s10167_s6 + $0x30] sm:$0xff] }
0x12b4   :  { %8209 = vpow2.f32 %v7826_v41  ;;  %1780 = vmatpush.msrb.mxu0 %v9147_v52 }
0x12b9   :  { %v8208_v53 = vpop.eup %8207 }
0x12ba   :  { %1432 = vrot.lane.b32.xlu0 %v8208_v53, %s8814_s27  ;;  %v8210_v56 = vpop.eup %8209 }
0x12bb   :  { %v1400_v57 = vadd.f32 1.0, %v8210_v56 }
0x12bd   :  { %8211 = vrcp.f32 %v1400_v57  ;;  %v1412_v7 = vand.u32 2147483648, %v1400_v57  ;;  %vm1406_vm14 = vweird.f32 %v1400_v57  ;;  %v1410_v9 = vand.u32 2147483647, %v1400_v57 }
0x12bf   :  { %v1413_v25 = vor.u32 1.1754944e-38, %v1412_v7  ;;  %vm1411_vm2 = vcmp.eq.f32.partialorder %v1410_v9, 8.507059e+37  ;;  %v9152_v7 = vld [vmem:[%s10167_s6 + $0x20] sm:$0xff]  ;;  %v9157_v9 = vld [vmem:[%s10167_s6 + $0x28] sm:$0xff] }
0x12c0   :  { %1696 = vmatpush.msrb.mxu2 %v9152_v7  ;;  %1736 = vmatpush.msrb.mxu3 %v9157_v9 }
0x12c3   :  { %v8212_v59 = vpop.eup %8211 }
0x12c4   :  { %v1402_v60 = vmul.f32 %v8212_v59, %v1400_v57  ;;  %vm1407_vm9 = vweird.f32 %v8212_v59 }
0x12c5   :  { %vm1408_vm0 = vmor %vm1406_vm14, %vm1407_vm9 }
0x12c6   :  { %v1403_v36 = vsub.f32 1.0, %v1402_v60 }
0x12c8   :  { %v1404_v54 = vmul.f32 %v8212_v59, %v1403_v36 }
0x12ca   :  { %v1405_v61 = vadd.f32 %v8212_v59, %v1404_v54 }
0x12cc   :  { %v1409_v18 = vsel %vm1408_vm0, %v8212_v59, %v1405_v61 }
0x12cd   :  { %v1414_v63 = vsel %vm1411_vm2, %v1413_v25, %v1409_v18 }
0x132c   :  { %v1433_v0 = vpop.permute.xlu0 %1432 }
0x132d   :  { %v1435_v1 = vmul.f32 %v1433_v0, %v1414_v63 }
0x132f   :  { %v1437_v2 = vrot.slane %v1435_v1, 6  ;;  %v9123_v3 = vsel %vm1632_vm3, %v9100_v62, %v1435_v1 }
0x1331   :  { %1438 = vrot.lane.b32.xlu1 %v1437_v2, %s8818_s13 }
0x13a3   :  { %v1439_v58 = vpop.permute.xlu1 %1438 }
0x13a4   :  { %7827 = vmatmul.msk.f32.vlgmr.msrb.gmra.mxu1 %vm112_vm1, %v1439_v58  ;;  %7829 = vmatmul.msk.f32.vlgmr.msra.gmra.mxu2 %vm112_vm1, %v1439_v58 }
0x13a5   :  { %7831 = vmatmul.msk.f32.vlgmr.msra.gmra.mxu3 %vm112_vm1, %v1439_v58  ;;  %7832 = vmatmul.msk.f32.vlgmr.msra.gmra.mxu0 %vm112_vm1, %v1439_v58 }
0x13a6   :  { %1963 = vmatpush.msra.mxu0 %v9147_v52  ;;  %1875 = vmatpush.msra.mxu2 %v9152_v7 }
0x13a7   :  { %1918 = vmatpush.msra.mxu3 %v9157_v9 }
0x1421   :  { %v1459_v16 = vpop.f32.mrf.mxu1 }
0x1422   :  { %v1574_v13 = vpop.f32.mrf.mxu0  ;;  %v1463_v17 = vrot.slane %v1459_v16, 1 }
0x1423   :  { %v1578_v15 = vrot.slane %v1574_v13, 1  ;;  %v9175_v13 = vld [vmem:[%s10167_s6 + $0x38] sm:$0xff] }
0x1424   :  { %v1465_v19 = vadd.f32 %v1463_v17, %v8937_v29 }
0x1426   :  { %v7828_v20 = vmul.f32 -1.442695, %v1465_v19  ;;  %v8097_v19 = vld [vmem:[%s10166_s5 + $0x18] ss:$0 sm:$0xff] }
0x1427   :  { %v1502_v4 = vpop.f32.mrf.mxu2 }
0x1428   :  { %v1506_v6 = vrot.slane %v1502_v4, 1  ;;  %v1547_v8 = vpop.f32.mrf.mxu3 }
0x1429   :  { %v1551_v10 = vrot.slane %v1547_v8, 1 }
0x142a   :  { %1507 = vrot.lane.b32.xlu1 %v1506_v6, %s8815_s10 }
0x142b   :  { %1552 = vrot.lane.b32.xlu2 %v1551_v10, %s8814_s27 }
0x1485   :  { %v1553_v62 = vpop.permute.xlu2 %1552 }
0x1486   :  { %v1555_v11 = vadd.f32 %v1553_v62, %v8937_v29 }
0x1488   :  { %8213 = vtanh.f32 %v1555_v11 }
0x1489   :  { %8215 = vpow2.f32 %v7828_v20 }
0x148e   :  { %v8214_v12 = vpop.eup %8213 }
0x148f   :  { %1607 = vrot.lane.b32.xlu0 %v8214_v12, %s8816_s11  ;;  %v8216_v21 = vpop.eup %8215  ;;  %v7834_v12 = vld [vmem:[%s10166_s5 + $0x10] sm:$0xff] }
0x1490   :  { %v1469_v22 = vadd.f32 1.0, %v8216_v21  ;;  %1662 = vmatpush.msra.mxu1 %v7834_v12 }
0x1492   :  { %8217 = vrcp.f32 %v1469_v22  ;;  %v1481_v31 = vand.u32 2147483648, %v1469_v22  ;;  %vm1475_vm5 = vweird.f32 %v1469_v22  ;;  %v1479_v32 = vand.u32 2147483647, %v1469_v22  ;;  %1806 = vmatpush.msrb.mxu1 %v9175_v13 }
0x1494   :  { %v1482_v34 = vor.u32 1.1754944e-38, %v1481_v31  ;;  %vm1480_vm7 = vcmp.eq.f32.partialorder %v1479_v32, 8.507059e+37 }
0x1497   :  { %1579 = vrot.lane.b32.xlu0 %v1578_v15, %s8817_s4 }
0x1498   :  { %v8218_v23 = vpop.eup %8217 }
0x1499   :  { %v1471_v24 = vmul.f32 %v8218_v23, %v1469_v22  ;;  %vm1476_vm4 = vweird.f32 %v8218_v23 }
0x149a   :  { %vm1477_vm6 = vmor %vm1475_vm5, %vm1476_vm4 }
0x149b   :  { %v1472_v26 = vsub.f32 1.0, %v1471_v24 }
0x149c   :  { %v1508_v39 = vpop.permute.xlu1 %1507 }
0x149d   :  { %v1473_v28 = vmul.f32 %v8218_v23, %v1472_v26  ;;  %v1510_v40 = vadd.f32 %v1508_v39, %v8937_v29 }
0x149f   :  { %v1474_v30 = vadd.f32 %v8218_v23, %v1473_v28  ;;  %v7830_v42 = vmul.f32 -1.442695, %v1510_v40 }
0x14a1   :  { %v1478_v33 = vsel %vm1477_vm6, %v8218_v23, %v1474_v30  ;;  %8219 = vpow2.f32 %v7830_v42 }
0x14a2   :  { %v1483_v37 = vsel %vm1480_vm7, %v1482_v34, %v1478_v33  ;;  %vm1634_vm7 = vcmask 1046528  }
0x14a7   :  { %v8220_v43 = vpop.eup %8219 }
0x14a8   :  { %v1514_v44 = vadd.f32 1.0, %v8220_v43 }
0x14aa   :  { %8221 = vrcp.f32 %v1514_v44  ;;  %v1526_v35 = vand.u32 2147483648, %v1514_v44  ;;  %vm1520_vm9 = vweird.f32 %v1514_v44  ;;  %v1524_v49 = vand.u32 2147483647, %v1514_v44 }
0x14ac   :  { %v1527_v51 = vor.u32 1.1754944e-38, %v1526_v35  ;;  %vm1525_vm0 = vcmp.eq.f32.partialorder %v1524_v49, 8.507059e+37 }
0x14b0   :  { %v8222_v5 = vpop.eup %8221 }
0x14b1   :  { %v1516_v45 = vmul.f32 %v8222_v5, %v1514_v44  ;;  %vm1521_vm8 = vweird.f32 %v8222_v5 }
0x14b2   :  { %vm1522_vm14 = vmor %vm1520_vm9, %vm1521_vm8 }
0x14b3   :  { %v1517_v46 = vsub.f32 1.0, %v1516_v45 }
0x14b5   :  { %v1518_v48 = vmul.f32 %v8222_v5, %v1517_v46 }
0x14b7   :  { %v1519_v27 = vadd.f32 %v8222_v5, %v1518_v48 }
0x14b9   :  { %v1523_v50 = vsel %vm1522_vm14, %v8222_v5, %v1519_v27 }
0x14ba   :  { %v1528_v53 = vsel %vm1525_vm0, %v1527_v51, %v1523_v50 }
0x14bb   :  { %v1605_v47 = vmul.f32 %v1603_v55, %v1528_v53 }
0x1501   :  { %v1608_v14 = vpop.permute.xlu0 %1607 }
0x1502   :  { %v1610_v38 = vmul.f32 %v1608_v14, %v1483_v37 }
0x1504   :  { %1612 = vrot.lane.b32.xlu2 %v1610_v38, %s8815_s10 }
0x1509   :  { %v1580_v59 = vpop.permute.xlu0 %1579 }
0x150a   :  { %v1582_v60 = vadd.f32 %v1580_v59, %v8937_v29 }
0x150c   :  { %v7833_v36 = vmul.f32 -1.442695, %v1582_v60 }
0x155e   :  { %v1613_v41 = vpop.permute.xlu2 %1612 }
0x155f   :  { %v9139_v56 = vadd.f32 %v1613_v41, %v1605_v47 }
0x1561   :  { %8223 = vtanh.f32 %v9139_v56 }
0x1562   :  { %8225 = vpow2.f32 %v7833_v36 }
0x1567   :  { %v8224_v57 = vpop.eup %8223 }
0x1568   :  { %1618 = vrot.lane.b32.xlu1 %v8224_v57, %s8814_s27  ;;  %v8226_v54 = vpop.eup %8225 }
0x1569   :  { %v1586_v61 = vadd.f32 1.0, %v8226_v54 }
0x156b   :  { %8227 = vrcp.f32 %v1586_v61  ;;  %v1598_v1 = vand.u32 2147483648, %v1586_v61  ;;  %vm1592_vm4 = vweird.f32 %v1586_v61  ;;  %v1596_v2 = vand.u32 2147483647, %v1586_v61 }
0x156d   :  { %v1599_v4 = vor.u32 1.1754944e-38, %v1598_v1  ;;  %vm1597_vm6 = vcmp.eq.f32.partialorder %v1596_v2, 8.507059e+37 }
0x1571   :  { %v8228_v29 = vpop.eup %8227 }
0x1572   :  { %v1588_v18 = vmul.f32 %v8228_v29, %v1586_v61  ;;  %vm1593_vm2 = vweird.f32 %v8228_v29  ;;  %v1836_v61 = vrot.slane %v9139_v56, 7 }
0x1573   :  { %vm1594_vm5 = vmor %vm1592_vm4, %vm1593_vm2 }
0x1574   :  { %v1589_v25 = vsub.f32 1.0, %v1588_v18 }
0x1576   :  { %v1590_v63 = vmul.f32 %v8228_v29, %v1589_v25 }
0x1578   :  { %v1591_v0 = vadd.f32 %v8228_v29, %v1590_v63 }
0x157a   :  { %v1595_v58 = vsel %vm1594_vm5, %v8228_v29, %v1591_v0 }
0x157b   :  { %v1600_v6 = vsel %vm1597_vm6, %v1599_v4, %v1595_v58 }
0x15da   :  { %v1619_v8 = vpop.permute.xlu1 %1618 }
0x15db   :  { %v1621_v10 = vmul.f32 %v1619_v8, %v1600_v6 }
0x15dd   :  { %v1676_v62 = vrot.slane %v1621_v10, 7  ;;  %v1635_v11 = vsel %vm1634_vm7, %v9123_v3, %v1621_v10 }
0x15de   :  { %1637 = vrot.lane.b32.xlu0 %v1635_v11, %s8818_s13 }
0x15df   :  { %1677 = vrot.lane.b32.xlu2 %v1676_v62, %s8818_s13 }
0x1639   :  { %v1678_v15 = vpop.permute.xlu2 %1677 }
0x163a   :  { %7841 = vmatmul.msk.f32.vlgmr.msrb.gmra.mxu2 %vm112_vm1, %v1678_v15  ;;  %7843 = vmatmul.msk.f32.vlgmr.msrb.gmra.mxu3 %vm112_vm1, %v1678_v15 }
0x163b   :  { %7845 = vmatmul.msk.f32.vlgmr.msrb.gmra.mxu0 %vm112_vm1, %v1678_v15  ;;  %2061 = vmatpush.msrb.mxu2 %v9152_v7 }
0x163c   :  { %2149 = vmatpush.msrb.mxu0 %v9147_v52  ;;  %2104 = vmatpush.msrb.mxu3 %v9157_v9 }
0x1650   :  { %v1638_v3 = vpop.permute.xlu0 %1637 }
0x1651   :  { %1640 = vst.msk [vmem:[#allocation5] sm:$0xff] %vm112_vm1, %v1638_v3  ;;  %7836 = vmatmul.msk.f32.vlgmr.msra.gmra.mxu1 %vm112_vm1, %v1638_v3 }
0x1652   :  { %1990 = vmatpush.msra.mxu1 %v9175_v13 }
0x1659   :  { %7846 = vmatmul.msk.f32.vlgmr.msrb.gmra.mxu1 %vm112_vm1, %v1678_v15 }
0x165a   :  { %2176 = vmatpush.msrb.mxu1 %v9175_v13 }
0x16b8   :  { %v1782_v16 = vpop.f32.mrf.mxu0 }
0x16b9   :  { %1786 = vrot.lane.b32.xlu1 %v1782_v16, %s8814_s27 }
0x16bd   :  { %v1738_v17 = vpop.f32.mrf.mxu3  ;;  %v1698_v28 = vpop.f32.mrf.mxu2 }
0x16be   :  { %1742 = vrot.lane.b32.xlu0 %v1738_v17, %s8815_s10 }
0x16ce   :  { %v1664_v20 = vpop.f32.mrf.mxu1 }
0x16cf   :  { %v9194_v21 = vadd.f32 %v8097_v19, %v1664_v20 }
0x16d1   :  { %v1701_v30 = vadd.f32 %v1698_v28, %v9194_v21 }
0x16d3   :  { %v7842_v31 = vmul.f32 -1.442695, %v1701_v30 }
0x16d6   :  { %v1808_v26 = vpop.f32.mrf.mxu1 }
0x172b   :  { %v1787_v22 = vpop.permute.xlu1 %1786 }
0x172c   :  { %v1789_v23 = vadd.f32 %v1787_v22, %v9194_v21 }
0x172e   :  { %8229 = vtanh.f32 %v1789_v23 }
0x172f   :  { %8231 = vpow2.f32 %v7842_v31 }
0x1730   :  { %v1743_v48 = vpop.permute.xlu0 %1742 }
0x1731   :  { %v1745_v27 = vadd.f32 %v1743_v48, %v9194_v21 }
0x1733   :  { %v7844_v35 = vmul.f32 -1.442695, %v1745_v27 }
0x1734   :  { %v8230_v24 = vpop.eup %8229 }
0x1735   :  { %1840 = vrot.lane.b32.xlu2 %v8230_v24, %s8816_s11  ;;  %v8232_v32 = vpop.eup %8231 }
0x1736   :  { %v1705_v33 = vadd.f32 1.0, %v8232_v32 }
0x1738   :  { %8233 = vrcp.f32 %v1705_v33  ;;  %v1717_v40 = vand.u32 2147483648, %v1705_v33  ;;  %vm1711_vm9 = vweird.f32 %v1705_v33  ;;  %v1715_v42 = vand.u32 2147483647, %v1705_v33 }
0x1739   :  { %8235 = vpow2.f32 %v7844_v35 }
0x173a   :  { %v1718_v44 = vor.u32 1.1754944e-38, %v1717_v40  ;;  %vm1716_vm0 = vcmp.eq.f32.partialorder %v1715_v42, 8.507059e+37 }
0x173d   :  { %1812 = vrot.lane.b32.xlu2 %v1808_v26, %s8817_s4 }
0x173e   :  { %v8234_v34 = vpop.eup %8233 }
0x173f   :  { %v1707_v14 = vmul.f32 %v8234_v34, %v1705_v33  ;;  %vm1712_vm8 = vweird.f32 %v8234_v34  ;;  %v8236_v49 = vpop.eup %8235 }
0x1740   :  { %vm1713_vm14 = vmor %vm1711_vm9, %vm1712_vm8  ;;  %v1749_v50 = vadd.f32 1.0, %v8236_v49 }
0x1741   :  { %v1708_v37 = vsub.f32 1.0, %v1707_v14 }
0x1742   :  { %8237 = vrcp.f32 %v1749_v50  ;;  %v1761_v57 = vand.u32 2147483648, %v1749_v50  ;;  %vm1755_vm4 = vweird.f32 %v1749_v50  ;;  %v1759_v59 = vand.u32 2147483647, %v1749_v50 }
0x1743   :  { %v1709_v38 = vmul.f32 %v8234_v34, %v1708_v37 }
0x1744   :  { %v1762_v36 = vor.u32 1.1754944e-38, %v1761_v57  ;;  %vm1760_vm6 = vcmp.eq.f32.partialorder %v1759_v59, 8.507059e+37 }
0x1745   :  { %v1710_v39 = vadd.f32 %v8234_v34, %v1709_v38 }
0x1747   :  { %v1714_v43 = vsel %vm1713_vm14, %v8234_v34, %v1710_v39 }
0x1748   :  { %v1719_v45 = vsel %vm1716_vm0, %v1718_v44, %v1714_v43  ;;  %v8238_v51 = vpop.eup %8237 }
0x1749   :  { %v1751_v53 = vmul.f32 %v8238_v51, %v1749_v50  ;;  %vm1756_vm2 = vweird.f32 %v8238_v51 }
0x174a   :  { %vm1757_vm5 = vmor %vm1755_vm4, %vm1756_vm2 }
0x174b   :  { %v1752_v55 = vsub.f32 1.0, %v1751_v53 }
0x174d   :  { %v1753_v47 = vmul.f32 %v8238_v51, %v1752_v55 }
0x174f   :  { %v1754_v41 = vadd.f32 %v8238_v51, %v1753_v47 }
0x1751   :  { %v1758_v60 = vsel %vm1757_vm5, %v8238_v51, %v1754_v41 }
0x1752   :  { %v1763_v54 = vsel %vm1760_vm6, %v1762_v36, %v1758_v60 }
0x1753   :  { %v1838_v29 = vmul.f32 %v1836_v61, %v1763_v54 }
0x178f   :  { %v1841_v5 = vpop.permute.xlu2 %1840 }
0x1790   :  { %v1843_v46 = vmul.f32 %v1841_v5, %v1719_v45 }
0x1792   :  { %1845 = vrot.lane.b32.xlu1 %v1843_v46, %s8815_s10 }
0x1797   :  { %v1813_v0 = vpop.permute.xlu2 %1812 }
0x1798   :  { %v1815_v1 = vadd.f32 %v1813_v0, %v9194_v21 }
0x179a   :  { %v7847_v2 = vmul.f32 -1.442695, %v1815_v1 }
0x1804   :  { %v1846_v18 = vpop.permute.xlu1 %1845 }
0x1805   :  { %v9203_v25 = vadd.f32 %v1846_v18, %v1838_v29 }
0x1807   :  { %8239 = vtanh.f32 %v9203_v25 }
0x1808   :  { %8241 = vpow2.f32 %v7847_v2  ;;  %v2021_v2 = vrot.slane %v9203_v25, 7 }
0x180d   :  { %v8240_v63 = vpop.eup %8239 }
0x180e   :  { %1851 = vrot.lane.b32.xlu0 %v8240_v63, %s8814_s27  ;;  %v8242_v58 = vpop.eup %8241 }
0x180f   :  { %v1819_v4 = vadd.f32 1.0, %v8242_v58 }
0x1811   :  { %8243 = vrcp.f32 %v1819_v4  ;;  %v1831_v11 = vand.u32 2147483648, %v1819_v4  ;;  %vm1825_vm9 = vweird.f32 %v1819_v4  ;;  %v1829_v12 = vand.u32 2147483647, %v1819_v4 }
0x1813   :  { %v1832_v3 = vor.u32 1.1754944e-38, %v1831_v11  ;;  %vm1830_vm0 = vcmp.eq.f32.partialorder %v1829_v12, 8.507059e+37 }
0x1817   :  { %v8244_v6 = vpop.eup %8243 }
0x1818   :  { %v1821_v8 = vmul.f32 %v8244_v6, %v1819_v4  ;;  %vm1826_vm8 = vweird.f32 %v8244_v6 }
0x1819   :  { %vm1827_vm14 = vmor %vm1825_vm9, %vm1826_vm8 }
0x181a   :  { %v1822_v56 = vsub.f32 1.0, %v1821_v8 }
0x181c   :  { %v1823_v10 = vmul.f32 %v8244_v6, %v1822_v56 }
0x181e   :  { %v1824_v62 = vadd.f32 %v8244_v6, %v1823_v10 }
0x1820   :  { %v1828_v15 = vsel %vm1827_vm14, %v8244_v6, %v1824_v62 }
0x1821   :  { %v1833_v16 = vsel %vm1830_vm0, %v1832_v3, %v1828_v15 }
0x1880   :  { %v1852_v17 = vpop.permute.xlu0 %1851 }
0x1881   :  { %v9208_v19 = vmul.f32 %v1852_v17, %v1833_v16 }
0x1883   :  { %1856 = vrot.lane.b32.xlu1 %v9208_v19, %s8818_s13 }
0x18f5   :  { %v1857_v20 = vpop.permute.xlu1 %1856 }
0x18f6   :  { %7848 = vmatmul.msk.f32.vlgmr.msra.gmra.mxu2 %vm112_vm1, %v1857_v20  ;;  %7850 = vmatmul.msk.f32.vlgmr.msra.gmra.mxu3 %vm112_vm1, %v1857_v20 }
0x18f7   :  { %7852 = vmatmul.msk.f32.vlgmr.msra.gmra.mxu0 %vm112_vm1, %v1857_v20  ;;  %7853 = vmatmul.msk.f32.vlgmr.msra.gmra.mxu1 %vm112_vm1, %v1857_v20 }
0x18f8   :  { %2335 = vmatpush.msra.mxu0 %v9147_v52  ;;  %2247 = vmatpush.msra.mxu2 %v9152_v7 }
0x18f9   :  { %2290 = vmatpush.msra.mxu3 %v9157_v9  ;;  %2362 = vmatpush.msra.mxu1 %v9175_v13 }
0x1974   :  { %v1965_v22 = vpop.f32.mrf.mxu0  ;;  %v1992_v32 = vpop.f32.mrf.mxu1 }
0x1975   :  { %v1969_v23 = vrot.slane %v1965_v22, 7  ;;  %v1996_v33 = vrot.slane %v1992_v32, 7 }
0x1977   :  { %1970 = vrot.lane.b32.xlu2 %v1969_v23, %s8814_s27 }
0x1979   :  { %v1920_v24 = vpop.f32.mrf.mxu3  ;;  %v1877_v34 = vpop.f32.mrf.mxu2 }
0x197a   :  { %v1924_v26 = vrot.slane %v1920_v24, 7  ;;  %v1881_v14 = vrot.slane %v1877_v34, 7 }
0x197c   :  { %1925 = vrot.lane.b32.xlu1 %v1924_v26, %s8815_s10  ;;  %v1883_v37 = vadd.f32 %v1881_v14, %v9194_v21 }
0x197e   :  { %v7849_v38 = vmul.f32 -1.442695, %v1883_v37 }
0x19d1   :  { %v1971_v28 = vpop.permute.xlu2 %1970 }
0x19d2   :  { %v1973_v30 = vadd.f32 %v1971_v28, %v9194_v21 }
0x19d4   :  { %8245 = vtanh.f32 %v1973_v30 }
0x19d5   :  { %8247 = vpow2.f32 %v7849_v38 }
0x19da   :  { %v8246_v31 = vpop.eup %8245 }
0x19db   :  { %2025 = vrot.lane.b32.xlu0 %v8246_v31, %s8816_s11  ;;  %v8248_v39 = vpop.eup %8247 }
0x19dc   :  { %v1887_v40 = vadd.f32 1.0, %v8248_v39 }
0x19de   :  { %8249 = vrcp.f32 %v1887_v40  ;;  %v1899_v46 = vand.u32 2147483648, %v1887_v40  ;;  %vm1893_vm4 = vweird.f32 %v1887_v40  ;;  %v1897_v48 = vand.u32 2147483647, %v1887_v40 }
0x19e0   :  { %v1900_v35 = vor.u32 1.1754944e-38, %v1899_v46  ;;  %vm1898_vm6 = vcmp.eq.f32.partialorder %v1897_v48, 8.507059e+37 }
0x19e3   :  { %1997 = vrot.lane.b32.xlu0 %v1996_v33, %s8817_s4 }
0x19e4   :  { %v8250_v42 = vpop.eup %8249 }
0x19e5   :  { %v1889_v43 = vmul.f32 %v8250_v42, %v1887_v40  ;;  %vm1894_vm2 = vweird.f32 %v8250_v42 }
0x19e6   :  { %vm1895_vm5 = vmor %vm1893_vm4, %vm1894_vm2 }
0x19e7   :  { %v1890_v44 = vsub.f32 1.0, %v1889_v43 }
0x19e9   :  { %v1891_v5 = vmul.f32 %v8250_v42, %v1890_v44 }
0x19eb   :  { %v1892_v45 = vadd.f32 %v8250_v42, %v1891_v5 }
0x19ed   :  { %v1896_v27 = vsel %vm1895_vm5, %v8250_v42, %v1892_v45 }
0x19ee   :  { %v1901_v50 = vsel %vm1898_vm6, %v1900_v35, %v1896_v27  ;;  %v1926_v53 = vpop.permute.xlu1 %1925 }
0x19ef   :  { %v1928_v55 = vadd.f32 %v1926_v53, %v9194_v21 }
0x19f1   :  { %v7851_v47 = vmul.f32 -1.442695, %v1928_v55 }
0x19f3   :  { %8251 = vpow2.f32 %v7851_v47 }
0x19f9   :  { %v8252_v41 = vpop.eup %8251 }
0x19fa   :  { %v1932_v57 = vadd.f32 1.0, %v8252_v41 }
0x19fc   :  { %8253 = vrcp.f32 %v1932_v57  ;;  %v1944_v29 = vand.u32 2147483648, %v1932_v57  ;;  %vm1938_vm9 = vweird.f32 %v1932_v57  ;;  %v1942_v18 = vand.u32 2147483647, %v1932_v57 }
0x19fe   :  { %v1945_v0 = vor.u32 1.1754944e-38, %v1944_v29  ;;  %vm1943_vm0 = vcmp.eq.f32.partialorder %v1942_v18, 8.507059e+37 }
0x1a02   :  { %v8254_v59 = vpop.eup %8253 }
0x1a03   :  { %v1934_v60 = vmul.f32 %v8254_v59, %v1932_v57  ;;  %vm1939_vm8 = vweird.f32 %v8254_v59 }
0x1a04   :  { %vm1940_vm14 = vmor %vm1938_vm9, %vm1939_vm8 }
0x1a05   :  { %v1935_v36 = vsub.f32 1.0, %v1934_v60 }
0x1a07   :  { %v1936_v54 = vmul.f32 %v8254_v59, %v1935_v36 }
0x1a09   :  { %v1937_v61 = vadd.f32 %v8254_v59, %v1936_v54 }
0x1a0b   :  { %v1941_v63 = vsel %vm1940_vm14, %v8254_v59, %v1937_v61 }
0x1a0c   :  { %v1946_v1 = vsel %vm1943_vm0, %v1945_v0, %v1941_v63 }
0x1a0d   :  { %v2023_v58 = vmul.f32 %v2021_v2, %v1946_v1 }
0x1a4d   :  { %v2026_v49 = vpop.permute.xlu0 %2025 }
0x1a4e   :  { %v2028_v51 = vmul.f32 %v2026_v49, %v1901_v50 }
0x1a50   :  { %2030 = vrot.lane.b32.xlu2 %v2028_v51, %s8815_s10 }
0x1a55   :  { %v1998_v56 = vpop.permute.xlu0 %1997 }
0x1a56   :  { %v2000_v10 = vadd.f32 %v1998_v56, %v9194_v21 }
0x1a58   :  { %v7854_v62 = vmul.f32 -1.442695, %v2000_v10 }
0x1aaa   :  { %v2031_v4 = vpop.permute.xlu2 %2030 }
0x1aab   :  { %v9229_v6 = vadd.f32 %v2031_v4, %v2023_v58 }
0x1aad   :  { %8255 = vtanh.f32 %v9229_v6 }
0x1aae   :  { %8257 = vpow2.f32 %v7854_v62 }
0x1ab3   :  { %v8256_v8 = vpop.eup %8255 }
0x1ab4   :  { %2036 = vrot.lane.b32.xlu1 %v8256_v8, %s8814_s27  ;;  %v8258_v11 = vpop.eup %8257 }
0x1ab5   :  { %v2004_v12 = vadd.f32 1.0, %v8258_v11 }
0x1ab7   :  { %8259 = vrcp.f32 %v2004_v12  ;;  %v2016_v20 = vand.u32 2147483648, %v2004_v12  ;;  %vm2010_vm4 = vweird.f32 %v2004_v12  ;;  %v2014_v22 = vand.u32 2147483647, %v2004_v12 }
0x1ab9   :  { %v2017_v24 = vor.u32 1.1754944e-38, %v2016_v20  ;;  %vm2015_vm6 = vcmp.eq.f32.partialorder %v2014_v22, 8.507059e+37 }
0x1abd   :  { %v8260_v15 = vpop.eup %8259 }
0x1abe   :  { %v2006_v3 = vmul.f32 %v8260_v15, %v2004_v12  ;;  %vm2011_vm2 = vweird.f32 %v8260_v15  ;;  %v2207_v12 = vrot.slane %v9229_v6, 7 }
0x1abf   :  { %vm2012_vm5 = vmor %vm2010_vm4, %vm2011_vm2 }
0x1ac0   :  { %v2007_v25 = vsub.f32 1.0, %v2006_v3 }
0x1ac2   :  { %v2008_v16 = vmul.f32 %v8260_v15, %v2007_v25 }
0x1ac4   :  { %v2009_v17 = vadd.f32 %v8260_v15, %v2008_v16 }
0x1ac6   :  { %v2013_v23 = vsel %vm2012_vm5, %v8260_v15, %v2009_v17 }
0x1ac7   :  { %v2018_v26 = vsel %vm2015_vm6, %v2017_v24, %v2013_v23 }
0x1b26   :  { %v2037_v28 = vpop.permute.xlu1 %2036 }
0x1b27   :  { %v9234_v30 = vmul.f32 %v2037_v28, %v2018_v26 }
0x1b29   :  { %v2041_v31 = vrot.slane %v9234_v30, 1 }
0x1b2b   :  { %2042 = vrot.lane.b32.xlu2 %v2041_v31, %s8818_s13 }
0x1b85   :  { %v2043_v32 = vpop.permute.xlu2 %2042 }
0x1b86   :  { %7855 = vmatmul.msk.f32.vlgmr.msrb.gmra.mxu2 %vm112_vm1, %v2043_v32  ;;  %7857 = vmatmul.msk.f32.vlgmr.msrb.gmra.mxu3 %vm112_vm1, %v2043_v32 }
0x1b87   :  { %7859 = vmatmul.msk.f32.vlgmr.msrb.gmra.mxu0 %vm112_vm1, %v2043_v32  ;;  %7860 = vmatmul.msk.f32.vlgmr.msrb.gmra.mxu1 %vm112_vm1, %v2043_v32 }
0x1b88   :  { %2521 = vmatpush.msrb.mxu0 %v9147_v52  ;;  %2433 = vmatpush.msrb.mxu2 %v9152_v7 }
0x1b89   :  { %2476 = vmatpush.msrb.mxu3 %v9157_v9  ;;  %2548 = vmatpush.msrb.mxu1 %v9175_v13 }
0x1c04   :  { %v2151_v33 = vpop.f32.mrf.mxu0  ;;  %v2178_v42 = vpop.f32.mrf.mxu1 }
0x1c05   :  { %v2155_v34 = vrot.slane %v2151_v33, 6  ;;  %v2182_v43 = vrot.slane %v2178_v42, 6  ;;  %v3156_v42 = vsel %vm1622_vm10, %v9208_v19, %v9234_v30 }
0x1c07   :  { %2156 = vrot.lane.b32.xlu0 %v2155_v34, %s8814_s27 }
0x1c09   :  { %v2106_v14 = vpop.f32.mrf.mxu3  ;;  %v2063_v44 = vpop.f32.mrf.mxu2 }
0x1c0a   :  { %v2110_v37 = vrot.slane %v2106_v14, 6  ;;  %v2067_v5 = vrot.slane %v2063_v44, 6 }
0x1c0c   :  { %2111 = vrot.lane.b32.xlu2 %v2110_v37, %s8815_s10  ;;  %v2069_v45 = vadd.f32 %v2067_v5, %v9194_v21 }
0x1c0e   :  { %v7856_v46 = vmul.f32 -1.442695, %v2069_v45 }
0x1c66   :  { %v2112_v54 = vpop.permute.xlu2 %2111 }
0x1c67   :  { %v2114_v61 = vadd.f32 %v2112_v54, %v9194_v21 }
0x1c69   :  { %v7858_v29 = vmul.f32 -1.442695, %v2114_v61 }
0x1c79   :  { %v2157_v38 = vpop.permute.xlu0 %2156 }
0x1c7a   :  { %v2159_v39 = vadd.f32 %v2157_v38, %v9194_v21 }
0x1c7c   :  { %8261 = vtanh.f32 %v2159_v39 }
0x1c7d   :  { %8263 = vpow2.f32 %v7856_v46 }
0x1c82   :  { %v8262_v40 = vpop.eup %8261 }
0x1c83   :  { %2211 = vrot.lane.b32.xlu1 %v8262_v40, %s8816_s11  ;;  %v8264_v48 = vpop.eup %8263 }
0x1c84   :  { %v2073_v27 = vadd.f32 1.0, %v8264_v48 }
0x1c86   :  { %8265 = vrcp.f32 %v2073_v27  ;;  %v2085_v55 = vand.u32 2147483648, %v2073_v27  ;;  %vm2079_vm9 = vweird.f32 %v2073_v27  ;;  %v2083_v47 = vand.u32 2147483647, %v2073_v27 }
0x1c87   :  { %8267 = vpow2.f32 %v7858_v29 }
0x1c88   :  { %v2086_v57 = vor.u32 1.1754944e-38, %v2085_v55  ;;  %vm2084_vm0 = vcmp.eq.f32.partialorder %v2083_v47, 8.507059e+37 }
0x1c8b   :  { %2183 = vrot.lane.b32.xlu1 %v2182_v43, %s8817_s4 }
0x1c8c   :  { %v8266_v35 = vpop.eup %8265 }
0x1c8d   :  { %v2075_v49 = vmul.f32 %v8266_v35, %v2073_v27  ;;  %vm2080_vm8 = vweird.f32 %v8266_v35  ;;  %v8268_v18 = vpop.eup %8267 }
0x1c8e   :  { %vm2081_vm14 = vmor %vm2079_vm9, %vm2080_vm8  ;;  %v2118_v63 = vadd.f32 1.0, %v8268_v18 }
0x1c8f   :  { %v2076_v50 = vsub.f32 1.0, %v2075_v49 }
0x1c90   :  { %8269 = vrcp.f32 %v2118_v63  ;;  %v2130_v8 = vand.u32 2147483648, %v2118_v63  ;;  %vm2124_vm4 = vweird.f32 %v2118_v63  ;;  %v2128_v56 = vand.u32 2147483647, %v2118_v63 }
0x1c91   :  { %v2077_v51 = vmul.f32 %v8266_v35, %v2076_v50 }
0x1c92   :  { %v2131_v62 = vor.u32 1.1754944e-38, %v2130_v8  ;;  %vm2129_vm6 = vcmp.eq.f32.partialorder %v2128_v56, 8.507059e+37 }
0x1c93   :  { %v2078_v53 = vadd.f32 %v8266_v35, %v2077_v51 }
0x1c95   :  { %v2082_v41 = vsel %vm2081_vm14, %v8266_v35, %v2078_v53 }
0x1c96   :  { %v2087_v60 = vsel %vm2084_vm0, %v2086_v57, %v2082_v41  ;;  %v8270_v0 = vpop.eup %8269 }
0x1c97   :  { %v2120_v1 = vmul.f32 %v8270_v0, %v2118_v63  ;;  %vm2125_vm2 = vweird.f32 %v8270_v0 }
0x1c98   :  { %vm2126_vm5 = vmor %vm2124_vm4, %vm2125_vm2 }
0x1c99   :  { %v2121_v2 = vsub.f32 1.0, %v2120_v1 }
0x1c9b   :  { %v2122_v58 = vmul.f32 %v8270_v0, %v2121_v2 }
0x1c9d   :  { %v2123_v4 = vadd.f32 %v8270_v0, %v2122_v58 }
0x1c9f   :  { %v2127_v10 = vsel %vm2126_vm5, %v8270_v0, %v2123_v4 }
0x1ca0   :  { %v2132_v11 = vsel %vm2129_vm6, %v2131_v62, %v2127_v10 }
0x1ca1   :  { %v2209_v15 = vmul.f32 %v2207_v12, %v2132_v11 }
0x1cf5   :  { %v2212_v59 = vpop.permute.xlu1 %2211 }
0x1cf6   :  { %v2214_v36 = vmul.f32 %v2212_v59, %v2087_v60 }
0x1cf8   :  { %2216 = vrot.lane.b32.xlu0 %v2214_v36, %s8815_s10 }
0x1cfd   :  { %v2184_v17 = vpop.permute.xlu1 %2183 }
0x1cfe   :  { %v2186_v20 = vadd.f32 %v2184_v17, %v9194_v21 }
0x1d00   :  { %v7861_v22 = vmul.f32 -1.442695, %v2186_v20 }
0x1d6a   :  { %v2217_v3 = vpop.permute.xlu0 %2216 }
0x1d6b   :  { %v9255_v25 = vadd.f32 %v2217_v3, %v2209_v15 }
0x1d6d   :  { %8271 = vtanh.f32 %v9255_v25 }
0x1d6e   :  { %8273 = vpow2.f32 %v7861_v22 }
0x1d73   :  { %v8272_v16 = vpop.eup %8271 }
0x1d74   :  { %2222 = vrot.lane.b32.xlu2 %v8272_v16, %s8814_s27  ;;  %v8274_v23 = vpop.eup %8273 }
0x1d75   :  { %v2190_v24 = vadd.f32 1.0, %v8274_v23 }
0x1d77   :  { %8275 = vrcp.f32 %v2190_v24  ;;  %v2202_v33 = vand.u32 2147483648, %v2190_v24  ;;  %vm2196_vm9 = vweird.f32 %v2190_v24  ;;  %v2200_v34 = vand.u32 2147483647, %v2190_v24 }
0x1d79   :  { %v2203_v37 = vor.u32 1.1754944e-38, %v2202_v33  ;;  %vm2201_vm0 = vcmp.eq.f32.partialorder %v2200_v34, 8.507059e+37 }
0x1d7d   :  { %v8276_v26 = vpop.eup %8275 }
0x1d7e   :  { %v2192_v28 = vmul.f32 %v8276_v26, %v2190_v24  ;;  %vm2197_vm8 = vweird.f32 %v8276_v26 }
0x1d7f   :  { %vm2198_vm14 = vmor %vm2196_vm9, %vm2197_vm8 }
0x1d80   :  { %v2193_v6 = vsub.f32 1.0, %v2192_v28 }
0x1d82   :  { %v2194_v31 = vmul.f32 %v8276_v26, %v2193_v6 }
0x1d84   :  { %v2195_v32 = vadd.f32 %v8276_v26, %v2194_v31 }
0x1d86   :  { %v2199_v14 = vsel %vm2198_vm14, %v8276_v26, %v2195_v32  ;;  %v2393_v26 = vrot.slane %v9255_v25, 7 }
0x1d87   :  { %v2204_v38 = vsel %vm2201_vm0, %v2203_v37, %v2199_v14 }
0x1dce   :  { %v2223_v39 = vpop.permute.xlu2 %2222 }
0x1dcf   :  { %v2225_v40 = vmul.f32 %v2223_v39, %v2204_v38 }
0x1dd1   :  { %v2227_v43 = vrot.slane %v2225_v40, 2  ;;  %v9264_v44 = vsel %vm1624_vm12, %v3156_v42, %v2225_v40 }
0x1dd3   :  { %2228 = vrot.lane.b32.xlu0 %v2227_v43, %s8818_s13 }
0x1e45   :  { %v2229_v5 = vpop.permute.xlu0 %2228 }
0x1e46   :  { %7862 = vmatmul.msk.f32.vlgmr.msra.gmra.mxu2 %vm112_vm1, %v2229_v5  ;;  %7864 = vmatmul.msk.f32.vlgmr.msra.gmra.mxu3 %vm112_vm1, %v2229_v5 }
0x1e47   :  { %7866 = vmatmul.msk.f32.vlgmr.msra.gmra.mxu0 %vm112_vm1, %v2229_v5  ;;  %7867 = vmatmul.msk.f32.vlgmr.msra.gmra.mxu1 %vm112_vm1, %v2229_v5 }
0x1e48   :  { %2707 = vmatpush.msra.mxu0 %v9147_v52  ;;  %2619 = vmatpush.msra.mxu2 %v9152_v7 }
0x1e49   :  { %2662 = vmatpush.msra.mxu3 %v9157_v9  ;;  %2734 = vmatpush.msra.mxu1 %v9175_v13 }
0x1ec4   :  { %v2337_v19 = vpop.f32.mrf.mxu0  ;;  %v2364_v49 = vpop.f32.mrf.mxu1 }
0x1ec5   :  { %v2341_v30 = vrot.slane %v2337_v19, 5  ;;  %v2368_v50 = vrot.slane %v2364_v49, 5 }
0x1ec7   :  { %2342 = vrot.lane.b32.xlu1 %v2341_v30, %s8814_s27 }
0x1ec9   :  { %v2292_v45 = vpop.f32.mrf.mxu3  ;;  %v2249_v51 = vpop.f32.mrf.mxu2 }
0x1eca   :  { %v2296_v46 = vrot.slane %v2292_v45, 5  ;;  %v2253_v53 = vrot.slane %v2249_v51, 5 }
0x1ecc   :  { %2297 = vrot.lane.b32.xlu0 %v2296_v46, %s8815_s10  ;;  %v2255_v55 = vadd.f32 %v2253_v53, %v9194_v21 }
0x1ece   :  { %v7863_v47 = vmul.f32 -1.442695, %v2255_v55 }
0x1f39   :  { %v2343_v48 = vpop.permute.xlu1 %2342 }
0x1f3a   :  { %v2345_v27 = vadd.f32 %v2343_v48, %v9194_v21 }
0x1f3c   :  { %8277 = vtanh.f32 %v2345_v27 }
0x1f3d   :  { %8279 = vpow2.f32 %v7863_v47 }
0x1f3e   :  { %v2298_v4 = vpop.permute.xlu0 %2297 }
0x1f3f   :  { %v2300_v8 = vadd.f32 %v2298_v4, %v9194_v21 }
0x1f41   :  { %v7865_v56 = vmul.f32 -1.442695, %v2300_v8 }
0x1f42   :  { %v8278_v35 = vpop.eup %8277 }
0x1f43   :  { %2397 = vrot.lane.b32.xlu2 %v8278_v35, %s8816_s11  ;;  %v8280_v41 = vpop.eup %8279 }
0x1f44   :  { %v2259_v57 = vadd.f32 1.0, %v8280_v41 }
0x1f46   :  { %8281 = vrcp.f32 %v2259_v57  ;;  %v2271_v29 = vand.u32 2147483648, %v2259_v57  ;;  %vm2265_vm4 = vweird.f32 %v2259_v57  ;;  %v2269_v18 = vand.u32 2147483647, %v2259_v57 }
0x1f47   :  { %8283 = vpow2.f32 %v7865_v56 }
0x1f48   :  { %v2272_v0 = vor.u32 1.1754944e-38, %v2271_v29  ;;  %vm2270_vm6 = vcmp.eq.f32.partialorder %v2269_v18, 8.507059e+37 }
0x1f4b   :  { %2369 = vrot.lane.b32.xlu2 %v2368_v50, %s8817_s4 }
0x1f4c   :  { %v8282_v59 = vpop.eup %8281 }
0x1f4d   :  { %v2261_v60 = vmul.f32 %v8282_v59, %v2259_v57  ;;  %vm2266_vm2 = vweird.f32 %v8282_v59  ;;  %v8284_v10 = vpop.eup %8283 }
0x1f4e   :  { %vm2267_vm5 = vmor %vm2265_vm4, %vm2266_vm2  ;;  %v2304_v62 = vadd.f32 1.0, %v8284_v10 }
0x1f4f   :  { %v2262_v36 = vsub.f32 1.0, %v2261_v60 }
0x1f50   :  { %8285 = vrcp.f32 %v2304_v62  ;;  %v2316_v17 = vand.u32 2147483648, %v2304_v62  ;;  %vm2310_vm9 = vweird.f32 %v2304_v62  ;;  %v2314_v20 = vand.u32 2147483647, %v2304_v62 }
0x1f51   :  { %v2263_v54 = vmul.f32 %v8282_v59, %v2262_v36 }
0x1f52   :  { %v2317_v23 = vor.u32 1.1754944e-38, %v2316_v17  ;;  %vm2315_vm0 = vcmp.eq.f32.partialorder %v2314_v20, 8.507059e+37 }
0x1f53   :  { %v2264_v61 = vadd.f32 %v8282_v59, %v2263_v54 }
0x1f55   :  { %v2268_v63 = vsel %vm2267_vm5, %v8282_v59, %v2264_v61 }
0x1f56   :  { %v2273_v2 = vsel %vm2270_vm6, %v2272_v0, %v2268_v63  ;;  %v8286_v11 = vpop.eup %8285 }
0x1f57   :  { %v2306_v12 = vmul.f32 %v8286_v11, %v2304_v62  ;;  %vm2311_vm8 = vweird.f32 %v8286_v11 }
0x1f58   :  { %vm2312_vm14 = vmor %vm2310_vm9, %vm2311_vm8 }
0x1f59   :  { %v2307_v15 = vsub.f32 1.0, %v2306_v12 }
0x1f5b   :  { %v2308_v3 = vmul.f32 %v8286_v11, %v2307_v15 }
0x1f5d   :  { %v2309_v16 = vadd.f32 %v8286_v11, %v2308_v3 }
0x1f5f   :  { %v2313_v22 = vsel %vm2312_vm14, %v8286_v11, %v2309_v16 }
0x1f60   :  { %v2318_v24 = vsel %vm2315_vm0, %v2317_v23, %v2313_v22 }
0x1f61   :  { %v2395_v28 = vmul.f32 %v2393_v26, %v2318_v24 }
0x1f9d   :  { %v2398_v1 = vpop.permute.xlu2 %2397 }
0x1f9e   :  { %v2400_v58 = vmul.f32 %v2398_v1, %v2273_v2 }
0x1fa0   :  { %2402 = vrot.lane.b32.xlu1 %v2400_v58, %s8815_s10 }
0x1fa5   :  { %v2370_v33 = vpop.permute.xlu2 %2369 }
0x1fa6   :  { %v2372_v34 = vadd.f32 %v2370_v33, %v9194_v21 }
0x1fa8   :  { %v7868_v14 = vmul.f32 -1.442695, %v2372_v34 }
0x2012   :  { %v2403_v6 = vpop.permute.xlu1 %2402 }
0x2013   :  { %v9284_v31 = vadd.f32 %v2403_v6, %v2395_v28 }
0x2015   :  { %8287 = vtanh.f32 %v9284_v31  ;;  %v2579_v33 = vrot.slane %v9284_v31, 7 }
0x2016   :  { %8289 = vpow2.f32 %v7868_v14 }
0x201b   :  { %v8288_v32 = vpop.eup %8287 }
0x201c   :  { %2408 = vrot.lane.b32.xlu0 %v8288_v32, %s8814_s27  ;;  %v8290_v37 = vpop.eup %8289 }
0x201d   :  { %v2376_v38 = vadd.f32 1.0, %v8290_v37 }
0x201f   :  { %8291 = vrcp.f32 %v2376_v38  ;;  %v2388_v5 = vand.u32 2147483648, %v2376_v38  ;;  %vm2382_vm4 = vweird.f32 %v2376_v38  ;;  %v2386_v19 = vand.u32 2147483647, %v2376_v38 }
0x2021   :  { %v2389_v45 = vor.u32 1.1754944e-38, %v2388_v5  ;;  %vm2387_vm6 = vcmp.eq.f32.partialorder %v2386_v19, 8.507059e+37 }
0x2025   :  { %v8292_v39 = vpop.eup %8291 }
0x2026   :  { %v2378_v40 = vmul.f32 %v8292_v39, %v2376_v38  ;;  %vm2383_vm2 = vweird.f32 %v8292_v39 }
0x2027   :  { %vm2384_vm5 = vmor %vm2382_vm4, %vm2383_vm2 }
0x2028   :  { %v2379_v25 = vsub.f32 1.0, %v2378_v40 }
0x202a   :  { %v2380_v42 = vmul.f32 %v8292_v39, %v2379_v25 }
0x202c   :  { %v2381_v43 = vadd.f32 %v8292_v39, %v2380_v42 }
0x202e   :  { %v2385_v30 = vsel %vm2384_vm5, %v8292_v39, %v2381_v43 }
0x202f   :  { %v2390_v46 = vsel %vm2387_vm6, %v2389_v45, %v2385_v30 }
0x208e   :  { %v2409_v48 = vpop.permute.xlu0 %2408 }
0x208f   :  { %v2411_v27 = vmul.f32 %v2409_v48, %v2390_v46 }
0x2091   :  { %v2413_v35 = vrot.slane %v2411_v27, 3  ;;  %v9291_v49 = vsel %vm1626_vm11, %v9264_v44, %v2411_v27 }
0x2093   :  { %2414 = vrot.lane.b32.xlu1 %v2413_v35, %s8818_s13 }
0x2105   :  { %v2415_v50 = vpop.permute.xlu1 %2414 }
0x2106   :  { %7869 = vmatmul.msk.f32.vlgmr.msrb.gmra.mxu2 %vm112_vm1, %v2415_v50  ;;  %7871 = vmatmul.msk.f32.vlgmr.msrb.gmra.mxu3 %vm112_vm1, %v2415_v50 }
0x2107   :  { %7873 = vmatmul.msk.f32.vlgmr.msrb.gmra.mxu0 %vm112_vm1, %v2415_v50  ;;  %7874 = vmatmul.msk.f32.vlgmr.msrb.gmra.mxu1 %vm112_vm1, %v2415_v50 }
0x2108   :  { %2893 = vmatpush.msrb.mxu0 %v9147_v52  ;;  %2805 = vmatpush.msrb.mxu2 %v9152_v7 }
0x2109   :  { %2848 = vmatpush.msrb.mxu3 %v9157_v9  ;;  %2920 = vmatpush.msrb.mxu1 %v9175_v13 }
0x2184   :  { %v2523_v44 = vpop.f32.mrf.mxu0  ;;  %v2550_v52 = vpop.f32.mrf.mxu1 }
0x2185   :  { %v2527_v51 = vrot.slane %v2523_v44, 4  ;;  %v2554_v7 = vrot.slane %v2550_v52, 4  ;;  %v8748_v52 = vld [vmem:[%s10167_s6 + $0x38] sm:$0xff] }
0x2187   :  { %2528 = vrot.lane.b32.xlu2 %v2527_v51, %s8814_s27 }
0x2189   :  { %v2478_v53 = vpop.f32.mrf.mxu3  ;;  %v2435_v9 = vpop.f32.mrf.mxu2 }
0x218a   :  { %v2482_v55 = vrot.slane %v2478_v53, 4  ;;  %v2439_v13 = vrot.slane %v2435_v9, 4 }
0x218c   :  { %2483 = vrot.lane.b32.xlu1 %v2482_v55, %s8815_s10  ;;  %v2441_v59 = vadd.f32 %v2439_v13, %v9194_v21 }
0x218e   :  { %v7870_v60 = vmul.f32 -1.442695, %v2441_v59 }
0x21e1   :  { %v2529_v47 = vpop.permute.xlu2 %2528 }
0x21e2   :  { %v2531_v41 = vadd.f32 %v2529_v47, %v9194_v21 }
0x21e4   :  { %8293 = vtanh.f32 %v2531_v41  ;;  %v8745_v41 = vld [vmem:[%s10167_s6 + $0x30] sm:$0xff] }
0x21e5   :  { %8295 = vpow2.f32 %v7870_v60 }
0x21ea   :  { %v8294_v57 = vpop.eup %8293 }
0x21eb   :  { %2583 = vrot.lane.b32.xlu0 %v8294_v57, %s8816_s11  ;;  %v8296_v36 = vpop.eup %8295  ;;  %v8747_v57 = vld [vmem:[%s10167_s6 + $0x28] sm:$0xff] }
0x21ec   :  { %v2445_v54 = vadd.f32 1.0, %v8296_v36 }
0x21ee   :  { %8297 = vrcp.f32 %v2445_v54  ;;  %v2457_v1 = vand.u32 2147483648, %v2445_v54  ;;  %vm2451_vm9 = vweird.f32 %v2445_v54  ;;  %v2455_v2 = vand.u32 2147483647, %v2445_v54 }
0x21f0   :  { %v2458_v4 = vor.u32 1.1754944e-38, %v2457_v1  ;;  %vm2456_vm0 = vcmp.eq.f32.partialorder %v2455_v2, 8.507059e+37 }
0x21f3   :  { %2555 = vrot.lane.b32.xlu0 %v2554_v7, %s8817_s4 }
0x21f4   :  { %v8298_v61 = vpop.eup %8297 }
0x21f5   :  { %v2447_v29 = vmul.f32 %v8298_v61, %v2445_v54  ;;  %vm2452_vm8 = vweird.f32 %v8298_v61 }
0x21f6   :  { %vm2453_vm14 = vmor %vm2451_vm9, %vm2452_vm8 }
0x21f7   :  { %v2448_v18 = vsub.f32 1.0, %v2447_v29 }
0x21f9   :  { %v2449_v63 = vmul.f32 %v8298_v61, %v2448_v18 }
0x21fb   :  { %v2450_v0 = vadd.f32 %v8298_v61, %v2449_v63 }
0x21fd   :  { %v2454_v58 = vsel %vm2453_vm14, %v8298_v61, %v2450_v0 }
0x21fe   :  { %v2459_v56 = vsel %vm2456_vm0, %v2458_v4, %v2454_v58  ;;  %v2484_v62 = vpop.permute.xlu1 %2483 }
0x21ff   :  { %v2486_v11 = vadd.f32 %v2484_v62, %v9194_v21 }
0x2201   :  { %v7872_v12 = vmul.f32 -1.442695, %v2486_v11 }
0x2203   :  { %8299 = vpow2.f32 %v7872_v12 }
0x2209   :  { %v8300_v15 = vpop.eup %8299 }
0x220a   :  { %v2490_v3 = vadd.f32 1.0, %v8300_v15 }
0x220c   :  { %8301 = vrcp.f32 %v2490_v3  ;;  %v2502_v24 = vand.u32 2147483648, %v2490_v3  ;;  %vm2496_vm4 = vweird.f32 %v2490_v3  ;;  %v2500_v26 = vand.u32 2147483647, %v2490_v3 }
0x220e   :  { %v2503_v6 = vor.u32 1.1754944e-38, %v2502_v24  ;;  %vm2501_vm6 = vcmp.eq.f32.partialorder %v2500_v26, 8.507059e+37 }
0x2212   :  { %v8302_v16 = vpop.eup %8301 }
0x2213   :  { %v2492_v17 = vmul.f32 %v8302_v16, %v2490_v3  ;;  %vm2497_vm2 = vweird.f32 %v8302_v16 }
0x2214   :  { %vm2498_vm5 = vmor %vm2496_vm4, %vm2497_vm2 }
0x2215   :  { %v2493_v20 = vsub.f32 1.0, %v2492_v17 }
0x2217   :  { %v2494_v22 = vmul.f32 %v8302_v16, %v2493_v20 }
0x2219   :  { %v2495_v23 = vadd.f32 %v8302_v16, %v2494_v22 }
0x221b   :  { %v2499_v28 = vsel %vm2498_vm5, %v8302_v16, %v2495_v23 }
0x221c   :  { %v2504_v32 = vsel %vm2501_vm6, %v2503_v6, %v2499_v28 }
0x221d   :  { %v2581_v34 = vmul.f32 %v2579_v33, %v2504_v32 }
0x225d   :  { %v2584_v8 = vpop.permute.xlu0 %2583 }
0x225e   :  { %v2586_v10 = vmul.f32 %v2584_v8, %v2459_v56 }
0x2260   :  { %2588 = vrot.lane.b32.xlu2 %v2586_v10, %s8815_s10 }
0x2265   :  { %v2556_v39 = vpop.permute.xlu0 %2555 }
0x2266   :  { %v2558_v40 = vadd.f32 %v2556_v39, %v9194_v21 }
0x2268   :  { %v7875_v25 = vmul.f32 -1.442695, %v2558_v40 }
0x22ba   :  { %v2589_v14 = vpop.permute.xlu2 %2588 }
0x22bb   :  { %v9311_v37 = vadd.f32 %v2589_v14, %v2581_v34 }
0x22bd   :  { %8303 = vtanh.f32 %v9311_v37 }
0x22be   :  { %8305 = vpow2.f32 %v7875_v25 }
0x22c3   :  { %v8304_v38 = vpop.eup %8303 }
0x22c4   :  { %2594 = vrot.lane.b32.xlu1 %v8304_v38, %s8814_s27  ;;  %v8306_v42 = vpop.eup %8305 }
0x22c5   :  { %v2562_v43 = vadd.f32 1.0, %v8306_v42 }
0x22c7   :  { %8307 = vrcp.f32 %v2562_v43  ;;  %v2574_v46 = vand.u32 2147483648, %v2562_v43  ;;  %vm2568_vm9 = vweird.f32 %v2562_v43  ;;  %v2572_v48 = vand.u32 2147483647, %v2562_v43 }
0x22c9   :  { %v2575_v35 = vor.u32 1.1754944e-38, %v2574_v46  ;;  %vm2573_vm0 = vcmp.eq.f32.partialorder %v2572_v48, 8.507059e+37 }
0x22cd   :  { %v8308_v5 = vpop.eup %8307 }
0x22ce   :  { %v2564_v19 = vmul.f32 %v8308_v5, %v2562_v43  ;;  %vm2569_vm8 = vweird.f32 %v8308_v5  ;;  %v2765_v43 = vrot.slane %v9311_v37, 7 }
0x22cf   :  { %vm2570_vm14 = vmor %vm2568_vm9, %vm2569_vm8 }
0x22d0   :  { %v2565_v31 = vsub.f32 1.0, %v2564_v19 }
0x22d2   :  { %v2566_v30 = vmul.f32 %v8308_v5, %v2565_v31 }
0x22d4   :  { %v2567_v45 = vadd.f32 %v8308_v5, %v2566_v30 }
0x22d6   :  { %v2571_v27 = vsel %vm2570_vm14, %v8308_v5, %v2567_v45 }
0x22d7   :  { %v2576_v50 = vsel %vm2573_vm0, %v2575_v35, %v2571_v27 }
0x2336   :  { %v2595_v44 = vpop.permute.xlu1 %2594 }
0x2337   :  { %v2597_v51 = vmul.f32 %v2595_v44, %v2576_v50 }
0x2339   :  { %v2599_v53 = vrot.slane %v2597_v51, 4  ;;  %v9318_v55 = vsel %vm1628_vm13, %v9291_v49, %v2597_v51  ;;  %v8746_v49 = vld [vmem:[%s10167_s6 + $0x20] sm:$0xff] }
0x233b   :  { %2600 = vrot.lane.b32.xlu2 %v2599_v53, %s8818_s13 }
0x2395   :  { %v2601_v47 = vpop.permute.xlu2 %2600 }
0x2396   :  { %7876 = vmatmul.msk.f32.vlgmr.msra.gmra.mxu2 %vm112_vm1, %v2601_v47  ;;  %7878 = vmatmul.msk.f32.vlgmr.msra.gmra.mxu3 %vm112_vm1, %v2601_v47 }
0x2397   :  { %7880 = vmatmul.msk.f32.vlgmr.msra.gmra.mxu0 %vm112_vm1, %v2601_v47  ;;  %7881 = vmatmul.msk.f32.vlgmr.msra.gmra.mxu1 %vm112_vm1, %v2601_v47 }
0x2398   :  { %3079 = vmatpush.msra.mxu0 %v8745_v41  ;;  %2991 = vmatpush.msra.mxu2 %v8746_v49 }
0x2399   :  { %3034 = vmatpush.msra.mxu3 %v8747_v57  ;;  %3106 = vmatpush.msra.mxu1 %v8748_v52 }
0x2414   :  { %v2709_v7 = vpop.f32.mrf.mxu0  ;;  %v2736_v61 = vpop.f32.mrf.mxu1 }
0x2415   :  { %v2713_v9 = vrot.slane %v2709_v7, 3  ;;  %v2740_v29 = vrot.slane %v2736_v61, 3 }
0x2417   :  { %2714 = vrot.lane.b32.xlu0 %v2713_v9, %s8814_s27 }
0x2419   :  { %v2664_v13 = vpop.f32.mrf.mxu3  ;;  %v2621_v18 = vpop.f32.mrf.mxu2 }
0x241a   :  { %v2668_v59 = vrot.slane %v2664_v13, 3  ;;  %v2625_v63 = vrot.slane %v2621_v18, 3 }
0x241c   :  { %2669 = vrot.lane.b32.xlu2 %v2668_v59, %s8815_s10  ;;  %v2627_v0 = vadd.f32 %v2625_v63, %v9194_v21 }
0x241e   :  { %v7877_v1 = vmul.f32 -1.442695, %v2627_v0 }
0x2476   :  { %v2670_v22 = vpop.permute.xlu2 %2669 }
0x2477   :  { %v2672_v23 = vadd.f32 %v2670_v22, %v9194_v21 }
0x2479   :  { %v7879_v24 = vmul.f32 -1.442695, %v2672_v23 }
0x2489   :  { %v2715_v60 = vpop.permute.xlu0 %2714 }
0x248a   :  { %v2717_v36 = vadd.f32 %v2715_v60, %v9194_v21 }
0x248c   :  { %8309 = vtanh.f32 %v2717_v36 }
0x248d   :  { %8311 = vpow2.f32 %v7877_v1 }
0x2492   :  { %v8310_v54 = vpop.eup %8309 }
0x2493   :  { %2769 = vrot.lane.b32.xlu1 %v8310_v54, %s8816_s11  ;;  %v8312_v2 = vpop.eup %8311 }
0x2494   :  { %v2631_v58 = vadd.f32 1.0, %v8312_v2 }
0x2496   :  { %8313 = vrcp.f32 %v2631_v58  ;;  %v2643_v11 = vand.u32 2147483648, %v2631_v58  ;;  %vm2637_vm4 = vweird.f32 %v2631_v58  ;;  %v2641_v12 = vand.u32 2147483647, %v2631_v58 }
0x2497   :  { %8315 = vpow2.f32 %v7879_v24 }
0x2498   :  { %v2644_v3 = vor.u32 1.1754944e-38, %v2643_v11  ;;  %vm2642_vm6 = vcmp.eq.f32.partialorder %v2641_v12, 8.507059e+37 }
0x249b   :  { %2741 = vrot.lane.b32.xlu1 %v2740_v29, %s8817_s4 }
0x249c   :  { %v8314_v4 = vpop.eup %8313 }
0x249d   :  { %v2633_v8 = vmul.f32 %v8314_v4, %v2631_v58  ;;  %vm2638_vm2 = vweird.f32 %v8314_v4  ;;  %v8316_v26 = vpop.eup %8315 }
0x249e   :  { %vm2639_vm5 = vmor %vm2637_vm4, %vm2638_vm2  ;;  %v2676_v28 = vadd.f32 1.0, %v8316_v26 }
0x249f   :  { %v2634_v56 = vsub.f32 1.0, %v2633_v8 }
0x24a0   :  { %8317 = vrcp.f32 %v2676_v28  ;;  %v2688_v38 = vand.u32 2147483648, %v2676_v28  ;;  %vm2682_vm9 = vweird.f32 %v2676_v28  ;;  %v2686_v39 = vand.u32 2147483647, %v2676_v28 }
0x24a1   :  { %v2635_v10 = vmul.f32 %v8314_v4, %v2634_v56 }
0x24a2   :  { %v2689_v25 = vor.u32 1.1754944e-38, %v2688_v38  ;;  %vm2687_vm0 = vcmp.eq.f32.partialorder %v2686_v39, 8.507059e+37 }
0x24a3   :  { %v2636_v62 = vadd.f32 %v8314_v4, %v2635_v10 }
0x24a5   :  { %v2640_v15 = vsel %vm2639_vm5, %v8314_v4, %v2636_v62 }
0x24a6   :  { %v2645_v17 = vsel %vm2642_vm6, %v2644_v3, %v2640_v15  ;;  %v8318_v6 = vpop.eup %8317 }
0x24a7   :  { %v2678_v32 = vmul.f32 %v8318_v6, %v2676_v28  ;;  %vm2683_vm8 = vweird.f32 %v8318_v6 }
0x24a8   :  { %vm2684_vm14 = vmor %vm2682_vm9, %vm2683_vm8 }
0x24a9   :  { %v2679_v33 = vsub.f32 1.0, %v2678_v32 }
0x24ab   :  { %v2680_v34 = vmul.f32 %v8318_v6, %v2679_v33 }
0x24ad   :  { %v2681_v14 = vadd.f32 %v8318_v6, %v2680_v34 }
0x24af   :  { %v2685_v40 = vsel %vm2684_vm14, %v8318_v6, %v2681_v14 }
0x24b0   :  { %v2690_v42 = vsel %vm2687_vm0, %v2689_v25, %v2685_v40 }
0x24b1   :  { %v2767_v5 = vmul.f32 %v2765_v43, %v2690_v42 }
0x2505   :  { %v2770_v16 = vpop.permute.xlu1 %2769 }
0x2506   :  { %v2772_v20 = vmul.f32 %v2770_v16, %v2645_v17 }
0x2508   :  { %2774 = vrot.lane.b32.xlu0 %v2772_v20, %s8815_s10 }
0x250d   :  { %v2742_v45 = vpop.permute.xlu1 %2741 }
0x250e   :  { %v2744_v46 = vadd.f32 %v2742_v45, %v9194_v21 }
0x2510   :  { %v7882_v48 = vmul.f32 -1.442695, %v2744_v46 }
0x257a   :  { %v2775_v19 = vpop.permute.xlu0 %2774 }
0x257b   :  { %v9346_v31 = vadd.f32 %v2775_v19, %v2767_v5 }
0x257d   :  { %8319 = vtanh.f32 %v9346_v31  ;;  %v2951_v45 = vrot.slane %v9346_v31, 7 }
0x257e   :  { %8321 = vpow2.f32 %v7882_v48 }
0x2583   :  { %v8320_v30 = vpop.eup %8319 }
0x2584   :  { %2780 = vrot.lane.b32.xlu2 %v8320_v30, %s8814_s27  ;;  %v8322_v27 = vpop.eup %8321 }
0x2585   :  { %v2748_v35 = vadd.f32 1.0, %v8322_v27 }
0x2587   :  { %8323 = vrcp.f32 %v2748_v35  ;;  %v2760_v47 = vand.u32 2147483648, %v2748_v35  ;;  %vm2754_vm4 = vweird.f32 %v2748_v35  ;;  %v2758_v41 = vand.u32 2147483647, %v2748_v35 }
0x2589   :  { %v2761_v57 = vor.u32 1.1754944e-38, %v2760_v47  ;;  %vm2759_vm6 = vcmp.eq.f32.partialorder %v2758_v41, 8.507059e+37 }
0x258d   :  { %v8324_v50 = vpop.eup %8323 }
0x258e   :  { %v2750_v44 = vmul.f32 %v8324_v50, %v2748_v35  ;;  %vm2755_vm2 = vweird.f32 %v8324_v50 }
0x258f   :  { %vm2756_vm5 = vmor %vm2754_vm4, %vm2755_vm2 }
0x2590   :  { %v2751_v37 = vsub.f32 1.0, %v2750_v44 }
0x2592   :  { %v2752_v51 = vmul.f32 %v8324_v50, %v2751_v37 }
0x2594   :  { %v2753_v53 = vadd.f32 %v8324_v50, %v2752_v51 }
0x2596   :  { %v2757_v49 = vsel %vm2756_vm5, %v8324_v50, %v2753_v53 }
0x2597   :  { %v2762_v52 = vsel %vm2759_vm6, %v2761_v57, %v2757_v49 }
0x25de   :  { %v2781_v7 = vpop.permute.xlu2 %2780 }
0x25df   :  { %v2783_v9 = vmul.f32 %v2781_v7, %v2762_v52 }
0x25e1   :  { %v2785_v13 = vrot.slane %v2783_v9, 5  ;;  %v9353_v59 = vsel %vm1630_vm15, %v9318_v55, %v2783_v9 }
0x25e3   :  { %2786 = vrot.lane.b32.xlu0 %v2785_v13, %s8818_s13 }
0x2655   :  { %v2787_v60 = vpop.permute.xlu0 %2786 }
0x2656   :  { %7883 = vmatmul.msk.f32.vlgmr.msrb.gmra.mxu2 %vm112_vm1, %v2787_v60  ;;  %7885 = vmatmul.msk.f32.vlgmr.msrb.gmra.mxu3 %vm112_vm1, %v2787_v60 }
0x2657   :  { %7887 = vmatmul.msk.f32.vlgmr.msrb.gmra.mxu0 %vm112_vm1, %v2787_v60  ;;  %7888 = vmatmul.msk.f32.vlgmr.msrb.gmra.mxu1 %vm112_vm1, %v2787_v60 }
0x26d4   :  { %v2895_v36 = vpop.f32.mrf.mxu0  ;;  %v2922_v0 = vpop.f32.mrf.mxu1 }
0x26d5   :  { %v2899_v54 = vrot.slane %v2895_v36, 2  ;;  %v2926_v1 = vrot.slane %v2922_v0, 2 }
0x26d7   :  { %2900 = vrot.lane.b32.xlu1 %v2899_v54, %s8814_s27 }
0x26d9   :  { %v2850_v61 = vpop.f32.mrf.mxu3  ;;  %v2807_v2 = vpop.f32.mrf.mxu2 }
0x26da   :  { %v2854_v29 = vrot.slane %v2850_v61, 2  ;;  %v2811_v58 = vrot.slane %v2807_v2, 2 }
0x26dc   :  { %2855 = vrot.lane.b32.xlu0 %v2854_v29, %s8815_s10  ;;  %v2813_v4 = vadd.f32 %v2811_v58, %v9194_v21 }
0x26de   :  { %v7884_v8 = vmul.f32 -1.442695, %v2813_v4 }
0x2749   :  { %v2901_v55 = vpop.permute.xlu1 %2900 }
0x274a   :  { %v2903_v18 = vadd.f32 %v2901_v55, %v9194_v21 }
0x274c   :  { %8325 = vtanh.f32 %v2903_v18 }
0x274d   :  { %8327 = vpow2.f32 %v7884_v8 }
0x274e   :  { %v2856_v28 = vpop.permute.xlu0 %2855 }
0x274f   :  { %v2858_v6 = vadd.f32 %v2856_v28, %v9194_v21 }
0x2751   :  { %v7886_v32 = vmul.f32 -1.442695, %v2858_v6 }
0x2752   :  { %v8326_v63 = vpop.eup %8325 }
0x2753   :  { %2955 = vrot.lane.b32.xlu2 %v8326_v63, %s8816_s11  ;;  %v8328_v56 = vpop.eup %8327 }
0x2754   :  { %v2817_v10 = vadd.f32 1.0, %v8328_v56 }
0x2756   :  { %8329 = vrcp.f32 %v2817_v10  ;;  %v2829_v16 = vand.u32 2147483648, %v2817_v10  ;;  %vm2823_vm9 = vweird.f32 %v2817_v10  ;;  %v2827_v17 = vand.u32 2147483647, %v2817_v10 }
0x2757   :  { %8331 = vpow2.f32 %v7886_v32 }
0x2758   :  { %v2830_v22 = vor.u32 1.1754944e-38, %v2829_v16  ;;  %vm2828_vm0 = vcmp.eq.f32.partialorder %v2827_v17, 8.507059e+37 }
0x275b   :  { %2927 = vrot.lane.b32.xlu2 %v2926_v1, %s8817_s4 }
0x275c   :  { %v8330_v62 = vpop.eup %8329 }
0x275d   :  { %v2819_v11 = vmul.f32 %v8330_v62, %v2817_v10  ;;  %vm2824_vm8 = vweird.f32 %v8330_v62  ;;  %v8332_v33 = vpop.eup %8331 }
0x275e   :  { %vm2825_vm14 = vmor %vm2823_vm9, %vm2824_vm8  ;;  %v2862_v34 = vadd.f32 1.0, %v8332_v33 }
0x275f   :  { %v2820_v12 = vsub.f32 1.0, %v2819_v11 }
0x2760   :  { %8333 = vrcp.f32 %v2862_v34  ;;  %v2874_v42 = vand.u32 2147483648, %v2862_v34  ;;  %vm2868_vm4 = vweird.f32 %v2862_v34  ;;  %v2872_v43 = vand.u32 2147483647, %v2862_v34 }
0x2761   :  { %v2821_v15 = vmul.f32 %v8330_v62, %v2820_v12 }
0x2762   :  { %v2875_v19 = vor.u32 1.1754944e-38, %v2874_v42  ;;  %vm2873_vm6 = vcmp.eq.f32.partialorder %v2872_v43, 8.507059e+37 }
0x2763   :  { %v2822_v3 = vadd.f32 %v8330_v62, %v2821_v15 }
0x2765   :  { %v2826_v20 = vsel %vm2825_vm14, %v8330_v62, %v2822_v3 }
0x2766   :  { %v2831_v24 = vsel %vm2828_vm0, %v2830_v22, %v2826_v20  ;;  %v8334_v14 = vpop.eup %8333 }
0x2767   :  { %v2864_v38 = vmul.f32 %v8334_v14, %v2862_v34  ;;  %vm2869_vm2 = vweird.f32 %v8334_v14 }
0x2768   :  { %vm2870_vm5 = vmor %vm2868_vm4, %vm2869_vm2 }
0x2769   :  { %v2865_v39 = vsub.f32 1.0, %v2864_v38 }
0x276b   :  { %v2866_v40 = vmul.f32 %v8334_v14, %v2865_v39 }
0x276d   :  { %v2867_v25 = vadd.f32 %v8334_v14, %v2866_v40 }
0x276f   :  { %v2871_v5 = vsel %vm2870_vm5, %v8334_v14, %v2867_v25 }
0x2770   :  { %v2876_v30 = vsel %vm2873_vm6, %v2875_v19, %v2871_v5 }
0x2771   :  { %v2953_v46 = vmul.f32 %v2951_v45, %v2876_v30 }
0x27ad   :  { %v2956_v23 = vpop.permute.xlu2 %2955 }
0x27ae   :  { %v2958_v26 = vmul.f32 %v2956_v23, %v2831_v24 }
0x27b0   :  { %2960 = vrot.lane.b32.xlu1 %v2958_v26, %s8815_s10 }
0x27b5   :  { %v2928_v50 = vpop.permute.xlu2 %2927 }
0x27b6   :  { %v2930_v44 = vadd.f32 %v2928_v50, %v9194_v21 }
0x27b8   :  { %v7889_v37 = vmul.f32 -1.442695, %v2930_v44 }
0x2822   :  { %v2961_v48 = vpop.permute.xlu1 %2960 }
0x2823   :  { %v9369_v27 = vadd.f32 %v2961_v48, %v2953_v46 }
0x2825   :  { %8335 = vtanh.f32 %v9369_v27  ;;  %v3137_v50 = vrot.slane %v9369_v27, 7  ;;  %v9400_v27 = vld [vmem:[%s10167_s6 + $0x50] sm:$0xff] }
0x2826   :  { %8337 = vpow2.f32 %v7889_v37  ;;  %3308 = vmatpush.msrb.mxu1 %v9400_v27 }
0x282b   :  { %v8336_v35 = vpop.eup %8335 }
0x282c   :  { %2966 = vrot.lane.b32.xlu0 %v8336_v35, %s8814_s27  ;;  %v8338_v51 = vpop.eup %8337 }
0x282d   :  { %v2934_v53 = vadd.f32 1.0, %v8338_v51 }
0x282f   :  { %8339 = vrcp.f32 %v2934_v53  ;;  %v2946_v52 = vand.u32 2147483648, %v2934_v53  ;;  %vm2940_vm9 = vweird.f32 %v2934_v53  ;;  %v2944_v7 = vand.u32 2147483647, %v2934_v53 }
0x2831   :  { %v2947_v13 = vor.u32 1.1754944e-38, %v2946_v52  ;;  %vm2945_vm0 = vcmp.eq.f32.partialorder %v2944_v7, 8.507059e+37  ;;  %v9405_v52 = vld [vmem:[%s10167_s6 + $0x40] sm:$0xff]  ;;  %v9410_v7 = vld [vmem:[%s10167_s6 + $0x48] sm:$0xff] }
0x2832   :  { %3224 = vmatpush.msrb.mxu3 %v9405_v52  ;;  %3264 = vmatpush.msrb.mxu0 %v9410_v7 }
0x2835   :  { %v8340_v47 = vpop.eup %8339 }
0x2836   :  { %v2936_v41 = vmul.f32 %v8340_v47, %v2934_v53  ;;  %vm2941_vm8 = vweird.f32 %v8340_v47 }
0x2837   :  { %vm2942_vm14 = vmor %vm2940_vm9, %vm2941_vm8 }
0x2838   :  { %v2937_v31 = vsub.f32 1.0, %v2936_v41 }
0x283a   :  { %v2938_v49 = vmul.f32 %v8340_v47, %v2937_v31 }
0x283c   :  { %v2939_v57 = vadd.f32 %v8340_v47, %v2938_v49 }
0x283e   :  { %v2943_v9 = vsel %vm2942_vm14, %v8340_v47, %v2939_v57 }
0x283f   :  { %v2948_v60 = vsel %vm2945_vm0, %v2947_v13, %v2943_v9 }
0x289e   :  { %v2967_v36 = vpop.permute.xlu0 %2966 }
0x289f   :  { %v2969_v54 = vmul.f32 %v2967_v36, %v2948_v60 }
0x28a1   :  { %v2971_v61 = vrot.slane %v2969_v54, 6  ;;  %v9376_v29 = vsel %vm1632_vm3, %v9353_v59, %v2969_v54 }
0x28a3   :  { %2972 = vrot.lane.b32.xlu1 %v2971_v61, %s8818_s13 }
0x2915   :  { %v2973_v55 = vpop.permute.xlu1 %2972 }
0x2916   :  { %7890 = vmatmul.msk.f32.vlgmr.msra.gmra.mxu2 %vm112_vm1, %v2973_v55  ;;  %7892 = vmatmul.msk.f32.vlgmr.msra.gmra.mxu3 %vm112_vm1, %v2973_v55 }
0x2917   :  { %7894 = vmatmul.msk.f32.vlgmr.msra.gmra.mxu0 %vm112_vm1, %v2973_v55  ;;  %7895 = vmatmul.msk.f32.vlgmr.msra.gmra.mxu1 %vm112_vm1, %v2973_v55 }
0x2918   :  { %3491 = vmatpush.msra.mxu1 %v9400_v27  ;;  %3403 = vmatpush.msra.mxu3 %v9405_v52 }
0x2919   :  { %3446 = vmatpush.msra.mxu0 %v9410_v7 }
0x2994   :  { %v3081_v18 = vpop.f32.mrf.mxu0  ;;  %v3108_v4 = vpop.f32.mrf.mxu1 }
0x2995   :  { %v3085_v63 = vrot.slane %v3081_v18, 1  ;;  %v3112_v8 = vrot.slane %v3108_v4, 1  ;;  %v9428_v4 = vld [vmem:[%s10167_s6 + $0x58] sm:$0xff] }
0x2997   :  { %3086 = vrot.lane.b32.xlu2 %v3085_v63, %s8814_s27 }
0x2999   :  { %v3036_v0 = vpop.f32.mrf.mxu3  ;;  %v2993_v56 = vpop.f32.mrf.mxu2 }
0x299a   :  { %v3040_v1 = vrot.slane %v3036_v0, 1  ;;  %v2997_v10 = vrot.slane %v2993_v56, 1 }
0x299c   :  { %3041 = vrot.lane.b32.xlu1 %v3040_v1, %s8815_s10  ;;  %v2999_v62 = vadd.f32 %v2997_v10, %v9194_v21 }
0x299e   :  { %v7891_v11 = vmul.f32 -1.442695, %v2999_v62  ;;  %v8098_v62 = vld [vmem:[%s10166_s5 + $0x28] ss:$0 sm:$0xff] }
0x29f1   :  { %v3087_v59 = vpop.permute.xlu2 %3086 }
0x29f2   :  { %v3089_v2 = vadd.f32 %v3087_v59, %v9194_v21 }
0x29f4   :  { %8341 = vtanh.f32 %v3089_v2 }
0x29f5   :  { %8343 = vpow2.f32 %v7891_v11 }
0x29fa   :  { %v8342_v58 = vpop.eup %8341 }
0x29fb   :  { %3141 = vrot.lane.b32.xlu0 %v8342_v58, %s8816_s11  ;;  %v8344_v12 = vpop.eup %8343  ;;  %v7897_v58 = vld [vmem:[%s10166_s5 + $0x20] sm:$0xff] }
0x29fc   :  { %v3003_v15 = vadd.f32 1.0, %v8344_v12  ;;  %3190 = vmatpush.msrb.mxu2 %v7897_v58 }
0x29fe   :  { %8345 = vrcp.f32 %v3003_v15  ;;  %v3015_v23 = vand.u32 2147483648, %v3003_v15  ;;  %vm3009_vm4 = vweird.f32 %v3003_v15  ;;  %v3013_v24 = vand.u32 2147483647, %v3003_v15  ;;  %3334 = vmatpush.msra.mxu2 %v9428_v4 }
0x2a00   :  { %v3016_v28 = vor.u32 1.1754944e-38, %v3015_v23  ;;  %vm3014_vm6 = vcmp.eq.f32.partialorder %v3013_v24, 8.507059e+37 }
0x2a03   :  { %3113 = vrot.lane.b32.xlu0 %v3112_v8, %s8817_s4 }
0x2a04   :  { %v8346_v3 = vpop.eup %8345 }
0x2a05   :  { %v3005_v16 = vmul.f32 %v8346_v3, %v3003_v15  ;;  %vm3010_vm2 = vweird.f32 %v8346_v3 }
0x2a06   :  { %vm3011_vm5 = vmor %vm3009_vm4, %vm3010_vm2 }
0x2a07   :  { %v3006_v17 = vsub.f32 1.0, %v3005_v16 }
0x2a09   :  { %v3007_v20 = vmul.f32 %v8346_v3, %v3006_v17 }
0x2a0b   :  { %v3008_v22 = vadd.f32 %v8346_v3, %v3007_v20 }
0x2a0d   :  { %v3012_v26 = vsel %vm3011_vm5, %v8346_v3, %v3008_v22 }
0x2a0e   :  { %v3017_v32 = vsel %vm3014_vm6, %v3016_v28, %v3012_v26  ;;  %v3042_v34 = vpop.permute.xlu1 %3041 }
0x2a0f   :  { %v3044_v14 = vadd.f32 %v3042_v34, %v9194_v21 }
0x2a11   :  { %v7893_v38 = vmul.f32 -1.442695, %v3044_v14 }
0x2a13   :  { %8347 = vpow2.f32 %v7893_v38 }
0x2a19   :  { %v8348_v39 = vpop.eup %8347 }
0x2a1a   :  { %v3048_v40 = vadd.f32 1.0, %v8348_v39 }
0x2a1c   :  { %8349 = vrcp.f32 %v3048_v40  ;;  %v3060_v30 = vand.u32 2147483648, %v3048_v40  ;;  %vm3054_vm9 = vweird.f32 %v3048_v40  ;;  %v3058_v45 = vand.u32 2147483647, %v3048_v40 }
0x2a1e   :  { %v3061_v48 = vor.u32 1.1754944e-38, %v3060_v30  ;;  %vm3059_vm0 = vcmp.eq.f32.partialorder %v3058_v45, 8.507059e+37 }
0x2a22   :  { %v8350_v25 = vpop.eup %8349 }
0x2a23   :  { %v3050_v42 = vmul.f32 %v8350_v25, %v3048_v40  ;;  %vm3055_vm8 = vweird.f32 %v8350_v25 }
0x2a24   :  { %vm3056_vm14 = vmor %vm3054_vm9, %vm3055_vm8 }
0x2a25   :  { %v3051_v43 = vsub.f32 1.0, %v3050_v42 }
0x2a27   :  { %v3052_v5 = vmul.f32 %v8350_v25, %v3051_v43 }
0x2a29   :  { %v3053_v19 = vadd.f32 %v8350_v25, %v3052_v5 }
0x2a2b   :  { %v3057_v46 = vsel %vm3056_vm14, %v8350_v25, %v3053_v19 }
0x2a2c   :  { %v3062_v35 = vsel %vm3059_vm0, %v3061_v48, %v3057_v46 }
0x2a2d   :  { %v3139_v44 = vmul.f32 %v3137_v50, %v3062_v35 }
0x2a6d   :  { %v3142_v6 = vpop.permute.xlu0 %3141 }
0x2a6e   :  { %v3144_v33 = vmul.f32 %v3142_v6, %v3017_v32 }
0x2a70   :  { %3146 = vrot.lane.b32.xlu2 %v3144_v33, %s8815_s10 }
0x2a75   :  { %v3114_v47 = vpop.permute.xlu0 %3113 }
0x2a76   :  { %v3116_v41 = vadd.f32 %v3114_v47, %v9194_v21 }
0x2a78   :  { %v7896_v31 = vmul.f32 -1.442695, %v3116_v41 }
0x2aca   :  { %v3147_v37 = vpop.permute.xlu2 %3146 }
0x2acb   :  { %v9392_v51 = vadd.f32 %v3147_v37, %v3139_v44 }
0x2acd   :  { %8351 = vtanh.f32 %v9392_v51 }
0x2ace   :  { %8353 = vpow2.f32 %v7896_v31 }
0x2ad3   :  { %v8352_v53 = vpop.eup %8351 }
0x2ad4   :  { %3152 = vrot.lane.b32.xlu1 %v8352_v53, %s8814_s27  ;;  %v8354_v49 = vpop.eup %8353 }
0x2ad5   :  { %v3120_v57 = vadd.f32 1.0, %v8354_v49 }
0x2ad7   :  { %8355 = vrcp.f32 %v3120_v57  ;;  %v3132_v54 = vand.u32 2147483648, %v3120_v57  ;;  %vm3126_vm4 = vweird.f32 %v3120_v57  ;;  %v3130_v61 = vand.u32 2147483647, %v3120_v57 }
0x2ad9   :  { %v3133_v18 = vor.u32 1.1754944e-38, %v3132_v54  ;;  %vm3131_vm6 = vcmp.eq.f32.partialorder %v3130_v61, 8.507059e+37 }
0x2add   :  { %v8356_v21 = vpop.eup %8355 }
0x2ade   :  { %v3122_v9 = vmul.f32 %v8356_v21, %v3120_v57  ;;  %vm3127_vm2 = vweird.f32 %v8356_v21  ;;  %v3364_v57 = vrot.slane %v9392_v51, 7 }
0x2adf   :  { %vm3128_vm5 = vmor %vm3126_vm4, %vm3127_vm2 }
0x2ae0   :  { %v3123_v13 = vsub.f32 1.0, %v3122_v9 }
0x2ae2   :  { %v3124_v60 = vmul.f32 %v8356_v21, %v3123_v13 }
0x2ae4   :  { %v3125_v36 = vadd.f32 %v8356_v21, %v3124_v60 }
0x2ae6   :  { %v3129_v55 = vsel %vm3128_vm5, %v8356_v21, %v3125_v36 }
0x2ae7   :  { %v3134_v63 = vsel %vm3131_vm6, %v3133_v18, %v3129_v55 }
0x2b46   :  { %v3153_v0 = vpop.permute.xlu1 %3152 }
0x2b47   :  { %v3155_v1 = vmul.f32 %v3153_v0, %v3134_v63 }
0x2b49   :  { %v3204_v59 = vrot.slane %v3155_v1, 7  ;;  %v3162_v2 = vsel %vm1634_vm7, %v9376_v29, %v3155_v1 }
0x2b4a   :  { %3164 = vrot.lane.b32.xlu0 %v3162_v2, %s8818_s13 }
0x2b4b   :  { %3205 = vrot.lane.b32.xlu2 %v3204_v59, %s8818_s13 }
0x2ba5   :  { %v3206_v8 = vpop.permute.xlu2 %3205 }
0x2ba6   :  { %7904 = vmatmul.msk.f32.vlgmr.msrb.gmra.mxu3 %vm112_vm1, %v3206_v8  ;;  %7906 = vmatmul.msk.f32.vlgmr.msrb.gmra.mxu0 %vm112_vm1, %v3206_v8 }
0x2ba7   :  { %7908 = vmatmul.msk.f32.vlgmr.msrb.gmra.mxu1 %vm112_vm1, %v3206_v8  ;;  %3589 = vmatpush.msrb.mxu3 %v9405_v52 }
0x2ba8   :  { %3677 = vmatpush.msrb.mxu1 %v9400_v27  ;;  %3632 = vmatpush.msrb.mxu0 %v9410_v7 }
0x2bbc   :  { %v3165_v29 = vpop.permute.xlu0 %3164 }
0x2bbd   :  { %3168 = vst.msk [vmem:[#allocation5 + $0x8] sm:$0xff] %vm112_vm1, %v3165_v29  ;;  %7899 = vmatmul.msk.f32.vlgmr.msrb.gmra.mxu2 %vm112_vm1, %v3165_v29 }
0x2bbe   :  { %3518 = vmatpush.msrb.mxu2 %v9428_v4 }
0x2bc5   :  { %7909 = vmatmul.msk.f32.vlgmr.msra.gmra.mxu2 %vm112_vm1, %v3206_v8 }
0x2bc6   :  { %3704 = vmatpush.msra.mxu2 %v9428_v4 }
0x2c23   :  { %v3266_v56 = vpop.f32.mrf.mxu0 }
0x2c24   :  { %v3310_v10 = vpop.f32.mrf.mxu1  ;;  %3270 = vrot.lane.b32.xlu0 %v3266_v56, %s8815_s10 }
0x2c25   :  { %3314 = vrot.lane.b32.xlu1 %v3310_v10, %s8814_s27 }
0x2c29   :  { %v3226_v20 = vpop.f32.mrf.mxu3 }
0x2c40   :  { %v3192_v11 = vpop.f32.mrf.mxu2 }
0x2c41   :  { %v9447_v12 = vadd.f32 %v8098_v62, %v3192_v11 }
0x2c43   :  { %v3229_v22 = vadd.f32 %v3226_v20, %v9447_v12 }
0x2c45   :  { %v7905_v23 = vmul.f32 -1.442695, %v3229_v22 }
0x2c48   :  { %v3336_v17 = vpop.f32.mrf.mxu2 }
0x2c96   :  { %v3271_v5 = vpop.permute.xlu0 %3270 }
0x2c97   :  { %v3315_v15 = vpop.permute.xlu1 %3314  ;;  %v3273_v19 = vadd.f32 %v3271_v5, %v9447_v12 }
0x2c98   :  { %v3317_v3 = vadd.f32 %v3315_v15, %v9447_v12 }
0x2c99   :  { %v7907_v30 = vmul.f32 -1.442695, %v3273_v19 }
0x2c9a   :  { %8357 = vtanh.f32 %v3317_v3 }
0x2c9b   :  { %8359 = vpow2.f32 %v7905_v23 }
0x2ca0   :  { %v8358_v16 = vpop.eup %8357 }
0x2ca1   :  { %3368 = vrot.lane.b32.xlu2 %v8358_v16, %s8816_s11  ;;  %v8360_v24 = vpop.eup %8359 }
0x2ca2   :  { %v3233_v26 = vadd.f32 1.0, %v8360_v24 }
0x2ca4   :  { %8361 = vrcp.f32 %v3233_v26  ;;  %v3245_v14 = vand.u32 2147483648, %v3233_v26  ;;  %vm3239_vm9 = vweird.f32 %v3233_v26  ;;  %v3243_v38 = vand.u32 2147483647, %v3233_v26 }
0x2ca5   :  { %8363 = vpow2.f32 %v7907_v30 }
0x2ca6   :  { %v3246_v40 = vor.u32 1.1754944e-38, %v3245_v14  ;;  %vm3244_vm0 = vcmp.eq.f32.partialorder %v3243_v38, 8.507059e+37 }
0x2ca9   :  { %3340 = vrot.lane.b32.xlu2 %v3336_v17, %s8817_s4 }
0x2caa   :  { %v8362_v28 = vpop.eup %8361 }
0x2cab   :  { %v3235_v6 = vmul.f32 %v8362_v28, %v3233_v26  ;;  %vm3240_vm8 = vweird.f32 %v8362_v28  ;;  %v8364_v45 = vpop.eup %8363 }
0x2cac   :  { %vm3241_vm14 = vmor %vm3239_vm9, %vm3240_vm8  ;;  %v3277_v46 = vadd.f32 1.0, %v8364_v45 }
0x2cad   :  { %v3236_v32 = vsub.f32 1.0, %v3235_v6 }
0x2cae   :  { %8365 = vrcp.f32 %v3277_v46  ;;  %v3289_v53 = vand.u32 2147483648, %v3277_v46  ;;  %vm3283_vm4 = vweird.f32 %v3277_v46  ;;  %v3287_v47 = vand.u32 2147483647, %v3277_v46 }
0x2caf   :  { %v3237_v33 = vmul.f32 %v8362_v28, %v3236_v32 }
0x2cb0   :  { %v3290_v31 = vor.u32 1.1754944e-38, %v3289_v53  ;;  %vm3288_vm6 = vcmp.eq.f32.partialorder %v3287_v47, 8.507059e+37 }
0x2cb1   :  { %v3238_v34 = vadd.f32 %v8362_v28, %v3237_v33 }
0x2cb3   :  { %v3242_v39 = vsel %vm3241_vm14, %v8362_v28, %v3238_v34 }
0x2cb4   :  { %v3247_v42 = vsel %vm3244_vm0, %v3246_v40, %v3242_v39  ;;  %v8366_v48 = vpop.eup %8365 }
0x2cb5   :  { %v3279_v35 = vmul.f32 %v8366_v48, %v3277_v46  ;;  %vm3284_vm2 = vweird.f32 %v8366_v48 }
0x2cb6   :  { %vm3285_vm5 = vmor %vm3283_vm4, %vm3284_vm2 }
0x2cb7   :  { %v3280_v50 = vsub.f32 1.0, %v3279_v35 }
0x2cb9   :  { %v3281_v44 = vmul.f32 %v8366_v48, %v3280_v50 }
0x2cbb   :  { %v3282_v37 = vadd.f32 %v8366_v48, %v3281_v44 }
0x2cbd   :  { %v3286_v41 = vsel %vm3285_vm5, %v8366_v48, %v3282_v37 }
0x2cbe   :  { %v3291_v49 = vsel %vm3288_vm6, %v3290_v31, %v3286_v41 }
0x2cbf   :  { %v3366_v21 = vmul.f32 %v3364_v57, %v3291_v49 }
0x2cfb   :  { %v3369_v25 = vpop.permute.xlu2 %3368 }
0x2cfc   :  { %v3371_v43 = vmul.f32 %v3369_v25, %v3247_v42 }
0x2cfe   :  { %3373 = vrot.lane.b32.xlu1 %v3371_v43, %s8815_s10 }
0x2d03   :  { %v3341_v36 = vpop.permute.xlu2 %3340 }
0x2d04   :  { %v3343_v54 = vadd.f32 %v3341_v36, %v9447_v12 }
0x2d06   :  { %v7910_v61 = vmul.f32 -1.442695, %v3343_v54 }
0x2d70   :  { %v3374_v9 = vpop.permute.xlu1 %3373 }
0x2d71   :  { %v9456_v13 = vadd.f32 %v3374_v9, %v3366_v21 }
0x2d73   :  { %8367 = vtanh.f32 %v9456_v13 }
0x2d74   :  { %8369 = vpow2.f32 %v7910_v61  ;;  %v3549_v61 = vrot.slane %v9456_v13, 7 }
0x2d79   :  { %v8368_v60 = vpop.eup %8367 }
0x2d7a   :  { %3379 = vrot.lane.b32.xlu0 %v8368_v60, %s8814_s27  ;;  %v8370_v55 = vpop.eup %8369 }
0x2d7b   :  { %v3347_v18 = vadd.f32 1.0, %v8370_v55 }
0x2d7d   :  { %8371 = vrcp.f32 %v3347_v18  ;;  %v3359_v2 = vand.u32 2147483648, %v3347_v18  ;;  %vm3353_vm9 = vweird.f32 %v3347_v18  ;;  %v3357_v58 = vand.u32 2147483647, %v3347_v18 }
0x2d7f   :  { %v3360_v29 = vor.u32 1.1754944e-38, %v3359_v2  ;;  %vm3358_vm0 = vcmp.eq.f32.partialorder %v3357_v58, 8.507059e+37 }
0x2d83   :  { %v8372_v63 = vpop.eup %8371 }
0x2d84   :  { %v3349_v0 = vmul.f32 %v8372_v63, %v3347_v18  ;;  %vm3354_vm8 = vweird.f32 %v8372_v63 }
0x2d85   :  { %vm3355_vm14 = vmor %vm3353_vm9, %vm3354_vm8 }
0x2d86   :  { %v3350_v51 = vsub.f32 1.0, %v3349_v0 }
0x2d88   :  { %v3351_v1 = vmul.f32 %v8372_v63, %v3350_v51 }
0x2d8a   :  { %v3352_v59 = vadd.f32 %v8372_v63, %v3351_v1 }
0x2d8c   :  { %v3356_v8 = vsel %vm3355_vm14, %v8372_v63, %v3352_v59 }
0x2d8d   :  { %v3361_v56 = vsel %vm3358_vm0, %v3360_v29, %v3356_v8 }
0x2dec   :  { %v3380_v10 = vpop.permute.xlu0 %3379 }
0x2ded   :  { %v9461_v62 = vmul.f32 %v3380_v10, %v3361_v56 }
0x2def   :  { %3384 = vrot.lane.b32.xlu1 %v9461_v62, %s8818_s13 }
0x2e61   :  { %v3385_v11 = vpop.permute.xlu1 %3384 }
0x2e62   :  { %7911 = vmatmul.msk.f32.vlgmr.msra.gmra.mxu3 %vm112_vm1, %v3385_v11  ;;  %7913 = vmatmul.msk.f32.vlgmr.msra.gmra.mxu0 %vm112_vm1, %v3385_v11 }
0x2e63   :  { %7915 = vmatmul.msk.f32.vlgmr.msra.gmra.mxu1 %vm112_vm1, %v3385_v11  ;;  %7916 = vmatmul.msk.f32.vlgmr.msrb.gmra.mxu2 %vm112_vm1, %v3385_v11 }
0x2e64   :  { %3863 = vmatpush.msra.mxu1 %v9400_v27  ;;  %3775 = vmatpush.msra.mxu3 %v9405_v52 }
0x2e65   :  { %3818 = vmatpush.msra.mxu0 %v9410_v7  ;;  %3890 = vmatpush.msrb.mxu2 %v9428_v4 }
0x2edf   :  { %v3448_v15 = vpop.f32.mrf.mxu0 }
0x2ee0   :  { %v3452_v3 = vrot.slane %v3448_v15, 7  ;;  %v3493_v16 = vpop.f32.mrf.mxu1 }
0x2ee1   :  { %v3497_v17 = vrot.slane %v3493_v16, 7 }
0x2ee2   :  { %3453 = vrot.lane.b32.xlu1 %v3452_v3, %s8815_s10 }
0x2ee3   :  { %3498 = vrot.lane.b32.xlu2 %v3497_v17, %s8814_s27 }
0x2ee5   :  { %v3405_v28 = vpop.f32.mrf.mxu3 }
0x2ee6   :  { %v3520_v24 = vpop.f32.mrf.mxu2  ;;  %v3409_v6 = vrot.slane %v3405_v28, 7 }
0x2ee7   :  { %v3524_v26 = vrot.slane %v3520_v24, 7 }
0x2ee8   :  { %v3411_v32 = vadd.f32 %v3409_v6, %v9447_v12 }
0x2eea   :  { %v7912_v33 = vmul.f32 -1.442695, %v3411_v32 }
0x2f3d   :  { %v3499_v20 = vpop.permute.xlu2 %3498 }
0x2f3e   :  { %v3501_v22 = vadd.f32 %v3499_v20, %v9447_v12 }
0x2f40   :  { %8373 = vtanh.f32 %v3501_v22 }
0x2f41   :  { %8375 = vpow2.f32 %v7912_v33 }
0x2f46   :  { %v8374_v23 = vpop.eup %8373 }
0x2f47   :  { %3553 = vrot.lane.b32.xlu0 %v8374_v23, %s8816_s11  ;;  %v8376_v34 = vpop.eup %8375 }
0x2f48   :  { %v3415_v14 = vadd.f32 1.0, %v8376_v34 }
0x2f4a   :  { %8377 = vrcp.f32 %v3415_v14  ;;  %v3427_v43 = vand.u32 2147483648, %v3415_v14  ;;  %vm3421_vm4 = vweird.f32 %v3415_v14  ;;  %v3425_v5 = vand.u32 2147483647, %v3415_v14 }
0x2f4c   :  { %v3428_v30 = vor.u32 1.1754944e-38, %v3427_v43  ;;  %vm3426_vm6 = vcmp.eq.f32.partialorder %v3425_v5, 8.507059e+37 }
0x2f4f   :  { %3525 = vrot.lane.b32.xlu0 %v3524_v26, %s8817_s4 }
0x2f50   :  { %v8378_v38 = vpop.eup %8377 }
0x2f51   :  { %v3417_v39 = vmul.f32 %v8378_v38, %v3415_v14  ;;  %vm3422_vm2 = vweird.f32 %v8378_v38 }
0x2f52   :  { %vm3423_vm5 = vmor %vm3421_vm4, %vm3422_vm2 }
0x2f53   :  { %v3418_v40 = vsub.f32 1.0, %v3417_v39 }
0x2f54   :  { %v3454_v35 = vpop.permute.xlu1 %3453 }
0x2f55   :  { %v3419_v25 = vmul.f32 %v8378_v38, %v3418_v40  ;;  %v3456_v50 = vadd.f32 %v3454_v35, %v9447_v12 }
0x2f57   :  { %v3420_v42 = vadd.f32 %v8378_v38, %v3419_v25  ;;  %v7914_v44 = vmul.f32 -1.442695, %v3456_v50 }
0x2f59   :  { %v3424_v19 = vsel %vm3423_vm5, %v8378_v38, %v3420_v42  ;;  %8379 = vpow2.f32 %v7914_v44 }
0x2f5a   :  { %v3429_v46 = vsel %vm3426_vm6, %v3428_v30, %v3424_v19 }
0x2f5f   :  { %v8380_v37 = vpop.eup %8379 }
0x2f60   :  { %v3460_v53 = vadd.f32 1.0, %v8380_v37 }
0x2f62   :  { %8381 = vrcp.f32 %v3460_v53  ;;  %v3472_v21 = vand.u32 2147483648, %v3460_v53  ;;  %vm3466_vm9 = vweird.f32 %v3460_v53  ;;  %v3470_v9 = vand.u32 2147483647, %v3460_v53 }
0x2f64   :  { %v3473_v36 = vor.u32 1.1754944e-38, %v3472_v21  ;;  %vm3471_vm0 = vcmp.eq.f32.partialorder %v3470_v9, 8.507059e+37 }
0x2f68   :  { %v8382_v47 = vpop.eup %8381 }
0x2f69   :  { %v3462_v41 = vmul.f32 %v8382_v47, %v3460_v53  ;;  %vm3467_vm8 = vweird.f32 %v8382_v47 }
0x2f6a   :  { %vm3468_vm14 = vmor %vm3466_vm9, %vm3467_vm8 }
0x2f6b   :  { %v3463_v31 = vsub.f32 1.0, %v3462_v41 }
0x2f6d   :  { %v3464_v49 = vmul.f32 %v8382_v47, %v3463_v31 }
0x2f6f   :  { %v3465_v57 = vadd.f32 %v8382_v47, %v3464_v49 }
0x2f71   :  { %v3469_v60 = vsel %vm3468_vm14, %v8382_v47, %v3465_v57 }
0x2f72   :  { %v3474_v54 = vsel %vm3471_vm0, %v3473_v36, %v3469_v60 }
0x2f73   :  { %v3551_v55 = vmul.f32 %v3549_v61, %v3474_v54 }
0x2fb9   :  { %v3554_v45 = vpop.permute.xlu0 %3553 }
0x2fba   :  { %v3556_v48 = vmul.f32 %v3554_v45, %v3429_v46 }
0x2fbc   :  { %3558 = vrot.lane.b32.xlu2 %v3556_v48, %s8815_s10 }
0x2fc1   :  { %v3526_v51 = vpop.permute.xlu0 %3525 }
0x2fc2   :  { %v3528_v1 = vadd.f32 %v3526_v51, %v9447_v12 }
0x2fc4   :  { %v7917_v59 = vmul.f32 -1.442695, %v3528_v1 }
0x3016   :  { %v3559_v18 = vpop.permute.xlu2 %3558 }
0x3017   :  { %v9482_v63 = vadd.f32 %v3559_v18, %v3551_v55 }
0x3019   :  { %8383 = vtanh.f32 %v9482_v63 }
0x301a   :  { %8385 = vpow2.f32 %v7917_v59 }
0x301f   :  { %v8384_v0 = vpop.eup %8383 }
0x3020   :  { %3564 = vrot.lane.b32.xlu1 %v8384_v0, %s8814_s27  ;;  %v8386_v2 = vpop.eup %8385 }
0x3021   :  { %v3532_v58 = vadd.f32 1.0, %v8386_v2 }
0x3023   :  { %8387 = vrcp.f32 %v3532_v58  ;;  %v3544_v11 = vand.u32 2147483648, %v3532_v58  ;;  %vm3538_vm4 = vweird.f32 %v3532_v58  ;;  %v3542_v15 = vand.u32 2147483647, %v3532_v58 }
0x3025   :  { %v3545_v16 = vor.u32 1.1754944e-38, %v3544_v11  ;;  %vm3543_vm6 = vcmp.eq.f32.partialorder %v3542_v15, 8.507059e+37 }
0x3029   :  { %v8388_v8 = vpop.eup %8387 }
0x302a   :  { %v3534_v29 = vmul.f32 %v8388_v8, %v3532_v58  ;;  %vm3539_vm2 = vweird.f32 %v8388_v8  ;;  %v3735_v58 = vrot.slane %v9482_v63, 7 }
0x302b   :  { %vm3540_vm5 = vmor %vm3538_vm4, %vm3539_vm2 }
0x302c   :  { %v3535_v13 = vsub.f32 1.0, %v3534_v29 }
0x302e   :  { %v3536_v56 = vmul.f32 %v8388_v8, %v3535_v13 }
0x3030   :  { %v3537_v10 = vadd.f32 %v8388_v8, %v3536_v56 }
0x3032   :  { %v3541_v3 = vsel %vm3540_vm5, %v8388_v8, %v3537_v10 }
0x3033   :  { %v3546_v17 = vsel %vm3543_vm6, %v3545_v16, %v3541_v3 }
0x3092   :  { %v3565_v20 = vpop.permute.xlu1 %3564 }
0x3093   :  { %v9487_v22 = vmul.f32 %v3565_v20, %v3546_v17 }
0x3095   :  { %v3569_v23 = vrot.slane %v9487_v22, 1 }
0x3097   :  { %3570 = vrot.lane.b32.xlu2 %v3569_v23, %s8818_s13 }
0x30f1   :  { %v3571_v24 = vpop.permute.xlu2 %3570 }
0x30f2   :  { %7918 = vmatmul.msk.f32.vlgmr.msrb.gmra.mxu3 %vm112_vm1, %v3571_v24  ;;  %7920 = vmatmul.msk.f32.vlgmr.msrb.gmra.mxu0 %vm112_vm1, %v3571_v24 }
0x30f3   :  { %7922 = vmatmul.msk.f32.vlgmr.msrb.gmra.mxu1 %vm112_vm1, %v3571_v24  ;;  %7923 = vmatmul.msk.f32.vlgmr.msra.gmra.mxu2 %vm112_vm1, %v3571_v24 }
0x30f4   :  { %4049 = vmatpush.msrb.mxu1 %v9400_v27  ;;  %3961 = vmatpush.msrb.mxu3 %v9405_v52 }
0x30f5   :  { %4004 = vmatpush.msrb.mxu0 %v9410_v7  ;;  %4076 = vmatpush.msra.mxu2 %v9428_v4 }
0x316f   :  { %v3634_v26 = vpop.f32.mrf.mxu0 }
0x3170   :  { %v3638_v28 = vrot.slane %v3634_v26, 6  ;;  %v3679_v6 = vpop.f32.mrf.mxu1 }
0x3171   :  { %v3683_v32 = vrot.slane %v3679_v6, 6 }
0x3172   :  { %3639 = vrot.lane.b32.xlu2 %v3638_v28, %s8815_s10 }
0x3173   :  { %3684 = vrot.lane.b32.xlu0 %v3683_v32, %s8814_s27 }
0x3175   :  { %v3591_v40 = vpop.f32.mrf.mxu3 }
0x3176   :  { %v3706_v38 = vpop.f32.mrf.mxu2  ;;  %v3595_v25 = vrot.slane %v3591_v40, 6 }
0x3177   :  { %v3710_v39 = vrot.slane %v3706_v38, 6  ;;  %v4684_v38 = vsel %vm1622_vm10, %v9461_v62, %v9487_v22 }
0x3178   :  { %v3597_v42 = vadd.f32 %v3595_v25, %v9447_v12 }
0x317a   :  { %v7919_v43 = vmul.f32 -1.442695, %v3597_v42 }
0x31cc   :  { %v3640_v49 = vpop.permute.xlu2 %3639 }
0x31cd   :  { %v3642_v57 = vadd.f32 %v3640_v49, %v9447_v12 }
0x31cf   :  { %v7921_v21 = vmul.f32 -1.442695, %v3642_v57 }
0x31e5   :  { %v3685_v33 = vpop.permute.xlu0 %3684 }
0x31e6   :  { %v3687_v34 = vadd.f32 %v3685_v33, %v9447_v12 }
0x31e8   :  { %8389 = vtanh.f32 %v3687_v34 }
0x31e9   :  { %8391 = vpow2.f32 %v7919_v43 }
0x31ee   :  { %v8390_v14 = vpop.eup %8389 }
0x31ef   :  { %3739 = vrot.lane.b32.xlu1 %v8390_v14, %s8816_s11  ;;  %v8392_v5 = vpop.eup %8391 }
0x31f0   :  { %v3601_v19 = vadd.f32 1.0, %v8392_v5 }
0x31f2   :  { %8393 = vrcp.f32 %v3601_v19  ;;  %v3613_v50 = vand.u32 2147483648, %v3601_v19  ;;  %vm3607_vm9 = vweird.f32 %v3601_v19  ;;  %v3611_v44 = vand.u32 2147483647, %v3601_v19 }
0x31f3   :  { %8395 = vpow2.f32 %v7921_v21 }
0x31f4   :  { %v3614_v53 = vor.u32 1.1754944e-38, %v3613_v50  ;;  %vm3612_vm0 = vcmp.eq.f32.partialorder %v3611_v44, 8.507059e+37 }
0x31f7   :  { %3711 = vrot.lane.b32.xlu1 %v3710_v39, %s8817_s4 }
0x31f8   :  { %v8394_v30 = vpop.eup %8393 }
0x31f9   :  { %v3603_v45 = vmul.f32 %v8394_v30, %v3601_v19  ;;  %vm3608_vm8 = vweird.f32 %v8394_v30  ;;  %v8396_v9 = vpop.eup %8395 }
0x31fa   :  { %vm3609_vm14 = vmor %vm3607_vm9, %vm3608_vm8  ;;  %v3646_v60 = vadd.f32 1.0, %v8396_v9 }
0x31fb   :  { %v3604_v46 = vsub.f32 1.0, %v3603_v45 }
0x31fc   :  { %8397 = vrcp.f32 %v3646_v60  ;;  %v3658_v0 = vand.u32 2147483648, %v3646_v60  ;;  %vm3652_vm4 = vweird.f32 %v3646_v60  ;;  %v3656_v51 = vand.u32 2147483647, %v3646_v60 }
0x31fd   :  { %v3605_v48 = vmul.f32 %v8394_v30, %v3604_v46 }
0x31fe   :  { %v3659_v59 = vor.u32 1.1754944e-38, %v3658_v0  ;;  %vm3657_vm6 = vcmp.eq.f32.partialorder %v3656_v51, 8.507059e+37 }
0x31ff   :  { %v3606_v35 = vadd.f32 %v8394_v30, %v3605_v48 }
0x3201   :  { %v3610_v37 = vsel %vm3609_vm14, %v8394_v30, %v3606_v35 }
0x3202   :  { %v3615_v41 = vsel %vm3612_vm0, %v3614_v53, %v3610_v37  ;;  %v8398_v36 = vpop.eup %8397 }
0x3203   :  { %v3648_v54 = vmul.f32 %v8398_v36, %v3646_v60  ;;  %vm3653_vm2 = vweird.f32 %v8398_v36 }
0x3204   :  { %vm3654_vm5 = vmor %vm3652_vm4, %vm3653_vm2 }
0x3205   :  { %v3649_v61 = vsub.f32 1.0, %v3648_v54 }
0x3207   :  { %v3650_v55 = vmul.f32 %v8398_v36, %v3649_v61 }
0x3209   :  { %v3651_v18 = vadd.f32 %v8398_v36, %v3650_v55 }
0x320b   :  { %v3655_v1 = vsel %vm3654_vm5, %v8398_v36, %v3651_v18 }
0x320c   :  { %v3660_v2 = vsel %vm3657_vm6, %v3659_v59, %v3655_v1 }
0x320d   :  { %v3737_v8 = vmul.f32 %v3735_v58, %v3660_v2 }
0x3261   :  { %v3740_v47 = vpop.permute.xlu1 %3739 }
0x3262   :  { %v3742_v31 = vmul.f32 %v3740_v47, %v3615_v41 }
0x3264   :  { %3744 = vrot.lane.b32.xlu0 %v3742_v31, %s8815_s10 }
0x3269   :  { %v3712_v10 = vpop.permute.xlu1 %3711 }
0x326a   :  { %v3714_v11 = vadd.f32 %v3712_v10, %v9447_v12 }
0x326c   :  { %v7924_v15 = vmul.f32 -1.442695, %v3714_v11 }
0x32d6   :  { %v3745_v29 = vpop.permute.xlu0 %3744 }
0x32d7   :  { %v9508_v13 = vadd.f32 %v3745_v29, %v3737_v8 }
0x32d9   :  { %8399 = vtanh.f32 %v9508_v13 }
0x32da   :  { %8401 = vpow2.f32 %v7924_v15 }
0x32df   :  { %v8400_v56 = vpop.eup %8399 }
0x32e0   :  { %3750 = vrot.lane.b32.xlu2 %v8400_v56, %s8814_s27  ;;  %v8402_v3 = vpop.eup %8401 }
0x32e1   :  { %v3718_v16 = vadd.f32 1.0, %v8402_v3 }
0x32e3   :  { %8403 = vrcp.f32 %v3718_v16  ;;  %v3730_v26 = vand.u32 2147483648, %v3718_v16  ;;  %vm3724_vm9 = vweird.f32 %v3718_v16  ;;  %v3728_v28 = vand.u32 2147483647, %v3718_v16 }
0x32e5   :  { %v3731_v32 = vor.u32 1.1754944e-38, %v3730_v26  ;;  %vm3729_vm0 = vcmp.eq.f32.partialorder %v3728_v28, 8.507059e+37 }
0x32e9   :  { %v8404_v17 = vpop.eup %8403 }
0x32ea   :  { %v3720_v20 = vmul.f32 %v8404_v17, %v3718_v16  ;;  %vm3725_vm8 = vweird.f32 %v8404_v17 }
0x32eb   :  { %vm3726_vm14 = vmor %vm3724_vm9, %vm3725_vm8 }
0x32ec   :  { %v3721_v63 = vsub.f32 1.0, %v3720_v20 }
0x32ee   :  { %v3722_v23 = vmul.f32 %v8404_v17, %v3721_v63 }
0x32f0   :  { %v3723_v24 = vadd.f32 %v8404_v17, %v3722_v23 }
0x32f2   :  { %v3727_v6 = vsel %vm3726_vm14, %v8404_v17, %v3723_v24  ;;  %v3921_v17 = vrot.slane %v9508_v13, 7 }
0x32f3   :  { %v3732_v33 = vsel %vm3729_vm0, %v3731_v32, %v3727_v6 }
0x333a   :  { %v3751_v34 = vpop.permute.xlu2 %3750 }
0x333b   :  { %v3753_v14 = vmul.f32 %v3751_v34, %v3732_v33 }
0x333d   :  { %v3755_v39 = vrot.slane %v3753_v14, 2  ;;  %v9517_v40 = vsel %vm1624_vm12, %v4684_v38, %v3753_v14 }
0x333f   :  { %3756 = vrot.lane.b32.xlu0 %v3755_v39, %s8818_s13 }
0x33b1   :  { %v3757_v25 = vpop.permute.xlu0 %3756 }
0x33b2   :  { %7925 = vmatmul.msk.f32.vlgmr.msra.gmra.mxu3 %vm112_vm1, %v3757_v25  ;;  %7927 = vmatmul.msk.f32.vlgmr.msra.gmra.mxu0 %vm112_vm1, %v3757_v25 }
0x33b3   :  { %7929 = vmatmul.msk.f32.vlgmr.msra.gmra.mxu1 %vm112_vm1, %v3757_v25  ;;  %7930 = vmatmul.msk.f32.vlgmr.msrb.gmra.mxu2 %vm112_vm1, %v3757_v25 }
0x33b4   :  { %4235 = vmatpush.msra.mxu1 %v9400_v27  ;;  %4147 = vmatpush.msra.mxu3 %v9405_v52 }
0x33b5   :  { %4190 = vmatpush.msra.mxu0 %v9410_v7  ;;  %4262 = vmatpush.msrb.mxu2 %v9428_v4 }
0x342f   :  { %v3820_v62 = vpop.f32.mrf.mxu0 }
0x3430   :  { %v3824_v22 = vrot.slane %v3820_v62, 5  ;;  %v3865_v42 = vpop.f32.mrf.mxu1 }
0x3431   :  { %v3869_v43 = vrot.slane %v3865_v42, 5 }
0x3432   :  { %3825 = vrot.lane.b32.xlu0 %v3824_v22, %s8815_s10 }
0x3433   :  { %3870 = vrot.lane.b32.xlu1 %v3869_v43, %s8814_s27 }
0x3435   :  { %v3777_v48 = vpop.f32.mrf.mxu3 }
0x3436   :  { %v3892_v45 = vpop.f32.mrf.mxu2  ;;  %v3781_v35 = vrot.slane %v3777_v48, 5 }
0x3437   :  { %v3896_v46 = vrot.slane %v3892_v45, 5 }
0x3438   :  { %v3783_v50 = vadd.f32 %v3781_v35, %v9447_v12 }
0x343a   :  { %v7926_v44 = vmul.f32 -1.442695, %v3783_v50 }
0x34a4   :  { %v3826_v18 = vpop.permute.xlu0 %3825 }
0x34a5   :  { %v3871_v5 = vpop.permute.xlu1 %3870  ;;  %v3828_v0 = vadd.f32 %v3826_v18, %v9447_v12 }
0x34a6   :  { %v3873_v19 = vadd.f32 %v3871_v5, %v9447_v12 }
0x34a7   :  { %v7928_v51 = vmul.f32 -1.442695, %v3828_v0 }
0x34a8   :  { %8405 = vtanh.f32 %v3873_v19 }
0x34a9   :  { %8407 = vpow2.f32 %v7926_v44 }
0x34ae   :  { %v8406_v30 = vpop.eup %8405 }
0x34af   :  { %3925 = vrot.lane.b32.xlu2 %v8406_v30, %s8816_s11  ;;  %v8408_v37 = vpop.eup %8407 }
0x34b0   :  { %v3787_v53 = vadd.f32 1.0, %v8408_v37 }
0x34b2   :  { %8409 = vrcp.f32 %v3787_v53  ;;  %v3799_v21 = vand.u32 2147483648, %v3787_v53  ;;  %vm3793_vm4 = vweird.f32 %v3787_v53  ;;  %v3797_v9 = vand.u32 2147483647, %v3787_v53 }
0x34b3   :  { %8411 = vpow2.f32 %v7928_v51 }
0x34b4   :  { %v3800_v36 = vor.u32 1.1754944e-38, %v3799_v21  ;;  %vm3798_vm6 = vcmp.eq.f32.partialorder %v3797_v9, 8.507059e+37 }
0x34b7   :  { %3897 = vrot.lane.b32.xlu2 %v3896_v46, %s8817_s4 }
0x34b8   :  { %v8410_v47 = vpop.eup %8409 }
0x34b9   :  { %v3789_v41 = vmul.f32 %v8410_v47, %v3787_v53  ;;  %vm3794_vm2 = vweird.f32 %v8410_v47  ;;  %v8412_v1 = vpop.eup %8411 }
0x34ba   :  { %vm3795_vm5 = vmor %vm3793_vm4, %vm3794_vm2  ;;  %v3832_v59 = vadd.f32 1.0, %v8412_v1 }
0x34bb   :  { %v3790_v31 = vsub.f32 1.0, %v3789_v41 }
0x34bc   :  { %8413 = vrcp.f32 %v3832_v59  ;;  %v3844_v10 = vand.u32 2147483648, %v3832_v59  ;;  %vm3838_vm9 = vweird.f32 %v3832_v59  ;;  %v3842_v11 = vand.u32 2147483647, %v3832_v59 }
0x34bd   :  { %v3791_v49 = vmul.f32 %v8410_v47, %v3790_v31 }
0x34be   :  { %v3845_v3 = vor.u32 1.1754944e-38, %v3844_v10  ;;  %vm3843_vm0 = vcmp.eq.f32.partialorder %v3842_v11, 8.507059e+37 }
0x34bf   :  { %v3792_v57 = vadd.f32 %v8410_v47, %v3791_v49 }
0x34c1   :  { %v3796_v60 = vsel %vm3795_vm5, %v8410_v47, %v3792_v57 }
0x34c2   :  { %v3801_v61 = vsel %vm3798_vm6, %v3800_v36, %v3796_v60  ;;  %v8414_v2 = vpop.eup %8413 }
0x34c3   :  { %v3834_v58 = vmul.f32 %v8414_v2, %v3832_v59  ;;  %vm3839_vm8 = vweird.f32 %v8414_v2 }
0x34c4   :  { %vm3840_vm14 = vmor %vm3838_vm9, %vm3839_vm8 }
0x34c5   :  { %v3835_v8 = vsub.f32 1.0, %v3834_v58 }
0x34c7   :  { %v3836_v29 = vmul.f32 %v8414_v2, %v3835_v8 }
0x34c9   :  { %v3837_v56 = vadd.f32 %v8414_v2, %v3836_v29 }
0x34cb   :  { %v3841_v15 = vsel %vm3840_vm14, %v8414_v2, %v3837_v56 }
0x34cc   :  { %v3846_v16 = vsel %vm3843_vm0, %v3845_v3, %v3841_v15 }
0x34cd   :  { %v3923_v20 = vmul.f32 %v3921_v17, %v3846_v16 }
0x3509   :  { %v3926_v54 = vpop.permute.xlu2 %3925 }
0x350a   :  { %v3928_v55 = vmul.f32 %v3926_v54, %v3801_v61 }
0x350c   :  { %3930 = vrot.lane.b32.xlu1 %v3928_v55, %s8815_s10 }
0x3511   :  { %v3898_v26 = vpop.permute.xlu2 %3897 }
0x3512   :  { %v3900_v28 = vadd.f32 %v3898_v26, %v9447_v12 }
0x3514   :  { %v7931_v6 = vmul.f32 -1.442695, %v3900_v28 }
0x357e   :  { %v3931_v63 = vpop.permute.xlu1 %3930 }
0x357f   :  { %v9537_v23 = vadd.f32 %v3931_v63, %v3923_v20 }
0x3581   :  { %8415 = vtanh.f32 %v9537_v23  ;;  %v4107_v26 = vrot.slane %v9537_v23, 7 }
0x3582   :  { %8417 = vpow2.f32 %v7931_v6 }
0x3587   :  { %v8416_v24 = vpop.eup %8415 }
0x3588   :  { %3936 = vrot.lane.b32.xlu0 %v8416_v24, %s8814_s27  ;;  %v8418_v32 = vpop.eup %8417 }
0x3589   :  { %v3904_v33 = vadd.f32 1.0, %v8418_v32 }
0x358b   :  { %8419 = vrcp.f32 %v3904_v33  ;;  %v3916_v25 = vand.u32 2147483648, %v3904_v33  ;;  %vm3910_vm4 = vweird.f32 %v3904_v33  ;;  %v3914_v62 = vand.u32 2147483647, %v3904_v33 }
0x358d   :  { %v3917_v42 = vor.u32 1.1754944e-38, %v3916_v25  ;;  %vm3915_vm6 = vcmp.eq.f32.partialorder %v3914_v62, 8.507059e+37 }
0x3591   :  { %v8420_v34 = vpop.eup %8419 }
0x3592   :  { %v3906_v14 = vmul.f32 %v8420_v34, %v3904_v33  ;;  %vm3911_vm2 = vweird.f32 %v8420_v34 }
0x3593   :  { %vm3912_vm5 = vmor %vm3910_vm4, %vm3911_vm2 }
0x3594   :  { %v3907_v13 = vsub.f32 1.0, %v3906_v14 }
0x3596   :  { %v3908_v38 = vmul.f32 %v8420_v34, %v3907_v13 }
0x3598   :  { %v3909_v39 = vadd.f32 %v8420_v34, %v3908_v38 }
0x359a   :  { %v3913_v22 = vsel %vm3912_vm5, %v8420_v34, %v3909_v39 }
0x359b   :  { %v3918_v43 = vsel %vm3915_vm6, %v3917_v42, %v3913_v22 }
0x35fa   :  { %v3937_v5 = vpop.permute.xlu0 %3936 }
0x35fb   :  { %v3939_v19 = vmul.f32 %v3937_v5, %v3918_v43 }
0x35fd   :  { %v3941_v30 = vrot.slane %v3939_v19, 3  ;;  %v9544_v45 = vsel %vm1626_vm11, %v9517_v40, %v3939_v19 }
0x35ff   :  { %3942 = vrot.lane.b32.xlu1 %v3941_v30, %s8818_s13 }
0x3671   :  { %v3943_v46 = vpop.permute.xlu1 %3942 }
0x3672   :  { %7932 = vmatmul.msk.f32.vlgmr.msrb.gmra.mxu3 %vm112_vm1, %v3943_v46  ;;  %7934 = vmatmul.msk.f32.vlgmr.msrb.gmra.mxu0 %vm112_vm1, %v3943_v46 }
0x3673   :  { %7936 = vmatmul.msk.f32.vlgmr.msrb.gmra.mxu1 %vm112_vm1, %v3943_v46  ;;  %7937 = vmatmul.msk.f32.vlgmr.msra.gmra.mxu2 %vm112_vm1, %v3943_v46 }
0x3674   :  { %4421 = vmatpush.msrb.mxu1 %v9400_v27  ;;  %4333 = vmatpush.msrb.mxu3 %v9405_v52 }
0x3675   :  { %4376 = vmatpush.msrb.mxu0 %v9410_v7  ;;  %4448 = vmatpush.msra.mxu2 %v9428_v4 }
0x36ef   :  { %v4006_v40 = vpop.f32.mrf.mxu0 }
0x36f0   :  { %v4010_v48 = vrot.slane %v4006_v40, 4  ;;  %v4051_v35 = vpop.f32.mrf.mxu1 }
0x36f1   :  { %v4055_v50 = vrot.slane %v4051_v35, 4 }
0x36f2   :  { %4011 = vrot.lane.b32.xlu1 %v4010_v48, %s8815_s10 }
0x36f3   :  { %4056 = vrot.lane.b32.xlu2 %v4055_v50, %s8814_s27 }
0x36f5   :  { %v3963_v7 = vpop.f32.mrf.mxu3 }
0x36f6   :  { %v4078_v27 = vpop.f32.mrf.mxu2  ;;  %v3967_v4 = vrot.slane %v3963_v7, 4 }
0x36f7   :  { %v4082_v52 = vrot.slane %v4078_v27, 4  ;;  %v8752_v27 = vld [vmem:[%s10167_s6 + $0x58] sm:$0xff] }
0x36f8   :  { %v3969_v47 = vadd.f32 %v3967_v4, %v9447_v12 }
0x36fa   :  { %v7933_v41 = vmul.f32 -1.442695, %v3969_v47 }
0x374d   :  { %v4057_v44 = vpop.permute.xlu2 %4056 }
0x374e   :  { %v4059_v37 = vadd.f32 %v4057_v44, %v9447_v12 }
0x3750   :  { %8421 = vtanh.f32 %v4059_v37  ;;  %v8749_v37 = vld [vmem:[%s10167_s6 + $0x50] sm:$0xff] }
0x3751   :  { %8423 = vpow2.f32 %v7933_v41 }
0x3756   :  { %v8422_v53 = vpop.eup %8421 }
0x3757   :  { %4111 = vrot.lane.b32.xlu0 %v8422_v53, %s8816_s11  ;;  %v8424_v31 = vpop.eup %8423  ;;  %v8751_v53 = vld [vmem:[%s10167_s6 + $0x48] sm:$0xff] }
0x3758   :  { %v3973_v49 = vadd.f32 1.0, %v8424_v31 }
0x375a   :  { %8425 = vrcp.f32 %v3973_v49  ;;  %v3985_v54 = vand.u32 2147483648, %v3973_v49  ;;  %vm3979_vm9 = vweird.f32 %v3973_v49  ;;  %v3983_v61 = vand.u32 2147483647, %v3973_v49 }
0x375c   :  { %v3986_v18 = vor.u32 1.1754944e-38, %v3985_v54  ;;  %vm3984_vm0 = vcmp.eq.f32.partialorder %v3983_v61, 8.507059e+37 }
0x375f   :  { %4083 = vrot.lane.b32.xlu0 %v4082_v52, %s8817_s4 }
0x3760   :  { %v8426_v57 = vpop.eup %8425 }
0x3761   :  { %v3975_v21 = vmul.f32 %v8426_v57, %v3973_v49  ;;  %vm3980_vm8 = vweird.f32 %v8426_v57 }
0x3762   :  { %vm3981_vm14 = vmor %vm3979_vm9, %vm3980_vm8 }
0x3763   :  { %v3976_v9 = vsub.f32 1.0, %v3975_v21 }
0x3764   :  { %v4012_v59 = vpop.permute.xlu1 %4011 }
0x3765   :  { %v3977_v60 = vmul.f32 %v8426_v57, %v3976_v9  ;;  %v4014_v2 = vadd.f32 %v4012_v59, %v9447_v12 }
0x3767   :  { %v3978_v36 = vadd.f32 %v8426_v57, %v3977_v60  ;;  %v7935_v58 = vmul.f32 -1.442695, %v4014_v2 }
0x3769   :  { %v3982_v55 = vsel %vm3981_vm14, %v8426_v57, %v3978_v36  ;;  %8427 = vpow2.f32 %v7935_v58 }
0x376a   :  { %v3987_v51 = vsel %vm3984_vm0, %v3986_v18, %v3982_v55 }
0x376f   :  { %v8428_v8 = vpop.eup %8427 }
0x3770   :  { %v4018_v29 = vadd.f32 1.0, %v8428_v8 }
0x3772   :  { %8429 = vrcp.f32 %v4018_v29  ;;  %v4030_v16 = vand.u32 2147483648, %v4018_v29  ;;  %vm4024_vm4 = vweird.f32 %v4018_v29  ;;  %v4028_v17 = vand.u32 2147483647, %v4018_v29 }
0x3774   :  { %v4031_v63 = vor.u32 1.1754944e-38, %v4030_v16  ;;  %vm4029_vm6 = vcmp.eq.f32.partialorder %v4028_v17, 8.507059e+37 }
0x3778   :  { %v8430_v56 = vpop.eup %8429 }
0x3779   :  { %v4020_v10 = vmul.f32 %v8430_v56, %v4018_v29  ;;  %vm4025_vm2 = vweird.f32 %v8430_v56 }
0x377a   :  { %vm4026_vm5 = vmor %vm4024_vm4, %vm4025_vm2 }
0x377b   :  { %v4021_v11 = vsub.f32 1.0, %v4020_v10 }
0x377d   :  { %v4022_v15 = vmul.f32 %v8430_v56, %v4021_v11 }
0x377f   :  { %v4023_v3 = vadd.f32 %v8430_v56, %v4022_v15 }
0x3781   :  { %v4027_v20 = vsel %vm4026_vm5, %v8430_v56, %v4023_v3 }
0x3782   :  { %v4032_v24 = vsel %vm4029_vm6, %v4031_v63, %v4027_v20 }
0x3783   :  { %v4109_v28 = vmul.f32 %v4107_v26, %v4032_v24 }
0x37c9   :  { %v4112_v0 = vpop.permute.xlu0 %4111 }
0x37ca   :  { %v4114_v1 = vmul.f32 %v4112_v0, %v3987_v51 }
0x37cc   :  { %4116 = vrot.lane.b32.xlu2 %v4114_v1, %s8815_s10 }
0x37d1   :  { %v4084_v34 = vpop.permute.xlu0 %4083 }
0x37d2   :  { %v4086_v14 = vadd.f32 %v4084_v34, %v9447_v12 }
0x37d4   :  { %v7938_v13 = vmul.f32 -1.442695, %v4086_v14 }
0x3826   :  { %v4117_v6 = vpop.permute.xlu2 %4116 }
0x3827   :  { %v9564_v32 = vadd.f32 %v4117_v6, %v4109_v28 }
0x3829   :  { %8431 = vtanh.f32 %v9564_v32 }
0x382a   :  { %8433 = vpow2.f32 %v7938_v13 }
0x382f   :  { %v8432_v33 = vpop.eup %8431 }
0x3830   :  { %4122 = vrot.lane.b32.xlu1 %v8432_v33, %s8814_s27  ;;  %v8434_v38 = vpop.eup %8433 }
0x3831   :  { %v4090_v39 = vadd.f32 1.0, %v8434_v38 }
0x3833   :  { %8435 = vrcp.f32 %v4090_v39  ;;  %v4102_v43 = vand.u32 2147483648, %v4090_v39  ;;  %vm4096_vm9 = vweird.f32 %v4090_v39  ;;  %v4100_v5 = vand.u32 2147483647, %v4090_v39 }
0x3835   :  { %v4103_v30 = vor.u32 1.1754944e-38, %v4102_v43  ;;  %vm4101_vm0 = vcmp.eq.f32.partialorder %v4100_v5, 8.507059e+37 }
0x3839   :  { %v8436_v25 = vpop.eup %8435 }
0x383a   :  { %v4092_v62 = vmul.f32 %v8436_v25, %v4090_v39  ;;  %vm4097_vm8 = vweird.f32 %v8436_v25  ;;  %v4293_v39 = vrot.slane %v9564_v32, 7 }
0x383b   :  { %vm4098_vm14 = vmor %vm4096_vm9, %vm4097_vm8 }
0x383c   :  { %v4093_v23 = vsub.f32 1.0, %v4092_v62 }
0x383e   :  { %v4094_v22 = vmul.f32 %v8436_v25, %v4093_v23 }
0x3840   :  { %v4095_v42 = vadd.f32 %v8436_v25, %v4094_v22 }
0x3842   :  { %v4099_v19 = vsel %vm4098_vm14, %v8436_v25, %v4095_v42 }
0x3843   :  { %v4104_v46 = vsel %vm4101_vm0, %v4103_v30, %v4099_v19 }
0x38a2   :  { %v4123_v40 = vpop.permute.xlu1 %4122 }
0x38a3   :  { %v4125_v48 = vmul.f32 %v4123_v40, %v4104_v46 }
0x38a5   :  { %v4127_v35 = vrot.slane %v4125_v48, 4  ;;  %v9571_v50 = vsel %vm1628_vm13, %v9544_v45, %v4125_v48  ;;  %v8750_v45 = vld [vmem:[%s10167_s6 + $0x40] sm:$0xff] }
0x38a7   :  { %4128 = vrot.lane.b32.xlu2 %v4127_v35, %s8818_s13 }
0x3901   :  { %v4129_v44 = vpop.permute.xlu2 %4128 }
0x3902   :  { %7939 = vmatmul.msk.f32.vlgmr.msra.gmra.mxu3 %vm112_vm1, %v4129_v44  ;;  %7941 = vmatmul.msk.f32.vlgmr.msra.gmra.mxu0 %vm112_vm1, %v4129_v44 }
0x3903   :  { %7943 = vmatmul.msk.f32.vlgmr.msra.gmra.mxu1 %vm112_vm1, %v4129_v44  ;;  %7944 = vmatmul.msk.f32.vlgmr.msrb.gmra.mxu2 %vm112_vm1, %v4129_v44 }
0x3904   :  { %4607 = vmatpush.msra.mxu1 %v8749_v37  ;;  %4519 = vmatpush.msra.mxu3 %v8750_v45 }
0x3905   :  { %4562 = vmatpush.msra.mxu0 %v8751_v53  ;;  %4634 = vmatpush.msrb.mxu2 %v8752_v27 }
0x397f   :  { %v4192_v52 = vpop.f32.mrf.mxu0 }
0x3980   :  { %v4196_v7 = vrot.slane %v4192_v52, 3  ;;  %v4237_v4 = vpop.f32.mrf.mxu1 }
0x3981   :  { %v4241_v47 = vrot.slane %v4237_v4, 3 }
0x3982   :  { %4197 = vrot.lane.b32.xlu2 %v4196_v7, %s8815_s10 }
0x3983   :  { %4242 = vrot.lane.b32.xlu0 %v4241_v47, %s8814_s27 }
0x3985   :  { %v4149_v9 = vpop.f32.mrf.mxu3 }
0x3986   :  { %v4264_v57 = vpop.f32.mrf.mxu2  ;;  %v4153_v60 = vrot.slane %v4149_v9, 3 }
0x3987   :  { %v4268_v21 = vrot.slane %v4264_v57, 3 }
0x3988   :  { %v4155_v36 = vadd.f32 %v4153_v60, %v9447_v12 }
0x398a   :  { %v7940_v54 = vmul.f32 -1.442695, %v4155_v36 }
0x39dc   :  { %v4198_v15 = vpop.permute.xlu2 %4197 }
0x39dd   :  { %v4200_v3 = vadd.f32 %v4198_v15, %v9447_v12 }
0x39df   :  { %v7942_v16 = vmul.f32 -1.442695, %v4200_v3 }
0x39f5   :  { %v4243_v41 = vpop.permute.xlu0 %4242 }
0x39f6   :  { %v4245_v31 = vadd.f32 %v4243_v41, %v9447_v12 }
0x39f8   :  { %8437 = vtanh.f32 %v4245_v31 }
0x39f9   :  { %8439 = vpow2.f32 %v7940_v54 }
0x39fe   :  { %v8438_v49 = vpop.eup %8437 }
0x39ff   :  { %4297 = vrot.lane.b32.xlu1 %v8438_v49, %s8816_s11  ;;  %v8440_v61 = vpop.eup %8439 }
0x3a00   :  { %v4159_v55 = vadd.f32 1.0, %v8440_v61 }
0x3a02   :  { %8441 = vrcp.f32 %v4159_v55  ;;  %v4171_v2 = vand.u32 2147483648, %v4159_v55  ;;  %vm4165_vm4 = vweird.f32 %v4159_v55  ;;  %v4169_v58 = vand.u32 2147483647, %v4159_v55 }
0x3a03   :  { %8443 = vpow2.f32 %v7942_v16 }
0x3a04   :  { %v4172_v29 = vor.u32 1.1754944e-38, %v4171_v2  ;;  %vm4170_vm6 = vcmp.eq.f32.partialorder %v4169_v58, 8.507059e+37 }
0x3a07   :  { %4269 = vrot.lane.b32.xlu1 %v4268_v21, %s8817_s4 }
0x3a08   :  { %v8442_v18 = vpop.eup %8441 }
0x3a09   :  { %v4161_v0 = vmul.f32 %v8442_v18, %v4159_v55  ;;  %vm4166_vm2 = vweird.f32 %v8442_v18  ;;  %v8444_v17 = vpop.eup %8443 }
0x3a0a   :  { %vm4167_vm5 = vmor %vm4165_vm4, %vm4166_vm2  ;;  %v4204_v20 = vadd.f32 1.0, %v8444_v17 }
0x3a0b   :  { %v4162_v51 = vsub.f32 1.0, %v4161_v0 }
0x3a0c   :  { %8445 = vrcp.f32 %v4204_v20  ;;  %v4216_v33 = vand.u32 2147483648, %v4204_v20  ;;  %vm4210_vm9 = vweird.f32 %v4204_v20  ;;  %v4214_v34 = vand.u32 2147483647, %v4204_v20 }
0x3a0d   :  { %v4163_v1 = vmul.f32 %v8442_v18, %v4162_v51 }
0x3a0e   :  { %v4217_v13 = vor.u32 1.1754944e-38, %v4216_v33  ;;  %vm4215_vm0 = vcmp.eq.f32.partialorder %v4214_v34, 8.507059e+37 }
0x3a0f   :  { %v4164_v59 = vadd.f32 %v8442_v18, %v4163_v1 }
0x3a11   :  { %v4168_v8 = vsel %vm4167_vm5, %v8442_v18, %v4164_v59 }
0x3a12   :  { %v4173_v10 = vsel %vm4170_vm6, %v4172_v29, %v4168_v8  ;;  %v8446_v63 = vpop.eup %8445 }
0x3a13   :  { %v4206_v24 = vmul.f32 %v8446_v63, %v4204_v20  ;;  %vm4211_vm8 = vweird.f32 %v8446_v63 }
0x3a14   :  { %vm4212_vm14 = vmor %vm4210_vm9, %vm4211_vm8 }
0x3a15   :  { %v4207_v26 = vsub.f32 1.0, %v4206_v24 }
0x3a17   :  { %v4208_v28 = vmul.f32 %v8446_v63, %v4207_v26 }
0x3a19   :  { %v4209_v6 = vadd.f32 %v8446_v63, %v4208_v28 }
0x3a1b   :  { %v4213_v14 = vsel %vm4212_vm14, %v8446_v63, %v4209_v6 }
0x3a1c   :  { %v4218_v38 = vsel %vm4215_vm0, %v4217_v13, %v4213_v14 }
0x3a1d   :  { %v4295_v25 = vmul.f32 %v4293_v39, %v4218_v38 }
0x3a71   :  { %v4298_v56 = vpop.permute.xlu1 %4297 }
0x3a72   :  { %v4300_v11 = vmul.f32 %v4298_v56, %v4173_v10 }
0x3a74   :  { %4302 = vrot.lane.b32.xlu0 %v4300_v11, %s8815_s10 }
0x3a79   :  { %v4270_v42 = vpop.permute.xlu1 %4269 }
0x3a7a   :  { %v4272_v43 = vadd.f32 %v4270_v42, %v9447_v12 }
0x3a7c   :  { %v7945_v5 = vmul.f32 -1.442695, %v4272_v43 }
0x3ae6   :  { %v4303_v62 = vpop.permute.xlu0 %4302 }
0x3ae7   :  { %v9599_v23 = vadd.f32 %v4303_v62, %v4295_v25 }
0x3ae9   :  { %8447 = vtanh.f32 %v9599_v23  ;;  %v4479_v42 = vrot.slane %v9599_v23, 7 }
0x3aea   :  { %8449 = vpow2.f32 %v7945_v5 }
0x3aef   :  { %v8448_v22 = vpop.eup %8447 }
0x3af0   :  { %4308 = vrot.lane.b32.xlu2 %v8448_v22, %s8814_s27  ;;  %v8450_v19 = vpop.eup %8449 }
0x3af1   :  { %v4276_v30 = vadd.f32 1.0, %v8450_v19 }
0x3af3   :  { %8451 = vrcp.f32 %v4276_v30  ;;  %v4288_v44 = vand.u32 2147483648, %v4276_v30  ;;  %vm4282_vm4 = vweird.f32 %v4276_v30  ;;  %v4286_v37 = vand.u32 2147483647, %v4276_v30 }
0x3af5   :  { %v4289_v53 = vor.u32 1.1754944e-38, %v4288_v44  ;;  %vm4287_vm6 = vcmp.eq.f32.partialorder %v4286_v37, 8.507059e+37 }
0x3af9   :  { %v8452_v46 = vpop.eup %8451 }
0x3afa   :  { %v4278_v40 = vmul.f32 %v8452_v46, %v4276_v30  ;;  %vm4283_vm2 = vweird.f32 %v8452_v46 }
0x3afb   :  { %vm4284_vm5 = vmor %vm4282_vm4, %vm4283_vm2 }
0x3afc   :  { %v4279_v32 = vsub.f32 1.0, %v4278_v40 }
0x3afe   :  { %v4280_v48 = vmul.f32 %v8452_v46, %v4279_v32 }
0x3b00   :  { %v4281_v35 = vadd.f32 %v8452_v46, %v4280_v48 }
0x3b02   :  { %v4285_v45 = vsel %vm4284_vm5, %v8452_v46, %v4281_v35 }
0x3b03   :  { %v4290_v27 = vsel %vm4287_vm6, %v4289_v53, %v4285_v45 }
0x3b4a   :  { %v4309_v52 = vpop.permute.xlu2 %4308 }
0x3b4b   :  { %v4311_v7 = vmul.f32 %v4309_v52, %v4290_v27 }
0x3b4d   :  { %v4313_v4 = vrot.slane %v4311_v7, 5  ;;  %v9606_v47 = vsel %vm1630_vm15, %v9571_v50, %v4311_v7 }
0x3b4f   :  { %4314 = vrot.lane.b32.xlu0 %v4313_v4, %s8818_s13 }
0x3bc1   :  { %v4315_v41 = vpop.permute.xlu0 %4314 }
0x3bc2   :  { %7946 = vmatmul.msk.f32.vlgmr.msrb.gmra.mxu3 %vm112_vm1, %v4315_v41  ;;  %7948 = vmatmul.msk.f32.vlgmr.msrb.gmra.mxu0 %vm112_vm1, %v4315_v41 }
0x3bc3   :  { %7950 = vmatmul.msk.f32.vlgmr.msrb.gmra.mxu1 %vm112_vm1, %v4315_v41  ;;  %7951 = vmatmul.msk.f32.vlgmr.msra.gmra.mxu2 %vm112_vm1, %v4315_v41 }
0x3c3f   :  { %v4378_v31 = vpop.f32.mrf.mxu0 }
0x3c40   :  { %v4382_v49 = vrot.slane %v4378_v31, 2  ;;  %v4423_v57 = vpop.f32.mrf.mxu1 }
0x3c41   :  { %v4427_v21 = vrot.slane %v4423_v57, 2 }
0x3c42   :  { %4383 = vrot.lane.b32.xlu0 %v4382_v49, %s8815_s10 }
0x3c43   :  { %4428 = vrot.lane.b32.xlu1 %v4427_v21, %s8814_s27 }
0x3c45   :  { %v4335_v61 = vpop.f32.mrf.mxu3 }
0x3c46   :  { %v4450_v36 = vpop.f32.mrf.mxu2  ;;  %v4339_v55 = vrot.slane %v4335_v61, 2 }
0x3c47   :  { %v4454_v54 = vrot.slane %v4450_v36, 2 }
0x3c48   :  { %v4341_v18 = vadd.f32 %v4339_v55, %v9447_v12 }
0x3c4a   :  { %v7947_v0 = vmul.f32 -1.442695, %v4341_v18 }
0x3cb4   :  { %v4384_v20 = vpop.permute.xlu0 %4383 }
0x3cb5   :  { %v4429_v50 = vpop.permute.xlu1 %4428  ;;  %v4386_v63 = vadd.f32 %v4384_v20, %v9447_v12 }
0x3cb6   :  { %v4431_v9 = vadd.f32 %v4429_v50, %v9447_v12 }
0x3cb7   :  { %v7949_v24 = vmul.f32 -1.442695, %v4386_v63 }
0x3cb8   :  { %8453 = vtanh.f32 %v4431_v9 }
0x3cb9   :  { %8455 = vpow2.f32 %v7947_v0 }
0x3cbe   :  { %v8454_v60 = vpop.eup %8453 }
0x3cbf   :  { %4483 = vrot.lane.b32.xlu2 %v8454_v60, %s8816_s11  ;;  %v8456_v51 = vpop.eup %8455 }
0x3cc0   :  { %v4345_v1 = vadd.f32 1.0, %v8456_v51 }
0x3cc2   :  { %8457 = vrcp.f32 %v4345_v1  ;;  %v4357_v56 = vand.u32 2147483648, %v4345_v1  ;;  %vm4351_vm9 = vweird.f32 %v4345_v1  ;;  %v4355_v10 = vand.u32 2147483647, %v4345_v1 }
0x3cc3   :  { %8459 = vpow2.f32 %v7949_v24 }
0x3cc4   :  { %v4358_v15 = vor.u32 1.1754944e-38, %v4357_v56  ;;  %vm4356_vm0 = vcmp.eq.f32.partialorder %v4355_v10, 8.507059e+37 }
0x3cc7   :  { %4455 = vrot.lane.b32.xlu2 %v4454_v54, %s8817_s4 }
0x3cc8   :  { %v8458_v59 = vpop.eup %8457 }
0x3cc9   :  { %v4347_v2 = vmul.f32 %v8458_v59, %v4345_v1  ;;  %vm4352_vm8 = vweird.f32 %v8458_v59  ;;  %v8460_v26 = vpop.eup %8459 }
0x3cca   :  { %vm4353_vm14 = vmor %vm4351_vm9, %vm4352_vm8  ;;  %v4390_v28 = vadd.f32 1.0, %v8460_v26 }
0x3ccb   :  { %v4348_v58 = vsub.f32 1.0, %v4347_v2 }
0x3ccc   :  { %8461 = vrcp.f32 %v4390_v28  ;;  %v4402_v38 = vand.u32 2147483648, %v4390_v28  ;;  %vm4396_vm4 = vweird.f32 %v4390_v28  ;;  %v4400_v39 = vand.u32 2147483647, %v4390_v28 }
0x3ccd   :  { %v4349_v8 = vmul.f32 %v8458_v59, %v4348_v58 }
0x3cce   :  { %v4403_v62 = vor.u32 1.1754944e-38, %v4402_v38  ;;  %vm4401_vm6 = vcmp.eq.f32.partialorder %v4400_v39, 8.507059e+37 }
0x3ccf   :  { %v4350_v29 = vadd.f32 %v8458_v59, %v4349_v8 }
0x3cd1   :  { %v4354_v11 = vsel %vm4353_vm14, %v8458_v59, %v4350_v29 }
0x3cd2   :  { %v4359_v16 = vsel %vm4356_vm0, %v4358_v15, %v4354_v11  ;;  %v8462_v6 = vpop.eup %8461 }
0x3cd3   :  { %v4392_v33 = vmul.f32 %v8462_v6, %v4390_v28  ;;  %vm4397_vm2 = vweird.f32 %v8462_v6 }
0x3cd4   :  { %vm4398_vm5 = vmor %vm4396_vm4, %vm4397_vm2 }
0x3cd5   :  { %v4393_v34 = vsub.f32 1.0, %v4392_v33 }
0x3cd7   :  { %v4394_v14 = vmul.f32 %v8462_v6, %v4393_v34 }
0x3cd9   :  { %v4395_v13 = vadd.f32 %v8462_v6, %v4394_v14 }
0x3cdb   :  { %v4399_v25 = vsel %vm4398_vm5, %v8462_v6, %v4395_v13 }
0x3cdc   :  { %v4404_v22 = vsel %vm4401_vm6, %v4403_v62, %v4399_v25 }
0x3cdd   :  { %v4481_v43 = vmul.f32 %v4479_v42, %v4404_v22 }
0x3d19   :  { %v4484_v3 = vpop.permute.xlu2 %4483 }
0x3d1a   :  { %v4486_v17 = vmul.f32 %v4484_v3, %v4359_v16 }
0x3d1c   :  { %4488 = vrot.lane.b32.xlu1 %v4486_v17, %s8815_s10 }
0x3d21   :  { %v4456_v46 = vpop.permute.xlu2 %4455 }
0x3d22   :  { %v4458_v40 = vadd.f32 %v4456_v46, %v9447_v12 }
0x3d24   :  { %v7952_v32 = vmul.f32 -1.442695, %v4458_v40 }
0x3d8e   :  { %v4489_v5 = vpop.permute.xlu1 %4488 }
0x3d8f   :  { %v9622_v19 = vadd.f32 %v4489_v5, %v4481_v43 }
0x3d91   :  { %8463 = vtanh.f32 %v9622_v19  ;;  %v4665_v46 = vrot.slane %v9622_v19, 7  ;;  %v9653_v19 = vld [vmem:[%s10167_s6 + $0x70] sm:$0xff] }
0x3d92   :  { %8465 = vpow2.f32 %v7952_v32  ;;  %4836 = vmatpush.msra.mxu2 %v9653_v19 }
0x3d97   :  { %v8464_v30 = vpop.eup %8463 }
0x3d98   :  { %4494 = vrot.lane.b32.xlu0 %v8464_v30, %s8814_s27  ;;  %v8466_v48 = vpop.eup %8465 }
0x3d99   :  { %v4462_v35 = vadd.f32 1.0, %v8466_v48 }
0x3d9b   :  { %8467 = vrcp.f32 %v4462_v35  ;;  %v4474_v27 = vand.u32 2147483648, %v4462_v35  ;;  %vm4468_vm9 = vweird.f32 %v4462_v35  ;;  %v4472_v52 = vand.u32 2147483647, %v4462_v35 }
0x3d9d   :  { %v4475_v4 = vor.u32 1.1754944e-38, %v4474_v27  ;;  %vm4473_vm0 = vcmp.eq.f32.partialorder %v4472_v52, 8.507059e+37  ;;  %v9658_v27 = vld [vmem:[%s10167_s6 + $0x60] sm:$0xff]  ;;  %v9663_v52 = vld [vmem:[%s10167_s6 + $0x68] sm:$0xff] }
0x3d9e   :  { %4752 = vmatpush.msrb.mxu0 %v9658_v27  ;;  %4792 = vmatpush.msrb.mxu1 %v9663_v52 }
0x3da1   :  { %v8468_v44 = vpop.eup %8467 }
0x3da2   :  { %v4464_v37 = vmul.f32 %v8468_v44, %v4462_v35  ;;  %vm4469_vm8 = vweird.f32 %v8468_v44 }
0x3da3   :  { %vm4470_vm14 = vmor %vm4468_vm9, %vm4469_vm8 }
0x3da4   :  { %v4465_v23 = vsub.f32 1.0, %v4464_v37 }
0x3da6   :  { %v4466_v45 = vmul.f32 %v8468_v44, %v4465_v23 }
0x3da8   :  { %v4467_v53 = vadd.f32 %v8468_v44, %v4466_v45 }
0x3daa   :  { %v4471_v7 = vsel %vm4470_vm14, %v8468_v44, %v4467_v53 }
0x3dab   :  { %v4476_v41 = vsel %vm4473_vm0, %v4475_v4, %v4471_v7 }
0x3e0a   :  { %v4495_v31 = vpop.permute.xlu0 %4494 }
0x3e0b   :  { %v4497_v49 = vmul.f32 %v4495_v31, %v4476_v41 }
0x3e0d   :  { %v4499_v57 = vrot.slane %v4497_v49, 6  ;;  %v9629_v21 = vsel %vm1632_vm3, %v9606_v47, %v4497_v49 }
0x3e0f   :  { %4500 = vrot.lane.b32.xlu1 %v4499_v57, %s8818_s13 }
0x3e81   :  { %v4501_v50 = vpop.permute.xlu1 %4500 }
0x3e82   :  { %7953 = vmatmul.msk.f32.vlgmr.msra.gmra.mxu3 %vm112_vm1, %v4501_v50  ;;  %7955 = vmatmul.msk.f32.vlgmr.msra.gmra.mxu0 %vm112_vm1, %v4501_v50 }
0x3e83   :  { %7957 = vmatmul.msk.f32.vlgmr.msra.gmra.mxu1 %vm112_vm1, %v4501_v50  ;;  %7958 = vmatmul.msk.f32.vlgmr.msrb.gmra.mxu2 %vm112_vm1, %v4501_v50 }
0x3e84   :  { %5019 = vmatpush.msrb.mxu2 %v9653_v19  ;;  %4931 = vmatpush.msra.mxu0 %v9658_v27 }
0x3e85   :  { %4974 = vmatpush.msra.mxu1 %v9663_v52 }
0x3eff   :  { %v4564_v9 = vpop.f32.mrf.mxu0 }
0x3f00   :  { %v4568_v60 = vrot.slane %v4564_v9, 1  ;;  %v4609_v36 = vpop.f32.mrf.mxu1 }
0x3f01   :  { %v4613_v54 = vrot.slane %v4609_v36, 1 }
0x3f02   :  { %4569 = vrot.lane.b32.xlu1 %v4568_v60, %s8815_s10 }
0x3f03   :  { %4614 = vrot.lane.b32.xlu2 %v4613_v54, %s8814_s27 }
0x3f05   :  { %v4521_v51 = vpop.f32.mrf.mxu3 }
0x3f06   :  { %v4636_v18 = vpop.f32.mrf.mxu2  ;;  %v4525_v1 = vrot.slane %v4521_v51, 1 }
0x3f07   :  { %v4640_v0 = vrot.slane %v4636_v18, 1  ;;  %v9681_v18 = vld [vmem:[%s10167_s6 + $0x78] sm:$0xff] }
0x3f08   :  { %v4527_v59 = vadd.f32 %v4525_v1, %v9447_v12 }
0x3f0a   :  { %v7954_v2 = vmul.f32 -1.442695, %v4527_v59  ;;  %v8099_v59 = vld [vmem:[%s10166_s5 + $0x38] ss:$0 sm:$0xff] }
0x3f5d   :  { %v4615_v47 = vpop.permute.xlu2 %4614 }
0x3f5e   :  { %v4617_v61 = vadd.f32 %v4615_v47, %v9447_v12 }
0x3f60   :  { %8469 = vtanh.f32 %v4617_v61 }
0x3f61   :  { %8471 = vpow2.f32 %v7954_v2 }
0x3f66   :  { %v8470_v55 = vpop.eup %8469 }
0x3f67   :  { %4669 = vrot.lane.b32.xlu0 %v8470_v55, %s8816_s11  ;;  %v8472_v58 = vpop.eup %8471  ;;  %v7960_v55 = vld [vmem:[%s10166_s5 + $0x30] sm:$0xff] }
0x3f68   :  { %v4531_v8 = vadd.f32 1.0, %v8472_v58  ;;  %4718 = vmatpush.msrb.mxu3 %v7960_v55 }
0x3f6a   :  { %8473 = vrcp.f32 %v4531_v8  ;;  %v4543_v3 = vand.u32 2147483648, %v4531_v8  ;;  %vm4537_vm4 = vweird.f32 %v4531_v8  ;;  %v4541_v16 = vand.u32 2147483647, %v4531_v8  ;;  %4862 = vmatpush.msra.mxu3 %v9681_v18 }
0x3f6c   :  { %v4544_v20 = vor.u32 1.1754944e-38, %v4543_v3  ;;  %vm4542_vm6 = vcmp.eq.f32.partialorder %v4541_v16, 8.507059e+37 }
0x3f6f   :  { %4641 = vrot.lane.b32.xlu0 %v4640_v0, %s8817_s4 }
0x3f70   :  { %v8474_v29 = vpop.eup %8473 }
0x3f71   :  { %v4533_v56 = vmul.f32 %v8474_v29, %v4531_v8  ;;  %vm4538_vm2 = vweird.f32 %v8474_v29 }
0x3f72   :  { %vm4539_vm5 = vmor %vm4537_vm4, %vm4538_vm2 }
0x3f73   :  { %v4534_v10 = vsub.f32 1.0, %v4533_v56 }
0x3f74   :  { %v4570_v28 = vpop.permute.xlu1 %4569 }
0x3f75   :  { %v4535_v11 = vmul.f32 %v8474_v29, %v4534_v10  ;;  %v4572_v6 = vadd.f32 %v4570_v28, %v9447_v12 }
0x3f77   :  { %v4536_v15 = vadd.f32 %v8474_v29, %v4535_v11  ;;  %v7956_v33 = vmul.f32 -1.442695, %v4572_v6 }
0x3f79   :  { %v4540_v17 = vsel %vm4539_vm5, %v8474_v29, %v4536_v15  ;;  %8475 = vpow2.f32 %v7956_v33 }
0x3f7a   :  { %v4545_v24 = vsel %vm4542_vm6, %v4544_v20, %v4540_v17 }
0x3f7f   :  { %v8476_v34 = vpop.eup %8475 }
0x3f80   :  { %v4576_v14 = vadd.f32 1.0, %v8476_v34 }
0x3f82   :  { %8477 = vrcp.f32 %v4576_v14  ;;  %v4588_v22 = vand.u32 2147483648, %v4576_v14  ;;  %vm4582_vm9 = vweird.f32 %v4576_v14  ;;  %v4586_v42 = vand.u32 2147483647, %v4576_v14 }
0x3f84   :  { %v4589_v5 = vor.u32 1.1754944e-38, %v4588_v22  ;;  %vm4587_vm0 = vcmp.eq.f32.partialorder %v4586_v42, 8.507059e+37 }
0x3f88   :  { %v8478_v13 = vpop.eup %8477 }
0x3f89   :  { %v4578_v38 = vmul.f32 %v8478_v13, %v4576_v14  ;;  %vm4583_vm8 = vweird.f32 %v8478_v13 }
0x3f8a   :  { %vm4584_vm14 = vmor %vm4582_vm9, %vm4583_vm8 }
0x3f8b   :  { %v4579_v39 = vsub.f32 1.0, %v4578_v38 }
0x3f8d   :  { %v4580_v25 = vmul.f32 %v8478_v13, %v4579_v39 }
0x3f8f   :  { %v4581_v62 = vadd.f32 %v8478_v13, %v4580_v25 }
0x3f91   :  { %v4585_v43 = vsel %vm4584_vm14, %v8478_v13, %v4581_v62 }
0x3f92   :  { %v4590_v30 = vsel %vm4587_vm0, %v4589_v5, %v4585_v43 }
0x3f93   :  { %v4667_v40 = vmul.f32 %v4665_v46, %v4590_v30 }
0x3fd9   :  { %v4670_v63 = vpop.permute.xlu0 %4669 }
0x3fda   :  { %v4672_v26 = vmul.f32 %v4670_v63, %v4545_v24 }
0x3fdc   :  { %4674 = vrot.lane.b32.xlu2 %v4672_v26, %s8815_s10 }
0x3fe1   :  { %v4642_v44 = vpop.permute.xlu0 %4641 }
0x3fe2   :  { %v4644_v37 = vadd.f32 %v4642_v44, %v9447_v12 }
0x3fe4   :  { %v7959_v23 = vmul.f32 -1.442695, %v4644_v37 }
0x4036   :  { %v4675_v32 = vpop.permute.xlu2 %4674 }
0x4037   :  { %v9645_v48 = vadd.f32 %v4675_v32, %v4667_v40 }
0x4039   :  { %8479 = vtanh.f32 %v9645_v48 }
0x403a   :  { %8481 = vpow2.f32 %v7959_v23 }
0x403f   :  { %v8480_v35 = vpop.eup %8479 }
0x4040   :  { %4680 = vrot.lane.b32.xlu1 %v8480_v35, %s8814_s27  ;;  %v8482_v45 = vpop.eup %8481 }
0x4041   :  { %v4648_v53 = vadd.f32 1.0, %v8482_v45 }
0x4043   :  { %8483 = vrcp.f32 %v4648_v53  ;;  %v4660_v49 = vand.u32 2147483648, %v4648_v53  ;;  %vm4654_vm4 = vweird.f32 %v4648_v53  ;;  %v4658_v57 = vand.u32 2147483647, %v4648_v53 }
0x4045   :  { %v4661_v9 = vor.u32 1.1754944e-38, %v4660_v49  ;;  %vm4659_vm6 = vcmp.eq.f32.partialorder %v4658_v57, 8.507059e+37 }
0x4049   :  { %v8484_v12 = vpop.eup %8483 }
0x404a   :  { %v4650_v7 = vmul.f32 %v8484_v12, %v4648_v53  ;;  %vm4655_vm2 = vweird.f32 %v8484_v12  ;;  %v4892_v53 = vrot.slane %v9645_v48, 7 }
0x404b   :  { %vm4656_vm5 = vmor %vm4654_vm4, %vm4655_vm2 }
0x404c   :  { %v4651_v4 = vsub.f32 1.0, %v4650_v7 }
0x404e   :  { %v4652_v41 = vmul.f32 %v8484_v12, %v4651_v4 }
0x4050   :  { %v4653_v31 = vadd.f32 %v8484_v12, %v4652_v41 }
0x4052   :  { %v4657_v50 = vsel %vm4656_vm5, %v8484_v12, %v4653_v31 }
0x4053   :  { %v4662_v60 = vsel %vm4659_vm6, %v4661_v9, %v4657_v50 }
0x40b2   :  { %v4681_v36 = vpop.permute.xlu1 %4680 }
0x40b3   :  { %v4683_v54 = vmul.f32 %v4681_v36, %v4662_v60 }
0x40b5   :  { %v4732_v47 = vrot.slane %v4683_v54, 7  ;;  %v4690_v61 = vsel %vm1634_vm7, %v9629_v21, %v4683_v54 }
0x40b6   :  { %4692 = vrot.lane.b32.xlu0 %v4690_v61, %s8818_s13 }
0x40b7   :  { %4733 = vrot.lane.b32.xlu2 %v4732_v47, %s8818_s13 }
0x4111   :  { %v4734_v0 = vpop.permute.xlu2 %4733 }
0x4112   :  { %7967 = vmatmul.msk.f32.vlgmr.msrb.gmra.mxu0 %vm112_vm1, %v4734_v0  ;;  %7969 = vmatmul.msk.f32.vlgmr.msrb.gmra.mxu1 %vm112_vm1, %v4734_v0 }
0x4113   :  { %7971 = vmatmul.msk.f32.vlgmr.msra.gmra.mxu2 %vm112_vm1, %v4734_v0  ;;  %5117 = vmatpush.msrb.mxu0 %v9658_v27 }
0x4114   :  { %5205 = vmatpush.msra.mxu2 %v9653_v19  ;;  %5160 = vmatpush.msrb.mxu1 %v9663_v52 }
0x4128   :  { %v4693_v21 = vpop.permute.xlu0 %4692 }
0x4129   :  { %4696 = vst.msk [vmem:[#allocation5 + $0x10] sm:$0xff] %vm112_vm1, %v4693_v21  ;;  %7962 = vmatmul.msk.f32.vlgmr.msrb.gmra.mxu3 %vm112_vm1, %v4693_v21 }
0x412a   :  { %5046 = vmatpush.msrb.mxu3 %v9681_v18 }
0x4131   :  { %7972 = vmatmul.msk.f32.vlgmr.msra.gmra.mxu3 %vm112_vm1, %v4734_v0 }
0x4132   :  { %5232 = vmatpush.msra.mxu3 %v9681_v18 }
0x418f   :  { %v4794_v51 = vpop.f32.mrf.mxu1  ;;  %v4754_v11 = vpop.f32.mrf.mxu0 }
0x4190   :  { %4798 = vrot.lane.b32.xlu0 %v4794_v51, %s8815_s10 }
0x4196   :  { %v4838_v1 = vpop.f32.mrf.mxu2 }
0x4197   :  { %4842 = vrot.lane.b32.xlu1 %v4838_v1, %s8814_s27 }
0x41ac   :  { %v4720_v2 = vpop.f32.mrf.mxu3 }
0x41ad   :  { %v9700_v58 = vadd.f32 %v8099_v59, %v4720_v2 }
0x41af   :  { %v4757_v15 = vadd.f32 %v4754_v11, %v9700_v58 }
0x41b1   :  { %v7968_v3 = vmul.f32 -1.442695, %v4757_v15 }
0x41b4   :  { %v4864_v10 = vpop.f32.mrf.mxu3 }
0x4202   :  { %v4799_v25 = vpop.permute.xlu0 %4798 }
0x4203   :  { %v4801_v62 = vadd.f32 %v4799_v25, %v9700_v58 }
0x4205   :  { %v7970_v22 = vmul.f32 -1.442695, %v4801_v62 }
0x4209   :  { %v4843_v8 = vpop.permute.xlu1 %4842 }
0x420a   :  { %v4845_v29 = vadd.f32 %v4843_v8, %v9700_v58 }
0x420c   :  { %8485 = vtanh.f32 %v4845_v29 }
0x420d   :  { %8487 = vpow2.f32 %v7968_v3 }
0x4212   :  { %v8486_v56 = vpop.eup %8485 }
0x4213   :  { %4896 = vrot.lane.b32.xlu2 %v8486_v56, %s8816_s11  ;;  %v8488_v16 = vpop.eup %8487 }
0x4214   :  { %v4761_v17 = vadd.f32 1.0, %v8488_v16 }
0x4216   :  { %8489 = vrcp.f32 %v4761_v17  ;;  %v4773_v6 = vand.u32 2147483648, %v4761_v17  ;;  %vm4767_vm9 = vweird.f32 %v4761_v17  ;;  %v4771_v33 = vand.u32 2147483647, %v4761_v17 }
0x4217   :  { %8491 = vpow2.f32 %v7970_v22 }
0x4218   :  { %v4774_v14 = vor.u32 1.1754944e-38, %v4773_v6  ;;  %vm4772_vm0 = vcmp.eq.f32.partialorder %v4771_v33, 8.507059e+37 }
0x421b   :  { %4868 = vrot.lane.b32.xlu2 %v4864_v10, %s8817_s4 }
0x421c   :  { %v8490_v20 = vpop.eup %8489 }
0x421d   :  { %v4763_v63 = vmul.f32 %v8490_v20, %v4761_v17  ;;  %vm4768_vm8 = vweird.f32 %v8490_v20  ;;  %v8492_v42 = vpop.eup %8491 }
0x421e   :  { %vm4769_vm14 = vmor %vm4767_vm9, %vm4768_vm8  ;;  %v4805_v43 = vadd.f32 1.0, %v8492_v42 }
0x421f   :  { %v4764_v24 = vsub.f32 1.0, %v4763_v63 }
0x4220   :  { %8493 = vrcp.f32 %v4805_v43  ;;  %v4817_v35 = vand.u32 2147483648, %v4805_v43  ;;  %vm4811_vm4 = vweird.f32 %v4805_v43  ;;  %v4815_v44 = vand.u32 2147483647, %v4805_v43 }
0x4221   :  { %v4765_v26 = vmul.f32 %v8490_v20, %v4764_v24 }
0x4222   :  { %v4818_v23 = vor.u32 1.1754944e-38, %v4817_v35  ;;  %vm4816_vm6 = vcmp.eq.f32.partialorder %v4815_v44, 8.507059e+37 }
0x4223   :  { %v4766_v28 = vadd.f32 %v8490_v20, %v4765_v26 }
0x4225   :  { %v4770_v34 = vsel %vm4769_vm14, %v8490_v20, %v4766_v28 }
0x4226   :  { %v4775_v38 = vsel %vm4772_vm0, %v4774_v14, %v4770_v34  ;;  %v8494_v5 = vpop.eup %8493 }
0x4227   :  { %v4807_v30 = vmul.f32 %v8494_v5, %v4805_v43  ;;  %vm4812_vm2 = vweird.f32 %v8494_v5 }
0x4228   :  { %vm4813_vm5 = vmor %vm4811_vm4, %vm4812_vm2 }
0x4229   :  { %v4808_v46 = vsub.f32 1.0, %v4807_v30 }
0x422b   :  { %v4809_v40 = vmul.f32 %v8494_v5, %v4808_v46 }
0x422d   :  { %v4810_v32 = vadd.f32 %v8494_v5, %v4809_v40 }
0x422f   :  { %v4814_v37 = vsel %vm4813_vm5, %v8494_v5, %v4810_v32 }
0x4230   :  { %v4819_v45 = vsel %vm4816_vm6, %v4818_v23, %v4814_v37 }
0x4231   :  { %v4894_v12 = vmul.f32 %v4892_v53, %v4819_v45 }
0x426d   :  { %v4897_v13 = vpop.permute.xlu2 %4896 }
0x426e   :  { %v4899_v39 = vmul.f32 %v4897_v13, %v4775_v38 }
0x4270   :  { %4901 = vrot.lane.b32.xlu1 %v4899_v39, %s8815_s10 }
0x4275   :  { %v4869_v31 = vpop.permute.xlu2 %4868 }
0x4276   :  { %v4871_v49 = vadd.f32 %v4869_v31, %v9700_v58 }
0x4278   :  { %v7973_v57 = vmul.f32 -1.442695, %v4871_v49 }
0x42e2   :  { %v4902_v7 = vpop.permute.xlu1 %4901 }
0x42e3   :  { %v9709_v4 = vadd.f32 %v4902_v7, %v4894_v12 }
0x42e5   :  { %8495 = vtanh.f32 %v9709_v4 }
0x42e6   :  { %8497 = vpow2.f32 %v7973_v57  ;;  %v5077_v57 = vrot.slane %v9709_v4, 7 }
0x42eb   :  { %v8496_v41 = vpop.eup %8495 }
0x42ec   :  { %4907 = vrot.lane.b32.xlu0 %v8496_v41, %s8814_s27  ;;  %v8498_v50 = vpop.eup %8497 }
0x42ed   :  { %v4875_v9 = vadd.f32 1.0, %v8498_v50 }
0x42ef   :  { %8499 = vrcp.f32 %v4875_v9  ;;  %v4887_v61 = vand.u32 2147483648, %v4875_v9  ;;  %vm4881_vm9 = vweird.f32 %v4875_v9  ;;  %v4885_v55 = vand.u32 2147483647, %v4875_v9 }
0x42f1   :  { %v4888_v21 = vor.u32 1.1754944e-38, %v4887_v61  ;;  %vm4886_vm0 = vcmp.eq.f32.partialorder %v4885_v55, 8.507059e+37 }
0x42f5   :  { %v8500_v60 = vpop.eup %8499 }
0x42f6   :  { %v4877_v36 = vmul.f32 %v8500_v60, %v4875_v9  ;;  %vm4882_vm8 = vweird.f32 %v8500_v60 }
0x42f7   :  { %vm4883_vm14 = vmor %vm4881_vm9, %vm4882_vm8 }
0x42f8   :  { %v4878_v48 = vsub.f32 1.0, %v4877_v36 }
0x42fa   :  { %v4879_v54 = vmul.f32 %v8500_v60, %v4878_v48 }
0x42fc   :  { %v4880_v47 = vadd.f32 %v8500_v60, %v4879_v54 }
0x42fe   :  { %v4884_v0 = vsel %vm4883_vm14, %v8500_v60, %v4880_v47 }
0x42ff   :  { %v4889_v51 = vsel %vm4886_vm0, %v4888_v21, %v4884_v0 }
0x435e   :  { %v4908_v1 = vpop.permute.xlu0 %4907 }
0x435f   :  { %v9714_v59 = vmul.f32 %v4908_v1, %v4889_v51 }
0x4361   :  { %4912 = vrot.lane.b32.xlu1 %v9714_v59, %s8818_s13 }
0x43d3   :  { %v4913_v2 = vpop.permute.xlu1 %4912 }
0x43d4   :  { %7974 = vmatmul.msk.f32.vlgmr.msra.gmra.mxu0 %vm112_vm1, %v4913_v2  ;;  %7976 = vmatmul.msk.f32.vlgmr.msra.gmra.mxu1 %vm112_vm1, %v4913_v2 }
0x43d5   :  { %7978 = vmatmul.msk.f32.vlgmr.msrb.gmra.mxu2 %vm112_vm1, %v4913_v2  ;;  %7979 = vmatmul.msk.f32.vlgmr.msrb.gmra.mxu3 %vm112_vm1, %v4913_v2 }
0x43d6   :  { %5391 = vmatpush.msrb.mxu2 %v9653_v19  ;;  %5303 = vmatpush.msra.mxu0 %v9658_v27 }
0x43d7   :  { %5346 = vmatpush.msra.mxu1 %v9663_v52  ;;  %5418 = vmatpush.msrb.mxu3 %v9681_v18 }
0x4451   :  { %v4976_v8 = vpop.f32.mrf.mxu1  ;;  %v4933_v20 = vpop.f32.mrf.mxu0 }
0x4452   :  { %v4980_v29 = vrot.slane %v4976_v8, 7  ;;  %v4937_v63 = vrot.slane %v4933_v20, 7 }
0x4454   :  { %4981 = vrot.lane.b32.xlu1 %v4980_v29, %s8815_s10  ;;  %v4939_v24 = vadd.f32 %v4937_v63, %v9700_v58 }
0x4456   :  { %v7975_v26 = vmul.f32 -1.442695, %v4939_v24 }
0x4458   :  { %v5021_v56 = vpop.f32.mrf.mxu2  ;;  %v5048_v16 = vpop.f32.mrf.mxu3 }
0x4459   :  { %v5025_v10 = vrot.slane %v5021_v56, 7  ;;  %v5052_v17 = vrot.slane %v5048_v16, 7 }
0x445b   :  { %5026 = vrot.lane.b32.xlu2 %v5025_v10, %s8814_s27 }
0x44b5   :  { %v5027_v11 = vpop.permute.xlu2 %5026 }
0x44b6   :  { %v5029_v15 = vadd.f32 %v5027_v11, %v9700_v58 }
0x44b8   :  { %8501 = vtanh.f32 %v5029_v15 }
0x44b9   :  { %8503 = vpow2.f32 %v7975_v26 }
0x44be   :  { %v8502_v3 = vpop.eup %8501 }
0x44bf   :  { %5081 = vrot.lane.b32.xlu0 %v8502_v3, %s8816_s11  ;;  %v8504_v28 = vpop.eup %8503 }
0x44c0   :  { %v4943_v6 = vadd.f32 1.0, %v8504_v28 }
0x44c2   :  { %8505 = vrcp.f32 %v4943_v6  ;;  %v4955_v39 = vand.u32 2147483648, %v4943_v6  ;;  %vm4949_vm4 = vweird.f32 %v4943_v6  ;;  %v4953_v25 = vand.u32 2147483647, %v4943_v6 }
0x44c4   :  { %v4956_v22 = vor.u32 1.1754944e-38, %v4955_v39  ;;  %vm4954_vm6 = vcmp.eq.f32.partialorder %v4953_v25, 8.507059e+37 }
0x44c6   :  { %v4982_v30 = vpop.permute.xlu1 %4981 }
0x44c7   :  { %5053 = vrot.lane.b32.xlu0 %v5052_v17, %s8817_s4  ;;  %v4984_v46 = vadd.f32 %v4982_v30, %v9700_v58 }
0x44c8   :  { %v8506_v33 = vpop.eup %8505 }
0x44c9   :  { %v4945_v34 = vmul.f32 %v8506_v33, %v4943_v6  ;;  %vm4950_vm2 = vweird.f32 %v8506_v33  ;;  %v7977_v40 = vmul.f32 -1.442695, %v4984_v46 }
0x44ca   :  { %vm4951_vm5 = vmor %vm4949_vm4, %vm4950_vm2 }
0x44cb   :  { %v4946_v14 = vsub.f32 1.0, %v4945_v34  ;;  %8507 = vpow2.f32 %v7977_v40 }
0x44cd   :  { %v4947_v13 = vmul.f32 %v8506_v33, %v4946_v14 }
0x44cf   :  { %v4948_v38 = vadd.f32 %v8506_v33, %v4947_v13 }
0x44d1   :  { %v4952_v62 = vsel %vm4951_vm5, %v8506_v33, %v4948_v38  ;;  %v8508_v32 = vpop.eup %8507 }
0x44d2   :  { %v4957_v43 = vsel %vm4954_vm6, %v4956_v22, %v4952_v62  ;;  %v4988_v35 = vadd.f32 1.0, %v8508_v32 }
0x44d4   :  { %8509 = vrcp.f32 %v4988_v35  ;;  %v5000_v12 = vand.u32 2147483648, %v4988_v35  ;;  %vm4994_vm9 = vweird.f32 %v4988_v35  ;;  %v4998_v7 = vand.u32 2147483647, %v4988_v35 }
0x44d6   :  { %v5001_v31 = vor.u32 1.1754944e-38, %v5000_v12  ;;  %vm4999_vm0 = vcmp.eq.f32.partialorder %v4998_v7, 8.507059e+37 }
0x44da   :  { %v8510_v44 = vpop.eup %8509 }
0x44db   :  { %v4990_v37 = vmul.f32 %v8510_v44, %v4988_v35  ;;  %vm4995_vm8 = vweird.f32 %v8510_v44 }
0x44dc   :  { %vm4996_vm14 = vmor %vm4994_vm9, %vm4995_vm8 }
0x44dd   :  { %v4991_v23 = vsub.f32 1.0, %v4990_v37 }
0x44df   :  { %v4992_v45 = vmul.f32 %v8510_v44, %v4991_v23 }
0x44e1   :  { %v4993_v53 = vadd.f32 %v8510_v44, %v4992_v45 }
0x44e3   :  { %v4997_v41 = vsel %vm4996_vm14, %v8510_v44, %v4993_v53 }
0x44e4   :  { %v5002_v49 = vsel %vm4999_vm0, %v5001_v31, %v4997_v41 }
0x44e5   :  { %v5079_v50 = vmul.f32 %v5077_v57, %v5002_v49 }
0x4531   :  { %v5082_v42 = vpop.permute.xlu0 %5081 }
0x4532   :  { %v5084_v5 = vmul.f32 %v5082_v42, %v4957_v43 }
0x4534   :  { %5086 = vrot.lane.b32.xlu2 %v5084_v5, %s8815_s10 }
0x4539   :  { %v5054_v48 = vpop.permute.xlu0 %5053 }
0x453a   :  { %v5056_v54 = vadd.f32 %v5054_v48, %v9700_v58 }
0x453c   :  { %v7980_v47 = vmul.f32 -1.442695, %v5056_v54 }
0x458e   :  { %v5087_v9 = vpop.permute.xlu2 %5086 }
0x458f   :  { %v9735_v60 = vadd.f32 %v5087_v9, %v5079_v50 }
0x4591   :  { %8511 = vtanh.f32 %v9735_v60 }
0x4592   :  { %8513 = vpow2.f32 %v7980_v47 }
0x4597   :  { %v8512_v36 = vpop.eup %8511 }
0x4598   :  { %5092 = vrot.lane.b32.xlu1 %v8512_v36, %s8814_s27  ;;  %v8514_v61 = vpop.eup %8513 }
0x4599   :  { %v5060_v55 = vadd.f32 1.0, %v8514_v61 }
0x459b   :  { %8515 = vrcp.f32 %v5060_v55  ;;  %v5072_v2 = vand.u32 2147483648, %v5060_v55  ;;  %vm5066_vm4 = vweird.f32 %v5060_v55  ;;  %v5070_v8 = vand.u32 2147483647, %v5060_v55 }
0x459d   :  { %v5073_v56 = vor.u32 1.1754944e-38, %v5072_v2  ;;  %vm5071_vm6 = vcmp.eq.f32.partialorder %v5070_v8, 8.507059e+37 }
0x45a1   :  { %v8516_v0 = vpop.eup %8515 }
0x45a2   :  { %v5062_v21 = vmul.f32 %v8516_v0, %v5060_v55  ;;  %vm5067_vm2 = vweird.f32 %v8516_v0  ;;  %v5263_v55 = vrot.slane %v9735_v60, 7 }
0x45a3   :  { %vm5068_vm5 = vmor %vm5066_vm4, %vm5067_vm2 }
0x45a4   :  { %v5063_v4 = vsub.f32 1.0, %v5062_v21 }
0x45a6   :  { %v5064_v51 = vmul.f32 %v8516_v0, %v5063_v4 }
0x45a8   :  { %v5065_v1 = vadd.f32 %v8516_v0, %v5064_v51 }
0x45aa   :  { %v5069_v29 = vsel %vm5068_vm5, %v8516_v0, %v5065_v1 }
0x45ab   :  { %v5074_v10 = vsel %vm5071_vm6, %v5073_v56, %v5069_v29 }
0x460a   :  { %v5093_v11 = vpop.permute.xlu1 %5092 }
0x460b   :  { %v9740_v15 = vmul.f32 %v5093_v11, %v5074_v10 }
0x460d   :  { %v5097_v3 = vrot.slane %v9740_v15, 1 }
0x460f   :  { %5098 = vrot.lane.b32.xlu2 %v5097_v3, %s8818_s13 }
0x4669   :  { %v5099_v16 = vpop.permute.xlu2 %5098 }
0x466a   :  { %7981 = vmatmul.msk.f32.vlgmr.msrb.gmra.mxu0 %vm112_vm1, %v5099_v16  ;;  %7983 = vmatmul.msk.f32.vlgmr.msrb.gmra.mxu1 %vm112_vm1, %v5099_v16 }
0x466b   :  { %7985 = vmatmul.msk.f32.vlgmr.msra.gmra.mxu2 %vm112_vm1, %v5099_v16  ;;  %7986 = vmatmul.msk.f32.vlgmr.msra.gmra.mxu3 %vm112_vm1, %v5099_v16 }
0x466c   :  { %5577 = vmatpush.msra.mxu2 %v9653_v19  ;;  %5489 = vmatpush.msrb.mxu0 %v9658_v27 }
0x466d   :  { %5532 = vmatpush.msrb.mxu1 %v9663_v52  ;;  %5604 = vmatpush.msra.mxu3 %v9681_v18 }
0x46e7   :  { %v5162_v17 = vpop.f32.mrf.mxu1  ;;  %v5119_v14 = vpop.f32.mrf.mxu0 }
0x46e8   :  { %v5166_v20 = vrot.slane %v5162_v17, 6  ;;  %v5123_v13 = vrot.slane %v5119_v14, 6 }
0x46ea   :  { %5167 = vrot.lane.b32.xlu2 %v5166_v20, %s8815_s10  ;;  %v5125_v38 = vadd.f32 %v5123_v13, %v9700_v58 }
0x46ec   :  { %v7982_v39 = vmul.f32 -1.442695, %v5125_v38 }
0x46ee   :  { %v5207_v63 = vpop.f32.mrf.mxu2  ;;  %v5234_v33 = vpop.f32.mrf.mxu3 }
0x46ef   :  { %v5211_v24 = vrot.slane %v5207_v63, 6  ;;  %v5238_v34 = vrot.slane %v5234_v33, 6  ;;  %v6212_v33 = vsel %vm1622_vm10, %v9714_v59, %v9740_v15 }
0x46f1   :  { %5212 = vrot.lane.b32.xlu0 %v5211_v24, %s8814_s27 }
0x4744   :  { %v5168_v45 = vpop.permute.xlu2 %5167 }
0x4745   :  { %v5170_v53 = vadd.f32 %v5168_v45, %v9700_v58 }
0x4747   :  { %v7984_v12 = vmul.f32 -1.442695, %v5170_v53 }
0x4763   :  { %v5213_v26 = vpop.permute.xlu0 %5212 }
0x4764   :  { %v5215_v28 = vadd.f32 %v5213_v26, %v9700_v58 }
0x4766   :  { %8517 = vtanh.f32 %v5215_v28 }
0x4767   :  { %8519 = vpow2.f32 %v7982_v39 }
0x476c   :  { %v8518_v6 = vpop.eup %8517 }
0x476d   :  { %5267 = vrot.lane.b32.xlu1 %v8518_v6, %s8816_s11  ;;  %v8520_v25 = vpop.eup %8519 }
0x476e   :  { %v5129_v62 = vadd.f32 1.0, %v8520_v25 }
0x4770   :  { %8521 = vrcp.f32 %v5129_v62  ;;  %v5141_v46 = vand.u32 2147483648, %v5129_v62  ;;  %vm5135_vm9 = vweird.f32 %v5129_v62  ;;  %v5139_v40 = vand.u32 2147483647, %v5129_v62 }
0x4771   :  { %8523 = vpow2.f32 %v7984_v12 }
0x4772   :  { %v5142_v35 = vor.u32 1.1754944e-38, %v5141_v46  ;;  %vm5140_vm0 = vcmp.eq.f32.partialorder %v5139_v40, 8.507059e+37 }
0x4775   :  { %5239 = vrot.lane.b32.xlu1 %v5238_v34, %s8817_s4 }
0x4776   :  { %v8522_v22 = vpop.eup %8521 }
0x4777   :  { %v5131_v42 = vmul.f32 %v8522_v22, %v5129_v62  ;;  %vm5136_vm8 = vweird.f32 %v8522_v22  ;;  %v8524_v7 = vpop.eup %8523 }
0x4778   :  { %vm5137_vm14 = vmor %vm5135_vm9, %vm5136_vm8  ;;  %v5174_v41 = vadd.f32 1.0, %v8524_v7 }
0x4779   :  { %v5132_v43 = vsub.f32 1.0, %v5131_v42 }
0x477a   :  { %8525 = vrcp.f32 %v5174_v41  ;;  %v5186_v36 = vand.u32 2147483648, %v5174_v41  ;;  %vm5180_vm4 = vweird.f32 %v5174_v41  ;;  %v5184_v48 = vand.u32 2147483647, %v5174_v41 }
0x477b   :  { %v5133_v5 = vmul.f32 %v8522_v22, %v5132_v43 }
0x477c   :  { %v5187_v47 = vor.u32 1.1754944e-38, %v5186_v36  ;;  %vm5185_vm6 = vcmp.eq.f32.partialorder %v5184_v48, 8.507059e+37 }
0x477d   :  { %v5134_v30 = vadd.f32 %v8522_v22, %v5133_v5 }
0x477f   :  { %v5138_v32 = vsel %vm5137_vm14, %v8522_v22, %v5134_v30 }
0x4780   :  { %v5143_v37 = vsel %vm5140_vm0, %v5142_v35, %v5138_v32  ;;  %v8526_v31 = vpop.eup %8525 }
0x4781   :  { %v5176_v49 = vmul.f32 %v8526_v31, %v5174_v41  ;;  %vm5181_vm2 = vweird.f32 %v8526_v31 }
0x4782   :  { %vm5182_vm5 = vmor %vm5180_vm4, %vm5181_vm2 }
0x4783   :  { %v5177_v57 = vsub.f32 1.0, %v5176_v49 }
0x4785   :  { %v5178_v50 = vmul.f32 %v8526_v31, %v5177_v57 }
0x4787   :  { %v5179_v9 = vadd.f32 %v8526_v31, %v5178_v50 }
0x4789   :  { %v5183_v54 = vsel %vm5182_vm5, %v8526_v31, %v5179_v9 }
0x478a   :  { %v5188_v61 = vsel %vm5185_vm6, %v5187_v47, %v5183_v54 }
0x478b   :  { %v5265_v0 = vmul.f32 %v5263_v55, %v5188_v61 }
0x47df   :  { %v5268_v44 = vpop.permute.xlu1 %5267 }
0x47e0   :  { %v5270_v23 = vmul.f32 %v5268_v44, %v5143_v37 }
0x47e2   :  { %5272 = vrot.lane.b32.xlu0 %v5270_v23, %s8815_s10 }
0x47e7   :  { %v5240_v1 = vpop.permute.xlu1 %5239 }
0x47e8   :  { %v5242_v2 = vadd.f32 %v5240_v1, %v9700_v58 }
0x47ea   :  { %v7987_v8 = vmul.f32 -1.442695, %v5242_v2 }
0x4854   :  { %v5273_v21 = vpop.permute.xlu0 %5272 }
0x4855   :  { %v9761_v4 = vadd.f32 %v5273_v21, %v5265_v0 }
0x4857   :  { %8527 = vtanh.f32 %v9761_v4 }
0x4858   :  { %8529 = vpow2.f32 %v7987_v8 }
0x485d   :  { %v8528_v51 = vpop.eup %8527 }
0x485e   :  { %5278 = vrot.lane.b32.xlu2 %v8528_v51, %s8814_s27  ;;  %v8530_v29 = vpop.eup %8529 }
0x485f   :  { %v5246_v56 = vadd.f32 1.0, %v8530_v29 }
0x4861   :  { %8531 = vrcp.f32 %v5246_v56  ;;  %v5258_v17 = vand.u32 2147483648, %v5246_v56  ;;  %vm5252_vm9 = vweird.f32 %v5246_v56  ;;  %v5256_v20 = vand.u32 2147483647, %v5246_v56 }
0x4863   :  { %v5259_v24 = vor.u32 1.1754944e-38, %v5258_v17  ;;  %vm5257_vm0 = vcmp.eq.f32.partialorder %v5256_v20, 8.507059e+37 }
0x4867   :  { %v8532_v10 = vpop.eup %8531 }
0x4868   :  { %v5248_v11 = vmul.f32 %v8532_v10, %v5246_v56  ;;  %vm5253_vm8 = vweird.f32 %v8532_v10 }
0x4869   :  { %vm5254_vm14 = vmor %vm5252_vm9, %vm5253_vm8 }
0x486a   :  { %v5249_v60 = vsub.f32 1.0, %v5248_v11 }
0x486c   :  { %v5250_v3 = vmul.f32 %v8532_v10, %v5249_v60 }
0x486e   :  { %v5251_v16 = vadd.f32 %v8532_v10, %v5250_v3 }
0x4870   :  { %v5255_v63 = vsel %vm5254_vm14, %v8532_v10, %v5251_v16  ;;  %v5449_v10 = vrot.slane %v9761_v4, 7 }
0x4871   :  { %v5260_v26 = vsel %vm5257_vm0, %v5259_v24, %v5255_v63 }
0x48b8   :  { %v5279_v28 = vpop.permute.xlu2 %5278 }
0x48b9   :  { %v5281_v6 = vmul.f32 %v5279_v28, %v5260_v26 }
0x48bb   :  { %v5283_v34 = vrot.slane %v5281_v6, 2  ;;  %v9770_v14 = vsel %vm1624_vm12, %v6212_v33, %v5281_v6 }
0x48bd   :  { %5284 = vrot.lane.b32.xlu0 %v5283_v34, %s8818_s13 }
0x492f   :  { %v5285_v13 = vpop.permute.xlu0 %5284 }
0x4930   :  { %7988 = vmatmul.msk.f32.vlgmr.msra.gmra.mxu0 %vm112_vm1, %v5285_v13  ;;  %7990 = vmatmul.msk.f32.vlgmr.msra.gmra.mxu1 %vm112_vm1, %v5285_v13 }
0x4931   :  { %7992 = vmatmul.msk.f32.vlgmr.msrb.gmra.mxu2 %vm112_vm1, %v5285_v13  ;;  %7993 = vmatmul.msk.f32.vlgmr.msrb.gmra.mxu3 %vm112_vm1, %v5285_v13 }
0x4932   :  { %5763 = vmatpush.msrb.mxu2 %v9653_v19  ;;  %5675 = vmatpush.msra.mxu0 %v9658_v27 }
0x4933   :  { %5718 = vmatpush.msra.mxu1 %v9663_v52  ;;  %5790 = vmatpush.msrb.mxu3 %v9681_v18 }
0x49ad   :  { %v5348_v59 = vpop.f32.mrf.mxu1  ;;  %v5305_v5 = vpop.f32.mrf.mxu0 }
0x49ae   :  { %v5352_v15 = vrot.slane %v5348_v59, 5  ;;  %v5309_v30 = vrot.slane %v5305_v5, 5 }
0x49b0   :  { %5353 = vrot.lane.b32.xlu0 %v5352_v15, %s8815_s10  ;;  %v5311_v46 = vadd.f32 %v5309_v30, %v9700_v58 }
0x49b2   :  { %v7989_v40 = vmul.f32 -1.442695, %v5311_v46 }
0x49b4   :  { %v5393_v38 = vpop.f32.mrf.mxu2  ;;  %v5420_v42 = vpop.f32.mrf.mxu3 }
0x49b5   :  { %v5397_v39 = vrot.slane %v5393_v38, 5  ;;  %v5424_v43 = vrot.slane %v5420_v42, 5 }
0x49b7   :  { %5398 = vrot.lane.b32.xlu1 %v5397_v39, %s8814_s27 }
0x4a22   :  { %v5354_v9 = vpop.permute.xlu0 %5353 }
0x4a23   :  { %v5356_v36 = vadd.f32 %v5354_v9, %v9700_v58 }
0x4a25   :  { %v7991_v48 = vmul.f32 -1.442695, %v5356_v36 }
0x4a29   :  { %v5399_v25 = vpop.permute.xlu1 %5398 }
0x4a2a   :  { %v5401_v62 = vadd.f32 %v5399_v25, %v9700_v58 }
0x4a2c   :  { %8533 = vtanh.f32 %v5401_v62 }
0x4a2d   :  { %8535 = vpow2.f32 %v7989_v40 }
0x4a32   :  { %v8534_v22 = vpop.eup %8533 }
0x4a33   :  { %5453 = vrot.lane.b32.xlu2 %v8534_v22, %s8816_s11  ;;  %v8536_v32 = vpop.eup %8535 }
0x4a34   :  { %v5315_v35 = vadd.f32 1.0, %v8536_v32 }
0x4a36   :  { %8537 = vrcp.f32 %v5315_v35  ;;  %v5327_v12 = vand.u32 2147483648, %v5315_v35  ;;  %vm5321_vm4 = vweird.f32 %v5315_v35  ;;  %v5325_v7 = vand.u32 2147483647, %v5315_v35 }
0x4a37   :  { %8539 = vpow2.f32 %v7991_v48 }
0x4a38   :  { %v5328_v31 = vor.u32 1.1754944e-38, %v5327_v12  ;;  %vm5326_vm6 = vcmp.eq.f32.partialorder %v5325_v7, 8.507059e+37 }
0x4a3b   :  { %5425 = vrot.lane.b32.xlu2 %v5424_v43, %s8817_s4 }
0x4a3c   :  { %v8538_v44 = vpop.eup %8537 }
0x4a3d   :  { %v5317_v37 = vmul.f32 %v8538_v44, %v5315_v35  ;;  %vm5322_vm2 = vweird.f32 %v8538_v44  ;;  %v8540_v54 = vpop.eup %8539 }
0x4a3e   :  { %vm5323_vm5 = vmor %vm5321_vm4, %vm5322_vm2  ;;  %v5360_v47 = vadd.f32 1.0, %v8540_v54 }
0x4a3f   :  { %v5318_v23 = vsub.f32 1.0, %v5317_v37 }
0x4a40   :  { %8541 = vrcp.f32 %v5360_v47  ;;  %v5372_v1 = vand.u32 2147483648, %v5360_v47  ;;  %vm5366_vm9 = vweird.f32 %v5360_v47  ;;  %v5370_v2 = vand.u32 2147483647, %v5360_v47 }
0x4a41   :  { %v5319_v45 = vmul.f32 %v8538_v44, %v5318_v23 }
0x4a42   :  { %v5373_v29 = vor.u32 1.1754944e-38, %v5372_v1  ;;  %vm5371_vm0 = vcmp.eq.f32.partialorder %v5370_v2, 8.507059e+37 }
0x4a43   :  { %v5320_v53 = vadd.f32 %v8538_v44, %v5319_v45 }
0x4a45   :  { %v5324_v41 = vsel %vm5323_vm5, %v8538_v44, %v5320_v53 }
0x4a46   :  { %v5329_v57 = vsel %vm5326_vm6, %v5328_v31, %v5324_v41  ;;  %v8542_v61 = vpop.eup %8541 }
0x4a47   :  { %v5362_v55 = vmul.f32 %v8542_v61, %v5360_v47  ;;  %vm5367_vm8 = vweird.f32 %v8542_v61 }
0x4a48   :  { %vm5368_vm14 = vmor %vm5366_vm9, %vm5367_vm8 }
0x4a49   :  { %v5363_v0 = vsub.f32 1.0, %v5362_v55 }
0x4a4b   :  { %v5364_v21 = vmul.f32 %v8542_v61, %v5363_v0 }
0x4a4d   :  { %v5365_v51 = vadd.f32 %v8542_v61, %v5364_v21 }
0x4a4f   :  { %v5369_v8 = vsel %vm5368_vm14, %v8542_v61, %v5365_v51 }
0x4a50   :  { %v5374_v56 = vsel %vm5371_vm0, %v5373_v29, %v5369_v8 }
0x4a51   :  { %v5451_v11 = vmul.f32 %v5449_v10, %v5374_v56 }
0x4a8d   :  { %v5454_v49 = vpop.permute.xlu2 %5453 }
0x4a8e   :  { %v5456_v50 = vmul.f32 %v5454_v49, %v5329_v57 }
0x4a90   :  { %5458 = vrot.lane.b32.xlu1 %v5456_v50, %s8815_s10 }
0x4a95   :  { %v5426_v17 = vpop.permute.xlu2 %5425 }
0x4a96   :  { %v5428_v20 = vadd.f32 %v5426_v17, %v9700_v58 }
0x4a98   :  { %v7994_v63 = vmul.f32 -1.442695, %v5428_v20 }
0x4b02   :  { %v5459_v60 = vpop.permute.xlu1 %5458 }
0x4b03   :  { %v9790_v3 = vadd.f32 %v5459_v60, %v5451_v11 }
0x4b05   :  { %8543 = vtanh.f32 %v9790_v3  ;;  %v5635_v17 = vrot.slane %v9790_v3, 7 }
0x4b06   :  { %8545 = vpow2.f32 %v7994_v63 }
0x4b0b   :  { %v8544_v16 = vpop.eup %8543 }
0x4b0c   :  { %5464 = vrot.lane.b32.xlu0 %v8544_v16, %s8814_s27  ;;  %v8546_v24 = vpop.eup %8545 }
0x4b0d   :  { %v5432_v26 = vadd.f32 1.0, %v8546_v24 }
0x4b0f   :  { %8547 = vrcp.f32 %v5432_v26  ;;  %v5444_v13 = vand.u32 2147483648, %v5432_v26  ;;  %vm5438_vm4 = vweird.f32 %v5432_v26  ;;  %v5442_v59 = vand.u32 2147483647, %v5432_v26 }
0x4b11   :  { %v5445_v38 = vor.u32 1.1754944e-38, %v5444_v13  ;;  %vm5443_vm6 = vcmp.eq.f32.partialorder %v5442_v59, 8.507059e+37 }
0x4b15   :  { %v8548_v28 = vpop.eup %8547 }
0x4b16   :  { %v5434_v6 = vmul.f32 %v8548_v28, %v5432_v26  ;;  %vm5439_vm2 = vweird.f32 %v8548_v28 }
0x4b17   :  { %vm5440_vm5 = vmor %vm5438_vm4, %vm5439_vm2 }
0x4b18   :  { %v5435_v4 = vsub.f32 1.0, %v5434_v6 }
0x4b1a   :  { %v5436_v33 = vmul.f32 %v8548_v28, %v5435_v4 }
0x4b1c   :  { %v5437_v34 = vadd.f32 %v8548_v28, %v5436_v33 }
0x4b1e   :  { %v5441_v15 = vsel %vm5440_vm5, %v8548_v28, %v5437_v34 }
0x4b1f   :  { %v5446_v39 = vsel %vm5443_vm6, %v5445_v38, %v5441_v15 }
0x4b7e   :  { %v5465_v25 = vpop.permute.xlu0 %5464 }
0x4b7f   :  { %v5467_v62 = vmul.f32 %v5465_v25, %v5446_v39 }
0x4b81   :  { %v5469_v22 = vrot.slane %v5467_v62, 3  ;;  %v9797_v42 = vsel %vm1626_vm11, %v9770_v14, %v5467_v62 }
0x4b83   :  { %5470 = vrot.lane.b32.xlu1 %v5469_v22, %s8818_s13 }
0x4bf5   :  { %v5471_v43 = vpop.permute.xlu1 %5470 }
0x4bf6   :  { %7995 = vmatmul.msk.f32.vlgmr.msrb.gmra.mxu0 %vm112_vm1, %v5471_v43  ;;  %7997 = vmatmul.msk.f32.vlgmr.msrb.gmra.mxu1 %vm112_vm1, %v5471_v43 }
0x4bf7   :  { %7999 = vmatmul.msk.f32.vlgmr.msra.gmra.mxu2 %vm112_vm1, %v5471_v43  ;;  %8000 = vmatmul.msk.f32.vlgmr.msra.gmra.mxu3 %vm112_vm1, %v5471_v43 }
0x4bf8   :  { %5949 = vmatpush.msra.mxu2 %v9653_v19  ;;  %5861 = vmatpush.msrb.mxu0 %v9658_v27 }
0x4bf9   :  { %5904 = vmatpush.msrb.mxu1 %v9663_v52  ;;  %5976 = vmatpush.msra.mxu3 %v9681_v18 }
0x4c73   :  { %v5534_v14 = vpop.f32.mrf.mxu1  ;;  %v5491_v52 = vpop.f32.mrf.mxu0 }
0x4c74   :  { %v5538_v5 = vrot.slane %v5534_v14, 4  ;;  %v5495_v18 = vrot.slane %v5491_v52, 4 }
0x4c76   :  { %5539 = vrot.lane.b32.xlu1 %v5538_v5, %s8815_s10  ;;  %v5497_v44 = vadd.f32 %v5495_v18, %v9700_v58 }
0x4c78   :  { %v7996_v37 = vmul.f32 -1.442695, %v5497_v44 }
0x4c7a   :  { %v5579_v30 = vpop.f32.mrf.mxu2  ;;  %v5606_v19 = vpop.f32.mrf.mxu3 }
0x4c7b   :  { %v5583_v46 = vrot.slane %v5579_v30, 4  ;;  %v5610_v27 = vrot.slane %v5606_v19, 4  ;;  %v8756_v19 = vld [vmem:[%s10167_s6 + $0x78] sm:$0xff] }
0x4c7d   :  { %5584 = vrot.lane.b32.xlu2 %v5583_v46, %s8814_s27 }
0x4cd7   :  { %v5585_v40 = vpop.permute.xlu2 %5584 }
0x4cd8   :  { %v5587_v32 = vadd.f32 %v5585_v40, %v9700_v58 }
0x4cda   :  { %8549 = vtanh.f32 %v5587_v32  ;;  %v8753_v32 = vld [vmem:[%s10167_s6 + $0x70] sm:$0xff] }
0x4cdb   :  { %8551 = vpow2.f32 %v7996_v37 }
0x4ce0   :  { %v8550_v35 = vpop.eup %8549 }
0x4ce1   :  { %5639 = vrot.lane.b32.xlu0 %v8550_v35, %s8816_s11  ;;  %v8552_v23 = vpop.eup %8551  ;;  %v8755_v35 = vld [vmem:[%s10167_s6 + $0x68] sm:$0xff] }
0x4ce2   :  { %v5501_v45 = vadd.f32 1.0, %v8552_v23 }
0x4ce4   :  { %8553 = vrcp.f32 %v5501_v45  ;;  %v5513_v49 = vand.u32 2147483648, %v5501_v45  ;;  %vm5507_vm9 = vweird.f32 %v5501_v45  ;;  %v5511_v57 = vand.u32 2147483647, %v5501_v45 }
0x4ce6   :  { %v5514_v9 = vor.u32 1.1754944e-38, %v5513_v49  ;;  %vm5512_vm0 = vcmp.eq.f32.partialorder %v5511_v57, 8.507059e+37 }
0x4ce8   :  { %v5540_v47 = vpop.permute.xlu1 %5539 }
0x4ce9   :  { %5611 = vrot.lane.b32.xlu0 %v5610_v27, %s8817_s4  ;;  %v5542_v61 = vadd.f32 %v5540_v47, %v9700_v58 }
0x4cea   :  { %v8554_v53 = vpop.eup %8553 }
0x4ceb   :  { %v5503_v12 = vmul.f32 %v8554_v53, %v5501_v45  ;;  %vm5508_vm8 = vweird.f32 %v8554_v53  ;;  %v7998_v55 = vmul.f32 -1.442695, %v5542_v61 }
0x4cec   :  { %vm5509_vm14 = vmor %vm5507_vm9, %vm5508_vm8 }
0x4ced   :  { %v5504_v7 = vsub.f32 1.0, %v5503_v12  ;;  %8555 = vpow2.f32 %v7998_v55 }
0x4cef   :  { %v5505_v41 = vmul.f32 %v8554_v53, %v5504_v7 }
0x4cf1   :  { %v5506_v31 = vadd.f32 %v8554_v53, %v5505_v41 }
0x4cf3   :  { %v5510_v50 = vsel %vm5509_vm14, %v8554_v53, %v5506_v31  ;;  %v8556_v0 = vpop.eup %8555 }
0x4cf4   :  { %v5515_v48 = vsel %vm5512_vm0, %v5514_v9, %v5510_v50  ;;  %v5546_v21 = vadd.f32 1.0, %v8556_v0 }
0x4cf6   :  { %8557 = vrcp.f32 %v5546_v21  ;;  %v5558_v56 = vand.u32 2147483648, %v5546_v21  ;;  %vm5552_vm4 = vweird.f32 %v5546_v21  ;;  %v5556_v10 = vand.u32 2147483647, %v5546_v21 }
0x4cf8   :  { %v5559_v60 = vor.u32 1.1754944e-38, %v5558_v56  ;;  %vm5557_vm6 = vcmp.eq.f32.partialorder %v5556_v10, 8.507059e+37 }
0x4cfc   :  { %v8558_v51 = vpop.eup %8557 }
0x4cfd   :  { %v5548_v1 = vmul.f32 %v8558_v51, %v5546_v21  ;;  %vm5553_vm2 = vweird.f32 %v8558_v51 }
0x4cfe   :  { %vm5554_vm5 = vmor %vm5552_vm4, %vm5553_vm2 }
0x4cff   :  { %v5549_v2 = vsub.f32 1.0, %v5548_v1 }
0x4d01   :  { %v5550_v8 = vmul.f32 %v8558_v51, %v5549_v2 }
0x4d03   :  { %v5551_v29 = vadd.f32 %v8558_v51, %v5550_v8 }
0x4d05   :  { %v5555_v11 = vsel %vm5554_vm5, %v8558_v51, %v5551_v29 }
0x4d06   :  { %v5560_v16 = vsel %vm5557_vm6, %v5559_v60, %v5555_v11 }
0x4d07   :  { %v5637_v20 = vmul.f32 %v5635_v17, %v5560_v16 }
0x4d53   :  { %v5640_v36 = vpop.permute.xlu0 %5639 }
0x4d54   :  { %v5642_v54 = vmul.f32 %v5640_v36, %v5515_v48 }
0x4d56   :  { %5644 = vrot.lane.b32.xlu2 %v5642_v54, %s8815_s10 }
0x4d5b   :  { %v5612_v28 = vpop.permute.xlu0 %5611 }
0x4d5c   :  { %v5614_v6 = vadd.f32 %v5612_v28, %v9700_v58 }
0x4d5e   :  { %v8001_v4 = vmul.f32 -1.442695, %v5614_v6 }
0x4db0   :  { %v5645_v63 = vpop.permute.xlu2 %5644 }
0x4db1   :  { %v9817_v24 = vadd.f32 %v5645_v63, %v5637_v20 }
0x4db3   :  { %8559 = vtanh.f32 %v9817_v24 }
0x4db4   :  { %8561 = vpow2.f32 %v8001_v4 }
0x4db9   :  { %v8560_v26 = vpop.eup %8559 }
0x4dba   :  { %5650 = vrot.lane.b32.xlu1 %v8560_v26, %s8814_s27  ;;  %v8562_v33 = vpop.eup %8561 }
0x4dbb   :  { %v5618_v34 = vadd.f32 1.0, %v8562_v33 }
0x4dbd   :  { %8563 = vrcp.f32 %v5618_v34  ;;  %v5630_v39 = vand.u32 2147483648, %v5618_v34  ;;  %vm5624_vm9 = vweird.f32 %v5618_v34  ;;  %v5628_v25 = vand.u32 2147483647, %v5618_v34 }
0x4dbf   :  { %v5631_v22 = vor.u32 1.1754944e-38, %v5630_v39  ;;  %vm5629_vm0 = vcmp.eq.f32.partialorder %v5628_v25, 8.507059e+37 }
0x4dc3   :  { %v8564_v13 = vpop.eup %8563 }
0x4dc4   :  { %v5620_v59 = vmul.f32 %v8564_v13, %v5618_v34  ;;  %vm5625_vm8 = vweird.f32 %v8564_v13  ;;  %v5821_v34 = vrot.slane %v9817_v24, 7 }
0x4dc5   :  { %vm5626_vm14 = vmor %vm5624_vm9, %vm5625_vm8 }
0x4dc6   :  { %v5621_v3 = vsub.f32 1.0, %v5620_v59 }
0x4dc8   :  { %v5622_v15 = vmul.f32 %v8564_v13, %v5621_v3 }
0x4dca   :  { %v5623_v38 = vadd.f32 %v8564_v13, %v5622_v15 }
0x4dcc   :  { %v5627_v62 = vsel %vm5626_vm14, %v8564_v13, %v5623_v38 }
0x4dcd   :  { %v5632_v43 = vsel %vm5629_vm0, %v5631_v22, %v5627_v62 }
0x4e2c   :  { %v5651_v14 = vpop.permute.xlu1 %5650 }
0x4e2d   :  { %v5653_v5 = vmul.f32 %v5651_v14, %v5632_v43 }
0x4e2f   :  { %v5655_v30 = vrot.slane %v5653_v5, 4  ;;  %v9824_v46 = vsel %vm1628_vm13, %v9797_v42, %v5653_v5  ;;  %v8754_v42 = vld [vmem:[%s10167_s6 + $0x60] sm:$0xff] }
0x4e31   :  { %5656 = vrot.lane.b32.xlu2 %v5655_v30, %s8818_s13 }
0x4e8b   :  { %v5657_v40 = vpop.permute.xlu2 %5656 }
0x4e8c   :  { %8002 = vmatmul.msk.f32.vlgmr.msra.gmra.mxu0 %vm112_vm1, %v5657_v40  ;;  %8004 = vmatmul.msk.f32.vlgmr.msra.gmra.mxu1 %vm112_vm1, %v5657_v40 }
0x4e8d   :  { %8006 = vmatmul.msk.f32.vlgmr.msrb.gmra.mxu2 %vm112_vm1, %v5657_v40  ;;  %8007 = vmatmul.msk.f32.vlgmr.msrb.gmra.mxu3 %vm112_vm1, %v5657_v40 }
0x4e8e   :  { %6135 = vmatpush.msrb.mxu2 %v8753_v32  ;;  %6047 = vmatpush.msra.mxu0 %v8754_v42 }
0x4e8f   :  { %6090 = vmatpush.msra.mxu1 %v8755_v35  ;;  %6162 = vmatpush.msrb.mxu3 %v8756_v19 }
0x4f09   :  { %v5720_v27 = vpop.f32.mrf.mxu1  ;;  %v5677_v7 = vpop.f32.mrf.mxu0 }
0x4f0a   :  { %v5724_v52 = vrot.slane %v5720_v27, 3  ;;  %v5681_v41 = vrot.slane %v5677_v7, 3 }
0x4f0c   :  { %5725 = vrot.lane.b32.xlu2 %v5724_v52, %s8815_s10  ;;  %v5683_v31 = vadd.f32 %v5681_v41, %v9700_v58 }
0x4f0e   :  { %v8003_v49 = vmul.f32 -1.442695, %v5683_v31 }
0x4f10   :  { %v5765_v18 = vpop.f32.mrf.mxu2  ;;  %v5792_v53 = vpop.f32.mrf.mxu3 }
0x4f11   :  { %v5769_v44 = vrot.slane %v5765_v18, 3  ;;  %v5796_v12 = vrot.slane %v5792_v53, 3 }
0x4f13   :  { %5770 = vrot.lane.b32.xlu0 %v5769_v44, %s8814_s27 }
0x4f66   :  { %v5726_v8 = vpop.permute.xlu2 %5725 }
0x4f67   :  { %v5728_v29 = vadd.f32 %v5726_v8, %v9700_v58 }
0x4f69   :  { %v8005_v56 = vmul.f32 -1.442695, %v5728_v29 }
0x4f85   :  { %v5771_v37 = vpop.permute.xlu0 %5770 }
0x4f86   :  { %v5773_v23 = vadd.f32 %v5771_v37, %v9700_v58 }
0x4f88   :  { %8565 = vtanh.f32 %v5773_v23 }
0x4f89   :  { %8567 = vpow2.f32 %v8003_v49 }
0x4f8e   :  { %v8566_v45 = vpop.eup %8565 }
0x4f8f   :  { %5825 = vrot.lane.b32.xlu1 %v8566_v45, %s8816_s11  ;;  %v8568_v57 = vpop.eup %8567 }
0x4f90   :  { %v5687_v50 = vadd.f32 1.0, %v8568_v57 }
0x4f92   :  { %8569 = vrcp.f32 %v5687_v50  ;;  %v5699_v61 = vand.u32 2147483648, %v5687_v50  ;;  %vm5693_vm4 = vweird.f32 %v5687_v50  ;;  %v5697_v55 = vand.u32 2147483647, %v5687_v50 }
0x4f93   :  { %8571 = vpow2.f32 %v8005_v56 }
0x4f94   :  { %v5700_v21 = vor.u32 1.1754944e-38, %v5699_v61  ;;  %vm5698_vm6 = vcmp.eq.f32.partialorder %v5697_v55, 8.507059e+37 }
0x4f97   :  { %5797 = vrot.lane.b32.xlu1 %v5796_v12, %s8817_s4 }
0x4f98   :  { %v8570_v9 = vpop.eup %8569 }
0x4f99   :  { %v5689_v36 = vmul.f32 %v8570_v9, %v5687_v50  ;;  %vm5694_vm2 = vweird.f32 %v8570_v9  ;;  %v8572_v10 = vpop.eup %8571 }
0x4f9a   :  { %vm5695_vm5 = vmor %vm5693_vm4, %vm5694_vm2  ;;  %v5732_v11 = vadd.f32 1.0, %v8572_v10 }
0x4f9b   :  { %v5690_v48 = vsub.f32 1.0, %v5689_v36 }
0x4f9c   :  { %8573 = vrcp.f32 %v5732_v11  ;;  %v5744_v26 = vand.u32 2147483648, %v5732_v11  ;;  %vm5738_vm9 = vweird.f32 %v5732_v11  ;;  %v5742_v28 = vand.u32 2147483647, %v5732_v11 }
0x4f9d   :  { %v5691_v54 = vmul.f32 %v8570_v9, %v5690_v48 }
0x4f9e   :  { %v5745_v4 = vor.u32 1.1754944e-38, %v5744_v26  ;;  %vm5743_vm0 = vcmp.eq.f32.partialorder %v5742_v28, 8.507059e+37 }
0x4f9f   :  { %v5692_v47 = vadd.f32 %v8570_v9, %v5691_v54 }
0x4fa1   :  { %v5696_v0 = vsel %vm5695_vm5, %v8570_v9, %v5692_v47 }
0x4fa2   :  { %v5701_v1 = vsel %vm5698_vm6, %v5700_v21, %v5696_v0  ;;  %v8574_v60 = vpop.eup %8573 }
0x4fa3   :  { %v5734_v16 = vmul.f32 %v8574_v60, %v5732_v11  ;;  %vm5739_vm8 = vweird.f32 %v8574_v60 }
0x4fa4   :  { %vm5740_vm14 = vmor %vm5738_vm9, %vm5739_vm8 }
0x4fa5   :  { %v5735_v17 = vsub.f32 1.0, %v5734_v16 }
0x4fa7   :  { %v5736_v20 = vmul.f32 %v8574_v60, %v5735_v17 }
0x4fa9   :  { %v5737_v63 = vadd.f32 %v8574_v60, %v5736_v20 }
0x4fab   :  { %v5741_v6 = vsel %vm5740_vm14, %v8574_v60, %v5737_v63 }
0x4fac   :  { %v5746_v33 = vsel %vm5743_vm0, %v5745_v4, %v5741_v6 }
0x4fad   :  { %v5823_v13 = vmul.f32 %v5821_v34, %v5746_v33 }
0x5001   :  { %v5826_v51 = vpop.permute.xlu1 %5825 }
0x5002   :  { %v5828_v2 = vmul.f32 %v5826_v51, %v5701_v1 }
0x5004   :  { %5830 = vrot.lane.b32.xlu0 %v5828_v2, %s8815_s10 }
0x5009   :  { %v5798_v38 = vpop.permute.xlu1 %5797 }
0x500a   :  { %v5800_v39 = vadd.f32 %v5798_v38, %v9700_v58 }
0x500c   :  { %v8008_v25 = vmul.f32 -1.442695, %v5800_v39 }
0x5076   :  { %v5831_v59 = vpop.permute.xlu0 %5830 }
0x5077   :  { %v9852_v3 = vadd.f32 %v5831_v59, %v5823_v13 }
0x5079   :  { %8575 = vtanh.f32 %v9852_v3  ;;  %v6007_v38 = vrot.slane %v9852_v3, 7 }
0x507a   :  { %8577 = vpow2.f32 %v8008_v25 }
0x507f   :  { %v8576_v15 = vpop.eup %8575 }
0x5080   :  { %5836 = vrot.lane.b32.xlu2 %v8576_v15, %s8814_s27  ;;  %v8578_v62 = vpop.eup %8577 }
0x5081   :  { %v5804_v22 = vadd.f32 1.0, %v8578_v62 }
0x5083   :  { %8579 = vrcp.f32 %v5804_v22  ;;  %v5816_v40 = vand.u32 2147483648, %v5804_v22  ;;  %vm5810_vm4 = vweird.f32 %v5804_v22  ;;  %v5814_v32 = vand.u32 2147483647, %v5804_v22 }
0x5085   :  { %v5817_v35 = vor.u32 1.1754944e-38, %v5816_v40  ;;  %vm5815_vm6 = vcmp.eq.f32.partialorder %v5814_v32, 8.507059e+37 }
0x5089   :  { %v8580_v43 = vpop.eup %8579 }
0x508a   :  { %v5806_v14 = vmul.f32 %v8580_v43, %v5804_v22  ;;  %vm5811_vm2 = vweird.f32 %v8580_v43 }
0x508b   :  { %vm5812_vm5 = vmor %vm5810_vm4, %vm5811_vm2 }
0x508c   :  { %v5807_v24 = vsub.f32 1.0, %v5806_v14 }
0x508e   :  { %v5808_v5 = vmul.f32 %v8580_v43, %v5807_v24 }
0x5090   :  { %v5809_v30 = vadd.f32 %v8580_v43, %v5808_v5 }
0x5092   :  { %v5813_v42 = vsel %vm5812_vm5, %v8580_v43, %v5809_v30 }
0x5093   :  { %v5818_v19 = vsel %vm5815_vm6, %v5817_v35, %v5813_v42 }
0x50da   :  { %v5837_v27 = vpop.permute.xlu2 %5836 }
0x50db   :  { %v5839_v52 = vmul.f32 %v5837_v27, %v5818_v19 }
0x50dd   :  { %v5841_v18 = vrot.slane %v5839_v52, 5  ;;  %v9859_v44 = vsel %vm1630_vm15, %v9824_v46, %v5839_v52 }
0x50df   :  { %5842 = vrot.lane.b32.xlu0 %v5841_v18, %s8818_s13 }
0x5151   :  { %v5843_v37 = vpop.permute.xlu0 %5842 }
0x5152   :  { %8009 = vmatmul.msk.f32.vlgmr.msrb.gmra.mxu0 %vm112_vm1, %v5843_v37  ;;  %8011 = vmatmul.msk.f32.vlgmr.msrb.gmra.mxu1 %vm112_vm1, %v5843_v37 }
0x5153   :  { %8013 = vmatmul.msk.f32.vlgmr.msra.gmra.mxu2 %vm112_vm1, %v5843_v37  ;;  %8014 = vmatmul.msk.f32.vlgmr.msra.gmra.mxu3 %vm112_vm1, %v5843_v37 }
0x51cf   :  { %v5906_v23 = vpop.f32.mrf.mxu1  ;;  %v5863_v57 = vpop.f32.mrf.mxu0 }
0x51d0   :  { %v5910_v45 = vrot.slane %v5906_v23, 2  ;;  %v5867_v50 = vrot.slane %v5863_v57, 2 }
0x51d2   :  { %5911 = vrot.lane.b32.xlu0 %v5910_v45, %s8815_s10  ;;  %v5869_v9 = vadd.f32 %v5867_v50, %v9700_v58 }
0x51d4   :  { %v8010_v36 = vmul.f32 -1.442695, %v5869_v9 }
0x51d6   :  { %v5951_v53 = vpop.f32.mrf.mxu2  ;;  %v5978_v31 = vpop.f32.mrf.mxu3 }
0x51d7   :  { %v5955_v12 = vrot.slane %v5951_v53, 2  ;;  %v5982_v49 = vrot.slane %v5978_v31, 2 }
0x51d9   :  { %5956 = vrot.lane.b32.xlu1 %v5955_v12, %s8814_s27 }
0x5244   :  { %v5912_v11 = vpop.permute.xlu0 %5911 }
0x5245   :  { %v5914_v60 = vadd.f32 %v5912_v11, %v9700_v58 }
0x5247   :  { %v8012_v16 = vmul.f32 -1.442695, %v5914_v60 }
0x524b   :  { %v5957_v46 = vpop.permute.xlu1 %5956 }
0x524c   :  { %v5959_v7 = vadd.f32 %v5957_v46, %v9700_v58 }
0x524e   :  { %8581 = vtanh.f32 %v5959_v7 }
0x524f   :  { %8583 = vpow2.f32 %v8010_v36 }
0x5254   :  { %v8582_v41 = vpop.eup %8581 }
0x5255   :  { %6011 = vrot.lane.b32.xlu2 %v8582_v41, %s8816_s11  ;;  %v8584_v48 = vpop.eup %8583 }
0x5256   :  { %v5873_v54 = vadd.f32 1.0, %v8584_v48 }
0x5258   :  { %8585 = vrcp.f32 %v5873_v54  ;;  %v5885_v51 = vand.u32 2147483648, %v5873_v54  ;;  %vm5879_vm9 = vweird.f32 %v5873_v54  ;;  %v5883_v1 = vand.u32 2147483647, %v5873_v54 }
0x5259   :  { %8587 = vpow2.f32 %v8012_v16 }
0x525a   :  { %v5886_v8 = vor.u32 1.1754944e-38, %v5885_v51  ;;  %vm5884_vm0 = vcmp.eq.f32.partialorder %v5883_v1, 8.507059e+37 }
0x525d   :  { %5983 = vrot.lane.b32.xlu2 %v5982_v49, %s8817_s4 }
0x525e   :  { %v8586_v47 = vpop.eup %8585 }
0x525f   :  { %v5875_v61 = vmul.f32 %v8586_v47, %v5873_v54  ;;  %vm5880_vm8 = vweird.f32 %v8586_v47  ;;  %v8588_v17 = vpop.eup %8587 }
0x5260   :  { %vm5881_vm14 = vmor %vm5879_vm9, %vm5880_vm8  ;;  %v5918_v20 = vadd.f32 1.0, %v8588_v17 }
0x5261   :  { %v5876_v55 = vsub.f32 1.0, %v5875_v61 }
0x5262   :  { %8589 = vrcp.f32 %v5918_v20  ;;  %v5930_v33 = vand.u32 2147483648, %v5918_v20  ;;  %vm5924_vm4 = vweird.f32 %v5918_v20  ;;  %v5928_v34 = vand.u32 2147483647, %v5918_v20 }
0x5263   :  { %v5877_v0 = vmul.f32 %v8586_v47, %v5876_v55 }
0x5264   :  { %v5931_v59 = vor.u32 1.1754944e-38, %v5930_v33  ;;  %vm5929_vm6 = vcmp.eq.f32.partialorder %v5928_v34, 8.507059e+37 }
0x5265   :  { %v5878_v21 = vadd.f32 %v8586_v47, %v5877_v0 }
0x5267   :  { %v5882_v2 = vsel %vm5881_vm14, %v8586_v47, %v5878_v21 }
0x5268   :  { %v5887_v56 = vsel %vm5884_vm0, %v5886_v8, %v5882_v2  ;;  %v8590_v63 = vpop.eup %8589 }
0x5269   :  { %v5920_v26 = vmul.f32 %v8590_v63, %v5918_v20  ;;  %vm5925_vm2 = vweird.f32 %v8590_v63 }
0x526a   :  { %vm5926_vm5 = vmor %vm5924_vm4, %vm5925_vm2 }
0x526b   :  { %v5921_v28 = vsub.f32 1.0, %v5920_v26 }
0x526d   :  { %v5922_v6 = vmul.f32 %v8590_v63, %v5921_v28 }
0x526f   :  { %v5923_v4 = vadd.f32 %v8590_v63, %v5922_v6 }
0x5271   :  { %v5927_v13 = vsel %vm5926_vm5, %v8590_v63, %v5923_v4 }
0x5272   :  { %v5932_v15 = vsel %vm5929_vm6, %v5931_v59, %v5927_v13 }
0x5273   :  { %v6009_v39 = vmul.f32 %v6007_v38, %v5932_v15 }
0x52af   :  { %v6012_v29 = vpop.permute.xlu2 %6011 }
0x52b0   :  { %v6014_v10 = vmul.f32 %v6012_v29, %v5887_v56 }
0x52b2   :  { %6016 = vrot.lane.b32.xlu1 %v6014_v10, %s8815_s10 }
0x52b7   :  { %v5984_v43 = vpop.permute.xlu2 %5983 }
0x52b8   :  { %v5986_v14 = vadd.f32 %v5984_v43, %v9700_v58 }
0x52ba   :  { %v8015_v24 = vmul.f32 -1.442695, %v5986_v14 }
0x5324   :  { %v6017_v25 = vpop.permute.xlu1 %6016 }
0x5325   :  { %v9875_v62 = vadd.f32 %v6017_v25, %v6009_v39 }
0x5327   :  { %8591 = vtanh.f32 %v9875_v62  ;;  %v6193_v43 = vrot.slane %v9875_v62, 7  ;;  %v9906_v62 = vld [vmem:[%s10167_s6 + $0x90] sm:$0xff] }
0x5328   :  { %8593 = vpow2.f32 %v8015_v24  ;;  %6364 = vmatpush.msra.mxu3 %v9906_v62 }
0x532d   :  { %v8592_v22 = vpop.eup %8591 }
0x532e   :  { %6022 = vrot.lane.b32.xlu0 %v8592_v22, %s8814_s27  ;;  %v8594_v5 = vpop.eup %8593 }
0x532f   :  { %v5990_v30 = vadd.f32 1.0, %v8594_v5 }
0x5331   :  { %8595 = vrcp.f32 %v5990_v30  ;;  %v6002_v19 = vand.u32 2147483648, %v5990_v30  ;;  %vm5996_vm9 = vweird.f32 %v5990_v30  ;;  %v6000_v27 = vand.u32 2147483647, %v5990_v30 }
0x5333   :  { %v6003_v18 = vor.u32 1.1754944e-38, %v6002_v19  ;;  %vm6001_vm0 = vcmp.eq.f32.partialorder %v6000_v27, 8.507059e+37  ;;  %v9911_v19 = vld [vmem:[%s10167_s6 + $0x80] sm:$0xff]  ;;  %v9916_v27 = vld [vmem:[%s10167_s6 + $0x88] sm:$0xff] }
0x5334   :  { %6280 = vmatpush.msrb.mxu1 %v9911_v19  ;;  %6320 = vmatpush.msra.mxu2 %v9916_v27 }
0x5337   :  { %v8596_v40 = vpop.eup %8595 }
0x5338   :  { %v5992_v32 = vmul.f32 %v8596_v40, %v5990_v30  ;;  %vm5997_vm8 = vweird.f32 %v8596_v40 }
0x5339   :  { %vm5998_vm14 = vmor %vm5996_vm9, %vm5997_vm8 }
0x533a   :  { %v5993_v3 = vsub.f32 1.0, %v5992_v32 }
0x533c   :  { %v5994_v42 = vmul.f32 %v8596_v40, %v5993_v3 }
0x533e   :  { %v5995_v35 = vadd.f32 %v8596_v40, %v5994_v42 }
0x5340   :  { %v5999_v52 = vsel %vm5998_vm14, %v8596_v40, %v5995_v35 }
0x5341   :  { %v6004_v37 = vsel %vm6001_vm0, %v6003_v18, %v5999_v52 }
0x53a0   :  { %v6023_v23 = vpop.permute.xlu0 %6022 }
0x53a1   :  { %v6025_v45 = vmul.f32 %v6023_v23, %v6004_v37 }
0x53a3   :  { %v6027_v53 = vrot.slane %v6025_v45, 6  ;;  %v9882_v12 = vsel %vm1632_vm3, %v9859_v44, %v6025_v45 }
0x53a5   :  { %6028 = vrot.lane.b32.xlu1 %v6027_v53, %s8818_s13 }
0x5417   :  { %v6029_v46 = vpop.permute.xlu1 %6028 }
0x5418   :  { %8016 = vmatmul.msk.f32.vlgmr.msra.gmra.mxu0 %vm112_vm1, %v6029_v46  ;;  %8018 = vmatmul.msk.f32.vlgmr.msra.gmra.mxu1 %vm112_vm1, %v6029_v46 }
0x5419   :  { %8020 = vmatmul.msk.f32.vlgmr.msrb.gmra.mxu2 %vm112_vm1, %v6029_v46  ;;  %8021 = vmatmul.msk.f32.vlgmr.msrb.gmra.mxu3 %vm112_vm1, %v6029_v46 }
0x541a   :  { %6547 = vmatpush.msrb.mxu3 %v9906_v62  ;;  %6459 = vmatpush.msra.mxu1 %v9911_v19 }
0x541b   :  { %6502 = vmatpush.msrb.mxu2 %v9916_v27 }
0x5495   :  { %v6092_v7 = vpop.f32.mrf.mxu1  ;;  %v6049_v48 = vpop.f32.mrf.mxu0 }
0x5496   :  { %v6096_v41 = vrot.slane %v6092_v7, 1  ;;  %v6053_v54 = vrot.slane %v6049_v48, 1 }
0x5498   :  { %6097 = vrot.lane.b32.xlu1 %v6096_v41, %s8815_s10  ;;  %v6055_v47 = vadd.f32 %v6053_v54, %v9700_v58 }
0x549a   :  { %v8017_v61 = vmul.f32 -1.442695, %v6055_v47  ;;  %v8100_v47 = vld [vmem:[%s10166_s5 + $0x48] ss:$0 sm:$0xff] }
0x549c   :  { %v6137_v31 = vpop.f32.mrf.mxu2  ;;  %v6164_v9 = vpop.f32.mrf.mxu3 }
0x549d   :  { %v6141_v49 = vrot.slane %v6137_v31, 1  ;;  %v6168_v36 = vrot.slane %v6164_v9, 1  ;;  %v9934_v9 = vld [vmem:[%s10167_s6 + $0x98] sm:$0xff] }
0x549f   :  { %6142 = vrot.lane.b32.xlu2 %v6141_v49, %s8814_s27 }
0x54f9   :  { %v6143_v44 = vpop.permute.xlu2 %6142 }
0x54fa   :  { %v6145_v57 = vadd.f32 %v6143_v44, %v9700_v58 }
0x54fc   :  { %8597 = vtanh.f32 %v6145_v57 }
0x54fd   :  { %8599 = vpow2.f32 %v8017_v61 }
0x5502   :  { %v8598_v50 = vpop.eup %8597 }
0x5503   :  { %6197 = vrot.lane.b32.xlu0 %v8598_v50, %s8816_s11  ;;  %v8600_v55 = vpop.eup %8599  ;;  %v8023_v50 = vld [vmem:[%s10166_s5 + $0x40] sm:$0xff] }
0x5504   :  { %v6059_v0 = vadd.f32 1.0, %v8600_v55  ;;  %6246 = vmatpush.msrb.mxu0 %v8023_v50 }
0x5506   :  { %8601 = vrcp.f32 %v6059_v0  ;;  %v6071_v29 = vand.u32 2147483648, %v6059_v0  ;;  %vm6065_vm4 = vweird.f32 %v6059_v0  ;;  %v6069_v56 = vand.u32 2147483647, %v6059_v0  ;;  %6390 = vmatpush.msra.mxu0 %v9934_v9 }
0x5508   :  { %v6072_v11 = vor.u32 1.1754944e-38, %v6071_v29  ;;  %vm6070_vm6 = vcmp.eq.f32.partialorder %v6069_v56, 8.507059e+37 }
0x550a   :  { %v6098_v20 = vpop.permute.xlu1 %6097 }
0x550b   :  { %6169 = vrot.lane.b32.xlu0 %v6168_v36, %s8817_s4  ;;  %v6100_v63 = vadd.f32 %v6098_v20, %v9700_v58 }
0x550c   :  { %v8602_v21 = vpop.eup %8601 }
0x550d   :  { %v6061_v51 = vmul.f32 %v8602_v21, %v6059_v0  ;;  %vm6066_vm2 = vweird.f32 %v8602_v21  ;;  %v8019_v26 = vmul.f32 -1.442695, %v6100_v63 }
0x550e   :  { %vm6067_vm5 = vmor %vm6065_vm4, %vm6066_vm2 }
0x550f   :  { %v6062_v1 = vsub.f32 1.0, %v6061_v51  ;;  %8603 = vpow2.f32 %v8019_v26 }
0x5511   :  { %v6063_v2 = vmul.f32 %v8602_v21, %v6062_v1 }
0x5513   :  { %v6064_v8 = vadd.f32 %v8602_v21, %v6063_v2 }
0x5515   :  { %v6068_v10 = vsel %vm6067_vm5, %v8602_v21, %v6064_v8  ;;  %v8604_v28 = vpop.eup %8603 }
0x5516   :  { %v6073_v16 = vsel %vm6070_vm6, %v6072_v11, %v6068_v10  ;;  %v6104_v6 = vadd.f32 1.0, %v8604_v28 }
0x5518   :  { %8605 = vrcp.f32 %v6104_v6  ;;  %v6116_v15 = vand.u32 2147483648, %v6104_v6  ;;  %vm6110_vm9 = vweird.f32 %v6104_v6  ;;  %v6114_v38 = vand.u32 2147483647, %v6104_v6 }
0x551a   :  { %v6117_v25 = vor.u32 1.1754944e-38, %v6116_v15  ;;  %vm6115_vm0 = vcmp.eq.f32.partialorder %v6114_v38, 8.507059e+37 }
0x551e   :  { %v8606_v4 = vpop.eup %8605 }
0x551f   :  { %v6106_v33 = vmul.f32 %v8606_v4, %v6104_v6  ;;  %vm6111_vm8 = vweird.f32 %v8606_v4 }
0x5520   :  { %vm6112_vm14 = vmor %vm6110_vm9, %vm6111_vm8 }
0x5521   :  { %v6107_v34 = vsub.f32 1.0, %v6106_v33 }
0x5523   :  { %v6108_v13 = vmul.f32 %v8606_v4, %v6107_v34 }
0x5525   :  { %v6109_v59 = vadd.f32 %v8606_v4, %v6108_v13 }
0x5527   :  { %v6113_v39 = vsel %vm6112_vm14, %v8606_v4, %v6109_v59 }
0x5528   :  { %v6118_v22 = vsel %vm6115_vm0, %v6117_v25, %v6113_v39 }
0x5529   :  { %v6195_v14 = vmul.f32 %v6193_v43, %v6118_v22 }
0x5575   :  { %v6198_v60 = vpop.permute.xlu0 %6197 }
0x5576   :  { %v6200_v17 = vmul.f32 %v6198_v60, %v6073_v16 }
0x5578   :  { %6202 = vrot.lane.b32.xlu2 %v6200_v17, %s8815_s10 }
0x557d   :  { %v6170_v40 = vpop.permute.xlu0 %6169 }
0x557e   :  { %v6172_v32 = vadd.f32 %v6170_v40, %v9700_v58 }
0x5580   :  { %v8022_v3 = vmul.f32 -1.442695, %v6172_v32 }
0x55d2   :  { %v6203_v24 = vpop.permute.xlu2 %6202 }
0x55d3   :  { %v9898_v5 = vadd.f32 %v6203_v24, %v6195_v14 }
0x55d5   :  { %8607 = vtanh.f32 %v9898_v5 }
0x55d6   :  { %8609 = vpow2.f32 %v8022_v3 }
0x55db   :  { %v8608_v30 = vpop.eup %8607 }
0x55dc   :  { %6208 = vrot.lane.b32.xlu1 %v8608_v30, %s8814_s27  ;;  %v8610_v42 = vpop.eup %8609 }
0x55dd   :  { %v6176_v35 = vadd.f32 1.0, %v8610_v42 }
0x55df   :  { %8611 = vrcp.f32 %v6176_v35  ;;  %v6188_v45 = vand.u32 2147483648, %v6176_v35  ;;  %vm6182_vm4 = vweird.f32 %v6176_v35  ;;  %v6186_v53 = vand.u32 2147483647, %v6176_v35 }
0x55e1   :  { %v6189_v7 = vor.u32 1.1754944e-38, %v6188_v45  ;;  %vm6187_vm6 = vcmp.eq.f32.partialorder %v6186_v53, 8.507059e+37 }
0x55e5   :  { %v8612_v58 = vpop.eup %8611 }
0x55e6   :  { %v6178_v52 = vmul.f32 %v8612_v58, %v6176_v35  ;;  %vm6183_vm2 = vweird.f32 %v8612_v58  ;;  %v6420_v35 = vrot.slane %v9898_v5, 7 }
0x55e7   :  { %vm6184_vm5 = vmor %vm6182_vm4, %vm6183_vm2 }
0x55e8   :  { %v6179_v18 = vsub.f32 1.0, %v6178_v52 }
0x55ea   :  { %v6180_v37 = vmul.f32 %v8612_v58, %v6179_v18 }
0x55ec   :  { %v6181_v23 = vadd.f32 %v8612_v58, %v6180_v37 }
0x55ee   :  { %v6185_v46 = vsel %vm6184_vm5, %v8612_v58, %v6181_v23 }
0x55ef   :  { %v6190_v41 = vsel %vm6187_vm6, %v6189_v7, %v6185_v46 }
0x564e   :  { %v6209_v31 = vpop.permute.xlu1 %6208 }
0x564f   :  { %v6211_v49 = vmul.f32 %v6209_v31, %v6190_v41 }
0x5651   :  { %v6260_v44 = vrot.slane %v6211_v49, 7  ;;  %v6218_v57 = vsel %vm1634_vm7, %v9882_v12, %v6211_v49 }
0x5652   :  { %6220 = vrot.lane.b32.xlu0 %v6218_v57, %s8818_s13 }
0x5653   :  { %6261 = vrot.lane.b32.xlu2 %v6260_v44, %s8818_s13 }
0x56ad   :  { %v6262_v36 = vpop.permute.xlu2 %6261 }
0x56ae   :  { %8030 = vmatmul.msk.f32.vlgmr.msrb.gmra.mxu1 %vm112_vm1, %v6262_v36  ;;  %8032 = vmatmul.msk.f32.vlgmr.msra.gmra.mxu2 %vm112_vm1, %v6262_v36 }
0x56af   :  { %8034 = vmatmul.msk.f32.vlgmr.msra.gmra.mxu3 %vm112_vm1, %v6262_v36  ;;  %6645 = vmatpush.msrb.mxu1 %v9911_v19 }
0x56b0   :  { %6733 = vmatpush.msra.mxu3 %v9906_v62  ;;  %6688 = vmatpush.msra.mxu2 %v9916_v27 }
0x56c4   :  { %v6221_v12 = vpop.permute.xlu0 %6220 }
0x56c5   :  { %6224 = vst.msk [vmem:[#allocation5 + $0x18] sm:$0xff] %vm112_vm1, %v6221_v12  ;;  %8025 = vmatmul.msk.f32.vlgmr.msrb.gmra.mxu0 %vm112_vm1, %v6221_v12 }
0x56c6   :  { %6574 = vmatpush.msrb.mxu0 %v9934_v9 }
0x56cd   :  { %8035 = vmatmul.msk.f32.vlgmr.msra.gmra.mxu0 %vm112_vm1, %v6262_v36 }
0x56ce   :  { %6760 = vmatpush.msra.mxu0 %v9934_v9 }
0x572b   :  { %v6282_v2 = vpop.f32.mrf.mxu1 }
0x5731   :  { %v6322_v48 = vpop.f32.mrf.mxu2 }
0x5732   :  { %v6366_v54 = vpop.f32.mrf.mxu3  ;;  %6326 = vrot.lane.b32.xlu0 %v6322_v48, %s8815_s10 }
0x5733   :  { %6370 = vrot.lane.b32.xlu1 %v6366_v54, %s8814_s27 }
0x5742   :  { %v6248_v61 = vpop.f32.mrf.mxu0 }
0x5743   :  { %v9953_v55 = vadd.f32 %v8100_v47, %v6248_v61 }
0x5745   :  { %v6285_v8 = vadd.f32 %v6282_v2, %v9953_v55 }
0x5747   :  { %v8031_v29 = vmul.f32 -1.442695, %v6285_v8 }
0x574a   :  { %v6392_v1 = vpop.f32.mrf.mxu0 }
0x57a4   :  { %v6327_v13 = vpop.permute.xlu0 %6326 }
0x57a5   :  { %v6371_v0 = vpop.permute.xlu1 %6370  ;;  %v6329_v59 = vadd.f32 %v6327_v13, %v9953_v55 }
0x57a6   :  { %v6373_v21 = vadd.f32 %v6371_v0, %v9953_v55 }
0x57a7   :  { %v8033_v15 = vmul.f32 -1.442695, %v6329_v59 }
0x57a8   :  { %8613 = vtanh.f32 %v6373_v21 }
0x57a9   :  { %8615 = vpow2.f32 %v8031_v29 }
0x57ae   :  { %v8614_v51 = vpop.eup %8613 }
0x57af   :  { %6424 = vrot.lane.b32.xlu2 %v8614_v51, %s8816_s11  ;;  %v8616_v56 = vpop.eup %8615 }
0x57b0   :  { %v6289_v10 = vadd.f32 1.0, %v8616_v56 }
0x57b2   :  { %8617 = vrcp.f32 %v6289_v10  ;;  %v6301_v63 = vand.u32 2147483648, %v6289_v10  ;;  %vm6295_vm9 = vweird.f32 %v6289_v10  ;;  %v6299_v26 = vand.u32 2147483647, %v6289_v10 }
0x57b3   :  { %8619 = vpow2.f32 %v8033_v15 }
0x57b4   :  { %v6302_v6 = vor.u32 1.1754944e-38, %v6301_v63  ;;  %vm6300_vm0 = vcmp.eq.f32.partialorder %v6299_v26, 8.507059e+37 }
0x57b7   :  { %6396 = vrot.lane.b32.xlu2 %v6392_v1, %s8817_s4 }
0x57b8   :  { %v8618_v11 = vpop.eup %8617 }
0x57b9   :  { %v6291_v60 = vmul.f32 %v8618_v11, %v6289_v10  ;;  %vm6296_vm8 = vweird.f32 %v8618_v11  ;;  %v8620_v38 = vpop.eup %8619 }
0x57ba   :  { %vm6297_vm14 = vmor %vm6295_vm9, %vm6296_vm8  ;;  %v6333_v39 = vadd.f32 1.0, %v8620_v38 }
0x57bb   :  { %v6292_v16 = vsub.f32 1.0, %v6291_v60 }
0x57bc   :  { %8621 = vrcp.f32 %v6333_v39  ;;  %v6345_v30 = vand.u32 2147483648, %v6333_v39  ;;  %vm6339_vm4 = vweird.f32 %v6333_v39  ;;  %v6343_v40 = vand.u32 2147483647, %v6333_v39 }
0x57bd   :  { %v6293_v17 = vmul.f32 %v8618_v11, %v6292_v16 }
0x57be   :  { %v6346_v3 = vor.u32 1.1754944e-38, %v6345_v30  ;;  %vm6344_vm6 = vcmp.eq.f32.partialorder %v6343_v40, 8.507059e+37 }
0x57bf   :  { %v6294_v20 = vadd.f32 %v8618_v11, %v6293_v17 }
0x57c1   :  { %v6298_v28 = vsel %vm6297_vm14, %v8618_v11, %v6294_v20 }
0x57c2   :  { %v6303_v33 = vsel %vm6300_vm0, %v6302_v6, %v6298_v28  ;;  %v8622_v25 = vpop.eup %8621 }
0x57c3   :  { %v6335_v22 = vmul.f32 %v8622_v25, %v6333_v39  ;;  %vm6340_vm2 = vweird.f32 %v8622_v25 }
0x57c4   :  { %vm6341_vm5 = vmor %vm6339_vm4, %vm6340_vm2 }
0x57c5   :  { %v6336_v43 = vsub.f32 1.0, %v6335_v22 }
0x57c7   :  { %v6337_v14 = vmul.f32 %v8622_v25, %v6336_v43 }
0x57c9   :  { %v6338_v24 = vadd.f32 %v8622_v25, %v6337_v14 }
0x57cb   :  { %v6342_v32 = vsel %vm6341_vm5, %v8622_v25, %v6338_v24 }
0x57cc   :  { %v6347_v42 = vsel %vm6344_vm6, %v6346_v3, %v6342_v32 }
0x57cd   :  { %v6422_v58 = vmul.f32 %v6420_v35, %v6347_v42 }
0x5809   :  { %v6425_v4 = vpop.permute.xlu2 %6424 }
0x580a   :  { %v6427_v34 = vmul.f32 %v6425_v4, %v6303_v33 }
0x580c   :  { %6429 = vrot.lane.b32.xlu1 %v6427_v34, %s8815_s10 }
0x5811   :  { %v6397_v23 = vpop.permute.xlu2 %6396 }
0x5812   :  { %v6399_v45 = vadd.f32 %v6397_v23, %v9953_v55 }
0x5814   :  { %v8036_v53 = vmul.f32 -1.442695, %v6399_v45 }
0x587e   :  { %v6430_v52 = vpop.permute.xlu1 %6429 }
0x587f   :  { %v9962_v18 = vadd.f32 %v6430_v52, %v6422_v58 }
0x5881   :  { %8623 = vtanh.f32 %v9962_v18 }
0x5882   :  { %8625 = vpow2.f32 %v8036_v53  ;;  %v6605_v53 = vrot.slane %v9962_v18, 7 }
0x5887   :  { %v8624_v37 = vpop.eup %8623 }
0x5888   :  { %6435 = vrot.lane.b32.xlu0 %v8624_v37, %s8814_s27  ;;  %v8626_v46 = vpop.eup %8625 }
0x5889   :  { %v6403_v7 = vadd.f32 1.0, %v8626_v46 }
0x588b   :  { %8627 = vrcp.f32 %v6403_v7  ;;  %v6415_v57 = vand.u32 2147483648, %v6403_v7  ;;  %vm6409_vm9 = vweird.f32 %v6403_v7  ;;  %v6413_v50 = vand.u32 2147483647, %v6403_v7 }
0x588d   :  { %v6416_v12 = vor.u32 1.1754944e-38, %v6415_v57  ;;  %vm6414_vm0 = vcmp.eq.f32.partialorder %v6413_v50, 8.507059e+37 }
0x5891   :  { %v8628_v41 = vpop.eup %8627 }
0x5892   :  { %v6405_v31 = vmul.f32 %v8628_v41, %v6403_v7  ;;  %vm6410_vm8 = vweird.f32 %v8628_v41 }
0x5893   :  { %vm6411_vm14 = vmor %vm6409_vm9, %vm6410_vm8 }
0x5894   :  { %v6406_v5 = vsub.f32 1.0, %v6405_v31 }
0x5896   :  { %v6407_v49 = vmul.f32 %v8628_v41, %v6406_v5 }
0x5898   :  { %v6408_v44 = vadd.f32 %v8628_v41, %v6407_v49 }
0x589a   :  { %v6412_v36 = vsel %vm6411_vm14, %v8628_v41, %v6408_v44 }
0x589b   :  { %v6417_v48 = vsel %vm6414_vm0, %v6416_v12, %v6412_v36 }
0x58fa   :  { %v6436_v54 = vpop.permute.xlu0 %6435 }
0x58fb   :  { %v9967_v47 = vmul.f32 %v6436_v54, %v6417_v48 }
0x58fd   :  { %6440 = vrot.lane.b32.xlu1 %v9967_v47, %s8818_s13 }
0x596f   :  { %v6441_v61 = vpop.permute.xlu1 %6440 }
0x5970   :  { %8037 = vmatmul.msk.f32.vlgmr.msra.gmra.mxu1 %vm112_vm1, %v6441_v61  ;;  %8039 = vmatmul.msk.f32.vlgmr.msrb.gmra.mxu2 %vm112_vm1, %v6441_v61 }
0x5971   :  { %8041 = vmatmul.msk.f32.vlgmr.msrb.gmra.mxu3 %vm112_vm1, %v6441_v61  ;;  %8042 = vmatmul.msk.f32.vlgmr.msrb.gmra.mxu0 %vm112_vm1, %v6441_v61 }
0x5972   :  { %6919 = vmatpush.msrb.mxu3 %v9906_v62  ;;  %6831 = vmatpush.msra.mxu1 %v9911_v19 }
0x5973   :  { %6874 = vmatpush.msrb.mxu2 %v9916_v27  ;;  %6946 = vmatpush.msrb.mxu0 %v9934_v9 }
0x59ed   :  { %v6461_v11 = vpop.f32.mrf.mxu1 }
0x59ee   :  { %v6576_v56 = vpop.f32.mrf.mxu0  ;;  %v6465_v60 = vrot.slane %v6461_v11, 7 }
0x59ef   :  { %v6580_v10 = vrot.slane %v6576_v56, 7 }
0x59f0   :  { %v6467_v16 = vadd.f32 %v6465_v60, %v9953_v55 }
0x59f2   :  { %v8038_v17 = vmul.f32 -1.442695, %v6467_v16 }
0x59f3   :  { %v6504_v0 = vpop.f32.mrf.mxu2 }
0x59f4   :  { %v6508_v21 = vrot.slane %v6504_v0, 7  ;;  %v6549_v51 = vpop.f32.mrf.mxu3 }
0x59f5   :  { %v6553_v1 = vrot.slane %v6549_v51, 7 }
0x59f6   :  { %6509 = vrot.lane.b32.xlu1 %v6508_v21, %s8815_s10 }
0x59f7   :  { %6554 = vrot.lane.b32.xlu2 %v6553_v1, %s8814_s27 }
0x5a51   :  { %v6555_v2 = vpop.permute.xlu2 %6554 }
0x5a52   :  { %v6557_v8 = vadd.f32 %v6555_v2, %v9953_v55 }
0x5a54   :  { %8629 = vtanh.f32 %v6557_v8 }
0x5a55   :  { %8631 = vpow2.f32 %v8038_v17 }
0x5a5a   :  { %v8630_v29 = vpop.eup %8629 }
0x5a5b   :  { %6609 = vrot.lane.b32.xlu0 %v8630_v29, %s8816_s11  ;;  %v8632_v20 = vpop.eup %8631 }
0x5a5c   :  { %v6471_v63 = vadd.f32 1.0, %v8632_v20 }
0x5a5e   :  { %8633 = vrcp.f32 %v6471_v63  ;;  %v6483_v34 = vand.u32 2147483648, %v6471_v63  ;;  %vm6477_vm4 = vweird.f32 %v6471_v63  ;;  %v6481_v13 = vand.u32 2147483647, %v6471_v63 }
0x5a60   :  { %v6484_v15 = vor.u32 1.1754944e-38, %v6483_v34  ;;  %vm6482_vm6 = vcmp.eq.f32.partialorder %v6481_v13, 8.507059e+37 }
0x5a63   :  { %6581 = vrot.lane.b32.xlu0 %v6580_v10, %s8817_s4 }
0x5a64   :  { %v8634_v26 = vpop.eup %8633 }
0x5a65   :  { %v6473_v28 = vmul.f32 %v8634_v26, %v6471_v63  ;;  %vm6478_vm2 = vweird.f32 %v8634_v26 }
0x5a66   :  { %vm6479_vm5 = vmor %vm6477_vm4, %vm6478_vm2 }
0x5a67   :  { %v6474_v6 = vsub.f32 1.0, %v6473_v28 }
0x5a68   :  { %v6510_v22 = vpop.permute.xlu1 %6509 }
0x5a69   :  { %v6475_v4 = vmul.f32 %v8634_v26, %v6474_v6  ;;  %v6512_v43 = vadd.f32 %v6510_v22, %v9953_v55 }
0x5a6b   :  { %v6476_v33 = vadd.f32 %v8634_v26, %v6475_v4  ;;  %v8040_v14 = vmul.f32 -1.442695, %v6512_v43 }
0x5a6d   :  { %v6480_v59 = vsel %vm6479_vm5, %v8634_v26, %v6476_v33  ;;  %8635 = vpow2.f32 %v8040_v14 }
0x5a6e   :  { %v6485_v39 = vsel %vm6482_vm6, %v6484_v15, %v6480_v59 }
0x5a73   :  { %v8636_v24 = vpop.eup %8635 }
0x5a74   :  { %v6516_v30 = vadd.f32 1.0, %v8636_v24 }
0x5a76   :  { %8637 = vrcp.f32 %v6516_v30  ;;  %v6528_v58 = vand.u32 2147483648, %v6516_v30  ;;  %vm6522_vm9 = vweird.f32 %v6516_v30  ;;  %v6526_v52 = vand.u32 2147483647, %v6516_v30 }
0x5a78   :  { %v6529_v23 = vor.u32 1.1754944e-38, %v6528_v58  ;;  %vm6527_vm0 = vcmp.eq.f32.partialorder %v6526_v52, 8.507059e+37 }
0x5a7c   :  { %v8638_v40 = vpop.eup %8637 }
0x5a7d   :  { %v6518_v32 = vmul.f32 %v8638_v40, %v6516_v30  ;;  %vm6523_vm8 = vweird.f32 %v8638_v40 }
0x5a7e   :  { %vm6524_vm14 = vmor %vm6522_vm9, %vm6523_vm8 }
0x5a7f   :  { %v6519_v3 = vsub.f32 1.0, %v6518_v32 }
0x5a81   :  { %v6520_v42 = vmul.f32 %v8638_v40, %v6519_v3 }
0x5a83   :  { %v6521_v35 = vadd.f32 %v8638_v40, %v6520_v42 }
0x5a85   :  { %v6525_v37 = vsel %vm6524_vm14, %v8638_v40, %v6521_v35 }
0x5a86   :  { %v6530_v45 = vsel %vm6527_vm0, %v6529_v23, %v6525_v37 }
0x5a87   :  { %v6607_v46 = vmul.f32 %v6605_v53, %v6530_v45 }
0x5acd   :  { %v6610_v38 = vpop.permute.xlu0 %6609 }
0x5ace   :  { %v6612_v25 = vmul.f32 %v6610_v38, %v6485_v39 }
0x5ad0   :  { %6614 = vrot.lane.b32.xlu2 %v6612_v25, %s8815_s10 }
0x5ad5   :  { %v6582_v5 = vpop.permute.xlu0 %6581 }
0x5ad6   :  { %v6584_v49 = vadd.f32 %v6582_v5, %v9953_v55 }
0x5ad8   :  { %v8043_v44 = vmul.f32 -1.442695, %v6584_v49 }
0x5b2a   :  { %v6615_v7 = vpop.permute.xlu2 %6614 }
0x5b2b   :  { %v9988_v41 = vadd.f32 %v6615_v7, %v6607_v46 }
0x5b2d   :  { %8639 = vtanh.f32 %v9988_v41 }
0x5b2e   :  { %8641 = vpow2.f32 %v8043_v44 }
0x5b33   :  { %v8640_v31 = vpop.eup %8639 }
0x5b34   :  { %6620 = vrot.lane.b32.xlu1 %v8640_v31, %s8814_s27  ;;  %v8642_v57 = vpop.eup %8641 }
0x5b35   :  { %v6588_v50 = vadd.f32 1.0, %v8642_v57 }
0x5b37   :  { %8643 = vrcp.f32 %v6588_v50  ;;  %v6600_v61 = vand.u32 2147483648, %v6588_v50  ;;  %vm6594_vm4 = vweird.f32 %v6588_v50  ;;  %v6598_v0 = vand.u32 2147483647, %v6588_v50 }
0x5b39   :  { %v6601_v51 = vor.u32 1.1754944e-38, %v6600_v61  ;;  %vm6599_vm6 = vcmp.eq.f32.partialorder %v6598_v0, 8.507059e+37 }
0x5b3d   :  { %v8644_v36 = vpop.eup %8643 }
0x5b3e   :  { %v6590_v12 = vmul.f32 %v8644_v36, %v6588_v50  ;;  %vm6595_vm2 = vweird.f32 %v8644_v36  ;;  %v6791_v50 = vrot.slane %v9988_v41, 7 }
0x5b3f   :  { %vm6596_vm5 = vmor %vm6594_vm4, %vm6595_vm2 }
0x5b40   :  { %v6591_v18 = vsub.f32 1.0, %v6590_v12 }
0x5b42   :  { %v6592_v48 = vmul.f32 %v8644_v36, %v6591_v18 }
0x5b44   :  { %v6593_v54 = vadd.f32 %v8644_v36, %v6592_v48 }
0x5b46   :  { %v6597_v21 = vsel %vm6596_vm5, %v8644_v36, %v6593_v54 }
0x5b47   :  { %v6602_v1 = vsel %vm6599_vm6, %v6601_v51, %v6597_v21 }
0x5ba6   :  { %v6621_v2 = vpop.permute.xlu1 %6620 }
0x5ba7   :  { %v9993_v8 = vmul.f32 %v6621_v2, %v6602_v1 }
0x5ba9   :  { %v6625_v29 = vrot.slane %v9993_v8, 1 }
0x5bab   :  { %6626 = vrot.lane.b32.xlu2 %v6625_v29, %s8818_s13 }
0x5c05   :  { %v6627_v56 = vpop.permute.xlu2 %6626 }
0x5c06   :  { %8044 = vmatmul.msk.f32.vlgmr.msrb.gmra.mxu1 %vm112_vm1, %v6627_v56  ;;  %8046 = vmatmul.msk.f32.vlgmr.msra.gmra.mxu2 %vm112_vm1, %v6627_v56 }
0x5c07   :  { %8048 = vmatmul.msk.f32.vlgmr.msra.gmra.mxu3 %vm112_vm1, %v6627_v56  ;;  %8049 = vmatmul.msk.f32.vlgmr.msra.gmra.mxu0 %vm112_vm1, %v6627_v56 }
0x5c08   :  { %7105 = vmatpush.msra.mxu3 %v9906_v62  ;;  %7017 = vmatpush.msrb.mxu1 %v9911_v19 }
0x5c09   :  { %7060 = vmatpush.msra.mxu2 %v9916_v27  ;;  %7132 = vmatpush.msra.mxu0 %v9934_v9 }
0x5c83   :  { %v6647_v6 = vpop.f32.mrf.mxu1 }
0x5c84   :  { %v6762_v26 = vpop.f32.mrf.mxu0  ;;  %v6651_v4 = vrot.slane %v6647_v6, 6 }
0x5c85   :  { %v6766_v28 = vrot.slane %v6762_v26, 6  ;;  %v7740_v26 = vsel %vm1622_vm10, %v9967_v47, %v9993_v8 }
0x5c86   :  { %v6653_v33 = vadd.f32 %v6651_v4, %v9953_v55 }
0x5c88   :  { %v8045_v34 = vmul.f32 -1.442695, %v6653_v33 }
0x5c89   :  { %v6690_v10 = vpop.f32.mrf.mxu2 }
0x5c8a   :  { %v6694_v11 = vrot.slane %v6690_v10, 6  ;;  %v6735_v60 = vpop.f32.mrf.mxu3 }
0x5c8b   :  { %v6739_v16 = vrot.slane %v6735_v60, 6 }
0x5c8c   :  { %6695 = vrot.lane.b32.xlu2 %v6694_v11, %s8815_s10 }
0x5c8d   :  { %6740 = vrot.lane.b32.xlu0 %v6739_v16, %s8814_s27 }
0x5ce6   :  { %v6696_v42 = vpop.permute.xlu2 %6695 }
0x5ce7   :  { %v6698_v35 = vadd.f32 %v6696_v42, %v9953_v55 }
0x5ce9   :  { %v8047_v58 = vmul.f32 -1.442695, %v6698_v35 }
0x5cff   :  { %v6741_v17 = vpop.permute.xlu0 %6740 }
0x5d00   :  { %v6743_v20 = vadd.f32 %v6741_v17, %v9953_v55 }
0x5d02   :  { %8645 = vtanh.f32 %v6743_v20 }
0x5d03   :  { %8647 = vpow2.f32 %v8045_v34 }
0x5d08   :  { %v8646_v63 = vpop.eup %8645 }
0x5d09   :  { %6795 = vrot.lane.b32.xlu1 %v8646_v63, %s8816_s11  ;;  %v8648_v13 = vpop.eup %8647 }
0x5d0a   :  { %v6657_v59 = vadd.f32 1.0, %v8648_v13 }
0x5d0c   :  { %8649 = vrcp.f32 %v6657_v59  ;;  %v6669_v43 = vand.u32 2147483648, %v6657_v59  ;;  %vm6663_vm9 = vweird.f32 %v6657_v59  ;;  %v6667_v14 = vand.u32 2147483647, %v6657_v59 }
0x5d0d   :  { %8651 = vpow2.f32 %v8047_v58 }
0x5d0e   :  { %v6670_v30 = vor.u32 1.1754944e-38, %v6669_v43  ;;  %vm6668_vm0 = vcmp.eq.f32.partialorder %v6667_v14, 8.507059e+37 }
0x5d11   :  { %6767 = vrot.lane.b32.xlu1 %v6766_v28, %s8817_s4 }
0x5d12   :  { %v8650_v15 = vpop.eup %8649 }
0x5d13   :  { %v6659_v38 = vmul.f32 %v8650_v15, %v6657_v59  ;;  %vm6664_vm8 = vweird.f32 %v8650_v15  ;;  %v8652_v52 = vpop.eup %8651 }
0x5d14   :  { %vm6665_vm14 = vmor %vm6663_vm9, %vm6664_vm8  ;;  %v6702_v37 = vadd.f32 1.0, %v8652_v52 }
0x5d15   :  { %v6660_v39 = vsub.f32 1.0, %v6659_v38 }
0x5d16   :  { %8653 = vrcp.f32 %v6702_v37  ;;  %v6714_v31 = vand.u32 2147483648, %v6702_v37  ;;  %vm6708_vm4 = vweird.f32 %v6702_v37  ;;  %v6712_v5 = vand.u32 2147483647, %v6702_v37 }
0x5d17   :  { %v6661_v25 = vmul.f32 %v8650_v15, %v6660_v39 }
0x5d18   :  { %v6715_v44 = vor.u32 1.1754944e-38, %v6714_v31  ;;  %vm6713_vm6 = vcmp.eq.f32.partialorder %v6712_v5, 8.507059e+37 }
0x5d19   :  { %v6662_v22 = vadd.f32 %v8650_v15, %v6661_v25 }
0x5d1b   :  { %v6666_v24 = vsel %vm6665_vm14, %v8650_v15, %v6662_v22 }
0x5d1c   :  { %v6671_v32 = vsel %vm6668_vm0, %v6670_v30, %v6666_v24  ;;  %v8654_v23 = vpop.eup %8653 }
0x5d1d   :  { %v6704_v45 = vmul.f32 %v8654_v23, %v6702_v37  ;;  %vm6709_vm2 = vweird.f32 %v8654_v23 }
0x5d1e   :  { %vm6710_vm5 = vmor %vm6708_vm4, %vm6709_vm2 }
0x5d1f   :  { %v6705_v53 = vsub.f32 1.0, %v6704_v45 }
0x5d21   :  { %v6706_v46 = vmul.f32 %v8654_v23, %v6705_v53 }
0x5d23   :  { %v6707_v7 = vadd.f32 %v8654_v23, %v6706_v46 }
0x5d25   :  { %v6711_v49 = vsel %vm6710_vm5, %v8654_v23, %v6707_v7 }
0x5d26   :  { %v6716_v57 = vsel %vm6713_vm6, %v6715_v44, %v6711_v49 }
0x5d27   :  { %v6793_v36 = vmul.f32 %v6791_v50, %v6716_v57 }
0x5d7b   :  { %v6796_v40 = vpop.permute.xlu1 %6795 }
0x5d7c   :  { %v6798_v3 = vmul.f32 %v6796_v40, %v6671_v32 }
0x5d7e   :  { %6800 = vrot.lane.b32.xlu0 %v6798_v3, %s8815_s10 }
0x5d83   :  { %v6768_v54 = vpop.permute.xlu1 %6767 }
0x5d84   :  { %v6770_v61 = vadd.f32 %v6768_v54, %v9953_v55 }
0x5d86   :  { %v8050_v0 = vmul.f32 -1.442695, %v6770_v61 }
0x5df0   :  { %v6801_v12 = vpop.permute.xlu0 %6800 }
0x5df1   :  { %v10014_v18 = vadd.f32 %v6801_v12, %v6793_v36 }
0x5df3   :  { %8655 = vtanh.f32 %v10014_v18 }
0x5df4   :  { %8657 = vpow2.f32 %v8050_v0 }
0x5df9   :  { %v8656_v48 = vpop.eup %8655 }
0x5dfa   :  { %6806 = vrot.lane.b32.xlu2 %v8656_v48, %s8814_s27  ;;  %v8658_v21 = vpop.eup %8657 }
0x5dfb   :  { %v6774_v51 = vadd.f32 1.0, %v8658_v21 }
0x5dfd   :  { %8659 = vrcp.f32 %v6774_v51  ;;  %v6786_v10 = vand.u32 2147483648, %v6774_v51  ;;  %vm6780_vm9 = vweird.f32 %v6774_v51  ;;  %v6784_v11 = vand.u32 2147483647, %v6774_v51 }
0x5dff   :  { %v6787_v16 = vor.u32 1.1754944e-38, %v6786_v10  ;;  %vm6785_vm0 = vcmp.eq.f32.partialorder %v6784_v11, 8.507059e+37 }
0x5e03   :  { %v8660_v1 = vpop.eup %8659 }
0x5e04   :  { %v6776_v2 = vmul.f32 %v8660_v1, %v6774_v51  ;;  %vm6781_vm8 = vweird.f32 %v8660_v1 }
0x5e05   :  { %vm6782_vm14 = vmor %vm6780_vm9, %vm6781_vm8 }
0x5e06   :  { %v6777_v41 = vsub.f32 1.0, %v6776_v2 }
0x5e08   :  { %v6778_v29 = vmul.f32 %v8660_v1, %v6777_v41 }
0x5e0a   :  { %v6779_v56 = vadd.f32 %v8660_v1, %v6778_v29 }
0x5e0c   :  { %v6783_v60 = vsel %vm6782_vm14, %v8660_v1, %v6779_v56  ;;  %v6977_v1 = vrot.slane %v10014_v18, 7 }
0x5e0d   :  { %v6788_v17 = vsel %vm6785_vm0, %v6787_v16, %v6783_v60 }
0x5e54   :  { %v6807_v20 = vpop.permute.xlu2 %6806 }
0x5e55   :  { %v6809_v63 = vmul.f32 %v6807_v20, %v6788_v17 }
0x5e57   :  { %v6811_v28 = vrot.slane %v6809_v63, 2  ;;  %v10023_v6 = vsel %vm1624_vm12, %v7740_v26, %v6809_v63 }
0x5e59   :  { %6812 = vrot.lane.b32.xlu0 %v6811_v28, %s8818_s13 }
0x5ecb   :  { %v6813_v4 = vpop.permute.xlu0 %6812 }
0x5ecc   :  { %8051 = vmatmul.msk.f32.vlgmr.msra.gmra.mxu1 %vm112_vm1, %v6813_v4  ;;  %8053 = vmatmul.msk.f32.vlgmr.msrb.gmra.mxu2 %vm112_vm1, %v6813_v4 }
0x5ecd   :  { %8055 = vmatmul.msk.f32.vlgmr.msrb.gmra.mxu3 %vm112_vm1, %v6813_v4  ;;  %8056 = vmatmul.msk.f32.vlgmr.msrb.gmra.mxu0 %vm112_vm1, %v6813_v4 }
0x5ece   :  { %7291 = vmatpush.msrb.mxu3 %v9906_v62  ;;  %7203 = vmatpush.msra.mxu1 %v9911_v19 }
0x5ecf   :  { %7246 = vmatpush.msrb.mxu2 %v9916_v27  ;;  %7318 = vmatpush.msrb.mxu0 %v9934_v9 }
0x5f49   :  { %v6833_v25 = vpop.f32.mrf.mxu1 }
0x5f4a   :  { %v6948_v38 = vpop.f32.mrf.mxu0  ;;  %v6837_v22 = vrot.slane %v6833_v25, 5 }
0x5f4b   :  { %v6952_v39 = vrot.slane %v6948_v38, 5 }
0x5f4c   :  { %v6839_v43 = vadd.f32 %v6837_v22, %v9953_v55 }
0x5f4e   :  { %v8052_v14 = vmul.f32 -1.442695, %v6839_v43 }
0x5f4f   :  { %v6876_v47 = vpop.f32.mrf.mxu2 }
0x5f50   :  { %v6880_v8 = vrot.slane %v6876_v47, 5  ;;  %v6921_v33 = vpop.f32.mrf.mxu3 }
0x5f51   :  { %v6925_v34 = vrot.slane %v6921_v33, 5 }
0x5f52   :  { %6881 = vrot.lane.b32.xlu0 %v6880_v8, %s8815_s10 }
0x5f53   :  { %6926 = vrot.lane.b32.xlu1 %v6925_v34, %s8814_s27 }
0x5fc4   :  { %v6882_v7 = vpop.permute.xlu0 %6881 }
0x5fc5   :  { %v6927_v13 = vpop.permute.xlu1 %6926  ;;  %v6884_v31 = vadd.f32 %v6882_v7, %v9953_v55 }
0x5fc6   :  { %v6929_v59 = vadd.f32 %v6927_v13, %v9953_v55 }
0x5fc7   :  { %v8054_v5 = vmul.f32 -1.442695, %v6884_v31 }
0x5fc8   :  { %8661 = vtanh.f32 %v6929_v59 }
0x5fc9   :  { %8663 = vpow2.f32 %v8052_v14 }
0x5fce   :  { %v8662_v15 = vpop.eup %8661 }
0x5fcf   :  { %6981 = vrot.lane.b32.xlu2 %v8662_v15, %s8816_s11  ;;  %v8664_v24 = vpop.eup %8663 }
0x5fd0   :  { %v6843_v30 = vadd.f32 1.0, %v8664_v24 }
0x5fd2   :  { %8665 = vrcp.f32 %v6843_v30  ;;  %v6855_v58 = vand.u32 2147483648, %v6843_v30  ;;  %vm6849_vm12 = vweird.f32 %v6843_v30  ;;  %v6853_v52 = vand.u32 2147483647, %v6843_v30 }
0x5fd3   :  { %8667 = vpow2.f32 %v8054_v5 }
0x5fd4   :  { %v6856_v23 = vor.u32 1.1754944e-38, %v6855_v58  ;;  %vm6854_vm4 = vcmp.eq.f32.partialorder %v6853_v52, 8.507059e+37 }
0x5fd7   :  { %6953 = vrot.lane.b32.xlu2 %v6952_v39, %s8817_s4 }
0x5fd8   :  { %v8666_v40 = vpop.eup %8665 }
0x5fd9   :  { %v6845_v32 = vmul.f32 %v8666_v40, %v6843_v30  ;;  %vm6850_vm10 = vweird.f32 %v8666_v40  ;;  %v8668_v49 = vpop.eup %8667 }
0x5fda   :  { %vm6851_vm2 = vmor %vm6849_vm12, %vm6850_vm10  ;;  %v6888_v44 = vadd.f32 1.0, %v8668_v49 }
0x5fdb   :  { %v6846_v3 = vsub.f32 1.0, %v6845_v32 }
0x5fdc   :  { %8669 = vrcp.f32 %v6888_v44  ;;  %v6900_v54 = vand.u32 2147483648, %v6888_v44  ;;  %vm6894_vm6 = vweird.f32 %v6888_v44  ;;  %v6898_v61 = vand.u32 2147483647, %v6888_v44 }
0x5fdd   :  { %v6847_v42 = vmul.f32 %v8666_v40, %v6846_v3 }
0x5fde   :  { %v6901_v21 = vor.u32 1.1754944e-38, %v6900_v54  ;;  %vm6899_vm9 = vcmp.eq.f32.partialorder %v6898_v61, 8.507059e+37 }
0x5fdf   :  { %v6848_v35 = vadd.f32 %v8666_v40, %v6847_v42 }
0x5fe1   :  { %v6852_v37 = vsel %vm6851_vm2, %v8666_v40, %v6848_v35 }
0x5fe2   :  { %v6857_v53 = vsel %vm6854_vm4, %v6856_v23, %v6852_v37  ;;  %v8670_v57 = vpop.eup %8669 }
0x5fe3   :  { %v6890_v50 = vmul.f32 %v8670_v57, %v6888_v44  ;;  %vm6895_vm5 = vweird.f32 %v8670_v57 }
0x5fe4   :  { %vm6896_vm8 = vmor %vm6894_vm6, %vm6895_vm5 }
0x5fe5   :  { %v6891_v36 = vsub.f32 1.0, %v6890_v50 }
0x5fe7   :  { %v6892_v12 = vmul.f32 %v8670_v57, %v6891_v36 }
0x5fe9   :  { %v6893_v48 = vadd.f32 %v8670_v57, %v6892_v12 }
0x5feb   :  { %v6897_v0 = vsel %vm6896_vm8, %v8670_v57, %v6893_v48 }
0x5fec   :  { %v6902_v51 = vsel %vm6899_vm9, %v6901_v21, %v6897_v0 }
0x5fed   :  { %v6979_v2 = vmul.f32 %v6977_v1, %v6902_v51 }
0x6029   :  { %v6982_v45 = vpop.permute.xlu2 %6981 }
0x602a   :  { %v6984_v46 = vmul.f32 %v6982_v45, %v6857_v53 }
0x602c   :  { %6986 = vrot.lane.b32.xlu1 %v6984_v46, %s8815_s10 }
0x6031   :  { %v6954_v10 = vpop.permute.xlu2 %6953 }
0x6032   :  { %v6956_v11 = vadd.f32 %v6954_v10, %v9953_v55 }
0x6034   :  { %v8057_v60 = vmul.f32 -1.442695, %v6956_v11 }
0x609e   :  { %v6987_v41 = vpop.permute.xlu1 %6986 }
0x609f   :  { %v10043_v29 = vadd.f32 %v6987_v41, %v6979_v2 }
0x60a1   :  { %8671 = vtanh.f32 %v10043_v29  ;;  %v7163_v10 = vrot.slane %v10043_v29, 7 }
0x60a2   :  { %8673 = vpow2.f32 %v8057_v60 }
0x60a7   :  { %v8672_v56 = vpop.eup %8671 }
0x60a8   :  { %6992 = vrot.lane.b32.xlu0 %v8672_v56, %s8814_s27  ;;  %v8674_v16 = vpop.eup %8673 }
0x60a9   :  { %v6960_v17 = vadd.f32 1.0, %v8674_v16 }
0x60ab   :  { %8675 = vrcp.f32 %v6960_v17  ;;  %v6972_v4 = vand.u32 2147483648, %v6960_v17  ;;  %vm6966_vm0 = vweird.f32 %v6960_v17  ;;  %v6970_v47 = vand.u32 2147483647, %v6960_v17 }
0x60ad   :  { %v6973_v33 = vor.u32 1.1754944e-38, %v6972_v4  ;;  %vm6971_vm12 = vcmp.eq.f32.partialorder %v6970_v47, 8.507059e+37 }
0x60b1   :  { %v8676_v20 = vpop.eup %8675 }
0x60b2   :  { %v6962_v63 = vmul.f32 %v8676_v20, %v6960_v17  ;;  %vm6967_vm14 = vweird.f32 %v8676_v20 }
0x60b3   :  { %vm6968_vm10 = vmor %vm6966_vm0, %vm6967_vm14 }
0x60b4   :  { %v6963_v18 = vsub.f32 1.0, %v6962_v63 }
0x60b6   :  { %v6964_v26 = vmul.f32 %v8676_v20, %v6963_v18 }
0x60b8   :  { %v6965_v28 = vadd.f32 %v8676_v20, %v6964_v26 }
0x60ba   :  { %v6969_v8 = vsel %vm6968_vm10, %v8676_v20, %v6965_v28 }
0x60bb   :  { %v6974_v34 = vsel %vm6971_vm12, %v6973_v33, %v6969_v8 }
0x611a   :  { %v6993_v13 = vpop.permute.xlu0 %6992 }
0x611b   :  { %v6995_v59 = vmul.f32 %v6993_v13, %v6974_v34 }
0x611d   :  { %v6997_v15 = vrot.slane %v6995_v59, 3  ;;  %v10050_v38 = vsel %vm1626_vm11, %v10023_v6, %v6995_v59 }
0x611f   :  { %6998 = vrot.lane.b32.xlu1 %v6997_v15, %s8818_s13 }
0x6191   :  { %v6999_v39 = vpop.permute.xlu1 %6998 }
0x6192   :  { %8058 = vmatmul.msk.f32.vlgmr.msrb.gmra.mxu1 %vm112_vm1, %v6999_v39  ;;  %8060 = vmatmul.msk.f32.vlgmr.msra.gmra.mxu2 %vm112_vm1, %v6999_v39 }
0x6193   :  { %8062 = vmatmul.msk.f32.vlgmr.msra.gmra.mxu3 %vm112_vm1, %v6999_v39  ;;  %8063 = vmatmul.msk.f32.vlgmr.msra.gmra.mxu0 %vm112_vm1, %v6999_v39 }
0x6194   :  { %7477 = vmatpush.msra.mxu3 %v9906_v62  ;;  %7389 = vmatpush.msrb.mxu1 %v9911_v19 }
0x6195   :  { %7432 = vmatpush.msra.mxu2 %v9916_v27  ;;  %7504 = vmatpush.msra.mxu0 %v9934_v9 }
0x620f   :  { %v7019_v27 = vpop.f32.mrf.mxu1 }
0x6210   :  { %v7134_v62 = vpop.f32.mrf.mxu0  ;;  %v7023_v9 = vrot.slane %v7019_v27, 4 }
0x6211   :  { %v7138_v19 = vrot.slane %v7134_v62, 4  ;;  %v8760_v62 = vld [vmem:[%s10167_s6 + $0x98] sm:$0xff] }
0x6212   :  { %v7025_v40 = vadd.f32 %v7023_v9, %v9953_v55 }
0x6214   :  { %v8059_v32 = vmul.f32 -1.442695, %v7025_v40 }
0x6215   :  { %v7062_v6 = vpop.f32.mrf.mxu2 }
0x6216   :  { %v7066_v25 = vrot.slane %v7062_v6, 4  ;;  %v7107_v22 = vpop.f32.mrf.mxu3 }
0x6217   :  { %v7111_v43 = vrot.slane %v7107_v22, 4 }
0x6218   :  { %7067 = vrot.lane.b32.xlu1 %v7066_v25, %s8815_s10 }
0x6219   :  { %7112 = vrot.lane.b32.xlu2 %v7111_v43, %s8814_s27 }
0x6273   :  { %v7113_v14 = vpop.permute.xlu2 %7112 }
0x6274   :  { %v7115_v24 = vadd.f32 %v7113_v14, %v9953_v55 }
0x6276   :  { %8677 = vtanh.f32 %v7115_v24  ;;  %v8757_v24 = vld [vmem:[%s10167_s6 + $0x90] sm:$0xff] }
0x6277   :  { %8679 = vpow2.f32 %v8059_v32 }
0x627c   :  { %v8678_v30 = vpop.eup %8677 }
0x627d   :  { %7167 = vrot.lane.b32.xlu0 %v8678_v30, %s8816_s11  ;;  %v8680_v3 = vpop.eup %8679  ;;  %v8759_v30 = vld [vmem:[%s10167_s6 + $0x88] sm:$0xff] }
0x627e   :  { %v7029_v42 = vadd.f32 1.0, %v8680_v3 }
0x6280   :  { %8681 = vrcp.f32 %v7029_v42  ;;  %v7041_v45 = vand.u32 2147483648, %v7029_v42  ;;  %vm7035_vm2 = vweird.f32 %v7029_v42  ;;  %v7039_v53 = vand.u32 2147483647, %v7029_v42 }
0x6282   :  { %v7042_v7 = vor.u32 1.1754944e-38, %v7041_v45  ;;  %vm7040_vm5 = vcmp.eq.f32.partialorder %v7039_v53, 8.507059e+37 }
0x6285   :  { %7139 = vrot.lane.b32.xlu0 %v7138_v19, %s8817_s4 }
0x6286   :  { %v8682_v35 = vpop.eup %8681 }
0x6287   :  { %v7031_v58 = vmul.f32 %v8682_v35, %v7029_v42  ;;  %vm7036_vm11 = vweird.f32 %v8682_v35 }
0x6288   :  { %vm7037_vm4 = vmor %vm7035_vm2, %vm7036_vm11 }
0x6289   :  { %v7032_v52 = vsub.f32 1.0, %v7031_v58 }
0x628a   :  { %v7068_v44 = vpop.permute.xlu1 %7067 }
0x628b   :  { %v7033_v37 = vmul.f32 %v8682_v35, %v7032_v52  ;;  %v7070_v57 = vadd.f32 %v7068_v44, %v9953_v55 }
0x628d   :  { %v7034_v23 = vadd.f32 %v8682_v35, %v7033_v37  ;;  %v8061_v50 = vmul.f32 -1.442695, %v7070_v57 }
0x628f   :  { %v7038_v46 = vsel %vm7037_vm4, %v8682_v35, %v7034_v23  ;;  %8683 = vpow2.f32 %v8061_v50 }
0x6290   :  { %v7043_v5 = vsel %vm7040_vm5, %v7042_v7, %v7038_v46 }
0x6295   :  { %v8684_v36 = vpop.eup %8683 }
0x6296   :  { %v7074_v12 = vadd.f32 1.0, %v8684_v36 }
0x6298   :  { %8685 = vrcp.f32 %v7074_v12  ;;  %v7086_v51 = vand.u32 2147483648, %v7074_v12  ;;  %vm7080_vm8 = vweird.f32 %v7074_v12  ;;  %v7084_v1 = vand.u32 2147483647, %v7074_v12 }
0x629a   :  { %v7087_v41 = vor.u32 1.1754944e-38, %v7086_v51  ;;  %vm7085_vm14 = vcmp.eq.f32.partialorder %v7084_v1, 8.507059e+37 }
0x629e   :  { %v8686_v48 = vpop.eup %8685 }
0x629f   :  { %v7076_v54 = vmul.f32 %v8686_v48, %v7074_v12  ;;  %vm7081_vm6 = vweird.f32 %v8686_v48 }
0x62a0   :  { %vm7082_vm9 = vmor %vm7080_vm8, %vm7081_vm6 }
0x62a1   :  { %v7077_v61 = vsub.f32 1.0, %v7076_v54 }
0x62a3   :  { %v7078_v0 = vmul.f32 %v8686_v48, %v7077_v61 }
0x62a5   :  { %v7079_v21 = vadd.f32 %v8686_v48, %v7078_v0 }
0x62a7   :  { %v7083_v2 = vsel %vm7082_vm9, %v8686_v48, %v7079_v21 }
0x62a8   :  { %v7088_v56 = vsel %vm7085_vm14, %v7087_v41, %v7083_v2 }
0x62a9   :  { %v7165_v11 = vmul.f32 %v7163_v10, %v7088_v56 }
0x62ef   :  { %v7168_v31 = vpop.permute.xlu0 %7167 }
0x62f0   :  { %v7170_v49 = vmul.f32 %v7168_v31, %v7043_v5 }
0x62f2   :  { %7172 = vrot.lane.b32.xlu2 %v7170_v49, %s8815_s10 }
0x62f7   :  { %v7140_v20 = vpop.permute.xlu0 %7139 }
0x62f8   :  { %v7142_v63 = vadd.f32 %v7140_v20, %v9953_v55 }
0x62fa   :  { %v8064_v18 = vmul.f32 -1.442695, %v7142_v63 }
0x634c   :  { %v7173_v60 = vpop.permute.xlu2 %7172 }
0x634d   :  { %v10070_v16 = vadd.f32 %v7173_v60, %v7165_v11 }
0x634f   :  { %8687 = vtanh.f32 %v10070_v16 }
0x6350   :  { %8689 = vpow2.f32 %v8064_v18 }
0x6355   :  { %v8688_v17 = vpop.eup %8687 }
0x6356   :  { %7178 = vrot.lane.b32.xlu1 %v8688_v17, %s8814_s27  ;;  %v8690_v26 = vpop.eup %8689 }
0x6357   :  { %v7146_v28 = vadd.f32 1.0, %v8690_v26 }
0x6359   :  { %8691 = vrcp.f32 %v7146_v28  ;;  %v7158_v34 = vand.u32 2147483648, %v7146_v28  ;;  %vm7152_vm10 = vweird.f32 %v7146_v28  ;;  %v7156_v13 = vand.u32 2147483647, %v7146_v28 }
0x635b   :  { %v7159_v15 = vor.u32 1.1754944e-38, %v7158_v34  ;;  %vm7157_vm11 = vcmp.eq.f32.partialorder %v7156_v13, 8.507059e+37 }
0x635f   :  { %v8692_v4 = vpop.eup %8691 }
0x6360   :  { %v7148_v47 = vmul.f32 %v8692_v4, %v7146_v28  ;;  %vm7153_vm0 = vweird.f32 %v8692_v4  ;;  %v7349_v28 = vrot.slane %v10070_v16, 7 }
0x6361   :  { %vm7154_vm12 = vmor %vm7152_vm10, %vm7153_vm0 }
0x6362   :  { %v7149_v29 = vsub.f32 1.0, %v7148_v47 }
0x6364   :  { %v7150_v8 = vmul.f32 %v8692_v4, %v7149_v29 }
0x6366   :  { %v7151_v33 = vadd.f32 %v8692_v4, %v7150_v8 }
0x6368   :  { %v7155_v59 = vsel %vm7154_vm12, %v8692_v4, %v7151_v33 }
0x6369   :  { %v7160_v39 = vsel %vm7157_vm11, %v7159_v15, %v7155_v59 }
0x63c8   :  { %v7179_v6 = vpop.permute.xlu1 %7178 }
0x63c9   :  { %v7181_v25 = vmul.f32 %v7179_v6, %v7160_v39 }
0x63cb   :  { %v7183_v22 = vrot.slane %v7181_v25, 4  ;;  %v10077_v43 = vsel %vm1628_vm13, %v10050_v38, %v7181_v25  ;;  %v8758_v38 = vld [vmem:[%s10167_s6 + $0x80] sm:$0xff]  ;;  %s8819_s6 = smov [#allocation5]  }
0x63cd   :  { %7184 = vrot.lane.b32.xlu2 %v7183_v22, %s8818_s13 }
0x6427   :  { %v7185_v14 = vpop.permute.xlu2 %7184 }
0x6428   :  { %8065 = vmatmul.msk.f32.vlgmr.msra.gmra.mxu1 %vm112_vm1, %v7185_v14  ;;  %8067 = vmatmul.msk.f32.vlgmr.msrb.gmra.mxu2 %vm112_vm1, %v7185_v14 }
0x6429   :  { %8069 = vmatmul.msk.f32.vlgmr.msrb.gmra.mxu3 %vm112_vm1, %v7185_v14  ;;  %8070 = vmatmul.msk.f32.vlgmr.msrb.gmra.mxu0 %vm112_vm1, %v7185_v14 }
0x642a   :  { %7663 = vmatpush.msrb.mxu3 %v8757_v24  ;;  %7575 = vmatpush.msra.mxu1 %v8758_v38 }
0x642b   :  { %7618 = vmatpush.msrb.mxu2 %v8759_v30  ;;  %7690 = vmatpush.msrb.mxu0 %v8760_v62 }
0x64a5   :  { %v7205_v52 = vpop.f32.mrf.mxu1 }
0x64a6   :  { %v7320_v35 = vpop.f32.mrf.mxu0  ;;  %v7209_v37 = vrot.slane %v7205_v52, 3 }
0x64a7   :  { %v7324_v58 = vrot.slane %v7320_v35, 3 }
0x64a8   :  { %v7211_v23 = vadd.f32 %v7209_v37, %v9953_v55 }
0x64aa   :  { %v8066_v45 = vmul.f32 -1.442695, %v7211_v23 }
0x64ab   :  { %v7248_v19 = vpop.f32.mrf.mxu2 }
0x64ac   :  { %v7252_v27 = vrot.slane %v7248_v19, 3  ;;  %v7293_v9 = vpop.f32.mrf.mxu3 }
0x64ad   :  { %v7297_v40 = vrot.slane %v7293_v9, 3 }
0x64ae   :  { %7253 = vrot.lane.b32.xlu2 %v7252_v27, %s8815_s10 }
0x64af   :  { %7298 = vrot.lane.b32.xlu0 %v7297_v40, %s8814_s27 }
0x6508   :  { %v7254_v0 = vpop.permute.xlu2 %7253 }
0x6509   :  { %v7256_v21 = vadd.f32 %v7254_v0, %v9953_v55 }
0x650b   :  { %v8068_v51 = vmul.f32 -1.442695, %v7256_v21 }
0x6521   :  { %v7299_v32 = vpop.permute.xlu0 %7298 }
0x6522   :  { %v7301_v3 = vadd.f32 %v7299_v32, %v9953_v55 }
0x6524   :  { %8693 = vtanh.f32 %v7301_v3 }
0x6525   :  { %8695 = vpow2.f32 %v8066_v45 }
0x652a   :  { %v8694_v42 = vpop.eup %8693 }
0x652b   :  { %7353 = vrot.lane.b32.xlu1 %v8694_v42, %s8816_s11  ;;  %v8696_v53 = vpop.eup %8695 }
0x652c   :  { %v7215_v46 = vadd.f32 1.0, %v8696_v53 }
0x652e   :  { %8697 = vrcp.f32 %v7215_v46  ;;  %v7227_v57 = vand.u32 2147483648, %v7215_v46  ;;  %vm7221_vm2 = vweird.f32 %v7215_v46  ;;  %v7225_v50 = vand.u32 2147483647, %v7215_v46 }
0x652f   :  { %8699 = vpow2.f32 %v8068_v51 }
0x6530   :  { %v7228_v12 = vor.u32 1.1754944e-38, %v7227_v57  ;;  %vm7226_vm5 = vcmp.eq.f32.partialorder %v7225_v50, 8.507059e+37 }
0x6533   :  { %7325 = vrot.lane.b32.xlu1 %v7324_v58, %s8817_s4 }
0x6534   :  { %v8698_v7 = vpop.eup %8697 }
0x6535   :  { %v7217_v31 = vmul.f32 %v8698_v7, %v7215_v46  ;;  %vm7222_vm13 = vweird.f32 %v8698_v7  ;;  %v8700_v1 = vpop.eup %8699 }
0x6536   :  { %vm7223_vm4 = vmor %vm7221_vm2, %vm7222_vm13  ;;  %v7260_v2 = vadd.f32 1.0, %v8700_v1 }
0x6537   :  { %v7218_v5 = vsub.f32 1.0, %v7217_v31 }
0x6538   :  { %8701 = vrcp.f32 %v7260_v2  ;;  %v7272_v17 = vand.u32 2147483648, %v7260_v2  ;;  %vm7266_vm8 = vweird.f32 %v7260_v2  ;;  %v7270_v20 = vand.u32 2147483647, %v7260_v2 }
0x6539   :  { %v7219_v49 = vmul.f32 %v8698_v7, %v7218_v5 }
0x653a   :  { %v7273_v18 = vor.u32 1.1754944e-38, %v7272_v17  ;;  %vm7271_vm14 = vcmp.eq.f32.partialorder %v7270_v20, 8.507059e+37 }
0x653b   :  { %v7220_v44 = vadd.f32 %v8698_v7, %v7219_v49 }
0x653d   :  { %v7224_v36 = vsel %vm7223_vm4, %v8698_v7, %v7220_v44 }
0x653e   :  { %v7229_v54 = vsel %vm7226_vm5, %v7228_v12, %v7224_v36  ;;  %v8702_v41 = vpop.eup %8701 }
0x653f   :  { %v7262_v56 = vmul.f32 %v8702_v41, %v7260_v2  ;;  %vm7267_vm6 = vweird.f32 %v8702_v41 }
0x6540   :  { %vm7268_vm9 = vmor %vm7266_vm8, %vm7267_vm6 }
0x6541   :  { %v7263_v10 = vsub.f32 1.0, %v7262_v56 }
0x6543   :  { %v7264_v11 = vmul.f32 %v8702_v41, %v7263_v10 }
0x6545   :  { %v7265_v60 = vadd.f32 %v8702_v41, %v7264_v11 }
0x6547   :  { %v7269_v63 = vsel %vm7268_vm9, %v8702_v41, %v7265_v60 }
0x6548   :  { %v7274_v26 = vsel %vm7271_vm14, %v7273_v18, %v7269_v63 }
0x6549   :  { %v7351_v4 = vmul.f32 %v7349_v28, %v7274_v26 }
0x659d   :  { %v7354_v48 = vpop.permute.xlu1 %7353 }
0x659e   :  { %v7356_v61 = vmul.f32 %v7354_v48, %v7229_v54 }
0x65a0   :  { %7358 = vrot.lane.b32.xlu0 %v7356_v61, %s8815_s10 }
0x65a5   :  { %v7326_v33 = vpop.permute.xlu1 %7325 }
0x65a6   :  { %v7328_v34 = vadd.f32 %v7326_v33, %v9953_v55 }
0x65a8   :  { %v8071_v13 = vmul.f32 -1.442695, %v7328_v34 }
0x6612   :  { %v7359_v47 = vpop.permute.xlu0 %7358 }
0x6613   :  { %v10105_v29 = vadd.f32 %v7359_v47, %v7351_v4 }
0x6615   :  { %8703 = vtanh.f32 %v10105_v29  ;;  %v7535_v33 = vrot.slane %v10105_v29, 7 }
0x6616   :  { %8705 = vpow2.f32 %v8071_v13 }
0x661b   :  { %v8704_v8 = vpop.eup %8703 }
0x661c   :  { %7364 = vrot.lane.b32.xlu2 %v8704_v8, %s8814_s27  ;;  %v8706_v59 = vpop.eup %8705 }
0x661d   :  { %v7332_v15 = vadd.f32 1.0, %v8706_v59 }
0x661f   :  { %8707 = vrcp.f32 %v7332_v15  ;;  %v7344_v14 = vand.u32 2147483648, %v7332_v15  ;;  %vm7338_vm10 = vweird.f32 %v7332_v15  ;;  %v7342_v24 = vand.u32 2147483647, %v7332_v15 }
0x6621   :  { %v7345_v30 = vor.u32 1.1754944e-38, %v7344_v14  ;;  %vm7343_vm11 = vcmp.eq.f32.partialorder %v7342_v24, 8.507059e+37 }
0x6625   :  { %v8708_v39 = vpop.eup %8707 }
0x6626   :  { %v7334_v6 = vmul.f32 %v8708_v39, %v7332_v15  ;;  %vm7339_vm0 = vweird.f32 %v8708_v39 }
0x6627   :  { %vm7340_vm12 = vmor %vm7338_vm10, %vm7339_vm0 }
0x6628   :  { %v7335_v16 = vsub.f32 1.0, %v7334_v6 }
0x662a   :  { %v7336_v25 = vmul.f32 %v8708_v39, %v7335_v16 }
0x662c   :  { %v7337_v22 = vadd.f32 %v8708_v39, %v7336_v25 }
0x662e   :  { %v7341_v38 = vsel %vm7340_vm12, %v8708_v39, %v7337_v22 }
0x662f   :  { %v7346_v62 = vsel %vm7343_vm11, %v7345_v30, %v7341_v38 }
0x6676   :  { %v7365_v19 = vpop.permute.xlu2 %7364 }
0x6677   :  { %v7367_v27 = vmul.f32 %v7365_v19, %v7346_v62 }
0x6679   :  { %v7369_v9 = vrot.slane %v7367_v27, 5  ;;  %v10112_v40 = vsel %vm1630_vm15, %v10077_v43, %v7367_v27 }
0x667b   :  { %7370 = vrot.lane.b32.xlu0 %v7369_v9, %s8818_s13 }
0x66ed   :  { %v7371_v32 = vpop.permute.xlu0 %7370 }
0x66ee   :  { %8072 = vmatmul.msk.f32.vlgmr.msrb.gmra.mxu1 %vm112_vm1, %v7371_v32  ;;  %8074 = vmatmul.msk.f32.vlgmr.msra.gmra.mxu2 %vm112_vm1, %v7371_v32 }
0x66ef   :  { %8076 = vmatmul.msk.f32.vlgmr.msra.gmra.mxu3 %vm112_vm1, %v7371_v32  ;;  %8077 = vmatmul.msk.f32.vlgmr.msra.gmra.mxu0 %vm112_vm1, %v7371_v32 }
0x676b   :  { %v7391_v53 = vpop.f32.mrf.mxu1 }
0x676c   :  { %v7506_v23 = vpop.f32.mrf.mxu0  ;;  %v7395_v46 = vrot.slane %v7391_v53, 2 }
0x676d   :  { %v7510_v45 = vrot.slane %v7506_v23, 2 }
0x676e   :  { %v7397_v7 = vadd.f32 %v7395_v46, %v9953_v55 }
0x6770   :  { %v8073_v31 = vmul.f32 -1.442695, %v7397_v7 }
0x6771   :  { %v7434_v3 = vpop.f32.mrf.mxu2 }
0x6772   :  { %v7438_v42 = vrot.slane %v7434_v3, 2  ;;  %v7479_v35 = vpop.f32.mrf.mxu3 }
0x6773   :  { %v7483_v58 = vrot.slane %v7479_v35, 2 }
0x6774   :  { %7439 = vrot.lane.b32.xlu0 %v7438_v42, %s8815_s10 }
0x6775   :  { %7484 = vrot.lane.b32.xlu1 %v7483_v58, %s8814_s27 }
0x67e6   :  { %v7440_v2 = vpop.permute.xlu0 %7439 }
0x67e7   :  { %v7485_v43 = vpop.permute.xlu1 %7484  ;;  %v7442_v41 = vadd.f32 %v7440_v2, %v9953_v55 }
0x67e8   :  { %v7487_v52 = vadd.f32 %v7485_v43, %v9953_v55 }
0x67e9   :  { %v8075_v56 = vmul.f32 -1.442695, %v7442_v41 }
0x67ea   :  { %8709 = vtanh.f32 %v7487_v52 }
0x67eb   :  { %8711 = vpow2.f32 %v8073_v31 }
0x67f0   :  { %v8710_v37 = vpop.eup %8709 }
0x67f1   :  { %7539 = vrot.lane.b32.xlu2 %v8710_v37, %s8816_s11  ;;  %v8712_v5 = vpop.eup %8711 }
0x67f2   :  { %v7401_v49 = vadd.f32 1.0, %v8712_v5 }
0x67f4   :  { %8713 = vrcp.f32 %v7401_v49  ;;  %v7413_v48 = vand.u32 2147483648, %v7401_v49  ;;  %vm7407_vm13 = vweird.f32 %v7401_v49  ;;  %v7411_v54 = vand.u32 2147483647, %v7401_v49 }
0x67f5   :  { %8715 = vpow2.f32 %v8075_v56 }
0x67f6   :  { %v7414_v0 = vor.u32 1.1754944e-38, %v7413_v48  ;;  %vm7412_vm4 = vcmp.eq.f32.partialorder %v7411_v54, 8.507059e+37 }
0x67f9   :  { %7511 = vrot.lane.b32.xlu2 %v7510_v45, %s8817_s4 }
0x67fa   :  { %v8714_v44 = vpop.eup %8713 }
0x67fb   :  { %v7403_v57 = vmul.f32 %v8714_v44, %v7401_v49  ;;  %vm7408_vm15 = vweird.f32 %v8714_v44  ;;  %v8716_v10 = vpop.eup %8715 }
0x67fc   :  { %vm7409_vm2 = vmor %vm7407_vm13, %vm7408_vm15  ;;  %v7446_v11 = vadd.f32 1.0, %v8716_v10 }
0x67fd   :  { %v7404_v50 = vsub.f32 1.0, %v7403_v57 }
0x67fe   :  { %8717 = vrcp.f32 %v7446_v11  ;;  %v7458_v26 = vand.u32 2147483648, %v7446_v11  ;;  %vm7452_vm6 = vweird.f32 %v7446_v11  ;;  %v7456_v28 = vand.u32 2147483647, %v7446_v11 }
0x67ff   :  { %v7405_v36 = vmul.f32 %v8714_v44, %v7404_v50 }
0x6800   :  { %v7459_v47 = vor.u32 1.1754944e-38, %v7458_v26  ;;  %vm7457_vm9 = vcmp.eq.f32.partialorder %v7456_v28, 8.507059e+37 }
0x6801   :  { %v7406_v12 = vadd.f32 %v8714_v44, %v7405_v36 }
0x6803   :  { %v7410_v61 = vsel %vm7409_vm2, %v8714_v44, %v7406_v12 }
0x6804   :  { %v7415_v51 = vsel %vm7412_vm4, %v7414_v0, %v7410_v61  ;;  %v8718_v60 = vpop.eup %8717 }
0x6805   :  { %v7448_v17 = vmul.f32 %v8718_v60, %v7446_v11  ;;  %vm7453_vm5 = vweird.f32 %v8718_v60 }
0x6806   :  { %vm7454_vm8 = vmor %vm7452_vm6, %vm7453_vm5 }
0x6807   :  { %v7449_v20 = vsub.f32 1.0, %v7448_v17 }
0x6809   :  { %v7450_v63 = vmul.f32 %v8718_v60, %v7449_v20 }
0x680b   :  { %v7451_v18 = vadd.f32 %v8718_v60, %v7450_v63 }
0x680d   :  { %v7455_v4 = vsel %vm7454_vm8, %v8718_v60, %v7451_v18 }
0x680e   :  { %v7460_v8 = vsel %vm7457_vm9, %v7459_v47, %v7455_v4 }
0x680f   :  { %v7537_v34 = vmul.f32 %v7535_v33, %v7460_v8 }
0x684b   :  { %v7540_v21 = vpop.permute.xlu2 %7539 }
0x684c   :  { %v7542_v1 = vmul.f32 %v7540_v21, %v7415_v51 }
0x684e   :  { %7544 = vrot.lane.b32.xlu1 %v7542_v1, %s8815_s10 }
0x6853   :  { %v7512_v39 = vpop.permute.xlu2 %7511 }
0x6854   :  { %v7514_v6 = vadd.f32 %v7512_v39, %v9953_v55 }
0x6856   :  { %v8078_v16 = vmul.f32 -1.442695, %v7514_v6 }
0x68c0   :  { %v7545_v13 = vpop.permute.xlu1 %7544 }
0x68c1   :  { %v10128_v59 = vadd.f32 %v7545_v13, %v7537_v34 }
0x68c3   :  { %8719 = vtanh.f32 %v10128_v59  ;;  %v7721_v39 = vrot.slane %v10128_v59, 7 }
0x68c4   :  { %8721 = vpow2.f32 %v8078_v16 }
0x68c9   :  { %v8720_v15 = vpop.eup %8719 }
0x68ca   :  { %7550 = vrot.lane.b32.xlu0 %v8720_v15, %s8814_s27  ;;  %v8722_v25 = vpop.eup %8721 }
0x68cb   :  { %v7518_v22 = vadd.f32 1.0, %v8722_v25 }
0x68cd   :  { %8723 = vrcp.f32 %v7518_v22  ;;  %v7530_v62 = vand.u32 2147483648, %v7518_v22  ;;  %vm7524_vm0 = vweird.f32 %v7518_v22  ;;  %v7528_v19 = vand.u32 2147483647, %v7518_v22 }
0x68cf   :  { %v7531_v9 = vor.u32 1.1754944e-38, %v7530_v62  ;;  %vm7529_vm12 = vcmp.eq.f32.partialorder %v7528_v19, 8.507059e+37 }
0x68d3   :  { %v8724_v14 = vpop.eup %8723 }
0x68d4   :  { %v7520_v24 = vmul.f32 %v8724_v14, %v7518_v22  ;;  %vm7525_vm14 = vweird.f32 %v8724_v14 }
0x68d5   :  { %vm7526_vm10 = vmor %vm7524_vm0, %vm7525_vm14 }
0x68d6   :  { %v7521_v29 = vsub.f32 1.0, %v7520_v24 }
0x68d8   :  { %v7522_v38 = vmul.f32 %v8724_v14, %v7521_v29 }
0x68da   :  { %v7523_v30 = vadd.f32 %v8724_v14, %v7522_v38 }
0x68dc   :  { %v7527_v27 = vsel %vm7526_vm10, %v8724_v14, %v7523_v30 }
0x68dd   :  { %v7532_v32 = vsel %vm7529_vm12, %v7531_v9, %v7527_v27 }
0x693c   :  { %v7551_v3 = vpop.permute.xlu0 %7550 }
0x693d   :  { %v7553_v42 = vmul.f32 %v7551_v3, %v7532_v32 }
0x693f   :  { %v7555_v35 = vrot.slane %v7553_v42, 6  ;;  %v10135_v58 = vsel %vm1632_vm3, %v10112_v40, %v7553_v42 }
0x6941   :  { %7556 = vrot.lane.b32.xlu1 %v7555_v35, %s8818_s13 }
0x69b3   :  { %v7557_v43 = vpop.permute.xlu1 %7556 }
0x69b4   :  { %8079 = vmatmul.msk.f32.vlgmr.msra.gmra.mxu1 %vm112_vm1, %v7557_v43  ;;  %8081 = vmatmul.msk.f32.vlgmr.msrb.gmra.mxu2 %vm112_vm1, %v7557_v43 }
0x69b5   :  { %8083 = vmatmul.msk.f32.vlgmr.msrb.gmra.mxu3 %vm112_vm1, %v7557_v43  ;;  %8084 = vmatmul.msk.f32.vlgmr.msrb.gmra.mxu0 %vm112_vm1, %v7557_v43 }
0x6a31   :  { %v7577_v5 = vpop.f32.mrf.mxu1 }
0x6a32   :  { %v7692_v7 = vpop.f32.mrf.mxu0  ;;  %v7581_v49 = vrot.slane %v7577_v5, 1 }
0x6a33   :  { %v7696_v31 = vrot.slane %v7692_v7, 1 }
0x6a34   :  { %v7583_v44 = vadd.f32 %v7581_v49, %v9953_v55 }
0x6a36   :  { %v8080_v57 = vmul.f32 -1.442695, %v7583_v44 }
0x6a37   :  { %v7620_v52 = vpop.f32.mrf.mxu2 }
0x6a38   :  { %v7624_v37 = vrot.slane %v7620_v52, 1  ;;  %v7665_v23 = vpop.f32.mrf.mxu3 }
0x6a39   :  { %v7669_v45 = vrot.slane %v7665_v23, 1 }
0x6a3a   :  { %7625 = vrot.lane.b32.xlu1 %v7624_v37, %s8815_s10 }
0x6a3b   :  { %7670 = vrot.lane.b32.xlu2 %v7669_v45, %s8814_s27 }
0x6a95   :  { %v7671_v40 = vpop.permute.xlu2 %7670 }
0x6a96   :  { %v7673_v53 = vadd.f32 %v7671_v40, %v9953_v55 }
0x6a98   :  { %8725 = vtanh.f32 %v7673_v53 }
0x6a99   :  { %8727 = vpow2.f32 %v8080_v57 }
0x6a9e   :  { %v8726_v46 = vpop.eup %8725 }
0x6a9f   :  { %7725 = vrot.lane.b32.xlu0 %v8726_v46, %s8816_s11  ;;  %v8728_v50 = vpop.eup %8727 }
0x6aa0   :  { %v7587_v36 = vadd.f32 1.0, %v8728_v50 }
0x6aa2   :  { %8729 = vrcp.f32 %v7587_v36  ;;  %v7599_v21 = vand.u32 2147483648, %v7587_v36  ;;  %vm7593_vm11 = vweird.f32 %v7587_v36  ;;  %v7597_v51 = vand.u32 2147483647, %v7587_v36 }
0x6aa4   :  { %v7600_v2 = vor.u32 1.1754944e-38, %v7599_v21  ;;  %vm7598_vm13 = vcmp.eq.f32.partialorder %v7597_v51, 8.507059e+37 }
0x6aa7   :  { %7697 = vrot.lane.b32.xlu0 %v7696_v31, %s8817_s4 }
0x6aa8   :  { %v8730_v12 = vpop.eup %8729 }
0x6aa9   :  { %v7589_v48 = vmul.f32 %v8730_v12, %v7587_v36  ;;  %vm7594_vm3 = vweird.f32 %v8730_v12 }
0x6aaa   :  { %vm7595_vm15 = vmor %vm7593_vm11, %vm7594_vm3 }
0x6aab   :  { %v7590_v54 = vsub.f32 1.0, %v7589_v48 }
0x6aac   :  { %v7626_v11 = vpop.permute.xlu1 %7625 }
0x6aad   :  { %v7591_v61 = vmul.f32 %v8730_v12, %v7590_v54  ;;  %v7628_v60 = vadd.f32 %v7626_v11, %v9953_v55 }
0x6aaf   :  { %v7592_v0 = vadd.f32 %v8730_v12, %v7591_v61  ;;  %v8082_v17 = vmul.f32 -1.442695, %v7628_v60 }
0x6ab1   :  { %v7596_v1 = vsel %vm7595_vm15, %v8730_v12, %v7592_v0  ;;  %8731 = vpow2.f32 %v8082_v17 }
0x6ab2   :  { %v7601_v56 = vsel %vm7598_vm13, %v7600_v2, %v7596_v1 }
0x6ab7   :  { %v8732_v20 = vpop.eup %8731 }
0x6ab8   :  { %v7632_v63 = vadd.f32 1.0, %v8732_v20 }
0x6aba   :  { %8733 = vrcp.f32 %v7632_v63  ;;  %v7644_v8 = vand.u32 2147483648, %v7632_v63  ;;  %vm7638_vm4 = vweird.f32 %v7632_v63  ;;  %v7642_v33 = vand.u32 2147483647, %v7632_v63 }
0x6abc   :  { %v7645_v13 = vor.u32 1.1754944e-38, %v7644_v8  ;;  %vm7643_vm6 = vcmp.eq.f32.partialorder %v7642_v33, 8.507059e+37 }
0x6ac0   :  { %v8734_v18 = vpop.eup %8733 }
0x6ac1   :  { %v7634_v26 = vmul.f32 %v8734_v18, %v7632_v63  ;;  %vm7639_vm2 = vweird.f32 %v8734_v18 }
0x6ac2   :  { %vm7640_vm5 = vmor %vm7638_vm4, %vm7639_vm2 }
0x6ac3   :  { %v7635_v28 = vsub.f32 1.0, %v7634_v26 }
0x6ac5   :  { %v7636_v4 = vmul.f32 %v8734_v18, %v7635_v28 }
0x6ac7   :  { %v7637_v47 = vadd.f32 %v8734_v18, %v7636_v4 }
0x6ac9   :  { %v7641_v34 = vsel %vm7640_vm5, %v8734_v18, %v7637_v47 }
0x6aca   :  { %v7646_v15 = vsel %vm7643_vm6, %v7645_v13, %v7641_v34 }
0x6acb   :  { %v7723_v6 = vmul.f32 %v7721_v39, %v7646_v15 }
0x6b11   :  { %v7726_v41 = vpop.permute.xlu0 %7725 }
0x6b12   :  { %v7728_v10 = vmul.f32 %v7726_v41, %v7601_v56 }
0x6b14   :  { %7730 = vrot.lane.b32.xlu2 %v7728_v10, %s8815_s10 }
0x6b19   :  { %v7698_v14 = vpop.permute.xlu0 %7697 }
0x6b1a   :  { %v7700_v24 = vadd.f32 %v7698_v14, %v9953_v55 }
0x6b1c   :  { %v8085_v29 = vmul.f32 -1.442695, %v7700_v24 }
0x6b6e   :  { %v7731_v16 = vpop.permute.xlu2 %7730 }
0x6b6f   :  { %v7733_v25 = vadd.f32 %v7731_v16, %v7723_v6 }
0x6b71   :  { %8735 = vtanh.f32 %v7733_v25 }
0x6b72   :  { %8737 = vpow2.f32 %v8085_v29 }
0x6b77   :  { %v8736_v22 = vpop.eup %8735 }
0x6b78   :  { %7736 = vrot.lane.b32.xlu1 %v8736_v22, %s8814_s27  ;;  %v8738_v38 = vpop.eup %8737  ;;  %s7757_s27 = sshll.u32 %s8819_s6, 4  ;;  %s7758_s27 = int_to_ptr.vmem [resolvable:$true] %s7757_s27 }
0x6b79   :  { %v7704_v30 = vadd.f32 1.0, %v8738_v38 }
0x6b7b   :  { %8739 = vrcp.f32 %v7704_v30  ;;  %v7716_v32 = vand.u32 2147483648, %v7704_v30  ;;  %vm7710_vm9 = vweird.f32 %v7704_v30  ;;  %v7714_v3 = vand.u32 2147483647, %v7704_v30 }
0x6b7d   :  { %v7717_v35 = vor.u32 1.1754944e-38, %v7716_v32  ;;  %vm7715_vm0 = vcmp.eq.f32.partialorder %v7714_v3, 8.507059e+37 }
0x6b81   :  { %v8740_v62 = vpop.eup %8739 }
0x6b82   :  { %v7706_v19 = vmul.f32 %v8740_v62, %v7704_v30  ;;  %vm7711_vm8 = vweird.f32 %v8740_v62 }
0x6b83   :  { %vm7712_vm14 = vmor %vm7710_vm9, %vm7711_vm8 }
0x6b84   :  { %v7707_v27 = vsub.f32 1.0, %v7706_v19 }
0x6b86   :  { %v7708_v9 = vmul.f32 %v8740_v62, %v7707_v27 }
0x6b88   :  { %v7709_v59 = vadd.f32 %v8740_v62, %v7708_v9 }
0x6b8a   :  { %v7713_v42 = vsel %vm7712_vm14, %v8740_v62, %v7709_v59 }
0x6b8b   :  { %v7718_v43 = vsel %vm7715_vm0, %v7717_v35, %v7713_v42 }
0x6bea   :  { %v7737_v55 = vpop.permute.xlu1 %7736 }
0x6beb   :  { %v7739_v52 = vmul.f32 %v7737_v55, %v7718_v43 }
0x6bed   :  { %v7746_v37 = vsel %vm1634_vm7, %v10135_v58, %v7739_v52 }
0x6bee   :  { %7748 = vrot.lane.b32.xlu2 %v7746_v37, %s8818_s13 }
0x6c48   :  { %v7749_v23 = vpop.permute.xlu2 %7748 }
0x6c49   :  { %7752 = vst.msk [vmem:[#allocation5 + $0x20] sm:$0xff] %vm112_vm1, %v7749_v23 }
0x6c4a   :  { %7765 = dma.vmem_to_hbm [thread:$0]  %s7758_s27, 640, %s7760_s8, [#allocation4], %s8820_s2, %s8820_s2, %s8815_s10  }
0x6c4b   :  { %8811 = dma.done.wait [#allocation4], 640  }
0x6c4c   :  { %8812 = vsyncadd [#allocation4], 4294966656 }
0x6c4d   :  { %7770 = vsyncpa [#allocation3], 1 }
0x6c4e   :  { %7771 = vsyncpa [#allocation4], 1 }

</bundles_post_ra>
